<compile_context>
chip_gen: v5e
topology: v5e:2x2
jax: 0.10.0
libtpu: 0.0.40
codegen_flags: <defaults>
</compile_context>

<pallas_src>
import jax
import jax.numpy as jnp
from jax.experimental import pallas as pl
from jax.experimental.pallas import tpu as pltpu

Z_DIM = 32
H1, H2, H3 = 256, 512, 1024
OUT = 28 * 28  # 784


def _round_up(x, m):
    return ((x + m - 1) // m) * m


def _leaky_relu_bf16(x_f32, slope=0.2):
    # f32 accum+bias -> bf16, LeakyReLU in bf16; the result feeds the next
    # MXU input directly (it would be rounded to bf16 there anyway).
    x = x_f32.astype(jnp.bfloat16)
    return jnp.where(x > 0, x, x * slope)


def generator_kernel(z_ref,
                     w1_ref, b1_ref,
                     w2_ref, b2_ref,
                     w3_ref, b3_ref,
                     w4_ref, b4_ref,
                     out_ref):
    # One batch tile per grid step.  Weights/biases are VMEM-resident
    # (constant index_map); bf16 MXU inputs, f32 accumulation.
    x = z_ref[...].astype(jnp.bfloat16)

    h = _leaky_relu_bf16(
        jnp.dot(x, w1_ref[...], preferred_element_type=jnp.float32) + b1_ref[...])
    h = _leaky_relu_bf16(
        jnp.dot(h, w2_ref[...], preferred_element_type=jnp.float32) + b2_ref[...])
    h = _leaky_relu_bf16(
        jnp.dot(h, w3_ref[...], preferred_element_type=jnp.float32) + b3_ref[...])

    y = jnp.dot(h, w4_ref[...], preferred_element_type=jnp.float32) + b4_ref[...]
    out_ref[...] = jnp.tanh(y).astype(out_ref.dtype)


def make_generator_params(key, z_dim=Z_DIM, dtype=jnp.float32):
    """Deterministic init mimicking PyTorch nn.Linear default:
    U(-1/sqrt(fan_in), 1/sqrt(fan_in)) for both weight and bias."""
    dims = [(z_dim, H1), (H1, H2), (H2, H3), (H3, OUT)]
    params = []
    for fan_in, fan_out in dims:
        key, kw, kb = jax.random.split(key, 3)
        bound = 1.0 / float(fan_in) ** 0.5
        w = jax.random.uniform(kw, (fan_in, fan_out), dtype, -bound, bound)
        b = jax.random.uniform(kb, (1, fan_out), dtype, -bound, bound)
        params.append((w, b))
    return params


def prepare_kernel_params(params):
    """bf16 weights (halves weight HBM traffic, bf16 MXU path); f32 biases."""
    return [(w.astype(jnp.bfloat16), b.astype(jnp.float32)) for (w, b) in params]


def _pick_batch_tile(batch, max_tile):
    b8 = _round_up(batch, 8)
    tb = min(max_tile, b8)
    num_tiles = pl.cdiv(b8, tb)
    # Prefer an even tile count when the batch spans several tiles so the
    # "parallel" batch axis puts balanced work on both TensorCores (v7x).
    if num_tiles > 1 and num_tiles % 2 == 1:
        tb = _round_up(pl.cdiv(b8, num_tiles + 1), 8)
        num_tiles = pl.cdiv(b8, tb)
    return tb, num_tiles


def _vmem_limit_bytes(tb):
    bf16, f32 = 2, 4
    w = (Z_DIM * H1 + H1 * H2 + H2 * H3 + H3 * OUT) * bf16      # single-buffered
    b = (H1 + H2 + H3 + OUT) * f32
    io = 2 * tb * Z_DIM * f32 + 2 * tb * OUT * f32              # double-buffered z/out
    act = tb * (H1 + H2 + H3 + OUT) * (f32 + bf16)              # intermediates
    est = w + b + io + act
    return min(48 << 20, max(32 << 20, 2 * est))                # cap for v7x (64 MiB/TC)


def generator_forward(z, kernel_params, max_tile=512):
    """z: (B, Z_DIM) f32.  kernel_params: output of prepare_kernel_params."""
    batch = z.shape[0]
    (w1, b1), (w2, b2), (w3, b3), (w4, b4) = kernel_params

    tb, num_tiles = _pick_batch_tile(batch, max_tile)
    b_pad = tb * num_tiles
    if b_pad != batch:
        z = jnp.pad(z, ((0, b_pad - batch), (0, 0)))

    weights = (w1, b1, w2, b2, w3, b3, w4, b4)
    semantics = ("parallel",) if num_tiles > 1 else ("arbitrary",)
    vmem_limit = _vmem_limit_bytes(tb)

    def build(single_buffer_weights):
        def wspec(arr):
            # Constant index_map -> weights stay VMEM-resident across steps.
            if single_buffer_weights:
                return pl.BlockSpec(arr.shape, lambda i: (0, 0),
                                    pipeline_mode=pl.Buffered(1))
            return pl.BlockSpec(arr.shape, lambda i: (0, 0))

        in_specs = [pl.BlockSpec((tb, Z_DIM), lambda i: (i, 0))]  # z batch tile
        in_specs += [wspec(a) for a in weights]

        return pl.pallas_call(
            generator_kernel,
            out_shape=jax.ShapeDtypeStruct((b_pad, OUT), jnp.float32),
            grid=(num_tiles,),
            in_specs=in_specs,
            out_specs=pl.BlockSpec((tb, OUT), lambda i: (i, 0)),
            compiler_params=pltpu.CompilerParams(
                dimension_semantics=semantics,
                vmem_limit_bytes=vmem_limit,
            ),
        )

    try:
        flat = jax.block_until_ready(build(True)(z, *weights))
    except Exception:
        # Fallback: identical kernel, default (double-buffered) weight blocks.
        flat = build(False)(z, *weights)

    if b_pad != batch:
        flat = flat[:batch]
    # Match `.view(-1, 1, 28, 28)` — pure metadata reshape, no extra HBM pass.
    return flat.reshape(-1, 1, 28, 28)


def generator_forward_ref(z, kernel_params):
    """Pure-JAX reference with identical bf16/f32 numerics for checking."""
    (w1, b1), (w2, b2), (w3, b3), (w4, b4) = kernel_params

    def lin(x_bf16, w, b):
        return jnp.dot(x_bf16, w, preferred_element_type=jnp.float32) + b

    h = _leaky_relu_bf16(lin(z.astype(jnp.bfloat16), w1, b1))
    h = _leaky_relu_bf16(lin(h, w2, b2))
    h = _leaky_relu_bf16(lin(h, w3, b3))
    y = jnp.tanh(lin(h, w4, b4))
    return y.reshape(-1, 1, 28, 28)


if __name__ == "__main__":
    key = jax.random.PRNGKey(0)
    key, zkey = jax.random.split(key)

    batch = 2
    z = jax.random.normal(zkey, (batch, Z_DIM), jnp.float32)

    params_f32 = make_generator_params(key)
    kparams = prepare_kernel_params(params_f32)

    out = generator_forward(z, kparams)
    out = jax.block_until_ready(out)

    assert out.shape == (batch, 1, 28, 28), out.shape

    ref = generator_forward_ref(z, kparams)
    assert jnp.allclose(out, ref, atol=2e-3, rtol=2e-3), \
        float(jnp.max(jnp.abs(out - ref)))

    print("KERNEL_OK")
</pallas_src>

<mosaic_0001>
module attributes {stable_mosaic.version = 11 : i64} {
  func.func @generator_kernel(%arg0: i32, %arg1: memref<8x32xf32, #tpu.memory_space<vmem>>, %arg2: memref<32x256xbf16, #tpu.memory_space<vmem>>, %arg3: memref<1x256xf32, #tpu.memory_space<vmem>>, %arg4: memref<256x512xbf16, #tpu.memory_space<vmem>>, %arg5: memref<1x512xf32, #tpu.memory_space<vmem>>, %arg6: memref<512x1024xbf16, #tpu.memory_space<vmem>>, %arg7: memref<1x1024xf32, #tpu.memory_space<vmem>>, %arg8: memref<1024x784xbf16, #tpu.memory_space<vmem>>, %arg9: memref<1x784xf32, #tpu.memory_space<vmem>>, %arg10: memref<8x784xf32, #tpu.memory_space<vmem>>) attributes {dimension_semantics = [#tpu.dimension_semantics<arbitrary>], iteration_bounds = array<i64: 1>, scalar_prefetch = 0 : i64, scratch_operands = 0 : i64, tpu.core_type = #tpu.core_type<tc>, window_params = [{transform_indices = @transform_0, window_bounds = array<i64: 8, 32>}, {pipeline_mode = #tpu.pipeline_mode<synchronous>, transform_indices = @transform_1, window_bounds = array<i64: 32, 256>}, {pipeline_mode = #tpu.pipeline_mode<synchronous>, transform_indices = @transform_2, window_bounds = array<i64: 1, 256>}, {pipeline_mode = #tpu.pipeline_mode<synchronous>, transform_indices = @transform_3, window_bounds = array<i64: 256, 512>}, {pipeline_mode = #tpu.pipeline_mode<synchronous>, transform_indices = @transform_4, window_bounds = array<i64: 1, 512>}, {pipeline_mode = #tpu.pipeline_mode<synchronous>, transform_indices = @transform_5, window_bounds = array<i64: 512, 1024>}, {pipeline_mode = #tpu.pipeline_mode<synchronous>, transform_indices = @transform_6, window_bounds = array<i64: 1, 1024>}, {pipeline_mode = #tpu.pipeline_mode<synchronous>, transform_indices = @transform_7, window_bounds = array<i64: 1024, 784>}, {pipeline_mode = #tpu.pipeline_mode<synchronous>, transform_indices = @transform_8, window_bounds = array<i64: 1, 784>}, {transform_indices = @transform_9, window_bounds = array<i64: 8, 784>}]} {
    %c0 = arith.constant 0 : index
    %c0_0 = arith.constant 0 : index
    %0 = vector.load %arg1[%c0, %c0_0] : memref<8x32xf32, #tpu.memory_space<vmem>>, vector<8x32xf32>
    %1 = arith.truncf %0 : vector<8x32xf32> to vector<8x32xbf16>
    %c0_1 = arith.constant 0 : index
    %c0_2 = arith.constant 0 : index
    %2 = vector.load %arg2[%c0_1, %c0_2] : memref<32x256xbf16, #tpu.memory_space<vmem>>, vector<32x256xbf16>
    %cst = arith.constant dense<0.000000e+00> : vector<8x256xf32>
    %3 = tpu.matmul %1, %2, %cst {dimension_numbers = #tpu.dot_dimension_numbers<[1], [0], [0], [1], [0, 0, 1, 1], [], []>} : vector<8x32xbf16>, vector<32x256xbf16>, vector<8x256xf32> -> vector<8x256xf32>
    %c0_3 = arith.constant 0 : index
    %c0_4 = arith.constant 0 : index
    %4 = vector.load %arg3[%c0_3, %c0_4] : memref<1x256xf32, #tpu.memory_space<vmem>>, vector<1x256xf32>
    %5 = vector.broadcast %4 : vector<1x256xf32> to vector<8x256xf32>
    %6 = arith.addf %3, %5 : vector<8x256xf32>
    %7 = arith.truncf %6 : vector<8x256xf32> to vector<8x256xbf16>
    %cst_5 = arith.constant 0.000000e+00 : bf16
    %8 = vector.broadcast %cst_5 : bf16 to vector<8x256xbf16>
    %9 = arith.cmpf ogt, %7, %8 : vector<8x256xbf16>
    %cst_6 = arith.constant 2.001950e-01 : bf16
    %10 = vector.broadcast %cst_6 : bf16 to vector<8x256xbf16>
    %11 = arith.mulf %7, %10 : vector<8x256xbf16>
    %12 = arith.select %9, %7, %11 : vector<8x256xi1>, vector<8x256xbf16>
    %c0_7 = arith.constant 0 : index
    %c0_8 = arith.constant 0 : index
    %13 = vector.load %arg4[%c0_7, %c0_8] : memref<256x512xbf16, #tpu.memory_space<vmem>>, vector<256x512xbf16>
    %cst_9 = arith.constant dense<0.000000e+00> : vector<8x512xf32>
    %14 = tpu.matmul %12, %13, %cst_9 {dimension_numbers = #tpu.dot_dimension_numbers<[1], [0], [0], [1], [0, 0, 1, 1], [], []>} : vector<8x256xbf16>, vector<256x512xbf16>, vector<8x512xf32> -> vector<8x512xf32>
    %c0_10 = arith.constant 0 : index
    %c0_11 = arith.constant 0 : index
    %15 = vector.load %arg5[%c0_10, %c0_11] : memref<1x512xf32, #tpu.memory_space<vmem>>, vector<1x512xf32>
    %16 = vector.broadcast %15 : vector<1x512xf32> to vector<8x512xf32>
    %17 = arith.addf %14, %16 : vector<8x512xf32>
    %18 = arith.truncf %17 : vector<8x512xf32> to vector<8x512xbf16>
    %cst_12 = arith.constant 0.000000e+00 : bf16
    %19 = vector.broadcast %cst_12 : bf16 to vector<8x512xbf16>
    %20 = arith.cmpf ogt, %18, %19 : vector<8x512xbf16>
    %cst_13 = arith.constant 2.001950e-01 : bf16
    %21 = vector.broadcast %cst_13 : bf16 to vector<8x512xbf16>
    %22 = arith.mulf %18, %21 : vector<8x512xbf16>
    %23 = arith.select %20, %18, %22 : vector<8x512xi1>, vector<8x512xbf16>
    %c0_14 = arith.constant 0 : index
    %c0_15 = arith.constant 0 : index
    %24 = vector.load %arg6[%c0_14, %c0_15] : memref<512x1024xbf16, #tpu.memory_space<vmem>>, vector<512x1024xbf16>
    %cst_16 = arith.constant dense<0.000000e+00> : vector<8x1024xf32>
    %25 = tpu.matmul %23, %24, %cst_16 {dimension_numbers = #tpu.dot_dimension_numbers<[1], [0], [0], [1], [0, 0, 1, 1], [], []>} : vector<8x512xbf16>, vector<512x1024xbf16>, vector<8x1024xf32> -> vector<8x1024xf32>
    %c0_17 = arith.constant 0 : index
    %c0_18 = arith.constant 0 : index
    %26 = vector.load %arg7[%c0_17, %c0_18] : memref<1x1024xf32, #tpu.memory_space<vmem>>, vector<1x1024xf32>
    %27 = vector.broadcast %26 : vector<1x1024xf32> to vector<8x1024xf32>
    %28 = arith.addf %25, %27 : vector<8x1024xf32>
    %29 = arith.truncf %28 : vector<8x1024xf32> to vector<8x1024xbf16>
    %cst_19 = arith.constant 0.000000e+00 : bf16
    %30 = vector.broadcast %cst_19 : bf16 to vector<8x1024xbf16>
    %31 = arith.cmpf ogt, %29, %30 : vector<8x1024xbf16>
    %cst_20 = arith.constant 2.001950e-01 : bf16
    %32 = vector.broadcast %cst_20 : bf16 to vector<8x1024xbf16>
    %33 = arith.mulf %29, %32 : vector<8x1024xbf16>
    %34 = arith.select %31, %29, %33 : vector<8x1024xi1>, vector<8x1024xbf16>
    %c0_21 = arith.constant 0 : index
    %c0_22 = arith.constant 0 : index
    %35 = vector.load %arg8[%c0_21, %c0_22] : memref<1024x784xbf16, #tpu.memory_space<vmem>>, vector<1024x784xbf16>
    %cst_23 = arith.constant dense<0.000000e+00> : vector<8x784xf32>
    %36 = tpu.matmul %34, %35, %cst_23 {dimension_numbers = #tpu.dot_dimension_numbers<[1], [0], [0], [1], [0, 0, 1, 1], [], []>} : vector<8x1024xbf16>, vector<1024x784xbf16>, vector<8x784xf32> -> vector<8x784xf32>
    %c0_24 = arith.constant 0 : index
    %c0_25 = arith.constant 0 : index
    %37 = vector.load %arg9[%c0_24, %c0_25] : memref<1x784xf32, #tpu.memory_space<vmem>>, vector<1x784xf32>
    %38 = vector.broadcast %37 : vector<1x784xf32> to vector<8x784xf32>
    %39 = arith.addf %36, %38 : vector<8x784xf32>
    %40 = math.tanh %39 : vector<8x784xf32>
    %c0_26 = arith.constant 0 : index
    %c0_27 = arith.constant 0 : index
    %41 = vector.load %arg10[%c0_26, %c0_27] : memref<8x784xf32, #tpu.memory_space<vmem>>, vector<8x784xf32>
    tpu.vector_store %arg10[%c0_26, %c0_27], %40 {strides = array<i32>} : memref<8x784xf32, #tpu.memory_space<vmem>>, vector<8x784xf32>,
    return
  }
  func.func @transform_0(%arg0: i32) -> (i32, i32) {
    %c0_i32 = arith.constant 0 : i32
    %c0_i32_0 = arith.constant 0 : i32
    return %arg0, %c0_i32 : i32, i32
  }
  func.func @transform_1(%arg0: i32) -> (i32, i32) {
    %c0_i32 = arith.constant 0 : i32
    %c0_i32_0 = arith.constant 0 : i32
    %c0_i32_1 = arith.constant 0 : i32
    return %c0_i32, %c0_i32_0 : i32, i32
  }
  func.func @transform_2(%arg0: i32) -> (i32, i32) {
    %c0_i32 = arith.constant 0 : i32
    %c0_i32_0 = arith.constant 0 : i32
    %c0_i32_1 = arith.constant 0 : i32
    return %c0_i32, %c0_i32_0 : i32, i32
  }
  func.func @transform_3(%arg0: i32) -> (i32, i32) {
    %c0_i32 = arith.constant 0 : i32
    %c0_i32_0 = arith.constant 0 : i32
    %c0_i32_1 = arith.constant 0 : i32
    return %c0_i32, %c0_i32_0 : i32, i32
  }
  func.func @transform_4(%arg0: i32) -> (i32, i32) {
    %c0_i32 = arith.constant 0 : i32
    %c0_i32_0 = arith.constant 0 : i32
    %c0_i32_1 = arith.constant 0 : i32
    return %c0_i32, %c0_i32_0 : i32, i32
  }
  func.func @transform_5(%arg0: i32) -> (i32, i32) {
    %c0_i32 = arith.constant 0 : i32
    %c0_i32_0 = arith.constant 0 : i32
    %c0_i32_1 = arith.constant 0 : i32
    return %c0_i32, %c0_i32_0 : i32, i32
  }
  func.func @transform_6(%arg0: i32) -> (i32, i32) {
    %c0_i32 = arith.constant 0 : i32
    %c0_i32_0 = arith.constant 0 : i32
    %c0_i32_1 = arith.constant 0 : i32
    return %c0_i32, %c0_i32_0 : i32, i32
  }
  func.func @transform_7(%arg0: i32) -> (i32, i32) {
    %c0_i32 = arith.constant 0 : i32
    %c0_i32_0 = arith.constant 0 : i32
    %c0_i32_1 = arith.constant 0 : i32
    return %c0_i32, %c0_i32_0 : i32, i32
  }
  func.func @transform_8(%arg0: i32) -> (i32, i32) {
    %c0_i32 = arith.constant 0 : i32
    %c0_i32_0 = arith.constant 0 : i32
    %c0_i32_1 = arith.constant 0 : i32
    return %c0_i32, %c0_i32_0 : i32, i32
  }
  func.func @transform_9(%arg0: i32) -> (i32, i32) {
    %c0_i32 = arith.constant 0 : i32
    %c0_i32_0 = arith.constant 0 : i32
    return %arg0, %c0_i32 : i32, i32
  }
}

module attributes {stable_mosaic.version = 11 : i64} {
  func.func @generator_kernel(%arg0: i32, %arg1: memref<8x32xf32, #tpu.memory_space<vmem>>, %arg2: memref<32x256xbf16, #tpu.memory_space<vmem>>, %arg3: memref<1x256xf32, #tpu.memory_space<vmem>>, %arg4: memref<256x512xbf16, #tpu.memory_space<vmem>>, %arg5: memref<1x512xf32, #tpu.memory_space<vmem>>, %arg6: memref<512x1024xbf16, #tpu.memory_space<vmem>>, %arg7: memref<1x1024xf32, #tpu.memory_space<vmem>>, %arg8: memref<1024x784xbf16, #tpu.memory_space<vmem>>, %arg9: memref<1x784xf32, #tpu.memory_space<vmem>>, %arg10: memref<8x784xf32, #tpu.memory_space<vmem>>) attributes {dimension_semantics = [#tpu.dimension_semantics<arbitrary>], iteration_bounds = array<i64: 1>, scalar_prefetch = 0 : i64, scratch_operands = 0 : i64, tpu.core_type = #tpu.core_type<tc>, window_params = [{transform_indices = @transform_0, window_bounds = array<i64: 8, 32>}, {pipeline_mode = #tpu.pipeline_mode<synchronous>, transform_indices = @transform_1, window_bounds = array<i64: 32, 256>}, {pipeline_mode = #tpu.pipeline_mode<synchronous>, transform_indices = @transform_2, window_bounds = array<i64: 1, 256>}, {pipeline_mode = #tpu.pipeline_mode<synchronous>, transform_indices = @transform_3, window_bounds = array<i64: 256, 512>}, {pipeline_mode = #tpu.pipeline_mode<synchronous>, transform_indices = @transform_4, window_bounds = array<i64: 1, 512>}, {pipeline_mode = #tpu.pipeline_mode<synchronous>, transform_indices = @transform_5, window_bounds = array<i64: 512, 1024>}, {pipeline_mode = #tpu.pipeline_mode<synchronous>, transform_indices = @transform_6, window_bounds = array<i64: 1, 1024>}, {pipeline_mode = #tpu.pipeline_mode<synchronous>, transform_indices = @transform_7, window_bounds = array<i64: 1024, 784>}, {pipeline_mode = #tpu.pipeline_mode<synchronous>, transform_indices = @transform_8, window_bounds = array<i64: 1, 784>}, {transform_indices = @transform_9, window_bounds = array<i64: 8, 784>}]} {
    %c0 = arith.constant 0 : index
    %c0_0 = arith.constant 0 : index
    %0 = vector.load %arg1[%c0, %c0_0] : memref<8x32xf32, #tpu.memory_space<vmem>>, vector<8x32xf32>
    %1 = arith.truncf %0 : vector<8x32xf32> to vector<8x32xbf16>
    %c0_1 = arith.constant 0 : index
    %c0_2 = arith.constant 0 : index
    %2 = vector.load %arg2[%c0_1, %c0_2] : memref<32x256xbf16, #tpu.memory_space<vmem>>, vector<32x256xbf16>
    %cst = arith.constant dense<0.000000e+00> : vector<8x256xf32>
    %3 = tpu.matmul %1, %2, %cst {dimension_numbers = #tpu.dot_dimension_numbers<[1], [0], [0], [1], [0, 0, 1, 1], [], []>} : vector<8x32xbf16>, vector<32x256xbf16>, vector<8x256xf32> -> vector<8x256xf32>
    %c0_3 = arith.constant 0 : index
    %c0_4 = arith.constant 0 : index
    %4 = vector.load %arg3[%c0_3, %c0_4] : memref<1x256xf32, #tpu.memory_space<vmem>>, vector<1x256xf32>
    %5 = vector.broadcast %4 : vector<1x256xf32> to vector<8x256xf32>
    %6 = arith.addf %3, %5 : vector<8x256xf32>
    %7 = arith.truncf %6 : vector<8x256xf32> to vector<8x256xbf16>
    %cst_5 = arith.constant 0.000000e+00 : bf16
    %8 = vector.broadcast %cst_5 : bf16 to vector<8x256xbf16>
    %9 = arith.cmpf ogt, %7, %8 : vector<8x256xbf16>
    %cst_6 = arith.constant 2.001950e-01 : bf16
    %10 = vector.broadcast %cst_6 : bf16 to vector<8x256xbf16>
    %11 = arith.mulf %7, %10 : vector<8x256xbf16>
    %12 = arith.select %9, %7, %11 : vector<8x256xi1>, vector<8x256xbf16>
    %c0_7 = arith.constant 0 : index
    %c0_8 = arith.constant 0 : index
    %13 = vector.load %arg4[%c0_7, %c0_8] : memref<256x512xbf16, #tpu.memory_space<vmem>>, vector<256x512xbf16>
    %cst_9 = arith.constant dense<0.000000e+00> : vector<8x512xf32>
    %14 = tpu.matmul %12, %13, %cst_9 {dimension_numbers = #tpu.dot_dimension_numbers<[1], [0], [0], [1], [0, 0, 1, 1], [], []>} : vector<8x256xbf16>, vector<256x512xbf16>, vector<8x512xf32> -> vector<8x512xf32>
    %c0_10 = arith.constant 0 : index
    %c0_11 = arith.constant 0 : index
    %15 = vector.load %arg5[%c0_10, %c0_11] : memref<1x512xf32, #tpu.memory_space<vmem>>, vector<1x512xf32>
    %16 = vector.broadcast %15 : vector<1x512xf32> to vector<8x512xf32>
    %17 = arith.addf %14, %16 : vector<8x512xf32>
    %18 = arith.truncf %17 : vector<8x512xf32> to vector<8x512xbf16>
    %cst_12 = arith.constant 0.000000e+00 : bf16
    %19 = vector.broadcast %cst_12 : bf16 to vector<8x512xbf16>
    %20 = arith.cmpf ogt, %18, %19 : vector<8x512xbf16>
    %cst_13 = arith.constant 2.001950e-01 : bf16
    %21 = vector.broadcast %cst_13 : bf16 to vector<8x512xbf16>
    %22 = arith.mulf %18, %21 : vector<8x512xbf16>
    %23 = arith.select %20, %18, %22 : vector<8x512xi1>, vector<8x512xbf16>
    %c0_14 = arith.constant 0 : index
    %c0_15 = arith.constant 0 : index
    %24 = vector.load %arg6[%c0_14, %c0_15] : memref<512x1024xbf16, #tpu.memory_space<vmem>>, vector<512x1024xbf16>
    %cst_16 = arith.constant dense<0.000000e+00> : vector<8x1024xf32>
    %25 = tpu.matmul %23, %24, %cst_16 {dimension_numbers = #tpu.dot_dimension_numbers<[1], [0], [0], [1], [0, 0, 1, 1], [], []>} : vector<8x512xbf16>, vector<512x1024xbf16>, vector<8x1024xf32> -> vector<8x1024xf32>
    %c0_17 = arith.constant 0 : index
    %c0_18 = arith.constant 0 : index
    %26 = vector.load %arg7[%c0_17, %c0_18] : memref<1x1024xf32, #tpu.memory_space<vmem>>, vector<1x1024xf32>
    %27 = vector.broadcast %26 : vector<1x1024xf32> to vector<8x1024xf32>
    %28 = arith.addf %25, %27 : vector<8x1024xf32>
    %29 = arith.truncf %28 : vector<8x1024xf32> to vector<8x1024xbf16>
    %cst_19 = arith.constant 0.000000e+00 : bf16
    %30 = vector.broadcast %cst_19 : bf16 to vector<8x1024xbf16>
    %31 = arith.cmpf ogt, %29, %30 : vector<8x1024xbf16>
    %cst_20 = arith.constant 2.001950e-01 : bf16
    %32 = vector.broadcast %cst_20 : bf16 to vector<8x1024xbf16>
    %33 = arith.mulf %29, %32 : vector<8x1024xbf16>
    %34 = arith.select %31, %29, %33 : vector<8x1024xi1>, vector<8x1024xbf16>
    %c0_21 = arith.constant 0 : index
    %c0_22 = arith.constant 0 : index
    %35 = vector.load %arg8[%c0_21, %c0_22] : memref<1024x784xbf16, #tpu.memory_space<vmem>>, vector<1024x784xbf16>
    %cst_23 = arith.constant dense<0.000000e+00> : vector<8x784xf32>
    %36 = tpu.matmul %34, %35, %cst_23 {dimension_numbers = #tpu.dot_dimension_numbers<[1], [0], [0], [1], [0, 0, 1, 1], [], []>} : vector<8x1024xbf16>, vector<1024x784xbf16>, vector<8x784xf32> -> vector<8x784xf32>
    %c0_24 = arith.constant 0 : index
    %c0_25 = arith.constant 0 : index
    %37 = vector.load %arg9[%c0_24, %c0_25] : memref<1x784xf32, #tpu.memory_space<vmem>>, vector<1x784xf32>
    %38 = vector.broadcast %37 : vector<1x784xf32> to vector<8x784xf32>
    %39 = arith.addf %36, %38 : vector<8x784xf32>
    %40 = math.tanh %39 : vector<8x784xf32>
    %c0_26 = arith.constant 0 : index
    %c0_27 = arith.constant 0 : index
    %41 = vector.load %arg10[%c0_26, %c0_27] : memref<8x784xf32, #tpu.memory_space<vmem>>, vector<8x784xf32>
    tpu.vector_store %arg10[%c0_26, %c0_27], %40 {strides = array<i32>} : memref<8x784xf32, #tpu.memory_space<vmem>>, vector<8x784xf32>,
    return
  }
  func.func @transform_0(%arg0: i32) -> (i32, i32) {
    %c0_i32 = arith.constant 0 : i32
    %c0_i32_0 = arith.constant 0 : i32
    return %arg0, %c0_i32 : i32, i32
  }
  func.func @transform_1(%arg0: i32) -> (i32, i32) {
    %c0_i32 = arith.constant 0 : i32
    %c0_i32_0 = arith.constant 0 : i32
    %c0_i32_1 = arith.constant 0 : i32
    return %c0_i32, %c0_i32_0 : i32, i32
  }
  func.func @transform_2(%arg0: i32) -> (i32, i32) {
    %c0_i32 = arith.constant 0 : i32
    %c0_i32_0 = arith.constant 0 : i32
    %c0_i32_1 = arith.constant 0 : i32
    return %c0_i32, %c0_i32_0 : i32, i32
  }
  func.func @transform_3(%arg0: i32) -> (i32, i32) {
    %c0_i32 = arith.constant 0 : i32
    %c0_i32_0 = arith.constant 0 : i32
    %c0_i32_1 = arith.constant 0 : i32
    return %c0_i32, %c0_i32_0 : i32, i32
  }
  func.func @transform_4(%arg0: i32) -> (i32, i32) {
    %c0_i32 = arith.constant 0 : i32
    %c0_i32_0 = arith.constant 0 : i32
    %c0_i32_1 = arith.constant 0 : i32
    return %c0_i32, %c0_i32_0 : i32, i32
  }
  func.func @transform_5(%arg0: i32) -> (i32, i32) {
    %c0_i32 = arith.constant 0 : i32
    %c0_i32_0 = arith.constant 0 : i32
    %c0_i32_1 = arith.constant 0 : i32
    return %c0_i32, %c0_i32_0 : i32, i32
  }
  func.func @transform_6(%arg0: i32) -> (i32, i32) {
    %c0_i32 = arith.constant 0 : i32
    %c0_i32_0 = arith.constant 0 : i32
    %c0_i32_1 = arith.constant 0 : i32
    return %c0_i32, %c0_i32_0 : i32, i32
  }
  func.func @transform_7(%arg0: i32) -> (i32, i32) {
    %c0_i32 = arith.constant 0 : i32
    %c0_i32_0 = arith.constant 0 : i32
    %c0_i32_1 = arith.constant 0 : i32
    return %c0_i32, %c0_i32_0 : i32, i32
  }
  func.func @transform_8(%arg0: i32) -> (i32, i32) {
    %c0_i32 = arith.constant 0 : i32
    %c0_i32_0 = arith.constant 0 : i32
    %c0_i32_1 = arith.constant 0 : i32
    return %c0_i32, %c0_i32_0 : i32, i32
  }
  func.func @transform_9(%arg0: i32) -> (i32, i32) {
    %c0_i32 = arith.constant 0 : i32
    %c0_i32_0 = arith.constant 0 : i32
    return %arg0, %c0_i32 : i32, i32
  }
}

</mosaic_0001>

<bundles_post_ra>
// kernel: tpu_custom_call.1
= control target key start
LH: loop header
LB: loop body
LE: loop exit
PB: predicated region body
PF: predicated region fallthrough
CT: control target
= control target key end

     0   :  { %vm66_vm0 = vcmask 261120   ;;  %s15213_s0 = inlined_call_operand.vmem [shape: f32[8,32], index: 0, kind: input, shape index: {}]   ;;  %s15214_s1 = inlined_call_operand.vmem [shape: bf16[32,256], index: 1, kind: input, shape index: {}]   ;;  %s15215_s2 = inlined_call_operand.vmem [shape: f32[1,256], index: 2, kind: input, shape index: {}]   ;;  %s15216_s3 = inlined_call_operand.vmem [shape: bf16[256,512], index: 3, kind: input, shape index: {}]   ;;  %s15217_s4 = inlined_call_operand.vmem [shape: f32[1,512], index: 4, kind: input, shape index: {}]   ;;  %s15218_s5 = inlined_call_operand.vmem [shape: bf16[512,1024], index: 5, kind: input, shape index: {}]   ;;  %s15219_s6 = inlined_call_operand.vmem [shape: f32[1,1024], index: 6, kind: input, shape index: {}]   ;;  %s15220_s7 = inlined_call_operand.vmem [shape: bf16[1024,784], index: 7, kind: input, shape index: {}]   ;;  %s15221_s8 = inlined_call_operand.vmem [shape: f32[1,784], index: 8, kind: input, shape index: {}]   ;;  %s15222_s9 = inlined_call_operand.hbm [shape: f32[8,784], index: 9, kind: output, shape index: {}]  }
   0x1   :  { %v6284_v0 = vld [vmem:[%s15214_s1 + $0x10] sm:$0xf]  ;;  %v9367_v1 = vld [vmem:[%s15214_s1 + $0x14] sm:$0xf0]  ;;  %v9366_v2 = vld [vmem:[%s15214_s1 + $0x14] sm:$0xf] }
   0x2   :  { %v6285_v3 = vor.u32 %v9367_v1, %v6284_v0  ;;  %v6286_v4 = vld [vmem:[%s15214_s1 + $0x18] sm:$0xf0]  ;;  %v6276_v5 = vld [vmem:[%s15214_s1] sm:$0xf]  ;;  %v9365_v6 = vld [vmem:[%s15214_s1 + $0x4] sm:$0xf0] }
   0x3   :  { %v6289_v7 = vor.u32 %v9366_v2, %v6286_v4  ;;  %v9364_v8 = vld [vmem:[%s15214_s1 + $0x4] sm:$0xf]  ;;  %v6278_v9 = vld [vmem:[%s15214_s1 + $0x8] sm:$0xf0]  ;;  %v6277_v11 = vor.u32 %v9365_v6, %v6276_v5  ;;  %v6406_v12 = vld [vmem:[%s15216_s3 + $0xe0] sm:$0xf] }
   0x4   :  { %v34_v10 = vld [vmem:[%s15213_s0] sm:$0xff]  ;;  %76 = vmatpush.bf16.msra.mxu0 %v6285_v3  ;;  %v9398_v13 = vld [vmem:[%s15216_s3 + $0xec] sm:$0xf0]  ;;  %v6281_v15 = vor.u32 %v9364_v8, %v6278_v9  ;;  %v6408_v19 = vld [vmem:[%s15216_s3 + $0xf0] sm:$0xf0] }
   0x5   :  { %v6534_v14 = vld [vmem:[%s15216_s3 + $0x1e0] sm:$0xf]  ;;  %89 = vmatpush.bf16.msra.mxu1 %v6289_v7  ;;  %v6407_v16 = vor.u32 %v9398_v13, %v6406_v12  ;;  %v9430_v17 = vld [vmem:[%s15216_s3 + $0x1ec] sm:$0xf0]  ;;  %v9396_v18 = vld [vmem:[%s15216_s3 + $0xe4] sm:$0xf]  ;;  %v35_v25 = vpack.c.bf16 %v34_v10, %v34_v10 }
   0x6   :  { %v6535_v20 = vor.u32 %v9430_v17, %v6534_v14  ;;  %v6411_v21 = vor.u32 %v9396_v18, %v6408_v19  ;;  %v9428_v22 = vld [vmem:[%s15216_s3 + $0x1e4] sm:$0xf]  ;;  %v6536_v23 = vld [vmem:[%s15216_s3 + $0x1f0] sm:$0xf0]  ;;  %v6390_v24 = vld [vmem:[%s15216_s3 + $0xc0] sm:$0xf] }
   0x7   :  { %507 = vmatpush.bf16.msra.mxu2 %v6407_v16  ;;  %v6539_v26 = vor.u32 %v9428_v22, %v6536_v23  ;;  %v9394_v27 = vld [vmem:[%s15216_s3 + $0xcc] sm:$0xf0]  ;;  %v6518_v28 = vld [vmem:[%s15216_s3 + $0x1c0] sm:$0xf]  ;;  %v9392_v32 = vld [vmem:[%s15216_s3 + $0xc4] sm:$0xf] }
   0x8   :  { %v9426_v29 = vld [vmem:[%s15216_s3 + $0x1cc] sm:$0xf0]  ;;  %77 = vmatpush.bf16.msra.mxu0 %v6277_v11  ;;  %520 = vmatpush.bf16.msra.mxu3 %v6535_v20  ;;  %v6391_v30 = vor.u32 %v9394_v27, %v6390_v24  ;;  %v6392_v33 = vld [vmem:[%s15216_s3 + $0xd0] sm:$0xf0]  ;;  %v9424_v34 = vld [vmem:[%s15216_s3 + $0x1c4] sm:$0xf] }
   0x9   :  { %v6519_v31 = vor.u32 %v9426_v29, %v6518_v28  ;;  %90 = vmatpush.bf16.msra.mxu1 %v6281_v15  ;;  %v6395_v35 = vor.u32 %v9392_v32, %v6392_v33  ;;  %v6520_v36 = vld [vmem:[%s15216_s3 + $0x1d0] sm:$0xf0]  ;;  %v6374_v37 = vld [vmem:[%s15216_s3 + $0xa0] sm:$0xf]  ;;  %v9390_v38 = vld [vmem:[%s15216_s3 + $0xac] sm:$0xf0] }
   0xa   :  { %v6523_v39 = vor.u32 %v9424_v34, %v6520_v36  ;;  %v6502_v40 = vld [vmem:[%s15216_s3 + $0x1a0] sm:$0xf]  ;;  %v9422_v41 = vld [vmem:[%s15216_s3 + $0x1ac] sm:$0xf0]  ;;  %v9388_v42 = vld [vmem:[%s15216_s3 + $0xa4] sm:$0xf]  ;;  %v6375_v43 = vor.u32 %v9390_v38, %v6374_v37 }
   0xb   :  { %6290 = vmatmul.msk.bf16.vlgmr.msra.gmra.mxu0 %vm66_vm0, %v35_v25  ;;  %508 = vmatpush.bf16.msra.mxu2 %v6391_v30  ;;  %v6376_v44 = vld [vmem:[%s15216_s3 + $0xb0] sm:$0xf0]  ;;  %v9420_v45 = vld [vmem:[%s15216_s3 + $0x1a4] sm:$0xf]  ;;  %v6503_v47 = vor.u32 %v9422_v41, %v6502_v40  ;;  %v6358_v48 = vld [vmem:[%s15216_s3 + $0x80] sm:$0xf] }
   0xc   :  { %533 = vmatpush.bf16.msrb.mxu0 %v6411_v21  ;;  %v6504_v46 = vld [vmem:[%s15216_s3 + $0x1b0] sm:$0xf0]  ;;  %6291 = vmatmul.msk.bf16.vlgmr.msra.gmra.mxu1 %vm66_vm0, %v35_v25  ;;  %v9386_v49 = vld [vmem:[%s15216_s3 + $0x8c] sm:$0xf0]  ;;  %v6379_v50 = vor.u32 %v9388_v42, %v6376_v44  ;;  %v6486_v51 = vld [vmem:[%s15216_s3 + $0x180] sm:$0xf] }
   0xd   :  { %546 = vmatpush.bf16.msrb.mxu1 %v6539_v26  ;;  %521 = vmatpush.bf16.msra.mxu3 %v6519_v31  ;;  %v9418_v52 = vld [vmem:[%s15216_s3 + $0x18c] sm:$0xf0]  ;;  %v6507_v53 = vor.u32 %v9420_v45, %v6504_v46  ;;  %v9384_v54 = vld [vmem:[%s15216_s3 + $0x84] sm:$0xf]  ;;  %v6360_v55 = vld [vmem:[%s15216_s3 + $0x90] sm:$0xf0]  ;;  %v6359_v56 = vor.u32 %v9386_v49, %v6358_v48 }
   0xe   :  { %v9416_v57 = vld [vmem:[%s15216_s3 + $0x184] sm:$0xf]  ;;  %v6488_v58 = vld [vmem:[%s15216_s3 + $0x190] sm:$0xf0]  ;;  %v6487_v59 = vor.u32 %v9418_v52, %v6486_v51  ;;  %v6342_v60 = vld [vmem:[%s15216_s3 + $0x60] sm:$0xf]  ;;  %v6363_v62 = vor.u32 %v9384_v54, %v6360_v55 }
   0xf   :  { %509 = vmatpush.bf16.msra.mxu2 %v6375_v43  ;;  %v9382_v61 = vld [vmem:[%s15216_s3 + $0x6c] sm:$0xf0]  ;;  %v6470_v63 = vld [vmem:[%s15216_s3 + $0x160] sm:$0xf]  ;;  %v6491_v1 = vor.u32 %v9416_v57, %v6488_v58  ;;  %v9380_v2 = vld [vmem:[%s15216_s3 + $0x64] sm:$0xf] }
  0x10   :  { %534 = vmatpush.bf16.msrb.mxu0 %v6395_v35  ;;  %v9414_v0 = vld [vmem:[%s15216_s3 + $0x16c] sm:$0xf0]  ;;  %v6344_v3 = vld [vmem:[%s15216_s3 + $0x70] sm:$0xf0]  ;;  %v6343_v4 = vor.u32 %v9382_v61, %v6342_v60  ;;  %v9412_v5 = vld [vmem:[%s15216_s3 + $0x164] sm:$0xf] }
  0x11   :  { %547 = vmatpush.bf16.msrb.mxu1 %v6523_v39  ;;  %522 = vmatpush.bf16.msra.mxu3 %v6503_v47  ;;  %v6472_v6 = vld [vmem:[%s15216_s3 + $0x170] sm:$0xf0]  ;;  %v6471_v7 = vor.u32 %v9414_v0, %v6470_v63  ;;  %v6326_v8 = vld [vmem:[%s15216_s3 + $0x40] sm:$0xf]  ;;  %v9378_v9 = vld [vmem:[%s15216_s3 + $0x4c] sm:$0xf0]  ;;  %v6347_v10 = vor.u32 %v9380_v2, %v6344_v3 }
  0x12   :  { %v6454_v11 = vld [vmem:[%s15216_s3 + $0x140] sm:$0xf]  ;;  %v9410_v12 = vld [vmem:[%s15216_s3 + $0x14c] sm:$0xf0]  ;;  %v6475_v13 = vor.u32 %v9412_v5, %v6472_v6  ;;  %v9376_v14 = vld [vmem:[%s15216_s3 + $0x44] sm:$0xf]  ;;  %v6327_v16 = vor.u32 %v9378_v9, %v6326_v8 }
  0x13   :  { %510 = vmatpush.bf16.msra.mxu2 %v6359_v56  ;;  %v6328_v15 = vld [vmem:[%s15216_s3 + $0x50] sm:$0xf0]  ;;  %v9408_v17 = vld [vmem:[%s15216_s3 + $0x144] sm:$0xf] }
  0x14   :  { %535 = vmatpush.bf16.msrb.mxu0 %v6379_v50  ;;  %v6456_v18 = vld [vmem:[%s15216_s3 + $0x150] sm:$0xf0] }
  0x15   :  { %548 = vmatpush.bf16.msrb.mxu1 %v6507_v53  ;;  %523 = vmatpush.bf16.msra.mxu3 %v6487_v59 }
  0x17   :  { %511 = vmatpush.bf16.msra.mxu2 %v6343_v4 }
  0x18   :  { %536 = vmatpush.bf16.msrb.mxu0 %v6363_v62 }
  0x19   :  { %549 = vmatpush.bf16.msrb.mxu1 %v6491_v1 }
  0x1a   :  { %14 = vsyncpa [#allocation3], 0  ;;  %524 = vmatpush.bf16.msra.mxu3 %v6471_v7  ;;  %v6455_v19 = vor.u32 %v9410_v12, %v6454_v11  ;;  %v6310_v20 = vld [vmem:[%s15216_s3 + $0x20] sm:$0xf]  ;;  %v9374_v21 = vld [vmem:[%s15216_s3 + $0x2c] sm:$0xf0]  ;;  %v6331_v22 = vor.u32 %v9376_v14, %v6328_v15  ;;  %v6459_v25 = vor.u32 %v9408_v17, %v6456_v18 }
  0x1b   :  { %v6438_v23 = vld [vmem:[%s15216_s3 + $0x120] sm:$0xf]  ;;  %v9406_v24 = vld [vmem:[%s15216_s3 + $0x12c] sm:$0xf0]  ;;  %v9372_v26 = vld [vmem:[%s15216_s3 + $0x24] sm:$0xf]  ;;  %512 = vmatpush.bf16.msra.mxu2 %v6327_v16  ;;  %v6311_v28 = vor.u32 %v9374_v21, %v6310_v20 }
  0x1c   :  { %537 = vmatpush.bf16.msrb.mxu0 %v6347_v10  ;;  %v6312_v27 = vld [vmem:[%s15216_s3 + $0x30] sm:$0xf0]  ;;  %v9404_v29 = vld [vmem:[%s15216_s3 + $0x124] sm:$0xf]  ;;  %v6439_v31 = vor.u32 %v9406_v24, %v6438_v23  ;;  %v6294_v34 = vld [vmem:[%s15216_s3] sm:$0xf] }
  0x1d   :  { %550 = vmatpush.bf16.msrb.mxu1 %v6475_v13  ;;  %v6440_v30 = vld [vmem:[%s15216_s3 + $0x130] sm:$0xf0]  ;;  %v6315_v32 = vor.u32 %v9372_v26, %v6312_v27  ;;  %v9370_v35 = vld [vmem:[%s15216_s3 + $0xc] sm:$0xf0]  ;;  %v6422_v36 = vld [vmem:[%s15216_s3 + $0x100] sm:$0xf] }
  0x1e   :  { %525 = vmatpush.bf16.msra.mxu3 %v6455_v19  ;;  %v6443_v33 = vor.u32 %v9404_v29, %v6440_v30  ;;  %v6295_v37 = vor.u32 %v9370_v35, %v6294_v34  ;;  %v9402_v38 = vld [vmem:[%s15216_s3 + $0x10c] sm:$0xf0]  ;;  %v9368_v39 = vld [vmem:[%s15216_s3 + $0x4] sm:$0xf]  ;;  %v6296_v40 = vld [vmem:[%s15216_s3 + $0x10] sm:$0xf0] }
  0x1f   :  { %513 = vmatpush.bf16.msra.mxu2 %v6311_v28  ;;  %v6423_v41 = vor.u32 %v9402_v38, %v6422_v36  ;;  %v6299_v42 = vor.u32 %v9368_v39, %v6296_v40  ;;  %v9400_v43 = vld [vmem:[%s15216_s3 + $0x104] sm:$0xf]  ;;  %v6424_v44 = vld [vmem:[%s15216_s3 + $0x110] sm:$0xf0]  ;;  %v6414_v46 = vld [vmem:[%s15216_s3 + $0xe8] sm:$0xf] }
  0x20   :  { %538 = vmatpush.bf16.msrb.mxu0 %v6331_v22  ;;  %v6427_v45 = vor.u32 %v9400_v43, %v6424_v44  ;;  %v9399_v47 = vld [vmem:[%s15216_s3 + $0xf4] sm:$0xf0]  ;;  %v6542_v48 = vld [vmem:[%s15216_s3 + $0x1e8] sm:$0xf]  ;;  %v9397_v51 = vld [vmem:[%s15216_s3 + $0xec] sm:$0xf] }
  0x21   :  { %551 = vmatpush.bf16.msrb.mxu1 %v6459_v25  ;;  %v6415_v49 = vor.u32 %v9399_v47, %v6414_v46  ;;  %v9431_v50 = vld [vmem:[%s15216_s3 + $0x1f4] sm:$0xf0]  ;;  %v6416_v52 = vld [vmem:[%s15216_s3 + $0xf8] sm:$0xf0]  ;;  %v9429_v55 = vld [vmem:[%s15216_s3 + $0x1ec] sm:$0xf] }
  0x22   :  { %526 = vmatpush.bf16.msra.mxu3 %v6439_v31  ;;  %v6543_v53 = vor.u32 %v9431_v50, %v6542_v48  ;;  %v6419_v54 = vor.u32 %v9397_v51, %v6416_v52  ;;  %v6544_v56 = vld [vmem:[%s15216_s3 + $0x1f8] sm:$0xf0]  ;;  %v6398_v57 = vld [vmem:[%s15216_s3 + $0xc8] sm:$0xf]  ;;  %v9395_v59 = vld [vmem:[%s15216_s3 + $0xd4] sm:$0xf0] }
  0x23   :  { %514 = vmatpush.bf16.msra.mxu2 %v6295_v37  ;;  %v6547_v58 = vor.u32 %v9429_v55, %v6544_v56  ;;  %v6526_v60 = vld [vmem:[%s15216_s3 + $0x1c8] sm:$0xf]  ;;  %v9427_v61 = vld [vmem:[%s15216_s3 + $0x1d4] sm:$0xf0]  ;;  %v6399_v62 = vor.u32 %v9395_v59, %v6398_v57  ;;  %v9393_v0 = vld [vmem:[%s15216_s3 + $0xcc] sm:$0xf] }
  0x24   :  { %539 = vmatpush.bf16.msrb.mxu0 %v6315_v32  ;;  %v6527_v63 = vor.u32 %v9427_v61, %v6526_v60  ;;  %v6400_v1 = vld [vmem:[%s15216_s3 + $0xd8] sm:$0xf0]  ;;  %v9425_v2 = vld [vmem:[%s15216_s3 + $0x1cc] sm:$0xf]  ;;  %v6382_v6 = vld [vmem:[%s15216_s3 + $0xa8] sm:$0xf] }
  0x25   :  { %552 = vmatpush.bf16.msrb.mxu1 %v6443_v33  ;;  %v6403_v3 = vor.u32 %v9393_v0, %v6400_v1  ;;  %v6528_v4 = vld [vmem:[%s15216_s3 + $0x1d8] sm:$0xf0]  ;;  %v9391_v7 = vld [vmem:[%s15216_s3 + $0xb4] sm:$0xf0]  ;;  %v6510_v8 = vld [vmem:[%s15216_s3 + $0x1a8] sm:$0xf] }
  0x26   :  { %527 = vmatpush.bf16.msra.mxu3 %v6423_v41  ;;  %v6531_v5 = vor.u32 %v9425_v2, %v6528_v4  ;;  %v6383_v9 = vor.u32 %v9391_v7, %v6382_v6  ;;  %v9423_v10 = vld [vmem:[%s15216_s3 + $0x1b4] sm:$0xf0]  ;;  %v9389_v11 = vld [vmem:[%s15216_s3 + $0xac] sm:$0xf]  ;;  %v6384_v12 = vld [vmem:[%s15216_s3 + $0xb8] sm:$0xf0] }
  0x27   :  { %559 = vmatpush.bf16.msrb.mxu2 %v6415_v49  ;;  %v6511_v13 = vor.u32 %v9423_v10, %v6510_v8  ;;  %v6387_v14 = vor.u32 %v9389_v11, %v6384_v12  ;;  %v9421_v15 = vld [vmem:[%s15216_s3 + $0x1ac] sm:$0xf]  ;;  %v6512_v16 = vld [vmem:[%s15216_s3 + $0x1b8] sm:$0xf0]  ;;  %v6366_v18 = vld [vmem:[%s15216_s3 + $0x88] sm:$0xf] }
  0x28   :  { %540 = vmatpush.bf16.msrb.mxu0 %v6299_v42  ;;  %v6515_v17 = vor.u32 %v9421_v15, %v6512_v16  ;;  %v9387_v19 = vld [vmem:[%s15216_s3 + $0x94] sm:$0xf0]  ;;  %v6494_v20 = vld [vmem:[%s15216_s3 + $0x188] sm:$0xf]  ;;  %v9385_v23 = vld [vmem:[%s15216_s3 + $0x8c] sm:$0xf] }
  0x29   :  { %553 = vmatpush.bf16.msrb.mxu1 %v6427_v45  ;;  %v6367_v21 = vor.u32 %v9387_v19, %v6366_v18  ;;  %v9419_v22 = vld [vmem:[%s15216_s3 + $0x194] sm:$0xf0]  ;;  %v6368_v24 = vld [vmem:[%s15216_s3 + $0x98] sm:$0xf0]  ;;  %v9417_v27 = vld [vmem:[%s15216_s3 + $0x18c] sm:$0xf] }
  0x2a   :  { %572 = vmatpush.bf16.msrb.mxu3 %v6543_v53  ;;  %v6495_v25 = vor.u32 %v9419_v22, %v6494_v20  ;;  %v6371_v26 = vor.u32 %v9385_v23, %v6368_v24  ;;  %v6496_v28 = vld [vmem:[%s15216_s3 + $0x198] sm:$0xf0]  ;;  %v6350_v30 = vld [vmem:[%s15216_s3 + $0x68] sm:$0xf]  ;;  %v9383_v31 = vld [vmem:[%s15216_s3 + $0x74] sm:$0xf0] }
  0x2b   :  { %560 = vmatpush.bf16.msrb.mxu2 %v6399_v62  ;;  %v6499_v29 = vor.u32 %v9417_v27, %v6496_v28  ;;  %v6478_v32 = vld [vmem:[%s15216_s3 + $0x168] sm:$0xf]  ;;  %v6351_v33 = vor.u32 %v9383_v31, %v6350_v30  ;;  %v9415_v34 = vld [vmem:[%s15216_s3 + $0x174] sm:$0xf0]  ;;  %v9381_v35 = vld [vmem:[%s15216_s3 + $0x6c] sm:$0xf] }
  0x2c   :  { %585 = vmatpush.bf16.msra.mxu0 %v6419_v54  ;;  %v6352_v36 = vld [vmem:[%s15216_s3 + $0x78] sm:$0xf0]  ;;  %v6479_v37 = vor.u32 %v9415_v34, %v6478_v32  ;;  %v9413_v39 = vld [vmem:[%s15216_s3 + $0x16c] sm:$0xf]  ;;  %v6334_v41 = vld [vmem:[%s15216_s3 + $0x48] sm:$0xf] }
  0x2d   :  { %598 = vmatpush.bf16.msra.mxu1 %v6547_v58  ;;  %v6355_v38 = vor.u32 %v9381_v35, %v6352_v36  ;;  %v6480_v40 = vld [vmem:[%s15216_s3 + $0x178] sm:$0xf0]  ;;  %v9379_v43 = vld [vmem:[%s15216_s3 + $0x54] sm:$0xf0]  ;;  %v6462_v44 = vld [vmem:[%s15216_s3 + $0x148] sm:$0xf] }
  0x2e   :  { %573 = vmatpush.bf16.msrb.mxu3 %v6527_v63  ;;  %v6483_v42 = vor.u32 %v9413_v39, %v6480_v40  ;;  %v9411_v45 = vld [vmem:[%s15216_s3 + $0x154] sm:$0xf0]  ;;  %v6335_v46 = vor.u32 %v9379_v43, %v6334_v41  ;;  %v9377_v47 = vld [vmem:[%s15216_s3 + $0x4c] sm:$0xf]  ;;  %v6336_v48 = vld [vmem:[%s15216_s3 + $0x58] sm:$0xf0] }
  0x2f   :  { %561 = vmatpush.bf16.msrb.mxu2 %v6383_v9  ;;  %v9409_v49 = vld [vmem:[%s15216_s3 + $0x14c] sm:$0xf]  ;;  %v6463_v50 = vor.u32 %v9411_v45, %v6462_v44  ;;  %v6339_v51 = vor.u32 %v9377_v47, %v6336_v48  ;;  %v6464_v52 = vld [vmem:[%s15216_s3 + $0x158] sm:$0xf0]  ;;  %v6318_v53 = vld [vmem:[%s15216_s3 + $0x28] sm:$0xf] }
  0x30   :  { %586 = vmatpush.bf16.msra.mxu0 %v6403_v3  ;;  %v9375_v54 = vld [vmem:[%s15216_s3 + $0x34] sm:$0xf0]  ;;  %v6467_v55 = vor.u32 %v9409_v49, %v6464_v52  ;;  %v6446_v56 = vld [vmem:[%s15216_s3 + $0x128] sm:$0xf]  ;;  %v9373_v58 = vld [vmem:[%s15216_s3 + $0x2c] sm:$0xf] }
  0x31   :  { %599 = vmatpush.bf16.msra.mxu1 %v6531_v5  ;;  %v9407_v57 = vld [vmem:[%s15216_s3 + $0x134] sm:$0xf0]  ;;  %v6320_v59 = vld [vmem:[%s15216_s3 + $0x38] sm:$0xf0]  ;;  %v9405_v60 = vld [vmem:[%s15216_s3 + $0x12c] sm:$0xf]  ;;  %v6319_v63 = vor.u32 %v9375_v54, %v6318_v53 }
  0x32   :  { %574 = vmatpush.bf16.msrb.mxu3 %v6511_v13  ;;  %v6448_v61 = vld [vmem:[%s15216_s3 + $0x138] sm:$0xf0]  ;;  %v40_v62 = vld [vmem:[%s15215_s2] sm:$0x3]  ;;  %v6447_v0 = vor.u32 %v9407_v57, %v6446_v56  ;;  %v6323_v1 = vor.u32 %v9373_v58, %v6320_v59  ;;  %v6302_v2 = vld [vmem:[%s15216_s3 + $0x8] sm:$0xf] }
  0x33   :  { %562 = vmatpush.bf16.msrb.mxu2 %v6367_v21  ;;  %v9371_v3 = vld [vmem:[%s15216_s3 + $0x14] sm:$0xf0]  ;;  %v6430_v4 = vld [vmem:[%s15216_s3 + $0x108] sm:$0xf]  ;;  %v6451_v5 = vor.u32 %v9405_v60, %v6448_v61  ;;  %v9369_v7 = vld [vmem:[%s15216_s3 + $0xc] sm:$0xf] }
  0x34   :  { %587 = vmatpush.bf16.msra.mxu0 %v6387_v14  ;;  %v9403_v6 = vld [vmem:[%s15216_s3 + $0x114] sm:$0xf0]  ;;  %v6304_v8 = vld [vmem:[%s15216_s3 + $0x18] sm:$0xf0]  ;;  %v9401_v9 = vld [vmem:[%s15216_s3 + $0x10c] sm:$0xf]  ;;  %v6303_v11 = vor.u32 %v9371_v3, %v6302_v2 }
  0x35   :  { %600 = vmatpush.bf16.msra.mxu1 %v6515_v17  ;;  %v6432_v10 = vld [vmem:[%s15216_s3 + $0x118] sm:$0xf0]  ;;  %v42_v12 = vperm.slane %v40_v62, 0  ;;  %v6431_v13 = vor.u32 %v9403_v6, %v6430_v4  ;;  %v6307_v14 = vor.u32 %v9369_v7, %v6304_v8  ;;  %v43_v15 = vperm.slane %v40_v62, 1  ;;  %v9492_v30 = vld [vmem:[%s15218_s5 + $0x1dc] sm:$0xf0] }
  0x36   :  { %575 = vmatpush.bf16.msrb.mxu3 %v6495_v25  ;;  %v6435_v16 = vor.u32 %v9401_v9, %v6432_v10  ;;  %v7030_v32 = vld [vmem:[%s15218_s5 + $0x3c0] sm:$0xf] }
  0x37   :  { %563 = vmatpush.bf16.msrb.mxu2 %v6351_v33  ;;  %v9556_v33 = vld [vmem:[%s15218_s5 + $0x3dc] sm:$0xf0] }
  0x38   :  { %588 = vmatpush.bf16.msra.mxu0 %v6371_v26  ;;  %v7286_v34 = vld [vmem:[%s15218_s5 + $0x5c0] sm:$0xf]  ;;  %v7031_v43 = vor.u32 %v9556_v33, %v7030_v32 }
  0x39   :  { %601 = vmatpush.bf16.msra.mxu1 %v6499_v29  ;;  %v6774_v29 = vld [vmem:[%s15218_s5 + $0x1c0] sm:$0xf] }
  0x3a   :  { %576 = vmatpush.bf16.msrb.mxu3 %v6479_v37  ;;  %v9620_v37 = vld [vmem:[%s15218_s5 + $0x5dc] sm:$0xf0] }
  0x3b   :  { %564 = vmatpush.bf16.msrb.mxu2 %v6335_v46  ;;  %v9684_v39 = vld [vmem:[%s15218_s5 + $0x7dc] sm:$0xf0]  ;;  %v7287_v48 = vor.u32 %v9620_v37, %v7286_v34 }
  0x3c   :  { %589 = vmatpush.bf16.msra.mxu0 %v6355_v38  ;;  %v7542_v38 = vld [vmem:[%s15218_s5 + $0x7c0] sm:$0xf] }
  0x3d   :  { %602 = vmatpush.bf16.msra.mxu1 %v6483_v42  ;;  %v6775_v42 = vor.u32 %v9492_v30, %v6774_v29  ;;  %v6742_v44 = vld [vmem:[%s15218_s5 + $0x180] sm:$0xf]  ;;  %v7543_v49 = vor.u32 %v9684_v39, %v7542_v38 }
  0x3e   :  { %577 = vmatpush.bf16.msrb.mxu3 %v6463_v50  ;;  %v9484_v45 = vld [vmem:[%s15218_s5 + $0x19c] sm:$0xf0] }
  0x3f   :  { %565 = vmatpush.bf16.msrb.mxu2 %v6319_v63  ;;  %v6998_v46 = vld [vmem:[%s15218_s5 + $0x380] sm:$0xf]  ;;  %v6743_v54 = vor.u32 %v9484_v45, %v6742_v44 }
  0x40   :  { %590 = vmatpush.bf16.msra.mxu0 %v6339_v51  ;;  %v9548_v47 = vld [vmem:[%s15218_s5 + $0x39c] sm:$0xf0] }
  0x41   :  { %603 = vmatpush.bf16.msra.mxu1 %v6467_v55  ;;  %v7254_v50 = vld [vmem:[%s15218_s5 + $0x580] sm:$0xf]  ;;  %v6999_v55 = vor.u32 %v9548_v47, %v6998_v46  ;;  %v9488_v46 = vld [vmem:[%s15218_s5 + $0x1c4] sm:$0xf] }
  0x42   :  { %578 = vmatpush.bf16.msrb.mxu3 %v6447_v0  ;;  %v9612_v51 = vld [vmem:[%s15218_s5 + $0x59c] sm:$0xf0]  ;;  %v6776_v47 = vld [vmem:[%s15218_s5 + $0x1e0] sm:$0xf0] }
  0x43   :  { %566 = vmatpush.bf16.msrb.mxu2 %v6303_v11  ;;  %v7510_v52 = vld [vmem:[%s15218_s5 + $0x780] sm:$0xf]  ;;  %v7255_v60 = vor.u32 %v9612_v51, %v7254_v50 }
  0x44   :  { %591 = vmatpush.bf16.msra.mxu0 %v6323_v1  ;;  %v9676_v53 = vld [vmem:[%s15218_s5 + $0x79c] sm:$0xf0] }
  0x45   :  { %604 = vmatpush.bf16.msra.mxu1 %v6451_v5  ;;  %v6710_v56 = vld [vmem:[%s15218_s5 + $0x140] sm:$0xf]  ;;  %v7511_v61 = vor.u32 %v9676_v53, %v7510_v52  ;;  %v6779_v52 = vor.u32 %v9488_v46, %v6776_v47  ;;  %v9672_v47 = vld [vmem:[%s15218_s5 + $0x784] sm:$0xf] }
  0x46   :  { %579 = vmatpush.bf16.msrb.mxu3 %v6431_v13  ;;  %v9476_v57 = vld [vmem:[%s15218_s5 + $0x15c] sm:$0xf0] }
  0x47   :  { %v6966_v58 = vld [vmem:[%s15218_s5 + $0x340] sm:$0xf]  ;;  %v6711_v2 = vor.u32 %v9476_v57, %v6710_v56  ;;  %v9544_v56 = vld [vmem:[%s15218_s5 + $0x384] sm:$0xf] }
  0x48   :  { %592 = vmatpush.bf16.msra.mxu0 %v6307_v14  ;;  %v9540_v59 = vld [vmem:[%s15218_s5 + $0x35c] sm:$0xf0]  ;;  %v7000_v57 = vld [vmem:[%s15218_s5 + $0x3a0] sm:$0xf0] }
  0x49   :  { %605 = vmatpush.bf16.msra.mxu1 %v6435_v16  ;;  %v7222_v62 = vld [vmem:[%s15218_s5 + $0x540] sm:$0xf]  ;;  %v6967_v3 = vor.u32 %v9540_v59, %v6966_v58  ;;  %v7003_v59 = vor.u32 %v9544_v56, %v7000_v57  ;;  %v7224_v56 = vld [vmem:[%s15218_s5 + $0x560] sm:$0xf0] }
  0x4a   :  { %v9604_v63 = vld [vmem:[%s15218_s5 + $0x55c] sm:$0xf0] }
  0x4b   :  { %v7478_v0 = vld [vmem:[%s15218_s5 + $0x740] sm:$0xf]  ;;  %v7223_v8 = vor.u32 %v9604_v63, %v7222_v62 }
  0x4c   :  { %v9668_v1 = vld [vmem:[%s15218_s5 + $0x75c] sm:$0xf0] }
  0x4d   :  { %v6678_v4 = vld [vmem:[%s15218_s5 + $0x100] sm:$0xf]  ;;  %v7479_v9 = vor.u32 %v9668_v1, %v7478_v0  ;;  %v9472_v1 = vld [vmem:[%s15218_s5 + $0x144] sm:$0xf] }
  0x4e   :  { %v9468_v5 = vld [vmem:[%s15218_s5 + $0x11c] sm:$0xf0] }
  0x4f   :  { %v6934_v6 = vld [vmem:[%s15218_s5 + $0x300] sm:$0xf]  ;;  %v6679_v14 = vor.u32 %v9468_v5, %v6678_v4  ;;  %v9536_v5 = vld [vmem:[%s15218_s5 + $0x344] sm:$0xf] }
  0x50   :  { %v9532_v7 = vld [vmem:[%s15218_s5 + $0x31c] sm:$0xf0] }
  0x51   :  { %v7190_v10 = vld [vmem:[%s15218_s5 + $0x500] sm:$0xf] }
  0x52   :  { %v9596_v11 = vld [vmem:[%s15218_s5 + $0x51c] sm:$0xf0] }
  0x53   :  { %v9660_v13 = vld [vmem:[%s15218_s5 + $0x71c] sm:$0xf0] }
  0x54   :  { %v6646_v16 = vld [vmem:[%s15218_s5 + $0xc0] sm:$0xf] }
  0x55   :  { %v9452_v29 = vld [vmem:[%s15218_s5 + $0x9c] sm:$0xf0] }
  0x56   :  { %v6870_v30 = vld [vmem:[%s15218_s5 + $0x280] sm:$0xf] }
  0x57   :  { %v9444_v37 = vld [vmem:[%s15218_s5 + $0x5c] sm:$0xf0] }
  0x58   :  { %v6838_v38 = vld [vmem:[%s15218_s5 + $0x240] sm:$0xf] }
  0x59   :  { %v9508_v39 = vld [vmem:[%s15218_s5 + $0x25c] sm:$0xf0] }
  0x5a   :  { %v6806_v44 = vld [vmem:[%s15218_s5 + $0x200] sm:$0xf] }
  0x5b   :  { %v9500_v45 = vld [vmem:[%s15218_s5 + $0x21c] sm:$0xf0] }
  0x5c   :  { %v6807_v51 = vor.u32 %v9500_v45, %v6806_v44  ;;  %v7382_v62 = vld [vmem:[%s15218_s5 + $0x680] sm:$0xf]  ;;  %v7256_v44 = vld [vmem:[%s15218_s5 + $0x5a0] sm:$0xf0] }
  0x5d   :  { %v9644_v0 = vld [vmem:[%s15218_s5 + $0x69c] sm:$0xf0] }
  0x88   :  { %v79_v17 = vpop.f32.mrf.mxu0 }
  0x89   :  { %v80_v18 = vadd.f32 %v79_v17, %v42_v12  ;;  %v92_v19 = vpop.f32.mrf.mxu1  ;;  %v7446_v12 = vld [vmem:[%s15218_s5 + $0x700] sm:$0xf] }
  0x8a   :  { %v93_v20 = vadd.f32 %v92_v19, %v43_v15  ;;  %v6935_v15 = vor.u32 %v9532_v7, %v6934_v6  ;;  %v9460_v17 = vld [vmem:[%s15218_s5 + $0xdc] sm:$0xf0]  ;;  %v6968_v6 = vld [vmem:[%s15218_s5 + $0x360] sm:$0xf0] }
  0x8b   :  { %v9524_v19 = vld [vmem:[%s15218_s5 + $0x2dc] sm:$0xf0]  ;;  %v6971_v7 = vor.u32 %v9536_v5, %v6968_v6  ;;  %v7192_v5 = vld [vmem:[%s15218_s5 + $0x520] sm:$0xf0] }
  0x8c   :  { %v96_v21 = vpack.c.bf16 %v93_v20, %v80_v18  ;;  %v6902_v18 = vld [vmem:[%s15218_s5 + $0x2c0] sm:$0xf]  ;;  %v7191_v20 = vor.u32 %v9596_v11, %v7190_v10  ;;  %v9656_v6 = vld [vmem:[%s15218_s5 + $0x704] sm:$0xf] }
  0x8d   :  { %v7350_v11 = vld [vmem:[%s15218_s5 + $0x640] sm:$0xf] }
  0x8e   :  { %v97_v22 = vunpack.c.l.bf16 %v96_v21  ;;  %v98_v23 = vunpack.c.h.bf16 %v96_v21 }
  0x90   :  { %vm99_vm1 = vcmp.gt.f32.partialorder %v97_v22, 0.0  ;;  %vm100_vm2 = vcmp.gt.f32.partialorder %v98_v23, 0.0  ;;  %v101_v24 = vmul.f32 0.20019531, %v97_v22  ;;  %v102_v25 = vmul.f32 0.20019531, %v98_v23  ;;  %v81_v26 = vpop.f32.mrf.mxu0  ;;  %v7158_v22 = vld [vmem:[%s15218_s5 + $0x4c0] sm:$0xf] }
  0x91   :  { %v94_v27 = vpop.f32.mrf.mxu1  ;;  %vm104_vm3 = vmpackc.low %vm100_vm2, %vm99_vm1  ;;  %v9588_v23 = vld [vmem:[%s15218_s5 + $0x4dc] sm:$0xf0]  ;;  %v6647_v26 = vor.u32 %v9460_v17, %v6646_v16  ;;  %v9528_v16 = vld [vmem:[%s15218_s5 + $0x304] sm:$0xf] }
  0x92   :  { %v103_v28 = vpack.c.bf16 %v102_v25, %v101_v24  ;;  %v7414_v24 = vld [vmem:[%s15218_s5 + $0x6c0] sm:$0xf]  ;;  %v6903_v27 = vor.u32 %v9524_v19, %v6902_v18  ;;  %v7159_v32 = vor.u32 %v9588_v23, %v7158_v22  ;;  %v6936_v17 = vld [vmem:[%s15218_s5 + $0x320] sm:$0xf0] }
  0x93   :  { %v9652_v25 = vld [vmem:[%s15218_s5 + $0x6dc] sm:$0xf0]  ;;  %v6939_v19 = vor.u32 %v9528_v16, %v6936_v17  ;;  %v9576_v17 = vld [vmem:[%s15218_s5 + $0x484] sm:$0xf] }
  0x94   :  { %v105_v31 = vsel %vm104_vm3, %v96_v21, %v103_v28  ;;  %v7447_v21 = vor.u32 %v9660_v13, %v7446_v12  ;;  %v6614_v28 = vld [vmem:[%s15218_s5 + $0x80] sm:$0xf]  ;;  %v7415_v33 = vor.u32 %v9652_v25, %v7414_v24  ;;  %v9464_v13 = vld [vmem:[%s15218_s5 + $0x104] sm:$0xf] }
  0x95   :  { %v181_v35 = vunpack.c.l.b16 %v105_v31  ;;  %v182_v36 = vunpack.c.h.b16 %v105_v31  ;;  %v9516_v31 = vld [vmem:[%s15218_s5 + $0x29c] sm:$0xf0]  ;;  %v6615_v34 = vor.u32 %v9452_v29, %v6614_v28  ;;  %v9456_v25 = vld [vmem:[%s15218_s5 + $0xc4] sm:$0xf] }
  0x96   :  { %v9636_v12 = vld [vmem:[%s15218_s5 + $0x65c] sm:$0xf0]  ;;  %v9520_v29 = vld [vmem:[%s15218_s5 + $0x2c4] sm:$0xf] }
  0x97   :  { %v10671_v40 = vpack.c.b16 %v181_v35, %v181_v35  ;;  %v10673_v41 = vpack.c.b16 %v182_v36, %v182_v36  ;;  %v6871_v35 = vor.u32 %v9516_v31, %v6870_v30  ;;  %v6582_v36 = vld [vmem:[%s15218_s5 + $0x40] sm:$0xf]  ;;  %v6904_v30 = vld [vmem:[%s15218_s5 + $0x2e0] sm:$0xf0] }
  0x98   :  { %v7318_v22 = vld [vmem:[%s15218_s5 + $0x600] sm:$0xf]  ;;  %v9616_v31 = vld [vmem:[%s15218_s5 + $0x5c4] sm:$0xf] }
  0x99   :  { %515 = vmatmul.bf16.vlgmr.msra.gmra.mxu2 %v10671_v40  ;;  %528 = vmatmul.bf16.vlgmr.msra.gmra.mxu3 %v10673_v41  ;;  %v9628_v24 = vld [vmem:[%s15218_s5 + $0x61c] sm:$0xf0] }
  0x9a   :  { %541 = vmatmul.bf16.vlgmr.msrb.gmra.mxu0 %v10671_v40  ;;  %554 = vmatmul.bf16.vlgmr.msrb.gmra.mxu1 %v10673_v41  ;;  %v11010_v16 = vld [vmem:[%s15217_s4] sm:$0xf]  ;;  %s6265_s4 = sshll.u32 %s15222_s9, 4  ;;  %s6266_s4 = int_to_ptr.hbm [resolvable:$true] %s6265_s4 }
  0x9b   :  { %2199 = vmatpush.bf16.msra.mxu2 %v6775_v42  ;;  %2212 = vmatpush.bf16.msra.mxu3 %v7031_v43  ;;  %v6550_v42 = vld [vmem:[%s15218_s5] sm:$0xf] }
  0x9c   :  { %2225 = vmatpush.bf16.msrb.mxu0 %v7287_v48  ;;  %2238 = vmatpush.bf16.msrb.mxu1 %v7543_v49  ;;  %v9436_v43 = vld [vmem:[%s15218_s5 + $0x1c] sm:$0xf0]  ;;  %v9552_v48 = vld [vmem:[%s15218_s5 + $0x3c4] sm:$0xf] }
  0x9d   :  { %v7032_v49 = vld [vmem:[%s15218_s5 + $0x3e0] sm:$0xf0]  ;;  %v6551_v50 = vor.u32 %v9436_v43, %v6550_v42 }
  0x9e   :  { %v7035_v53 = vor.u32 %v9552_v48, %v7032_v49  ;;  %v6872_v42 = vld [vmem:[%s15218_s5 + $0x2a0] sm:$0xf0] }
  0x9f   :  { %2200 = vmatpush.bf16.msra.mxu2 %v6743_v54  ;;  %2213 = vmatpush.bf16.msra.mxu3 %v6999_v55  ;;  %v9480_v54 = vld [vmem:[%s15218_s5 + $0x184] sm:$0xf] }
  0xa0   :  { %2226 = vmatpush.bf16.msrb.mxu0 %v7255_v60  ;;  %2239 = vmatpush.bf16.msrb.mxu1 %v7511_v61  ;;  %v6744_v55 = vld [vmem:[%s15218_s5 + $0x1a0] sm:$0xf0]  ;;  %v7126_v60 = vld [vmem:[%s15218_s5 + $0x480] sm:$0xf] }
  0xa1   :  { %v6747_v58 = vor.u32 %v9480_v54, %v6744_v55  ;;  %v9580_v61 = vld [vmem:[%s15218_s5 + $0x49c] sm:$0xf0]  ;;  %v9608_v43 = vld [vmem:[%s15218_s5 + $0x584] sm:$0xf] }
  0xa2   :  { %v7127_v63 = vor.u32 %v9580_v61, %v7126_v60  ;;  %v7259_v46 = vor.u32 %v9608_v43, %v7256_v44  ;;  %v7512_v48 = vld [vmem:[%s15218_s5 + $0x7a0] sm:$0xf0] }
  0xa3   :  { %2201 = vmatpush.bf16.msra.mxu2 %v6711_v2  ;;  %2214 = vmatpush.bf16.msra.mxu3 %v6967_v3  ;;  %v6712_v2 = vld [vmem:[%s15218_s5 + $0x160] sm:$0xf0]  ;;  %v7383_v3 = vor.u32 %v9644_v0, %v7382_v62  ;;  %v7515_v49 = vor.u32 %v9672_v47, %v7512_v48 }
  0xa4   :  { %2227 = vmatpush.bf16.msrb.mxu0 %v7223_v8  ;;  %2240 = vmatpush.bf16.msrb.mxu1 %v7479_v9  ;;  %v6715_v4 = vor.u32 %v9472_v1, %v6712_v2  ;;  %v7094_v8 = vld [vmem:[%s15218_s5 + $0x440] sm:$0xf]  ;;  %v6840_v54 = vld [vmem:[%s15218_s5 + $0x260] sm:$0xf0] }
  0xa5   :  { %v9572_v9 = vld [vmem:[%s15218_s5 + $0x45c] sm:$0xf0]  ;;  %v9600_v55 = vld [vmem:[%s15218_s5 + $0x544] sm:$0xf] }
  0xa6   :  { %v7095_v10 = vor.u32 %v9572_v9, %v7094_v8  ;;  %v7480_v60 = vld [vmem:[%s15218_s5 + $0x760] sm:$0xf0] }
  0xa7   :  { %2202 = vmatpush.bf16.msra.mxu2 %v6679_v14  ;;  %2215 = vmatpush.bf16.msra.mxu3 %v6935_v15  ;;  %v7351_v14 = vor.u32 %v9636_v12, %v7350_v11  ;;  %v6680_v15 = vld [vmem:[%s15218_s5 + $0x120] sm:$0xf0] }
  0xa8   :  { %2228 = vmatpush.bf16.msrb.mxu0 %v7191_v20  ;;  %2241 = vmatpush.bf16.msrb.mxu1 %v7447_v21  ;;  %v6683_v18 = vor.u32 %v9464_v13, %v6680_v15  ;;  %v7062_v20 = vld [vmem:[%s15218_s5 + $0x400] sm:$0xf]  ;;  %v9432_v62 = vld [vmem:[%s15218_s5 + $0x4] sm:$0xf] }
  0xa9   :  { %567 = vmatmul.bf16.vlgmr.msrb.gmra.mxu2 %v10671_v40  ;;  %580 = vmatmul.bf16.vlgmr.msrb.gmra.mxu3 %v10673_v41  ;;  %v9564_v21 = vld [vmem:[%s15218_s5 + $0x41c] sm:$0xf0]  ;;  %v9496_v0 = vld [vmem:[%s15218_s5 + $0x204] sm:$0xf] }
  0xaa   :  { %593 = vmatmul.bf16.vlgmr.msra.gmra.mxu0 %v10671_v40  ;;  %606 = vmatmul.bf16.vlgmr.msra.gmra.mxu1 %v10673_v41  ;;  %v6583_v40 = vor.u32 %v9444_v37, %v6582_v36  ;;  %v6839_v41 = vor.u32 %v9508_v39, %v6838_v38  ;;  %v7063_v23 = vor.u32 %v9564_v21, %v7062_v20  ;;  %v9448_v38 = vld [vmem:[%s15218_s5 + $0x84] sm:$0xf] }
  0xab   :  { %2203 = vmatpush.bf16.msra.mxu2 %v6647_v26  ;;  %2216 = vmatpush.bf16.msra.mxu3 %v6903_v27  ;;  %v6648_v26 = vld [vmem:[%s15218_s5 + $0xe0] sm:$0xf0]  ;;  %v7319_v27 = vor.u32 %v9628_v24, %v7318_v22 }
  0xac   :  { %2229 = vmatpush.bf16.msrb.mxu0 %v7159_v32  ;;  %2242 = vmatpush.bf16.msrb.mxu1 %v7415_v33  ;;  %v6651_v28 = vor.u32 %v9456_v25, %v6648_v26  ;;  %v6907_v32 = vor.u32 %v9520_v29, %v6904_v30  ;;  %v7288_v33 = vld [vmem:[%s15218_s5 + $0x5e0] sm:$0xf0] }
  0xad   :  { %v7291_v36 = vor.u32 %v9616_v31, %v7288_v33  ;;  %v6616_v39 = vld [vmem:[%s15218_s5 + $0xa0] sm:$0xf0]  ;;  %v172_v31 = vperm.slane %v11010_v16, 0 }
  0xae   :  { %v6808_v2 = vld [vmem:[%s15218_s5 + $0x220] sm:$0xf0] }
  0xaf   :  { %2204 = vmatpush.bf16.msra.mxu2 %v6615_v34  ;;  %2217 = vmatpush.bf16.msra.mxu3 %v6871_v35  ;;  %v9680_v34 = vld [vmem:[%s15218_s5 + $0x7c4] sm:$0xf] }
  0xb0   :  { %2230 = vmatpush.bf16.msrb.mxu0 %v7127_v63  ;;  %2243 = vmatpush.bf16.msrb.mxu1 %v7383_v3  ;;  %v7544_v35 = vld [vmem:[%s15218_s5 + $0x7e0] sm:$0xf0] }
  0xb1   :  { %v7547_v37 = vor.u32 %v9680_v34, %v7544_v35  ;;  %v6552_v63 = vld [vmem:[%s15218_s5 + $0x20] sm:$0xf0] }
  0xb2   :  { %v6555_v1 = vor.u32 %v9432_v62, %v6552_v63  ;;  %v9592_v3 = vld [vmem:[%s15218_s5 + $0x504] sm:$0xf]  ;;  %v174_v63 = vperm.slane %v11010_v16, 2 }
  0xb3   :  { %2205 = vmatpush.bf16.msra.mxu2 %v6583_v40  ;;  %2218 = vmatpush.bf16.msra.mxu3 %v6839_v41  ;;  %v9512_v40 = vld [vmem:[%s15218_s5 + $0x284] sm:$0xf]  ;;  %v6619_v41 = vor.u32 %v9448_v38, %v6616_v39  ;;  %v7195_v8 = vor.u32 %v9592_v3, %v7192_v5  ;;  %v6750_v5 = vld [vmem:[%s15218_s5 + $0x188] sm:$0xf] }
  0xb4   :  { %2231 = vmatpush.bf16.msrb.mxu0 %v7095_v10  ;;  %2244 = vmatpush.bf16.msrb.mxu1 %v7351_v14  ;;  %v6875_v45 = vor.u32 %v9512_v40, %v6872_v42  ;;  %v9584_v10 = vld [vmem:[%s15218_s5 + $0x4c4] sm:$0xf] }
  0xb5   :  { %v7160_v11 = vld [vmem:[%s15218_s5 + $0x4e0] sm:$0xf0] }
  0xb6   :  { %v7163_v12 = vor.u32 %v9584_v10, %v7160_v11  ;;  %v9648_v13 = vld [vmem:[%s15218_s5 + $0x6c4] sm:$0xf]  ;;  %v7006_v11 = vld [vmem:[%s15218_s5 + $0x388] sm:$0xf] }
  0xb7   :  { %2206 = vmatpush.bf16.msra.mxu2 %v6551_v50  ;;  %2219 = vmatpush.bf16.msra.mxu3 %v6807_v51  ;;  %v9440_v50 = vld [vmem:[%s15218_s5 + $0x44] sm:$0xf] }
  0xb8   :  { %2232 = vmatpush.bf16.msrb.mxu0 %v7063_v23  ;;  %2245 = vmatpush.bf16.msrb.mxu1 %v7319_v27  ;;  %v6584_v51 = vld [vmem:[%s15218_s5 + $0x60] sm:$0xf0]  ;;  %v173_v23 = vperm.slane %v11010_v16, 1 }
  0xb9   :  { %v7416_v14 = vld [vmem:[%s15218_s5 + $0x6e0] sm:$0xf0] }
  0xba   :  { %v7419_v15 = vor.u32 %v9648_v13, %v7416_v14  ;;  %v7384_v21 = vld [vmem:[%s15218_s5 + $0x6a0] sm:$0xf0] }
  0xbb   :  { %2251 = vmatpush.bf16.msrb.mxu2 %v6779_v52  ;;  %2264 = vmatpush.bf16.msrb.mxu3 %v7035_v53  ;;  %v9504_v52 = vld [vmem:[%s15218_s5 + $0x244] sm:$0xf]  ;;  %v6587_v53 = vor.u32 %v9440_v50, %v6584_v51 }
  0xbc   :  { %2277 = vmatpush.bf16.msra.mxu0 %v7291_v36  ;;  %2290 = vmatpush.bf16.msra.mxu1 %v7547_v37  ;;  %v6843_v57 = vor.u32 %v9504_v52, %v6840_v54  ;;  %v9568_v26 = vld [vmem:[%s15218_s5 + $0x444] sm:$0xf] }
  0xbd   :  { %v7096_v27 = vld [vmem:[%s15218_s5 + $0x460] sm:$0xf0] }
  0xbe   :  { %v7099_v29 = vor.u32 %v9568_v26, %v7096_v27  ;;  %v7352_v30 = vld [vmem:[%s15218_s5 + $0x660] sm:$0xf0] }
  0xbf   :  { %2252 = vmatpush.bf16.msrb.mxu2 %v6747_v58  ;;  %2265 = vmatpush.bf16.msrb.mxu3 %v7003_v59  ;;  %v7227_v58 = vor.u32 %v9600_v55, %v7224_v56  ;;  %v9664_v59 = vld [vmem:[%s15218_s5 + $0x744] sm:$0xf]  ;;  %v175_v55 = vperm.slane %v11010_v16, 3 }
  0xc0   :  { %2278 = vmatpush.bf16.msra.mxu0 %v7259_v46  ;;  %2291 = vmatpush.bf16.msra.mxu1 %v7515_v49  ;;  %v7483_v61 = vor.u32 %v9664_v59, %v7480_v60  ;;  %v9560_v34 = vld [vmem:[%s15218_s5 + $0x404] sm:$0xf]  ;;  %v9493_v59 = vld [vmem:[%s15218_s5 + $0x1e4] sm:$0xf0] }
  0xc1   :  { %v7064_v35 = vld [vmem:[%s15218_s5 + $0x420] sm:$0xf0]  ;;  %v7038_v60 = vld [vmem:[%s15218_s5 + $0x3c8] sm:$0xf] }
  0xc2   :  { %v9624_v36 = vld [vmem:[%s15218_s5 + $0x604] sm:$0xf]  ;;  %v7067_v39 = vor.u32 %v9560_v34, %v7064_v35  ;;  %v9533_v34 = vld [vmem:[%s15218_s5 + $0x324] sm:$0xf0] }
  0xc3   :  { %2253 = vmatpush.bf16.msrb.mxu2 %v6715_v4  ;;  %2266 = vmatpush.bf16.msrb.mxu3 %v6971_v7  ;;  %v6811_v4 = vor.u32 %v9496_v0, %v6808_v2  ;;  %v7448_v7 = vld [vmem:[%s15218_s5 + $0x720] sm:$0xf0] }
  0xc4   :  { %2279 = vmatpush.bf16.msra.mxu0 %v7227_v58  ;;  %2292 = vmatpush.bf16.msra.mxu1 %v7483_v61  ;;  %v7451_v9 = vor.u32 %v9656_v6, %v7448_v7  ;;  %v7320_v40 = vld [vmem:[%s15218_s5 + $0x620] sm:$0xf0]  ;;  %v6782_v58 = vld [vmem:[%s15218_s5 + $0x1c8] sm:$0xf] }
  0xc5   :  { %v7323_v42 = vor.u32 %v9624_v36, %v7320_v40  ;;  %v9557_v61 = vld [vmem:[%s15218_s5 + $0x3e4] sm:$0xf0]  ;;  %v6783_v3 = vor.u32 %v9493_v59, %v6782_v58 }
  0xc6   :  { %v9485_v6 = vld [vmem:[%s15218_s5 + $0x1a4] sm:$0xf0] }
  0xc7   :  { %2254 = vmatpush.bf16.msrb.mxu2 %v6683_v18  ;;  %2267 = vmatpush.bf16.msrb.mxu3 %v6939_v19  ;;  %v7128_v18 = vld [vmem:[%s15218_s5 + $0x4a0] sm:$0xf0]  ;;  %v6751_v14 = vor.u32 %v9485_v6, %v6750_v5  ;;  %v6654_v40 = vld [vmem:[%s15218_s5 + $0xc8] sm:$0xf] }
  0xc8   :  { %2280 = vmatpush.bf16.msra.mxu0 %v7195_v8  ;;  %2293 = vmatpush.bf16.msra.mxu1 %v7451_v9  ;;  %v9640_v19 = vld [vmem:[%s15218_s5 + $0x684] sm:$0xf]  ;;  %v7131_v20 = vor.u32 %v9576_v17, %v7128_v18  ;;  %v6878_v59 = vld [vmem:[%s15218_s5 + $0x288] sm:$0xf] }
  0xc9   :  { %v7387_v22 = vor.u32 %v9640_v19, %v7384_v21  ;;  %v9477_v21 = vld [vmem:[%s15218_s5 + $0x164] sm:$0xf0] }
  0xcb   :  { %2255 = vmatpush.bf16.msrb.mxu2 %v6651_v28  ;;  %2268 = vmatpush.bf16.msrb.mxu3 %v6907_v32  ;;  %v9632_v28 = vld [vmem:[%s15218_s5 + $0x644] sm:$0xf] }
  0xcc   :  { %2281 = vmatpush.bf16.msra.mxu0 %v7163_v12  ;;  %2294 = vmatpush.bf16.msra.mxu1 %v7419_v15  ;;  %v7355_v32 = vor.u32 %v9632_v28, %v7352_v30  ;;  %v9549_v12 = vld [vmem:[%s15218_s5 + $0x3a4] sm:$0xf0] }
  0xcd   :  { %v7007_v19 = vor.u32 %v9549_v12, %v7006_v11  ;;  %v7230_v11 = vld [vmem:[%s15218_s5 + $0x548] sm:$0xf] }
  0xce   :  { %v9605_v12 = vld [vmem:[%s15218_s5 + $0x564] sm:$0xf0] }
  0xcf   :  { %2256 = vmatpush.bf16.msrb.mxu2 %v6619_v41  ;;  %2269 = vmatpush.bf16.msrb.mxu3 %v6875_v45 }
  0xd0   :  { %2282 = vmatpush.bf16.msra.mxu0 %v7131_v20  ;;  %2295 = vmatpush.bf16.msra.mxu1 %v7387_v22  ;;  %v6718_v20 = vld [vmem:[%s15218_s5 + $0x148] sm:$0xf] }
  0xd1   :  { %v6974_v22 = vld [vmem:[%s15218_s5 + $0x348] sm:$0xf]  ;;  %v6719_v27 = vor.u32 %v9477_v21, %v6718_v20  ;;  %v7231_v20 = vor.u32 %v9605_v12, %v7230_v11 }
  0xd2   :  { %v7070_v11 = vld [vmem:[%s15218_s5 + $0x408] sm:$0xf] }
  0xd3   :  { %2257 = vmatpush.bf16.msrb.mxu2 %v6587_v53  ;;  %2270 = vmatpush.bf16.msrb.mxu3 %v6843_v57  ;;  %v9565_v12 = vld [vmem:[%s15218_s5 + $0x424] sm:$0xf0] }
  0xd4   :  { %2283 = vmatpush.bf16.msra.mxu0 %v7099_v29  ;;  %2296 = vmatpush.bf16.msra.mxu1 %v7355_v32  ;;  %v6686_v29 = vld [vmem:[%s15218_s5 + $0x108] sm:$0xf] }
  0xd5   :  { %v9469_v32 = vld [vmem:[%s15218_s5 + $0x124] sm:$0xf0] }
  0xd7   :  { %2258 = vmatpush.bf16.msrb.mxu2 %v6555_v1  ;;  %2271 = vmatpush.bf16.msrb.mxu3 %v6811_v4  ;;  %v7039_v4 = vor.u32 %v9557_v61, %v7038_v60  ;;  %v9517_v60 = vld [vmem:[%s15218_s5 + $0x2a4] sm:$0xf0] }
  0xd8   :  { %2284 = vmatpush.bf16.msra.mxu0 %v7067_v39  ;;  %2297 = vmatpush.bf16.msra.mxu1 %v7323_v42  ;;  %v7262_v61 = vld [vmem:[%s15218_s5 + $0x588] sm:$0xf] }
 0x117   :  { %v542_v24 = vpop.f32.mrf.mxu0  ;;  %v555_v25 = vpop.f32.mrf.mxu1 }
 0x118   :  { %v543_v33 = vadd.f32 %v542_v24, %v173_v23  ;;  %v9541_v23 = vld [vmem:[%s15218_s5 + $0x364] sm:$0xf0] }
 0x119   :  { %v6975_v28 = vor.u32 %v9541_v23, %v6974_v22  ;;  %v9501_v22 = vld [vmem:[%s15218_s5 + $0x224] sm:$0xf0] }
 0x11a   :  { %v556_v43 = vadd.f32 %v555_v25, %v543_v33  ;;  %v6942_v33 = vld [vmem:[%s15218_s5 + $0x308] sm:$0xf] }
 0x11b   :  { %v6943_v39 = vor.u32 %v9533_v34, %v6942_v33  ;;  %v7198_v23 = vld [vmem:[%s15218_s5 + $0x508] sm:$0xf] }
 0x11c   :  { %v516_v37 = vpop.f32.mrf.mxu2  ;;  %v529_v38 = vpop.f32.mrf.mxu3 }
 0x11d   :  { %v517_v41 = vadd.f32 %v516_v37, %v172_v31 }
 0x11f   :  { %v530_v44 = vadd.f32 %v529_v38, %v517_v41  ;;  %v544_v45 = vpop.f32.mrf.mxu0  ;;  %v557_v46 = vpop.f32.mrf.mxu1  ;;  %v6687_v38 = vor.u32 %v9469_v32, %v6686_v29  ;;  %v9461_v41 = vld [vmem:[%s15218_s5 + $0xe4] sm:$0xf0]  ;;  %v9553_v29 = vld [vmem:[%s15218_s5 + $0x3cc] sm:$0xf] }
 0x120   :  { %v7294_v45 = vld [vmem:[%s15218_s5 + $0x5c8] sm:$0xf] }
 0x121   :  { %v611_v47 = vpack.c.bf16 %v556_v43, %v530_v44  ;;  %v6910_v43 = vld [vmem:[%s15218_s5 + $0x2c8] sm:$0xf] }
 0x122   :  { %v9525_v44 = vld [vmem:[%s15218_s5 + $0x2e4] sm:$0xf0] }
 0x123   :  { %v613_v48 = vunpack.c.l.bf16 %v611_v47  ;;  %v614_v49 = vunpack.c.h.bf16 %v611_v47 }
 0x124   :  { %v518_v50 = vpop.f32.mrf.mxu2  ;;  %v531_v51 = vpop.f32.mrf.mxu3 }
 0x125   :  { %vm617_vm4 = vcmp.gt.f32.partialorder %v613_v48, 0.0  ;;  %vm618_vm5 = vcmp.gt.f32.partialorder %v614_v49, 0.0  ;;  %v621_v52 = vmul.f32 0.20019531, %v613_v48  ;;  %v622_v53 = vmul.f32 0.20019531, %v614_v49  ;;  %v9621_v48 = vld [vmem:[%s15218_s5 + $0x5e4] sm:$0xf0] }
 0x126   :  { %vm627_vm6 = vmpackc.low %vm618_vm5, %vm617_vm4  ;;  %v7550_v49 = vld [vmem:[%s15218_s5 + $0x7c8] sm:$0xf] }
 0x127   :  { %v625_v54 = vpack.c.bf16 %v622_v53, %v621_v52  ;;  %v594_v56 = vpop.f32.mrf.mxu0  ;;  %v607_v57 = vpop.f32.mrf.mxu1  ;;  %v9685_v50 = vld [vmem:[%s15218_s5 + $0x7e4] sm:$0xf0]  ;;  %v6655_v53 = vor.u32 %v9461_v41, %v6654_v40  ;;  %v9481_v41 = vld [vmem:[%s15218_s5 + $0x18c] sm:$0xf] }
 0x128   :  { %v595_v2 = vadd.f32 %v594_v56, %v175_v55  ;;  %v6622_v55 = vld [vmem:[%s15218_s5 + $0x88] sm:$0xf]  ;;  %v7551_v58 = vor.u32 %v9685_v50, %v7550_v49 }
 0x129   :  { %v629_v62 = vsel %vm627_vm6, %v611_v47, %v625_v54  ;;  %v6911_v54 = vor.u32 %v9525_v44, %v6910_v43  ;;  %v9453_v56 = vld [vmem:[%s15218_s5 + $0xa4] sm:$0xf0]  ;;  %v9545_v43 = vld [vmem:[%s15218_s5 + $0x38c] sm:$0xf]  ;;  %vm6256_vm6 = vcmask 130048  }
 0x12a   :  { %v907_v0 = vunpack.c.l.b16 %v629_v62  ;;  %v908_v1 = vunpack.c.h.b16 %v629_v62  ;;  %v608_v15 = vadd.f32 %v607_v57, %v595_v2  ;;  %v7295_v57 = vor.u32 %v9621_v48, %v7294_v45  ;;  %v9613_v62 = vld [vmem:[%s15218_s5 + $0x5a4] sm:$0xf0]  ;;  %v7008_v44 = vld [vmem:[%s15218_s5 + $0x3a8] sm:$0xf0] }
 0x12b   :  { %v6879_v2 = vor.u32 %v9517_v60, %v6878_v59  ;;  %v7263_v5 = vor.u32 %v9613_v62, %v7262_v61  ;;  %v9653_v40 = vld [vmem:[%s15218_s5 + $0x6e4] sm:$0xf0]  ;;  %v7011_v50 = vor.u32 %v9545_v43, %v7008_v44 }
 0x12c   :  { %v11070_v7 = vpack.c.b16 %v907_v0, %v907_v0  ;;  %v11072_v8 = vpack.c.b16 %v908_v1, %v908_v1  ;;  %v568_v9 = vpop.f32.mrf.mxu2  ;;  %v581_v10 = vpop.f32.mrf.mxu3  ;;  %v9677_v0 = vld [vmem:[%s15218_s5 + $0x7a4] sm:$0xf0]  ;;  %v6623_v1 = vor.u32 %v9453_v56, %v6622_v55  ;;  %v9473_v55 = vld [vmem:[%s15218_s5 + $0x14c] sm:$0xf] }
 0x12d   :  { %v569_v13 = vadd.f32 %v568_v9, %v174_v63  ;;  %v7518_v63 = vld [vmem:[%s15218_s5 + $0x788] sm:$0xf]  ;;  %v6720_v56 = vld [vmem:[%s15218_s5 + $0x168] sm:$0xf0] }
 0x12e   :  { %2207 = vmatmul.bf16.vlgmr.msra.gmra.mxu2 %v11070_v7  ;;  %2220 = vmatmul.bf16.vlgmr.msra.gmra.mxu3 %v11072_v8  ;;  %v7519_v6 = vor.u32 %v9677_v0, %v7518_v63  ;;  %v6846_v9 = vld [vmem:[%s15218_s5 + $0x248] sm:$0xf]  ;;  %v6723_v63 = vor.u32 %v9473_v55, %v6720_v56  ;;  %v9433_v55 = vld [vmem:[%s15218_s5 + $0xc] sm:$0xf] }
 0x12f   :  { %v582_v16 = vadd.f32 %v581_v10, %v569_v13  ;;  %v596_v17 = vpop.f32.mrf.mxu0  ;;  %v609_v18 = vpop.f32.mrf.mxu1  ;;  %2303 = vmatpush.bf16.msra.mxu2 %v6783_v3  ;;  %2316 = vmatpush.bf16.msra.mxu3 %v7039_v4  ;;  %v6590_v3 = vld [vmem:[%s15218_s5 + $0x48] sm:$0xf]  ;;  %v6560_v56 = vld [vmem:[%s15218_s5 + $0x28] sm:$0xf0] }
 0x130   :  { %v9445_v4 = vld [vmem:[%s15218_s5 + $0x64] sm:$0xf0] }
 0x131   :  { %v612_v24 = vpack.c.bf16 %v608_v15, %v582_v16  ;;  %v9509_v10 = vld [vmem:[%s15218_s5 + $0x264] sm:$0xf0]  ;;  %v6591_v15 = vor.u32 %v9445_v4, %v6590_v3  ;;  %v9465_v3 = vld [vmem:[%s15218_s5 + $0x10c] sm:$0xf] }
 0x132   :  { %v7486_v13 = vld [vmem:[%s15218_s5 + $0x748] sm:$0xf]  ;;  %v6847_v16 = vor.u32 %v9509_v10, %v6846_v9  ;;  %v6688_v4 = vld [vmem:[%s15218_s5 + $0x128] sm:$0xf0] }
 0x133   :  { %v615_v25 = vunpack.c.l.bf16 %v612_v24  ;;  %v616_v26 = vunpack.c.h.bf16 %v612_v24  ;;  %2304 = vmatpush.bf16.msra.mxu2 %v6751_v14  ;;  %2317 = vmatpush.bf16.msra.mxu3 %v7007_v19  ;;  %v9669_v14 = vld [vmem:[%s15218_s5 + $0x764] sm:$0xf0] }
 0x134   :  { %v570_v30 = vpop.f32.mrf.mxu2  ;;  %v583_v31 = vpop.f32.mrf.mxu3  ;;  %v6558_v17 = vld [vmem:[%s15218_s5 + $0x8] sm:$0xf]  ;;  %v7487_v21 = vor.u32 %v9669_v14, %v7486_v13  ;;  %v6691_v14 = vor.u32 %v9465_v3, %v6688_v4  ;;  %v7046_v3 = vld [vmem:[%s15218_s5 + $0x3d0] sm:$0xf] }
 0x135   :  { %vm619_vm7 = vcmp.gt.f32.partialorder %v615_v25, 0.0  ;;  %vm620_vm8 = vcmp.gt.f32.partialorder %v616_v26, 0.0  ;;  %v623_v35 = vmul.f32 0.20019531, %v615_v25  ;;  %v624_v36 = vmul.f32 0.20019531, %v616_v26  ;;  %v9437_v18 = vld [vmem:[%s15218_s5 + $0x24] sm:$0xf0] }
 0x136   :  { %vm628_vm9 = vmpackc.low %vm620_vm8, %vm619_vm7  ;;  %v6814_v19 = vld [vmem:[%s15218_s5 + $0x208] sm:$0xf]  ;;  %v7040_v30 = vld [vmem:[%s15218_s5 + $0x3e8] sm:$0xf0]  ;;  %v6559_v31 = vor.u32 %v9437_v18, %v6558_v17 }
 0x137   :  { %v626_v37 = vpack.c.bf16 %v624_v36, %v623_v35  ;;  %2305 = vmatpush.bf16.msra.mxu2 %v6719_v27  ;;  %2318 = vmatpush.bf16.msra.mxu3 %v6975_v28  ;;  %v7454_v25 = vld [vmem:[%s15218_s5 + $0x708] sm:$0xf]  ;;  %v9489_v27 = vld [vmem:[%s15218_s5 + $0x1cc] sm:$0xf]  ;;  %v6815_v32 = vor.u32 %v9501_v22, %v6814_v19  ;;  %v9558_v4 = vld [vmem:[%s15218_s5 + $0x3ec] sm:$0xf0] }
 0x138   :  { %v9661_v26 = vld [vmem:[%s15218_s5 + $0x724] sm:$0xf0]  ;;  %v6784_v28 = vld [vmem:[%s15218_s5 + $0x1e8] sm:$0xf0] }
 0x139   :  { %v630_v42 = vsel %vm628_vm9, %v612_v24, %v626_v37  ;;  %v9597_v24 = vld [vmem:[%s15218_s5 + $0x524] sm:$0xf0]  ;;  %v7455_v34 = vor.u32 %v9661_v26, %v7454_v25  ;;  %v6787_v37 = vor.u32 %v9489_v27, %v6784_v28  ;;  %v9457_v17 = vld [vmem:[%s15218_s5 + $0xcc] sm:$0xf]  ;;  %v7071_v25 = vor.u32 %v9565_v12, %v7070_v11 }
 0x13a   :  { %v909_v46 = vunpack.c.l.b16 %v630_v42  ;;  %v910_v47 = vunpack.c.h.b16 %v630_v42  ;;  %v7199_v33 = vor.u32 %v9597_v24, %v7198_v23  ;;  %v7166_v35 = vld [vmem:[%s15218_s5 + $0x4c8] sm:$0xf]  ;;  %v6752_v42 = vld [vmem:[%s15218_s5 + $0x1a8] sm:$0xf0] }
 0x13b   :  { %2306 = vmatpush.bf16.msra.mxu2 %v6687_v38  ;;  %2319 = vmatpush.bf16.msra.mxu3 %v6943_v39  ;;  %v9589_v36 = vld [vmem:[%s15218_s5 + $0x4e4] sm:$0xf0]  ;;  %v7043_v38 = vor.u32 %v9553_v29, %v7040_v30  ;;  %v6755_v49 = vor.u32 %v9481_v41, %v6752_v42  ;;  %v6656_v18 = vld [vmem:[%s15218_s5 + $0xe8] sm:$0xf0] }
 0x13c   :  { %v11130_v51 = vpack.c.b16 %v909_v46, %v909_v46  ;;  %v11132_v52 = vpack.c.b16 %v910_v47, %v910_v47  ;;  %v7422_v39 = vld [vmem:[%s15218_s5 + $0x6c8] sm:$0xf]  ;;  %v7167_v45 = vor.u32 %v9589_v36, %v7166_v35  ;;  %v9521_v19 = vld [vmem:[%s15218_s5 + $0x2cc] sm:$0xf]  ;;  %v6659_v27 = vor.u32 %v9457_v17, %v6656_v18  ;;  %v6758_v17 = vld [vmem:[%s15218_s5 + $0x190] sm:$0xf] }
 0x13d   :  { %v7423_v46 = vor.u32 %v9653_v40, %v7422_v39  ;;  %v7134_v47 = vld [vmem:[%s15218_s5 + $0x488] sm:$0xf]  ;;  %v7296_v22 = vld [vmem:[%s15218_s5 + $0x5e8] sm:$0xf0]  ;;  %v9486_v18 = vld [vmem:[%s15218_s5 + $0x1ac] sm:$0xf0] }
 0x13e   :  { %2233 = vmatmul.bf16.vlgmr.msrb.gmra.mxu0 %v11130_v51  ;;  %2246 = vmatmul.bf16.vlgmr.msrb.gmra.mxu1 %v11132_v52  ;;  %v9581_v48 = vld [vmem:[%s15218_s5 + $0x4a4] sm:$0xf0]  ;;  %v9681_v23 = vld [vmem:[%s15218_s5 + $0x7cc] sm:$0xf] }
 0x13f   :  { %2259 = vmatmul.bf16.vlgmr.msrb.gmra.mxu2 %v11070_v7  ;;  %2272 = vmatmul.bf16.vlgmr.msrb.gmra.mxu3 %v11072_v8  ;;  %v7135_v59 = vor.u32 %v9581_v48, %v7134_v47  ;;  %v7102_v61 = vld [vmem:[%s15218_s5 + $0x448] sm:$0xf]  ;;  %v7552_v24 = vld [vmem:[%s15218_s5 + $0x7e8] sm:$0xf0] }
 0x140   :  { %2307 = vmatpush.bf16.msra.mxu2 %v6655_v53  ;;  %2320 = vmatpush.bf16.msra.mxu3 %v6911_v54  ;;  %v7390_v53 = vld [vmem:[%s15218_s5 + $0x688] sm:$0xf]  ;;  %v9449_v29 = vld [vmem:[%s15218_s5 + $0x8c] sm:$0xf] }
 0x141   :  { %2329 = vmatpush.bf16.msrb.mxu0 %v7295_v57  ;;  %2342 = vmatpush.bf16.msrb.mxu1 %v7551_v58  ;;  %v9645_v54 = vld [vmem:[%s15218_s5 + $0x6a4] sm:$0xf0]  ;;  %v9537_v57 = vld [vmem:[%s15218_s5 + $0x34c] sm:$0xf] }
 0x142   :  { %v6976_v58 = vld [vmem:[%s15218_s5 + $0x368] sm:$0xf0]  ;;  %v7391_v60 = vor.u32 %v9645_v54, %v7390_v53  ;;  %v9573_v62 = vld [vmem:[%s15218_s5 + $0x464] sm:$0xf0] }
 0x143   :  { %v6979_v0 = vor.u32 %v9537_v57, %v6976_v58  ;;  %v7103_v9 = vor.u32 %v9573_v62, %v7102_v61  ;;  %v7326_v13 = vld [vmem:[%s15218_s5 + $0x608] sm:$0xf]  ;;  %v6624_v30 = vld [vmem:[%s15218_s5 + $0xa8] sm:$0xf0] }
 0x144   :  { %2308 = vmatpush.bf16.msra.mxu2 %v6623_v1  ;;  %2321 = vmatpush.bf16.msra.mxu3 %v6879_v2  ;;  %v7358_v1 = vld [vmem:[%s15218_s5 + $0x648] sm:$0xf]  ;;  %v9609_v35 = vld [vmem:[%s15218_s5 + $0x58c] sm:$0xf]  ;;  %v6627_v39 = vor.u32 %v9449_v29, %v6624_v30  ;;  %v6726_v29 = vld [vmem:[%s15218_s5 + $0x150] sm:$0xf] }
 0x145   :  { %2330 = vmatpush.bf16.msrb.mxu0 %v7263_v5  ;;  %2343 = vmatpush.bf16.msrb.mxu1 %v7519_v6  ;;  %v9637_v2 = vld [vmem:[%s15218_s5 + $0x664] sm:$0xf0]  ;;  %v9529_v5 = vld [vmem:[%s15218_s5 + $0x30c] sm:$0xf]  ;;  %v9478_v30 = vld [vmem:[%s15218_s5 + $0x16c] sm:$0xf0] }
 0x146   :  { %v6944_v6 = vld [vmem:[%s15218_s5 + $0x328] sm:$0xf0]  ;;  %v7359_v10 = vor.u32 %v9637_v2, %v7358_v1  ;;  %v6790_v1 = vld [vmem:[%s15218_s5 + $0x1d0] sm:$0xf] }
 0x147   :  { %v7264_v36 = vld [vmem:[%s15218_s5 + $0x5a8] sm:$0xf0]  ;;  %v9494_v2 = vld [vmem:[%s15218_s5 + $0x1ec] sm:$0xf0] }
 0x148   :  { %2309 = vmatpush.bf16.msra.mxu2 %v6591_v15  ;;  %2322 = vmatpush.bf16.msra.mxu3 %v6847_v16  ;;  %v6947_v15 = vor.u32 %v9529_v5, %v6944_v6  ;;  %v9629_v16 = vld [vmem:[%s15218_s5 + $0x624] sm:$0xf0]  ;;  %v9441_v41 = vld [vmem:[%s15218_s5 + $0x4c] sm:$0xf]  ;;  %v7267_v43 = vor.u32 %v9609_v35, %v7264_v36  ;;  %v6563_v5 = vor.u32 %v9433_v55, %v6560_v56  ;;  %v6662_v55 = vld [vmem:[%s15218_s5 + $0xd0] sm:$0xf] }
 0x149   :  { %2331 = vmatpush.bf16.msrb.mxu0 %v7231_v20  ;;  %2344 = vmatpush.bf16.msrb.mxu1 %v7487_v21  ;;  %v6912_v20 = vld [vmem:[%s15218_s5 + $0x2e8] sm:$0xf0]  ;;  %v7327_v26 = vor.u32 %v9629_v16, %v7326_v13  ;;  %v6791_v13 = vor.u32 %v9494_v2, %v6790_v1  ;;  %v9462_v56 = vld [vmem:[%s15218_s5 + $0xec] sm:$0xf0] }
 0x14a   :  { %v9617_v21 = vld [vmem:[%s15218_s5 + $0x5cc] sm:$0xf]  ;;  %v6915_v28 = vor.u32 %v9521_v19, %v6912_v20  ;;  %v7014_v19 = vld [vmem:[%s15218_s5 + $0x390] sm:$0xf]  ;;  %v6663_v1 = vor.u32 %v9462_v56, %v6662_v55  ;;  %v9482_v55 = vld [vmem:[%s15218_s5 + $0x194] sm:$0xf] }
 0x14b   :  { %v6592_v42 = vld [vmem:[%s15218_s5 + $0x68] sm:$0xf0]  ;;  %v9550_v20 = vld [vmem:[%s15218_s5 + $0x3ac] sm:$0xf0]  ;;  %v6760_v56 = vld [vmem:[%s15218_s5 + $0x1b0] sm:$0xf0] }
 0x14c   :  { %2310 = vmatpush.bf16.msra.mxu2 %v6559_v31  ;;  %2323 = vmatpush.bf16.msra.mxu3 %v6815_v32  ;;  %v7299_v31 = vor.u32 %v9617_v21, %v7296_v22  ;;  %v7555_v32 = vor.u32 %v9681_v23, %v7552_v24  ;;  %v9601_v47 = vld [vmem:[%s15218_s5 + $0x54c] sm:$0xf]  ;;  %v6595_v53 = vor.u32 %v9441_v41, %v6592_v42  ;;  %v6694_v41 = vld [vmem:[%s15218_s5 + $0x110] sm:$0xf] }
 0x14d   :  { %2332 = vmatpush.bf16.msrb.mxu0 %v7199_v33  ;;  %2345 = vmatpush.bf16.msrb.mxu1 %v7455_v34  ;;  %v9513_v33 = vld [vmem:[%s15218_s5 + $0x28c] sm:$0xf]  ;;  %v9470_v42 = vld [vmem:[%s15218_s5 + $0x12c] sm:$0xf0] }
 0x14e   :  { %2285 = vmatmul.bf16.vlgmr.msra.gmra.mxu0 %v11130_v51  ;;  %2298 = vmatmul.bf16.vlgmr.msra.gmra.mxu1 %v11132_v52  ;;  %v6880_v34 = vld [vmem:[%s15218_s5 + $0x2a8] sm:$0xf0] }
 0x14f   :  { %2311 = vmatmul.bf16.vlgmr.msra.gmra.mxu2 %v11070_v7  ;;  %2324 = vmatmul.bf16.vlgmr.msra.gmra.mxu3 %v11072_v8  ;;  %v6883_v40 = vor.u32 %v9513_v33, %v6880_v34  ;;  %v7232_v48 = vld [vmem:[%s15218_s5 + $0x568] sm:$0xf0] }
 0x150   :  { %2355 = vmatpush.bf16.msrb.mxu2 %v6787_v37  ;;  %2368 = vmatpush.bf16.msrb.mxu3 %v7043_v38  ;;  %v9673_v37 = vld [vmem:[%s15218_s5 + $0x78c] sm:$0xf]  ;;  %v7235_v58 = vor.u32 %v9601_v47, %v7232_v48 }
 0x151   :  { %2333 = vmatpush.bf16.msrb.mxu0 %v7167_v45  ;;  %2346 = vmatpush.bf16.msrb.mxu1 %v7423_v46  ;;  %v7520_v38 = vld [vmem:[%s15218_s5 + $0x7a8] sm:$0xf0] }
 0x152   :  { %v7523_v44 = vor.u32 %v9673_v37, %v7520_v38  ;;  %v9505_v45 = vld [vmem:[%s15218_s5 + $0x24c] sm:$0xf]  ;;  %v6727_v37 = vor.u32 %v9478_v30, %v6726_v29  ;;  %v6566_v29 = vld [vmem:[%s15218_s5 + $0x10] sm:$0xf] }
 0x153   :  { %v6848_v46 = vld [vmem:[%s15218_s5 + $0x268] sm:$0xf0]  ;;  %v9438_v30 = vld [vmem:[%s15218_s5 + $0x2c] sm:$0xf0] }
 0x154   :  { %2356 = vmatpush.bf16.msrb.mxu2 %v6755_v49  ;;  %2369 = vmatpush.bf16.msrb.mxu3 %v7011_v50  ;;  %v9665_v49 = vld [vmem:[%s15218_s5 + $0x74c] sm:$0xf]  ;;  %v6851_v54 = vor.u32 %v9505_v45, %v6848_v46 }
 0x155   :  { %2334 = vmatpush.bf16.msrb.mxu0 %v7135_v59  ;;  %2347 = vmatpush.bf16.msrb.mxu1 %v7391_v60  ;;  %v7488_v50 = vld [vmem:[%s15218_s5 + $0x768] sm:$0xf0] }
 0x156   :  { %v9497_v57 = vld [vmem:[%s15218_s5 + $0x20c] sm:$0xf]  ;;  %v7491_v59 = vor.u32 %v9665_v49, %v7488_v50  ;;  %v6695_v50 = vor.u32 %v9470_v42, %v6694_v41  ;;  %v9554_v41 = vld [vmem:[%s15218_s5 + $0x3d4] sm:$0xf] }
 0x157   :  { %v6816_v60 = vld [vmem:[%s15218_s5 + $0x228] sm:$0xf0]  ;;  %v7048_v42 = vld [vmem:[%s15218_s5 + $0x3f0] sm:$0xf0] }
 0x158   :  { %2357 = vmatpush.bf16.msrb.mxu2 %v6723_v63  ;;  %2370 = vmatpush.bf16.msrb.mxu3 %v6979_v0  ;;  %v9593_v61 = vld [vmem:[%s15218_s5 + $0x50c] sm:$0xf]  ;;  %v6819_v6 = vor.u32 %v9497_v57, %v6816_v60  ;;  %v6918_v57 = vld [vmem:[%s15218_s5 + $0x2d0] sm:$0xf] }
 0x159   :  { %2335 = vmatpush.bf16.msrb.mxu0 %v7103_v9  ;;  %2348 = vmatpush.bf16.msrb.mxu1 %v7359_v10  ;;  %v7200_v62 = vld [vmem:[%s15218_s5 + $0x528] sm:$0xf0]  ;;  %v9622_v60 = vld [vmem:[%s15218_s5 + $0x5ec] sm:$0xf0] }
 0x15a   :  { %v9657_v63 = vld [vmem:[%s15218_s5 + $0x70c] sm:$0xf]  ;;  %v7203_v9 = vor.u32 %v9593_v61, %v7200_v62  ;;  %v7558_v61 = vld [vmem:[%s15218_s5 + $0x7d0] sm:$0xf] }
 0x15b   :  { %v7456_v0 = vld [vmem:[%s15218_s5 + $0x728] sm:$0xf0]  ;;  %v9686_v62 = vld [vmem:[%s15218_s5 + $0x7ec] sm:$0xf0] }
 0x15c   :  { %2358 = vmatpush.bf16.msrb.mxu2 %v6691_v14  ;;  %2371 = vmatpush.bf16.msrb.mxu3 %v6947_v15  ;;  %v7459_v10 = vor.u32 %v9657_v63, %v7456_v0  ;;  %v9585_v11 = vld [vmem:[%s15218_s5 + $0x4cc] sm:$0xf]  ;;  %v7047_v14 = vor.u32 %v9558_v4, %v7046_v3  ;;  %v6630_v3 = vld [vmem:[%s15218_s5 + $0x90] sm:$0xf] }
 0x15d   :  { %2336 = vmatpush.bf16.msrb.mxu0 %v7071_v25  ;;  %2349 = vmatpush.bf16.msrb.mxu1 %v7327_v26  ;;  %v7168_v12 = vld [vmem:[%s15218_s5 + $0x4e8] sm:$0xf0]  ;;  %v6759_v25 = vor.u32 %v9486_v18, %v6758_v17  ;;  %v7015_v26 = vor.u32 %v9550_v20, %v7014_v19  ;;  %v9454_v4 = vld [vmem:[%s15218_s5 + $0xac] sm:$0xf0] }
 0x15e   :  { %v9649_v15 = vld [vmem:[%s15218_s5 + $0x6cc] sm:$0xf]  ;;  %v7171_v21 = vor.u32 %v9585_v11, %v7168_v12  ;;  %v7270_v11 = vld [vmem:[%s15218_s5 + $0x590] sm:$0xf] }
 0x15f   :  { %v7424_v16 = vld [vmem:[%s15218_s5 + $0x6e8] sm:$0xf0]  ;;  %v9614_v12 = vld [vmem:[%s15218_s5 + $0x5ac] sm:$0xf0] }
 0x160   :  { %2359 = vmatpush.bf16.msrb.mxu2 %v6659_v27  ;;  %2372 = vmatpush.bf16.msrb.mxu3 %v6915_v28  ;;  %v7427_v22 = vor.u32 %v9649_v15, %v7424_v16  ;;  %v9577_v23 = vld [vmem:[%s15218_s5 + $0x48c] sm:$0xf]  ;;  %v6631_v15 = vor.u32 %v9454_v4, %v6630_v3  ;;  %v6598_v17 = vld [vmem:[%s15218_s5 + $0x50] sm:$0xf]  ;;  %v7271_v19 = vor.u32 %v9614_v12, %v7270_v11  ;;  %v9474_v3 = vld [vmem:[%s15218_s5 + $0x154] sm:$0xf] }
 0x161   :  { %2381 = vmatpush.bf16.msra.mxu0 %v7299_v31  ;;  %2394 = vmatpush.bf16.msra.mxu1 %v7555_v32  ;;  %v7136_v24 = vld [vmem:[%s15218_s5 + $0x4a8] sm:$0xf0]  ;;  %v6982_v31 = vld [vmem:[%s15218_s5 + $0x350] sm:$0xf]  ;;  %v6728_v4 = vld [vmem:[%s15218_s5 + $0x170] sm:$0xf0] }
 0x162   :  { %2337 = vmatmul.bf16.vlgmr.msrb.gmra.mxu0 %v11130_v51  ;;  %2350 = vmatmul.bf16.vlgmr.msrb.gmra.mxu1 %v11132_v52  ;;  %v9641_v27 = vld [vmem:[%s15218_s5 + $0x68c] sm:$0xf]  ;;  %v9542_v32 = vld [vmem:[%s15218_s5 + $0x36c] sm:$0xf0]  ;;  %v7139_v33 = vor.u32 %v9577_v23, %v7136_v24 }
 0x163   :  { %v7392_v28 = vld [vmem:[%s15218_s5 + $0x6a8] sm:$0xf0]  ;;  %v6983_v38 = vor.u32 %v9542_v32, %v6982_v31  ;;  %v9446_v18 = vld [vmem:[%s15218_s5 + $0x6c] sm:$0xf0] }
 0x164   :  { %2360 = vmatpush.bf16.msrb.mxu2 %v6627_v39  ;;  %2373 = vmatpush.bf16.msrb.mxu3 %v6883_v40  ;;  %v7395_v34 = vor.u32 %v9641_v27, %v7392_v28  ;;  %v9569_v35 = vld [vmem:[%s15218_s5 + $0x44c] sm:$0xf]  ;;  %v7238_v23 = vld [vmem:[%s15218_s5 + $0x550] sm:$0xf]  ;;  %v6599_v27 = vor.u32 %v9446_v18, %v6598_v17  ;;  %v9466_v17 = vld [vmem:[%s15218_s5 + $0x114] sm:$0xf] }
 0x165   :  { %2382 = vmatpush.bf16.msra.mxu0 %v7267_v43  ;;  %2395 = vmatpush.bf16.msra.mxu1 %v7523_v44  ;;  %v7104_v36 = vld [vmem:[%s15218_s5 + $0x468] sm:$0xf0]  ;;  %v6950_v43 = vld [vmem:[%s15218_s5 + $0x310] sm:$0xf]  ;;  %v6696_v18 = vld [vmem:[%s15218_s5 + $0x130] sm:$0xf0] }
 0x166   :  { %v9633_v39 = vld [vmem:[%s15218_s5 + $0x64c] sm:$0xf]  ;;  %v9534_v44 = vld [vmem:[%s15218_s5 + $0x32c] sm:$0xf0]  ;;  %v7107_v45 = vor.u32 %v9569_v35, %v7104_v36 }
 0x167   :  { %v7360_v40 = vld [vmem:[%s15218_s5 + $0x668] sm:$0xf0]  ;;  %v9606_v24 = vld [vmem:[%s15218_s5 + $0x56c] sm:$0xf0] }
 0x168   :  { %2361 = vmatpush.bf16.msrb.mxu2 %v6595_v53  ;;  %2374 = vmatpush.bf16.msrb.mxu3 %v6851_v54  ;;  %v7363_v46 = vor.u32 %v9633_v39, %v7360_v40  ;;  %v9561_v47 = vld [vmem:[%s15218_s5 + $0x40c] sm:$0xf]  ;;  %v6951_v53 = vor.u32 %v9534_v44, %v6950_v43  ;;  %v6822_v31 = vld [vmem:[%s15218_s5 + $0x210] sm:$0xf]  ;;  %v7239_v32 = vor.u32 %v9606_v24, %v7238_v23  ;;  %v9490_v39 = vld [vmem:[%s15218_s5 + $0x1d4] sm:$0xf] }
 0x169   :  { %2383 = vmatpush.bf16.msra.mxu0 %v7235_v58  ;;  %2396 = vmatpush.bf16.msra.mxu1 %v7491_v59  ;;  %v7072_v48 = vld [vmem:[%s15218_s5 + $0x428] sm:$0xf0]  ;;  %v9526_v58 = vld [vmem:[%s15218_s5 + $0x2ec] sm:$0xf0]  ;;  %v6792_v40 = vld [vmem:[%s15218_s5 + $0x1f0] sm:$0xf0]  ;;  %v6567_v43 = vor.u32 %v9438_v30, %v6566_v29 }
 0x16a   :  { %v9625_v49 = vld [vmem:[%s15218_s5 + $0x60c] sm:$0xf]  ;;  %v7302_v59 = vld [vmem:[%s15218_s5 + $0x5d0] sm:$0xf]  ;;  %v7075_v63 = vor.u32 %v9561_v47, %v7072_v48  ;;  %v6919_v2 = vor.u32 %v9526_v58, %v6918_v57  ;;  %v9546_v57 = vld [vmem:[%s15218_s5 + $0x394] sm:$0xf] }
 0x16b   :  { %v7328_v54 = vld [vmem:[%s15218_s5 + $0x628] sm:$0xf0]  ;;  %v7206_v35 = vld [vmem:[%s15218_s5 + $0x510] sm:$0xf]  ;;  %v7016_v58 = vld [vmem:[%s15218_s5 + $0x3b0] sm:$0xf0] }
 0x16c   :  { %2362 = vmatpush.bf16.msrb.mxu2 %v6563_v5  ;;  %2375 = vmatpush.bf16.msrb.mxu3 %v6819_v6  ;;  %v7331_v0 = vor.u32 %v9625_v49, %v7328_v54  ;;  %v7303_v5 = vor.u32 %v9622_v60, %v7302_v59  ;;  %v7559_v6 = vor.u32 %v9686_v62, %v7558_v61  ;;  %v9598_v36 = vld [vmem:[%s15218_s5 + $0x52c] sm:$0xf0]  ;;  %v9458_v29 = vld [vmem:[%s15218_s5 + $0xd4] sm:$0xf] }
 0x16d   :  { %2384 = vmatpush.bf16.msra.mxu0 %v7203_v9  ;;  %2397 = vmatpush.bf16.msra.mxu1 %v7459_v10  ;;  %v6886_v9 = vld [vmem:[%s15218_s5 + $0x290] sm:$0xf]  ;;  %v6795_v49 = vor.u32 %v9490_v39, %v6792_v40  ;;  %v6664_v30 = vld [vmem:[%s15218_s5 + $0xf0] sm:$0xf0] }
 0x16e   :  { %v9518_v10 = vld [vmem:[%s15218_s5 + $0x2ac] sm:$0xf0]  ;;  %v6667_v39 = vor.u32 %v9458_v29, %v6664_v30  ;;  %v6766_v29 = vld [vmem:[%s15218_s5 + $0x198] sm:$0xf] }
 0x16f   :  { %2363 = vmatmul.bf16.vlgmr.msrb.gmra.mxu2 %v11070_v7  ;;  %2376 = vmatmul.bf16.vlgmr.msrb.gmra.mxu3 %v11072_v8  ;;  %v6887_v16 = vor.u32 %v9518_v10, %v6886_v9  ;;  %v7174_v47 = vld [vmem:[%s15218_s5 + $0x4d0] sm:$0xf]  ;;  %v9487_v30 = vld [vmem:[%s15218_s5 + $0x1b4] sm:$0xf0] }
 0x170   :  { %2407 = vmatpush.bf16.msra.mxu2 %v6791_v13  ;;  %2420 = vmatpush.bf16.msra.mxu3 %v7047_v14  ;;  %v7526_v13 = vld [vmem:[%s15218_s5 + $0x790] sm:$0xf] }
 0x171   :  { %2385 = vmatpush.bf16.msra.mxu0 %v7171_v21  ;;  %2398 = vmatpush.bf16.msra.mxu1 %v7427_v22  ;;  %v9678_v14 = vld [vmem:[%s15218_s5 + $0x7ac] sm:$0xf0] }
 0x172   :  { %v7527_v20 = vor.u32 %v9678_v14, %v7526_v13  ;;  %v6854_v21 = vld [vmem:[%s15218_s5 + $0x250] sm:$0xf]  ;;  %v6731_v13 = vor.u32 %v9474_v3, %v6728_v4  ;;  %v9434_v3 = vld [vmem:[%s15218_s5 + $0x14] sm:$0xf] }
 0x173   :  { %v9510_v22 = vld [vmem:[%s15218_s5 + $0x26c] sm:$0xf0]  ;;  %v6568_v4 = vld [vmem:[%s15218_s5 + $0x30] sm:$0xf0] }
 0x174   :  { %2408 = vmatpush.bf16.msra.mxu2 %v6759_v25  ;;  %2421 = vmatpush.bf16.msra.mxu3 %v7015_v26  ;;  %v7494_v25 = vld [vmem:[%s15218_s5 + $0x750] sm:$0xf]  ;;  %v6855_v28 = vor.u32 %v9510_v22, %v6854_v21 }
 0x175   :  { %2386 = vmatpush.bf16.msra.mxu0 %v7139_v33  ;;  %2399 = vmatpush.bf16.msra.mxu1 %v7395_v34  ;;  %v9670_v26 = vld [vmem:[%s15218_s5 + $0x76c] sm:$0xf0] }
 0x176   :  { %v7495_v33 = vor.u32 %v9670_v26, %v7494_v25  ;;  %v9502_v34 = vld [vmem:[%s15218_s5 + $0x22c] sm:$0xf0]  ;;  %v6699_v26 = vor.u32 %v9466_v17, %v6696_v18  ;;  %v7054_v17 = vld [vmem:[%s15218_s5 + $0x3d8] sm:$0xf] }
 0x177   :  { %v6823_v44 = vor.u32 %v9502_v34, %v6822_v31  ;;  %v9590_v48 = vld [vmem:[%s15218_s5 + $0x4ec] sm:$0xf0]  ;;  %v9522_v31 = vld [vmem:[%s15218_s5 + $0x2d4] sm:$0xf]  ;;  %v9559_v18 = vld [vmem:[%s15218_s5 + $0x3f4] sm:$0xf0] }
 0x178   :  { %2409 = vmatpush.bf16.msra.mxu2 %v6727_v37  ;;  %2422 = vmatpush.bf16.msra.mxu3 %v6983_v38  ;;  %v7462_v37 = vld [vmem:[%s15218_s5 + $0x710] sm:$0xf]  ;;  %v7175_v59 = vor.u32 %v9590_v48, %v7174_v47  ;;  %v7304_v34 = vld [vmem:[%s15218_s5 + $0x5f0] sm:$0xf0] }
 0x179   :  { %2387 = vmatpush.bf16.msra.mxu0 %v7107_v45  ;;  %2400 = vmatpush.bf16.msra.mxu1 %v7363_v46  ;;  %v9662_v38 = vld [vmem:[%s15218_s5 + $0x72c] sm:$0xf0]  ;;  %v7207_v45 = vor.u32 %v9598_v36, %v7206_v35  ;;  %v9682_v35 = vld [vmem:[%s15218_s5 + $0x7d4] sm:$0xf] }
 0x17a   :  { %v7463_v46 = vor.u32 %v9662_v38, %v7462_v37  ;;  %v9654_v54 = vld [vmem:[%s15218_s5 + $0x6ec] sm:$0xf0]  ;;  %v7560_v36 = vld [vmem:[%s15218_s5 + $0x7f0] sm:$0xf0] }
 0x17b   :  { %v7142_v61 = vld [vmem:[%s15218_s5 + $0x490] sm:$0xf]  ;;  %v9610_v47 = vld [vmem:[%s15218_s5 + $0x594] sm:$0xf] }
 0x17c   :  { %2410 = vmatpush.bf16.msra.mxu2 %v6695_v50  ;;  %2423 = vmatpush.bf16.msra.mxu3 %v6951_v53  ;;  %v7051_v50 = vor.u32 %v9554_v41, %v7048_v42  ;;  %v7430_v53 = vld [vmem:[%s15218_s5 + $0x6d0] sm:$0xf]  ;;  %v9450_v41 = vld [vmem:[%s15218_s5 + $0x94] sm:$0xf] }
 0x17d   :  { %2388 = vmatpush.bf16.msra.mxu0 %v7075_v63  ;;  %2401 = vmatpush.bf16.msra.mxu1 %v7331_v0  ;;  %v7431_v60 = vor.u32 %v9654_v54, %v7430_v53  ;;  %v9582_v62 = vld [vmem:[%s15218_s5 + $0x4ac] sm:$0xf0]  ;;  %v6763_v63 = vor.u32 %v9482_v55, %v6760_v56  ;;  %v7019_v0 = vor.u32 %v9546_v57, %v7016_v58  ;;  %v6632_v42 = vld [vmem:[%s15218_s5 + $0xb0] sm:$0xf0] }
 0x17e   :  { %v7143_v9 = vor.u32 %v9582_v62, %v7142_v61  ;;  %v7110_v11 = vld [vmem:[%s15218_s5 + $0x450] sm:$0xf]  ;;  %v7272_v48 = vld [vmem:[%s15218_s5 + $0x5b0] sm:$0xf0]  ;;  %v6635_v53 = vor.u32 %v9450_v41, %v6632_v42  ;;  %v6734_v41 = vld [vmem:[%s15218_s5 + $0x158] sm:$0xf] }
 0x17f   :  { %v9574_v12 = vld [vmem:[%s15218_s5 + $0x46c] sm:$0xf0]  ;;  %v9442_v55 = vld [vmem:[%s15218_s5 + $0x54] sm:$0xf]  ;;  %v7275_v57 = vor.u32 %v9610_v47, %v7272_v48  ;;  %v9479_v42 = vld [vmem:[%s15218_s5 + $0x174] sm:$0xf0] }
 0x180   :  { %2411 = vmatpush.bf16.msra.mxu2 %v6663_v1  ;;  %2424 = vmatpush.bf16.msra.mxu3 %v6919_v2  ;;  %v7398_v1 = vld [vmem:[%s15218_s5 + $0x690] sm:$0xf]  ;;  %v7111_v21 = vor.u32 %v9574_v12, %v7110_v11  ;;  %v6600_v56 = vld [vmem:[%s15218_s5 + $0x70] sm:$0xf0] }
 0x181   :  { %2433 = vmatpush.bf16.msrb.mxu0 %v7303_v5  ;;  %2446 = vmatpush.bf16.msrb.mxu1 %v7559_v6  ;;  %v9646_v2 = vld [vmem:[%s15218_s5 + $0x6ac] sm:$0xf0]  ;;  %v9538_v5 = vld [vmem:[%s15218_s5 + $0x354] sm:$0xf] }
 0x182   :  { %2389 = vmatmul.bf16.vlgmr.msra.gmra.mxu0 %v11130_v51  ;;  %2402 = vmatmul.bf16.vlgmr.msra.gmra.mxu1 %v11132_v52  ;;  %v6984_v6 = vld [vmem:[%s15218_s5 + $0x370] sm:$0xf0]  ;;  %v7399_v10 = vor.u32 %v9646_v2, %v7398_v1  ;;  %v7078_v23 = vld [vmem:[%s15218_s5 + $0x410] sm:$0xf]  ;;  %v6603_v1 = vor.u32 %v9442_v55, %v6600_v56  ;;  %v6702_v55 = vld [vmem:[%s15218_s5 + $0x118] sm:$0xf] }
 0x183   :  { %v6987_v14 = vor.u32 %v9538_v5, %v6984_v6  ;;  %v9566_v24 = vld [vmem:[%s15218_s5 + $0x42c] sm:$0xf0]  ;;  %v9602_v61 = vld [vmem:[%s15218_s5 + $0x554] sm:$0xf]  ;;  %v9471_v56 = vld [vmem:[%s15218_s5 + $0x134] sm:$0xf0] }
 0x184   :  { %2412 = vmatpush.bf16.msra.mxu2 %v6631_v15  ;;  %2425 = vmatpush.bf16.msra.mxu3 %v6887_v16  ;;  %v7366_v15 = vld [vmem:[%s15218_s5 + $0x650] sm:$0xf]  ;;  %v7079_v37 = vor.u32 %v9566_v24, %v7078_v23  ;;  %v7240_v62 = vld [vmem:[%s15218_s5 + $0x570] sm:$0xf0] }
 0x185   :  { %2434 = vmatpush.bf16.msrb.mxu0 %v7271_v19  ;;  %2447 = vmatpush.bf16.msrb.mxu1 %v7527_v20  ;;  %v9638_v16 = vld [vmem:[%s15218_s5 + $0x66c] sm:$0xf0]  ;;  %v9530_v19 = vld [vmem:[%s15218_s5 + $0x314] sm:$0xf]  ;;  %v7243_v6 = vor.u32 %v9602_v61, %v7240_v62 }
 0x186   :  { %v6952_v20 = vld [vmem:[%s15218_s5 + $0x330] sm:$0xf0]  ;;  %v7367_v22 = vor.u32 %v9638_v16, %v7366_v15  ;;  %v7334_v25 = vld [vmem:[%s15218_s5 + $0x610] sm:$0xf]  ;;  %v6798_v15 = vld [vmem:[%s15218_s5 + $0x1d8] sm:$0xf] }
 0x187   :  { %v9498_v5 = vld [vmem:[%s15218_s5 + $0x214] sm:$0xf]  ;;  %v9495_v16 = vld [vmem:[%s15218_s5 + $0x1f4] sm:$0xf0] }
 0x188   :  { %2413 = vmatpush.bf16.msra.mxu2 %v6599_v27  ;;  %2426 = vmatpush.bf16.msra.mxu3 %v6855_v28  ;;  %v6955_v27 = vor.u32 %v9530_v19, %v6952_v20  ;;  %v9630_v28 = vld [vmem:[%s15218_s5 + $0x62c] sm:$0xf0]  ;;  %v9594_v11 = vld [vmem:[%s15218_s5 + $0x514] sm:$0xf]  ;;  %v6571_v19 = vor.u32 %v9434_v3, %v6568_v4  ;;  %v6670_v3 = vld [vmem:[%s15218_s5 + $0xd8] sm:$0xf] }
 0x189   :  { %2435 = vmatpush.bf16.msrb.mxu0 %v7239_v32  ;;  %2448 = vmatpush.bf16.msrb.mxu1 %v7495_v33  ;;  %v6920_v32 = vld [vmem:[%s15218_s5 + $0x2f0] sm:$0xf0]  ;;  %v7335_v38 = vor.u32 %v9630_v28, %v7334_v25  ;;  %v6799_v25 = vor.u32 %v9495_v16, %v6798_v15  ;;  %v9463_v4 = vld [vmem:[%s15218_s5 + $0xf4] sm:$0xf0] }
 0x18a   :  { %v9618_v33 = vld [vmem:[%s15218_s5 + $0x5d4] sm:$0xf]  ;;  %v6923_v40 = vor.u32 %v9522_v31, %v6920_v32  ;;  %v7022_v31 = vld [vmem:[%s15218_s5 + $0x398] sm:$0xf] }
 0x18b   :  { %v7208_v12 = vld [vmem:[%s15218_s5 + $0x530] sm:$0xf0]  ;;  %v9551_v32 = vld [vmem:[%s15218_s5 + $0x3b4] sm:$0xf0] }
 0x18c   :  { %2414 = vmatpush.bf16.msra.mxu2 %v6567_v43  ;;  %2427 = vmatpush.bf16.msra.mxu3 %v6823_v44  ;;  %v7307_v43 = vor.u32 %v9618_v33, %v7304_v34  ;;  %v7563_v44 = vor.u32 %v9682_v35, %v7560_v36  ;;  %v9586_v23 = vld [vmem:[%s15218_s5 + $0x4d4] sm:$0xf] }
 0x18d   :  { %2436 = vmatpush.bf16.msrb.mxu0 %v7207_v45  ;;  %2449 = vmatpush.bf16.msrb.mxu1 %v7463_v46  ;;  %v9514_v45 = vld [vmem:[%s15218_s5 + $0x294] sm:$0xf] }
 0x18e   :  { %v6888_v46 = vld [vmem:[%s15218_s5 + $0x2b0] sm:$0xf0] }
 0x18f   :  { %2415 = vmatmul.bf16.vlgmr.msra.gmra.mxu2 %v11070_v7  ;;  %2428 = vmatmul.bf16.vlgmr.msra.gmra.mxu3 %v11072_v8  ;;  %v6891_v54 = vor.u32 %v9514_v45, %v6888_v46  ;;  %v7176_v24 = vld [vmem:[%s15218_s5 + $0x4f0] sm:$0xf0] }
 0x190   :  { %2459 = vmatpush.bf16.msrb.mxu2 %v6795_v49  ;;  %2472 = vmatpush.bf16.msrb.mxu3 %v7051_v50  ;;  %v9674_v49 = vld [vmem:[%s15218_s5 + $0x794] sm:$0xf]  ;;  %v7179_v33 = vor.u32 %v9586_v23, %v7176_v24  ;;  %v6894_v23 = vld [vmem:[%s15218_s5 + $0x298] sm:$0xf] }
 0x191   :  { %2437 = vmatpush.bf16.msrb.mxu0 %v7175_v59  ;;  %2450 = vmatpush.bf16.msrb.mxu1 %v7431_v60  ;;  %v7528_v50 = vld [vmem:[%s15218_s5 + $0x7b0] sm:$0xf0]  ;;  %v9519_v24 = vld [vmem:[%s15218_s5 + $0x2b4] sm:$0xf0] }
 0x192   :  { %v7531_v58 = vor.u32 %v9674_v49, %v7528_v50  ;;  %v9506_v59 = vld [vmem:[%s15218_s5 + $0x254] sm:$0xf]  ;;  %v6735_v49 = vor.u32 %v9479_v42, %v6734_v41  ;;  %v7502_v41 = vld [vmem:[%s15218_s5 + $0x758] sm:$0xf] }
 0x193   :  { %v6856_v60 = vld [vmem:[%s15218_s5 + $0x270] sm:$0xf0]  ;;  %v9671_v42 = vld [vmem:[%s15218_s5 + $0x774] sm:$0xf0] }
 0x194   :  { %2460 = vmatpush.bf16.msrb.mxu2 %v6763_v63  ;;  %2473 = vmatpush.bf16.msrb.mxu3 %v7019_v0  ;;  %v9666_v63 = vld [vmem:[%s15218_s5 + $0x754] sm:$0xf]  ;;  %v6859_v2 = vor.u32 %v9506_v59, %v6856_v60 }
 0x195   :  { %2438 = vmatpush.bf16.msrb.mxu0 %v7143_v9  ;;  %2451 = vmatpush.bf16.msrb.mxu1 %v7399_v10  ;;  %v7496_v0 = vld [vmem:[%s15218_s5 + $0x770] sm:$0xf0] }
 0x196   :  { %v7499_v9 = vor.u32 %v9666_v63, %v7496_v0  ;;  %v6824_v10 = vld [vmem:[%s15218_s5 + $0x230] sm:$0xf0]  ;;  %v6703_v0 = vor.u32 %v9471_v56, %v6702_v55  ;;  %v7214_v55 = vld [vmem:[%s15218_s5 + $0x518] sm:$0xf] }
 0x197   :  { %v6827_v20 = vor.u32 %v9498_v5, %v6824_v10  ;;  %v7432_v28 = vld [vmem:[%s15218_s5 + $0x6f0] sm:$0xf0]  ;;  %v9527_v10 = vld [vmem:[%s15218_s5 + $0x2f4] sm:$0xf0] }
 0x198   :  { %2461 = vmatpush.bf16.msrb.mxu2 %v6731_v13  ;;  %2474 = vmatpush.bf16.msrb.mxu3 %v6987_v14  ;;  %v9658_v13 = vld [vmem:[%s15218_s5 + $0x714] sm:$0xf]  ;;  %v9599_v56 = vld [vmem:[%s15218_s5 + $0x534] sm:$0xf0] }
 0x199   :  { %2439 = vmatpush.bf16.msrb.mxu0 %v7111_v21  ;;  %2452 = vmatpush.bf16.msrb.mxu1 %v7367_v22  ;;  %v7464_v14 = vld [vmem:[%s15218_s5 + $0x730] sm:$0xf0]  ;;  %v7211_v21 = vor.u32 %v9594_v11, %v7208_v12  ;;  %v7310_v11 = vld [vmem:[%s15218_s5 + $0x5d8] sm:$0xf] }
 0x19a   :  { %v7467_v22 = vor.u32 %v9658_v13, %v7464_v14  ;;  %v9578_v35 = vld [vmem:[%s15218_s5 + $0x494] sm:$0xf]  ;;  %v9623_v12 = vld [vmem:[%s15218_s5 + $0x5f4] sm:$0xf0] }
 0x19b   :  { %v7144_v36 = vld [vmem:[%s15218_s5 + $0x4b0] sm:$0xf0]  ;;  %v7566_v13 = vld [vmem:[%s15218_s5 + $0x7d8] sm:$0xf] }
 0x19c   :  { %2462 = vmatpush.bf16.msrb.mxu2 %v6699_v26  ;;  %2475 = vmatpush.bf16.msrb.mxu3 %v6955_v27  ;;  %v7055_v26 = vor.u32 %v9559_v18, %v7054_v17  ;;  %v9650_v27 = vld [vmem:[%s15218_s5 + $0x6d4] sm:$0xf]  ;;  %v7147_v45 = vor.u32 %v9578_v35, %v7144_v36  ;;  %v9687_v14 = vld [vmem:[%s15218_s5 + $0x7f4] sm:$0xf0]  ;;  %v6671_v17 = vor.u32 %v9463_v4, %v6670_v3 }
 0x19d   :  { %2440 = vmatpush.bf16.msrb.mxu0 %v7079_v37  ;;  %2453 = vmatpush.bf16.msrb.mxu1 %v7335_v38  ;;  %v7435_v34 = vor.u32 %v9650_v27, %v7432_v28  ;;  %v6767_v37 = vor.u32 %v9487_v30, %v6766_v29  ;;  %v7023_v38 = vor.u32 %v9551_v32, %v7022_v31  ;;  %v9570_v47 = vld [vmem:[%s15218_s5 + $0x454] sm:$0xf]  ;;  %v7534_v27 = vld [vmem:[%s15218_s5 + $0x798] sm:$0xf] }
 0x19e   :  { %v7112_v48 = vld [vmem:[%s15218_s5 + $0x470] sm:$0xf0]  ;;  %v9679_v28 = vld [vmem:[%s15218_s5 + $0x7b4] sm:$0xf0]  ;;  %v6895_v30 = vor.u32 %v9519_v24, %v6894_v23 }
 0x19f   :  { %v7115_v59 = vor.u32 %v9570_v47, %v7112_v48  ;;  %v9562_v61 = vld [vmem:[%s15218_s5 + $0x414] sm:$0xf]  ;;  %v6606_v31 = vld [vmem:[%s15218_s5 + $0x58] sm:$0xf] }
 0x1a0   :  { %2463 = vmatpush.bf16.msrb.mxu2 %v6667_v39  ;;  %2476 = vmatpush.bf16.msrb.mxu3 %v6923_v40  ;;  %v9642_v39 = vld [vmem:[%s15218_s5 + $0x694] sm:$0xf]  ;;  %v9447_v32 = vld [vmem:[%s15218_s5 + $0x74] sm:$0xf0] }
 0x1a1   :  { %2485 = vmatpush.bf16.msra.mxu0 %v7307_v43  ;;  %2498 = vmatpush.bf16.msra.mxu1 %v7563_v44  ;;  %v7400_v40 = vld [vmem:[%s15218_s5 + $0x6b0] sm:$0xf0]  ;;  %v6990_v43 = vld [vmem:[%s15218_s5 + $0x358] sm:$0xf] }
 0x1a2   :  { %2441 = vmatmul.bf16.vlgmr.msrb.gmra.mxu0 %v11130_v51  ;;  %2454 = vmatmul.bf16.vlgmr.msrb.gmra.mxu1 %v11132_v52  ;;  %v9543_v44 = vld [vmem:[%s15218_s5 + $0x374] sm:$0xf0]  ;;  %v7403_v46 = vor.u32 %v9642_v39, %v7400_v40  ;;  %v7080_v62 = vld [vmem:[%s15218_s5 + $0x430] sm:$0xf0] }
 0x1a3   :  { %v6991_v50 = vor.u32 %v9543_v44, %v6990_v43  ;;  %v9626_v63 = vld [vmem:[%s15218_s5 + $0x614] sm:$0xf]  ;;  %v7083_v15 = vor.u32 %v9562_v61, %v7080_v62  ;;  %v7246_v39 = vld [vmem:[%s15218_s5 + $0x558] sm:$0xf]  ;;  %v9555_v61 = vld [vmem:[%s15218_s5 + $0x3dc] sm:$0xf] }
 0x1a4   :  { %2464 = vmatpush.bf16.msrb.mxu2 %v6635_v53  ;;  %2477 = vmatpush.bf16.msrb.mxu3 %v6891_v54  ;;  %v9634_v53 = vld [vmem:[%s15218_s5 + $0x654] sm:$0xf]  ;;  %v9607_v40 = vld [vmem:[%s15218_s5 + $0x574] sm:$0xf0]  ;;  %v7056_v62 = vld [vmem:[%s15218_s5 + $0x3f8] sm:$0xf0] }
 0x1a5   :  { %2486 = vmatpush.bf16.msra.mxu0 %v7275_v57  ;;  %2499 = vmatpush.bf16.msra.mxu1 %v7531_v58  ;;  %v7368_v54 = vld [vmem:[%s15218_s5 + $0x670] sm:$0xf0]  ;;  %v6958_v57 = vld [vmem:[%s15218_s5 + $0x318] sm:$0xf] }
 0x1a6   :  { %v9535_v58 = vld [vmem:[%s15218_s5 + $0x334] sm:$0xf0]  ;;  %v7371_v60 = vor.u32 %v9634_v53, %v7368_v54  ;;  %v7503_v53 = vor.u32 %v9671_v42, %v7502_v41 }
 0x1a7   :  { %v6574_v47 = vld [vmem:[%s15218_s5 + $0x18] sm:$0xf] }
 0x1a8   :  { %2465 = vmatpush.bf16.msrb.mxu2 %v6603_v1  ;;  %2478 = vmatpush.bf16.msrb.mxu3 %v6859_v2  ;;  %v6959_v1 = vor.u32 %v9535_v58, %v6958_v57  ;;  %v7336_v2 = vld [vmem:[%s15218_s5 + $0x630] sm:$0xf0]  ;;  %v9439_v48 = vld [vmem:[%s15218_s5 + $0x34] sm:$0xf0] }
 0x1a9   :  { %2487 = vmatpush.bf16.msra.mxu0 %v7243_v6  ;;  %2500 = vmatpush.bf16.msra.mxu1 %v7499_v9  ;;  %v6926_v9 = vld [vmem:[%s15218_s5 + $0x2d8] sm:$0xf]  ;;  %v7339_v16 = vor.u32 %v9626_v63, %v7336_v2  ;;  %v6575_v63 = vor.u32 %v9439_v48, %v6574_v47  ;;  %v9531_v47 = vld [vmem:[%s15218_s5 + $0x31c] sm:$0xf] }
 0x1aa   :  { %v6927_v18 = vor.u32 %v9527_v10, %v6926_v9  ;;  %v9503_v54 = vld [vmem:[%s15218_s5 + $0x234] sm:$0xf0]  ;;  %v7059_v10 = vor.u32 %v9555_v61, %v7056_v62  ;;  %v6960_v48 = vld [vmem:[%s15218_s5 + $0x338] sm:$0xf0] }
 0x1ab   :  { %v7470_v57 = vld [vmem:[%s15218_s5 + $0x718] sm:$0xf]  ;;  %v9459_v61 = vld [vmem:[%s15218_s5 + $0xdc] sm:$0xf] }
 0x1ac   :  { %2466 = vmatpush.bf16.msrb.mxu2 %v6571_v19  ;;  %2479 = vmatpush.bf16.msrb.mxu3 %v6827_v20  ;;  %v6638_v19 = vld [vmem:[%s15218_s5 + $0x98] sm:$0xf]  ;;  %v6672_v62 = vld [vmem:[%s15218_s5 + $0xf8] sm:$0xf0] }
 0x1ad   :  { %2488 = vmatpush.bf16.msra.mxu0 %v7211_v21  ;;  %2501 = vmatpush.bf16.msra.mxu1 %v7467_v22  ;;  %v9455_v20 = vld [vmem:[%s15218_s5 + $0xb4] sm:$0xf0]  ;;  %v7311_v21 = vor.u32 %v9623_v12, %v7310_v11  ;;  %v7567_v22 = vor.u32 %v9687_v14, %v7566_v13 }
 0x1ae   :  { %v6639_v29 = vor.u32 %v9455_v20, %v6638_v19  ;;  %v9663_v58 = vld [vmem:[%s15218_s5 + $0x734] sm:$0xf0]  ;;  %v9547_v19 = vld [vmem:[%s15218_s5 + $0x39c] sm:$0xf] }
 0x1af   :  { %2467 = vmatmul.bf16.vlgmr.msrb.gmra.mxu2 %v11070_v7  ;;  %2480 = vmatmul.bf16.vlgmr.msrb.gmra.mxu3 %v11072_v8  ;;  %v7471_v2 = vor.u32 %v9663_v58, %v7470_v57  ;;  %v7182_v3 = vld [vmem:[%s15218_s5 + $0x4d8] sm:$0xf]  ;;  %v7024_v20 = vld [vmem:[%s15218_s5 + $0x3b8] sm:$0xf0] }
 0x1b0   :  { %2511 = vmatpush.bf16.msra.mxu2 %v6799_v25  ;;  %2524 = vmatpush.bf16.msra.mxu3 %v7055_v26  ;;  %v7278_v25 = vld [vmem:[%s15218_s5 + $0x598] sm:$0xf] }
 0x1b1   :  { %2489 = vmatpush.bf16.msra.mxu0 %v7179_v33  ;;  %2502 = vmatpush.bf16.msra.mxu1 %v7435_v34  ;;  %v11904_v5 = vpop.f32.mrf.mxu2  ;;  %v11906_v6 = vpop.f32.mrf.mxu3  ;;  %v9615_v26 = vld [vmem:[%s15218_s5 + $0x5b4] sm:$0xf0]  ;;  %v7535_v34 = vor.u32 %v9679_v28, %v7534_v27 }
 0x1b2   :  { %v7279_v33 = vor.u32 %v9615_v26, %v7278_v25  ;;  %v9591_v4 = vld [vmem:[%s15218_s5 + $0x4f4] sm:$0xf0]  ;;  %v7027_v26 = vor.u32 %v9547_v19, %v7024_v20 }
 0x1b3   :  { %v7438_v13 = vld [vmem:[%s15218_s5 + $0x6d8] sm:$0xf] }
 0x1b4   :  { %2512 = vmatpush.bf16.msra.mxu2 %v6767_v37  ;;  %2525 = vmatpush.bf16.msra.mxu3 %v7023_v38  ;;  %v6862_v37 = vld [vmem:[%s15218_s5 + $0x258] sm:$0xf] }
 0x1b5   :  { %2490 = vmatpush.bf16.msra.mxu0 %v7147_v45  ;;  %2503 = vmatpush.bf16.msra.mxu1 %v7403_v46  ;;  %v9511_v38 = vld [vmem:[%s15218_s5 + $0x274] sm:$0xf0]  ;;  %v6607_v45 = vor.u32 %v9447_v32, %v6606_v31  ;;  %v9539_v31 = vld [vmem:[%s15218_s5 + $0x35c] sm:$0xf] }
 0x1b6   :  { %v6863_v46 = vor.u32 %v9511_v38, %v6862_v37  ;;  %v9655_v14 = vld [vmem:[%s15218_s5 + $0x6f4] sm:$0xf0]  ;;  %v6992_v32 = vld [vmem:[%s15218_s5 + $0x378] sm:$0xf0] }
 0x1b7   :  { %v7150_v23 = vld [vmem:[%s15218_s5 + $0x498] sm:$0xf]  ;;  %v6995_v38 = vor.u32 %v9539_v31, %v6992_v32 }
 0x1b8   :  { %2513 = vmatpush.bf16.msra.mxu2 %v6735_v49  ;;  %2526 = vmatpush.bf16.msra.mxu3 %v6991_v50  ;;  %v6830_v49 = vld [vmem:[%s15218_s5 + $0x218] sm:$0xf]  ;;  %v7247_v50 = vor.u32 %v9607_v40, %v7246_v39 }
 0x1b9   :  { %2491 = vmatpush.bf16.msra.mxu0 %v7115_v59  ;;  %2504 = vmatpush.bf16.msra.mxu1 %v7371_v60  ;;  %v2210_v35 = vpop.f32.mrf.mxu2  ;;  %v2223_v36 = vpop.f32.mrf.mxu3  ;;  %v9491_v59 = vld [vmem:[%s15218_s5 + $0x1dc] sm:$0xf]  ;;  %v9583_v24 = vld [vmem:[%s15218_s5 + $0x4b4] sm:$0xf0] }
 0x1ba   :  { %v6800_v60 = vld [vmem:[%s15218_s5 + $0x1f8] sm:$0xf0]  ;;  %v7406_v27 = vld [vmem:[%s15218_s5 + $0x698] sm:$0xf] }
 0x1bb   :  { %v11976_v43 = vpop.f32.mrf.mxu0  ;;  %v11978_v44 = vpop.f32.mrf.mxu1  ;;  %v6803_v9 = vor.u32 %v9491_v59, %v6800_v60  ;;  %v9647_v28 = vld [vmem:[%s15218_s5 + $0x6b4] sm:$0xf0]  ;;  %v6963_v59 = vor.u32 %v9531_v47, %v6960_v48 }
 0x1bc   :  { %2514 = vmatpush.bf16.msra.mxu2 %v6703_v0  ;;  %2527 = vmatpush.bf16.msra.mxu3 %v6959_v1  ;;  %v6831_v0 = vor.u32 %v9503_v54, %v6830_v49  ;;  %v7215_v1 = vor.u32 %v9599_v56, %v7214_v55  ;;  %v7118_v35 = vld [vmem:[%s15218_s5 + $0x458] sm:$0xf] }
 0x1bd   :  { %2492 = vmatpush.bf16.msra.mxu0 %v7083_v15  ;;  %2505 = vmatpush.bf16.msra.mxu1 %v7339_v16  ;;  %v9483_v15 = vld [vmem:[%s15218_s5 + $0x19c] sm:$0xf]  ;;  %v9575_v36 = vld [vmem:[%s15218_s5 + $0x474] sm:$0xf0] }
 0x1be   :  { %v7374_v41 = vld [vmem:[%s15218_s5 + $0x658] sm:$0xf] }
 0x1bf   :  { %v9639_v42 = vld [vmem:[%s15218_s5 + $0x674] sm:$0xf0] }
 0x1c0   :  { %2515 = vmatpush.bf16.msra.mxu2 %v6671_v17  ;;  %2528 = vmatpush.bf16.msra.mxu3 %v6927_v18  ;;  %v6768_v18 = vld [vmem:[%s15218_s5 + $0x1b8] sm:$0xf0]  ;;  %v7375_v54 = vor.u32 %v9639_v42, %v7374_v41  ;;  %v7086_v55 = vld [vmem:[%s15218_s5 + $0x418] sm:$0xf] }
 0x1c1   :  { %2537 = vmatpush.bf16.msrb.mxu0 %v7311_v21  ;;  %2550 = vmatpush.bf16.msrb.mxu1 %v7567_v22  ;;  %v7183_v21 = vor.u32 %v9591_v4, %v7182_v3  ;;  %v7439_v22 = vor.u32 %v9655_v14, %v7438_v13  ;;  %v6771_v25 = vor.u32 %v9483_v15, %v6768_v18  ;;  %v9567_v56 = vld [vmem:[%s15218_s5 + $0x434] sm:$0xf0]  ;;  %v9683_v3 = vld [vmem:[%s15218_s5 + $0x7dc] sm:$0xf]  ;;  %v12137_v13 = vld [vmem:[%s15219_s6] sm:$0xff] }
 0x1c2   :  { %2493 = vmatmul.bf16.vlgmr.msra.gmra.mxu0 %v11130_v51  ;;  %2506 = vmatmul.bf16.vlgmr.msra.gmra.mxu1 %v11132_v52  ;;  %v12022_v11 = vpop.f32.mrf.mxu2  ;;  %v12024_v12 = vpop.f32.mrf.mxu3  ;;  %v7342_v57 = vld [vmem:[%s15218_s5 + $0x618] sm:$0xf]  ;;  %v7568_v4 = vld [vmem:[%s15218_s5 + $0x7f8] sm:$0xf0]  ;;  %v6675_v14 = vor.u32 %v9459_v61, %v6672_v62  ;;  %v889_v31 = vperm.slane %v12137_v13, 0 }
 0x1c3   :  { %v2236_v16 = vpop.f32.mrf.mxu0  ;;  %v2249_v17 = vpop.f32.mrf.mxu1  ;;  %v9631_v60 = vld [vmem:[%s15218_s5 + $0x634] sm:$0xf0]  ;;  %v7571_v19 = vor.u32 %v9683_v3, %v7568_v4  ;;  %v7248_v41 = vld [vmem:[%s15218_s5 + $0x578] sm:$0xf0]  ;;  %v9740_v4 = vld [vmem:[%s15220_s7 + $0x1a0] sm:$0xf0] }
 0x1c4   :  { %2516 = vmatpush.bf16.msra.mxu2 %v6639_v29  ;;  %2529 = vmatpush.bf16.msra.mxu3 %v6895_v30  ;;  %v9475_v29 = vld [vmem:[%s15218_s5 + $0x15c] sm:$0xf]  ;;  %v2209_v47 = vadd.f32 %v11904_v5, %v889_v31 }
 0x1c5   :  { %2538 = vmatpush.bf16.msrb.mxu0 %v7279_v33  ;;  %2551 = vmatpush.bf16.msrb.mxu1 %v7535_v34  ;;  %v6736_v30 = vld [vmem:[%s15218_s5 + $0x178] sm:$0xf0]  ;;  %v7151_v33 = vor.u32 %v9583_v24, %v7150_v23  ;;  %v7407_v34 = vor.u32 %v9647_v28, %v7406_v27 }
 0x1c6   :  { %v6739_v37 = vor.u32 %v9475_v29, %v6736_v30  ;;  %v9451_v16 = vld [vmem:[%s15218_s5 + $0x9c] sm:$0xf]  ;;  %v890_v30 = vperm.slane %v12137_v13, 1 }
 0x1c7   :  { %v6640_v17 = vld [vmem:[%s15218_s5 + $0xb8] sm:$0xf0] }
 0x1c8   :  { %2517 = vmatpush.bf16.msra.mxu2 %v6607_v45  ;;  %2530 = vmatpush.bf16.msra.mxu3 %v6863_v46  ;;  %v9467_v45 = vld [vmem:[%s15218_s5 + $0x11c] sm:$0xf]  ;;  %v6643_v32 = vor.u32 %v9451_v16, %v6640_v17 }
 0x1c9   :  { %2539 = vmatpush.bf16.msrb.mxu0 %v7247_v50  ;;  %2552 = vmatpush.bf16.msrb.mxu1 %v7503_v53  ;;  %v6704_v46 = vld [vmem:[%s15218_s5 + $0x138] sm:$0xf0]  ;;  %v7119_v53 = vor.u32 %v9575_v36, %v7118_v35 }
 0x1ca   :  { %v2262_v39 = vpop.f32.mrf.mxu2  ;;  %v2275_v40 = vpop.f32.mrf.mxu3  ;;  %v6707_v58 = vor.u32 %v9467_v45, %v6704_v46  ;;  %v6896_v23 = vld [vmem:[%s15218_s5 + $0x2b8] sm:$0xf0]  ;;  %v2261_v46 = vadd.f32 %v12022_v11, %v890_v30 }
 0x1cb   :  { %v12094_v49 = vpop.f32.mrf.mxu0  ;;  %v12096_v50 = vpop.f32.mrf.mxu1  ;;  %v9611_v24 = vld [vmem:[%s15218_s5 + $0x59c] sm:$0xf] }
 0x1cc   :  { %2518 = vmatpush.bf16.msra.mxu2 %v6575_v63  ;;  %2531 = vmatpush.bf16.msra.mxu3 %v6831_v0  ;;  %v9523_v63 = vld [vmem:[%s15218_s5 + $0x2dc] sm:$0xf] }
 0x1cd   :  { %2540 = vmatpush.bf16.msrb.mxu0 %v7215_v1  ;;  %2553 = vmatpush.bf16.msrb.mxu1 %v7471_v2  ;;  %v6928_v0 = vld [vmem:[%s15218_s5 + $0x2f8] sm:$0xf0] }
 0x1ce   :  { %v9619_v1 = vld [vmem:[%s15218_s5 + $0x5dc] sm:$0xf]  ;;  %v6931_v15 = vor.u32 %v9523_v63, %v6928_v0  ;;  %v7770_v0 = vld [vmem:[%s15220_s7 + $0x188] sm:$0xf] }
 0x1cf   :  { %2519 = vmatmul.bf16.vlgmr.msra.gmra.mxu2 %v11070_v7  ;;  %2532 = vmatmul.bf16.vlgmr.msra.gmra.mxu3 %v11072_v8  ;;  %v7312_v2 = vld [vmem:[%s15218_s5 + $0x5f8] sm:$0xf0] }
 0x1d0   :  { %2563 = vmatpush.bf16.msrb.mxu2 %v6803_v9  ;;  %2576 = vmatpush.bf16.msrb.mxu3 %v7059_v10  ;;  %v7087_v9 = vor.u32 %v9567_v56, %v7086_v55  ;;  %v7343_v10 = vor.u32 %v9631_v60, %v7342_v57  ;;  %v7315_v18 = vor.u32 %v9619_v1, %v7312_v2  ;;  %v7280_v27 = vld [vmem:[%s15218_s5 + $0x5b8] sm:$0xf0] }
 0x1d1   :  { %2541 = vmatpush.bf16.msrb.mxu0 %v7183_v21  ;;  %2554 = vmatpush.bf16.msrb.mxu1 %v7439_v22  ;;  %v9515_v22 = vld [vmem:[%s15218_s5 + $0x29c] sm:$0xf]  ;;  %v7283_v36 = vor.u32 %v9611_v24, %v7280_v27  ;;  %v2274_v1 = vadd.f32 %v12024_v12, %v2261_v46  ;;  %v9733_v27 = vld [vmem:[%s15220_s7 + $0x168] sm:$0xf0] }
 0x1d2   :  { %v12145_v20 = vpop.f32.mrf.mxu2  ;;  %v12147_v21 = vpop.f32.mrf.mxu3  ;;  %v9675_v28 = vld [vmem:[%s15218_s5 + $0x79c] sm:$0xf] }
 0x1d3   :  { %v7536_v29 = vld [vmem:[%s15218_s5 + $0x7b8] sm:$0xf0]  ;;  %v2287_v16 = vadd.f32 %v12094_v49, %v2274_v1 }
 0x1d4   :  { %2564 = vmatpush.bf16.msrb.mxu2 %v6771_v25  ;;  %2577 = vmatpush.bf16.msrb.mxu3 %v7027_v26  ;;  %v2288_v25 = vpop.f32.mrf.mxu0  ;;  %v2301_v26 = vpop.f32.mrf.mxu1  ;;  %v6608_v35 = vld [vmem:[%s15218_s5 + $0x78] sm:$0xf0] }
 0x1d5   :  { %2542 = vmatpush.bf16.msrb.mxu0 %v7151_v33  ;;  %2555 = vmatpush.bf16.msrb.mxu1 %v7407_v34  ;;  %v6899_v33 = vor.u32 %v9515_v22, %v6896_v23  ;;  %v9443_v34 = vld [vmem:[%s15218_s5 + $0x5c] sm:$0xf]  ;;  %v7771_v23 = vor.u32 %v9740_v4, %v7770_v0  ;;  %v7742_v25 = vld [vmem:[%s15220_s7 + $0x150] sm:$0xf]  ;;  %v2300_v30 = vadd.f32 %v12096_v50, %v2287_v16  ;;  %v8218_v16 = vld [vmem:[%s15220_s7 + $0x508] sm:$0xf] }
 0x1d6   :  { %v6864_v39 = vld [vmem:[%s15218_s5 + $0x278] sm:$0xf0]  ;;  %v6611_v48 = vor.u32 %v9443_v34, %v6608_v35  ;;  %v7743_v34 = vor.u32 %v9733_v27, %v7742_v25  ;;  %v892_v27 = vperm.slane %v12137_v13, 3 }
 0x1d7   :  { %v9603_v40 = vld [vmem:[%s15218_s5 + $0x55c] sm:$0xf] }
 0x1d8   :  { %2565 = vmatpush.bf16.msrb.mxu2 %v6739_v37  ;;  %2578 = vmatpush.bf16.msrb.mxu3 %v6995_v38  ;;  %v7539_v37 = vor.u32 %v9675_v28, %v7536_v29  ;;  %v9507_v38 = vld [vmem:[%s15218_s5 + $0x25c] sm:$0xf]  ;;  %v7251_v11 = vor.u32 %v9603_v40, %v7248_v41  ;;  %v7966_v28 = vld [vmem:[%s15220_s7 + $0x310] sm:$0xf]  ;;  %v9789_v29 = vld [vmem:[%s15220_s7 + $0x328] sm:$0xf0] }
 0x1d9   :  { %2543 = vmatpush.bf16.msrb.mxu0 %v7119_v53  ;;  %2556 = vmatpush.bf16.msrb.mxu1 %v7375_v54  ;;  %v9667_v42 = vld [vmem:[%s15218_s5 + $0x75c] sm:$0xf]  ;;  %v6867_v53 = vor.u32 %v9507_v38, %v6864_v39  ;;  %v7967_v35 = vor.u32 %v9789_v29, %v7966_v28  ;;  %v9726_v41 = vld [vmem:[%s15220_s7 + $0x130] sm:$0xf0] }
 0x1da   :  { %v7504_v45 = vld [vmem:[%s15218_s5 + $0x778] sm:$0xf0]  ;;  %v2314_v57 = vpop.f32.mrf.mxu2 }
 0x1db   :  { %v9435_v54 = vld [vmem:[%s15218_s5 + $0x1c] sm:$0xf]  ;;  %v7507_v5 = vor.u32 %v9667_v42, %v7504_v45  ;;  %v7938_v42 = vld [vmem:[%s15220_s7 + $0x2d8] sm:$0xf]  ;;  %v9782_v45 = vld [vmem:[%s15220_s7 + $0x2f0] sm:$0xf0] }
 0x1dc   :  { %2566 = vmatpush.bf16.msrb.mxu2 %v6707_v58  ;;  %2579 = vmatpush.bf16.msrb.mxu3 %v6963_v59  ;;  %v6576_v55 = vld [vmem:[%s15218_s5 + $0x38] sm:$0xf0]  ;;  %v2327_v58 = vpop.f32.mrf.mxu3 }
 0x1dd   :  { %2544 = vmatpush.bf16.msrb.mxu0 %v7087_v9  ;;  %2557 = vmatpush.bf16.msrb.mxu1 %v7343_v10  ;;  %v9499_v56 = vld [vmem:[%s15218_s5 + $0x21c] sm:$0xf]  ;;  %v7994_v9 = vld [vmem:[%s15220_s7 + $0x348] sm:$0xf]  ;;  %v9796_v10 = vld [vmem:[%s15220_s7 + $0x360] sm:$0xf0]  ;;  %v6579_v12 = vor.u32 %v9435_v54, %v6576_v55 }
 0x1de   :  { %v6832_v59 = vld [vmem:[%s15218_s5 + $0x238] sm:$0xf0] }
 0x1df   :  { %v9595_v60 = vld [vmem:[%s15218_s5 + $0x51c] sm:$0xf]  ;;  %v12225_v2 = vpop.f32.mrf.mxu0  ;;  %v12227_v3 = vpop.f32.mrf.mxu1 }
 0x1e0   :  { %2567 = vmatpush.bf16.msrb.mxu2 %v6675_v14  ;;  %2580 = vmatpush.bf16.msrb.mxu3 %v6931_v15  ;;  %v7216_v61 = vld [vmem:[%s15218_s5 + $0x538] sm:$0xf0]  ;;  %v2222_v14 = vadd.f32 %v11906_v6, %v2209_v47  ;;  %v6835_v15 = vor.u32 %v9499_v56, %v6832_v59  ;;  %v7995_v6 = vor.u32 %v9796_v10, %v7994_v9  ;;  %v7686_v56 = vld [vmem:[%s15220_s7 + $0xe0] sm:$0xf]  ;;  %v7658_v10 = vld [vmem:[%s15220_s7 + $0xa8] sm:$0xf] }
 0x1e1   :  { %2589 = vmatpush.bf16.msra.mxu0 %v7315_v18  ;;  %2602 = vmatpush.bf16.msra.mxu1 %v7571_v19  ;;  %v9659_v62 = vld [vmem:[%s15218_s5 + $0x71c] sm:$0xf]  ;;  %v7219_v17 = vor.u32 %v9595_v60, %v7216_v61 }
 0x1e2   :  { %2545 = vmatmul.bf16.vlgmr.msrb.gmra.mxu0 %v11130_v51  ;;  %2558 = vmatmul.bf16.vlgmr.msrb.gmra.mxu1 %v11132_v52  ;;  %v7472_v63 = vld [vmem:[%s15218_s5 + $0x738] sm:$0xf0]  ;;  %v2235_v26 = vadd.f32 %v11976_v43, %v2222_v14  ;;  %v9712_v14 = vld [vmem:[%s15220_s7 + $0xc0] sm:$0xf0] }
 0x1e3   :  { %v7475_v18 = vor.u32 %v9659_v62, %v7472_v63  ;;  %v9587_v19 = vld [vmem:[%s15218_s5 + $0x4dc] sm:$0xf]  ;;  %v7659_v25 = vor.u32 %v9712_v14, %v7658_v10 }
 0x1e4   :  { %2568 = vmatpush.bf16.msrb.mxu2 %v6643_v32  ;;  %2581 = vmatpush.bf16.msrb.mxu3 %v6899_v33  ;;  %v7184_v22 = vld [vmem:[%s15218_s5 + $0x4f8] sm:$0xf0]  ;;  %v2248_v38 = vadd.f32 %v11978_v44, %v2235_v26 }
 0x1e5   :  { %2590 = vmatpush.bf16.msra.mxu0 %v7283_v36  ;;  %2603 = vmatpush.bf16.msra.mxu1 %v7539_v37  ;;  %v9651_v24 = vld [vmem:[%s15218_s5 + $0x6dc] sm:$0xf]  ;;  %v7187_v31 = vor.u32 %v9587_v19, %v7184_v22  ;;  %v7714_v37 = vld [vmem:[%s15220_s7 + $0x118] sm:$0xf]  ;;  %v9908_v19 = vld [vmem:[%s15220_s7 + $0x6e0] sm:$0xf0] }
 0x1e6   :  { %v7440_v49 = vld [vmem:[%s15218_s5 + $0x6f8] sm:$0xf0]  ;;  %v12293_v46 = vpack.c.bf16 %v2300_v30, %v2248_v38  ;;  %v7630_v30 = vld [vmem:[%s15220_s7 + $0x70] sm:$0xf] }
 0x1e7   :  { %v7443_v43 = vor.u32 %v9651_v24, %v7440_v49  ;;  %v9579_v32 = vld [vmem:[%s15218_s5 + $0x49c] sm:$0xf]  ;;  %v2340_v39 = vpop.f32.mrf.mxu0  ;;  %v2353_v40 = vpop.f32.mrf.mxu1 }
 0x1e8   :  { %2569 = vmatpush.bf16.msrb.mxu2 %v6611_v48  ;;  %2582 = vmatpush.bf16.msrb.mxu3 %v6867_v53  ;;  %v7152_v33 = vld [vmem:[%s15218_s5 + $0x4b8] sm:$0xf0]  ;;  %v7715_v48 = vor.u32 %v9726_v41, %v7714_v37  ;;  %v7939_v53 = vor.u32 %v9782_v45, %v7938_v42  ;;  %v2619_v58 = vunpack.c.l.bf16 %v12293_v46  ;;  %v2620_v0 = vunpack.c.h.bf16 %v12293_v46  ;;  %v9901_v37 = vld [vmem:[%s15220_s7 + $0x6a8] sm:$0xf0]  ;;  %v7602_v45 = vld [vmem:[%s15220_s7 + $0x38] sm:$0xf] }
 0x1e9   :  { %2591 = vmatpush.bf16.msra.mxu0 %v7251_v11  ;;  %2604 = vmatpush.bf16.msra.mxu1 %v7507_v5  ;;  %v9643_v50 = vld [vmem:[%s15218_s5 + $0x69c] sm:$0xf]  ;;  %v7910_v5 = vld [vmem:[%s15220_s7 + $0x2a0] sm:$0xf]  ;;  %v8078_v40 = vld [vmem:[%s15220_s7 + $0x3f0] sm:$0xf] }
 0x1ea   :  { %v7408_v36 = vld [vmem:[%s15218_s5 + $0x6b8] sm:$0xf0]  ;;  %v2635_v22 = vmul.f32 0.20019531, %v2619_v58  ;;  %v2636_v49 = vmul.f32 0.20019531, %v2620_v0  ;;  %vm12384_vm10 = vcmp.gt.f32.partialorder %v2619_v58, 0.0  ;;  %vm12388_vm11 = vcmp.gt.f32.partialorder %v2620_v0, 0.0 }
 0x1eb   :  { %v9571_v44 = vld [vmem:[%s15218_s5 + $0x45c] sm:$0xf]  ;;  %vm2647_vm12 = vmpackc.low %vm12388_vm11, %vm12384_vm10 }
 0x1ec   :  { %2570 = vmatpush.bf16.msrb.mxu2 %v6579_v12  ;;  %2583 = vmatpush.bf16.msrb.mxu3 %v6835_v15  ;;  %v7120_v47 = vld [vmem:[%s15218_s5 + $0x478] sm:$0xf0]  ;;  %v7882_v12 = vld [vmem:[%s15220_s7 + $0x268] sm:$0xf]  ;;  %v9768_v15 = vld [vmem:[%s15220_s7 + $0x280] sm:$0xf0] }
 0x1ed   :  { %2592 = vmatpush.bf16.msra.mxu0 %v7219_v17  ;;  %2605 = vmatpush.bf16.msra.mxu1 %v7475_v18  ;;  %v9635_v54 = vld [vmem:[%s15218_s5 + $0x65c] sm:$0xf]  ;;  %v7123_v59 = vor.u32 %v9571_v44, %v7120_v47  ;;  %v9852_v17 = vld [vmem:[%s15220_s7 + $0x520] sm:$0xf0]  ;;  %v8442_v18 = vld [vmem:[%s15220_s7 + $0x6c8] sm:$0xf]  ;;  %v7883_v26 = vor.u32 %v9768_v15, %v7882_v12 }
 0x1ee   :  { %v7376_v55 = vld [vmem:[%s15218_s5 + $0x678] sm:$0xf0]  ;;  %v7826_v47 = vld [vmem:[%s15220_s7 + $0x1f8] sm:$0xf]  ;;  %v8666_v12 = vld [vmem:[%s15220_s7 + $0x888] sm:$0xf] }
 0x1ef   :  { %2571 = vmatmul.bf16.vlgmr.msrb.gmra.mxu2 %v11070_v7  ;;  %2584 = vmatmul.bf16.vlgmr.msrb.gmra.mxu3 %v11072_v8  ;;  %v7155_v7 = vor.u32 %v9579_v32, %v7152_v33  ;;  %v7411_v8 = vor.u32 %v9643_v50, %v7408_v36  ;;  %v9719_v11 = vld [vmem:[%s15220_s7 + $0xf8] sm:$0xf0]  ;;  %v7379_v60 = vor.u32 %v9635_v54, %v7376_v55  ;;  %v7854_v33 = vld [vmem:[%s15220_s7 + $0x230] sm:$0xf]  ;;  %v9845_v50 = vld [vmem:[%s15220_s7 + $0x4e8] sm:$0xf0] }
 0x1f0   :  { %5515 = vmatpush.bf16.msra.mxu2 %v7771_v23  ;;  %5528 = vmatpush.bf16.msra.mxu3 %v7995_v6  ;;  %v9775_v57 = vld [vmem:[%s15220_s7 + $0x2b8] sm:$0xf0]  ;;  %v7687_v1 = vor.u32 %v9719_v11, %v7686_v56  ;;  %v891_v23 = vperm.slane %v12137_v13, 2  ;;  %v8443_v32 = vor.u32 %v9908_v19, %v8442_v18  ;;  %v8414_v36 = vld [vmem:[%s15220_s7 + $0x690] sm:$0xf] }
 0x1f1   :  { %2593 = vmatpush.bf16.msra.mxu0 %v7187_v31  ;;  %2606 = vmatpush.bf16.msra.mxu1 %v7443_v43  ;;  %v9563_v61 = vld [vmem:[%s15218_s5 + $0x41c] sm:$0xf]  ;;  %v7911_v4 = vor.u32 %v9775_v57, %v7910_v5  ;;  %v9705_v31 = vld [vmem:[%s15220_s7 + $0x88] sm:$0xf0]  ;;  %v8219_v43 = vor.u32 %v9852_v17, %v8218_v16  ;;  %v8415_v44 = vor.u32 %v9901_v37, %v8414_v36  ;;  %v9838_v55 = vld [vmem:[%s15220_s7 + $0x4b0] sm:$0xf0] }
 0x1f2   :  { %v7088_v62 = vld [vmem:[%s15218_s5 + $0x438] sm:$0xf0]  ;;  %v2364_v28 = vpop.f32.mrf.mxu2  ;;  %v2377_v29 = vpop.f32.mrf.mxu3  ;;  %v2313_v38 = vadd.f32 %v12145_v20, %v891_v23  ;;  %v7631_v41 = vor.u32 %v9705_v31, %v7630_v30  ;;  %v9698_v20 = vld [vmem:[%s15220_s7 + $0x50] sm:$0xf0]  ;;  %v8386_v56 = vld [vmem:[%s15220_s7 + $0x658] sm:$0xf] }
 0x1f3   :  { %v9627_v63 = vld [vmem:[%s15218_s5 + $0x61c] sm:$0xf]  ;;  %v7091_v6 = vor.u32 %v9563_v61, %v7088_v62  ;;  %v2365_v54 = vadd.f32 %v2364_v28, %v892_v27  ;;  %v9894_v11 = vld [vmem:[%s15220_s7 + $0x670] sm:$0xf0]  ;;  %v7798_v61 = vld [vmem:[%s15220_s7 + $0x1c0] sm:$0xf] }
 0x1f4   :  { %5516 = vmatpush.bf16.msra.mxu2 %v7743_v34  ;;  %5529 = vmatpush.bf16.msra.mxu3 %v7967_v35  ;;  %v7344_v9 = vld [vmem:[%s15218_s5 + $0x638] sm:$0xf0]  ;;  %v9761_v34 = vld [vmem:[%s15220_s7 + $0x248] sm:$0xf0]  ;;  %v8190_v35 = vld [vmem:[%s15220_s7 + $0x4d0] sm:$0xf] }
 0x1f5   :  { %2594 = vmatpush.bf16.msra.mxu0 %v7155_v7  ;;  %2607 = vmatpush.bf16.msra.mxu1 %v7411_v8  ;;  %v7347_v24 = vor.u32 %v9627_v63, %v7344_v9  ;;  %v7855_v42 = vor.u32 %v9761_v34, %v7854_v33  ;;  %v2643_v7 = vpack.c.bf16 %v2636_v49, %v2635_v22  ;;  %v9747_v0 = vld [vmem:[%s15220_s7 + $0x1d8] sm:$0xf0]  ;;  %v9964_v17 = vld [vmem:[%s15220_s7 + $0x8a0] sm:$0xf0]  ;;  %v8330_v30 = vld [vmem:[%s15220_s7 + $0x5e8] sm:$0xf] }
 0x1f6   :  { %v8191_v8 = vor.u32 %v9845_v50, %v8190_v35  ;;  %v8387_v63 = vor.u32 %v9894_v11, %v8386_v56  ;;  %v2378_v10 = vadd.f32 %v2377_v29, %v2365_v54  ;;  %v9887_v14 = vld [vmem:[%s15220_s7 + $0x638] sm:$0xf0]  ;;  %v10020_v18 = vld [vmem:[%s15220_s7 + $0xa60] sm:$0xf0]  ;;  %v8638_v33 = vld [vmem:[%s15220_s7 + $0x850] sm:$0xf] }
 0x1f7   :  { %v9824_v27 = vld [vmem:[%s15220_s7 + $0x440] sm:$0xf0]  ;;  %v9957_v34 = vld [vmem:[%s15220_s7 + $0x868] sm:$0xf0]  ;;  %v9950_v54 = vld [vmem:[%s15220_s7 + $0x830] sm:$0xf0] }
 0x1f8   :  { %5517 = vmatpush.bf16.msra.mxu2 %v7715_v48  ;;  %5530 = vmatpush.bf16.msra.mxu3 %v7939_v53  ;;  %v9754_v48 = vld [vmem:[%s15220_s7 + $0x210] sm:$0xf0]  ;;  %v8162_v53 = vld [vmem:[%s15220_s7 + $0x498] sm:$0xf]  ;;  %v9880_v31 = vld [vmem:[%s15220_s7 + $0x600] sm:$0xf0] }
 0x1f9   :  { %2595 = vmatpush.bf16.msra.mxu0 %v7123_v59  ;;  %2608 = vmatpush.bf16.msra.mxu1 %v7379_v60  ;;  %v7827_v5 = vor.u32 %v9754_v48, %v7826_v47  ;;  %v7574_v59 = vld [vmem:[%s15220_s7] sm:$0xf]  ;;  %v9691_v60 = vld [vmem:[%s15220_s7 + $0x18] sm:$0xf0]  ;;  %v8163_v62 = vor.u32 %v9838_v55, %v8162_v53  ;;  %v10013_v35 = vld [vmem:[%s15220_s7 + $0xa28] sm:$0xf0]  ;;  %v8331_v39 = vor.u32 %v9880_v31, %v8330_v30 }
 0x1fa   :  { %v2366_v57 = vpop.f32.mrf.mxu2  ;;  %v2379_v58 = vpop.f32.mrf.mxu3  ;;  %v7575_v23 = vor.u32 %v9691_v60, %v7574_v59  ;;  %v8610_v47 = vld [vmem:[%s15220_s7 + $0x818] sm:$0xf]  ;;  %v10006_v56 = vld [vmem:[%s15220_s7 + $0x9f0] sm:$0xf0] }
 0x1fb   :  { %v8834_v55 = vld [vmem:[%s15220_s7 + $0x9d8] sm:$0xf]  ;;  %v9810_v58 = vld [vmem:[%s15220_s7 + $0x3d0] sm:$0xf0] }
 0x1fc   :  { %5518 = vmatpush.bf16.msra.mxu2 %v7687_v1  ;;  %5531 = vmatpush.bf16.msra.mxu3 %v7911_v4  ;;  %v8134_v1 = vld [vmem:[%s15220_s7 + $0x460] sm:$0xf]  ;;  %v9831_v4 = vld [vmem:[%s15220_s7 + $0x478] sm:$0xf0]  ;;  %v8050_v57 = vld [vmem:[%s15220_s7 + $0x3b8] sm:$0xf] }
 0x1fd   :  { %2596 = vmatpush.bf16.msra.mxu0 %v7091_v6  ;;  %2609 = vmatpush.bf16.msra.mxu1 %v7347_v24  ;;  %v7799_v6 = vor.u32 %v9747_v0, %v7798_v61  ;;  %v8135_v49 = vor.u32 %v9831_v4, %v8134_v1  ;;  %v8274_v59 = vld [vmem:[%s15220_s7 + $0x578] sm:$0xf]  ;;  %v9866_v60 = vld [vmem:[%s15220_s7 + $0x590] sm:$0xf0]  ;;  %v8611_v61 = vor.u32 %v9950_v54, %v8610_v47  ;;  %v9915_v47 = vld [vmem:[%s15220_s7 + $0x718] sm:$0xf0] }
 0x1fe   :  { %v9737_v54 = vld [vmem:[%s15220_s7 + $0x18c] sm:$0xf]  ;;  %v9723_v1 = vld [vmem:[%s15220_s7 + $0x11c] sm:$0xf] }
 0x1ff   :  { %v2390_v15 = vpop.f32.mrf.mxu0  ;;  %v2403_v16 = vpop.f32.mrf.mxu1 }
 0x200   :  { %5519 = vmatpush.bf16.msra.mxu2 %v7659_v25  ;;  %5532 = vmatpush.bf16.msra.mxu3 %v7883_v26  ;;  %v2391_v22 = vadd.f32 %v2390_v15, %v2378_v10  ;;  %v8106_v26 = vld [vmem:[%s15220_s7 + $0x428] sm:$0xf]  ;;  %v9999_v10 = vld [vmem:[%s15220_s7 + $0x9b8] sm:$0xf0] }
 0x201   :  { %5541 = vmatpush.bf16.msrb.mxu0 %v8219_v43  ;;  %5554 = vmatpush.bf16.msrb.mxu1 %v8443_v32  ;;  %v8667_v43 = vor.u32 %v9964_v17, %v8666_v12  ;;  %v8022_v12 = vld [vmem:[%s15220_s7 + $0x380] sm:$0xf]  ;;  %v9803_v15 = vld [vmem:[%s15220_s7 + $0x398] sm:$0xf0] }
 0x202   :  { %2597 = vmatmul.bf16.vlgmr.msra.gmra.mxu0 %v11130_v51  ;;  %2610 = vmatmul.bf16.vlgmr.msra.gmra.mxu1 %v11132_v52  ;;  %v2326_v51 = vadd.f32 %v12147_v21, %v2313_v38  ;;  %v7603_v52 = vor.u32 %v9698_v20, %v7602_v45  ;;  %v2651_v21 = vsel %vm2647_vm12, %v12293_v46, %v2643_v7  ;;  %v8358_v46 = vld [vmem:[%s15220_s7 + $0x620] sm:$0xf]  ;;  %v8302_v20 = vld [vmem:[%s15220_s7 + $0x5b0] sm:$0xf]  ;;  %v9873_v7 = vld [vmem:[%s15220_s7 + $0x5c8] sm:$0xf0] }
 0x203   :  { %v3187_v19 = vunpack.c.l.b16 %v2651_v21  ;;  %v3188_v24 = vunpack.c.h.b16 %v2651_v21  ;;  %v8359_v25 = vor.u32 %v9887_v14, %v8358_v46  ;;  %v2404_v29 = vadd.f32 %v2403_v16, %v2391_v22  ;;  %v8246_v16 = vld [vmem:[%s15220_s7 + $0x540] sm:$0xf]  ;;  %v9859_v17 = vld [vmem:[%s15220_s7 + $0x558] sm:$0xf0] }
 0x204   :  { %5520 = vmatpush.bf16.msra.mxu2 %v7631_v41  ;;  %5533 = vmatpush.bf16.msra.mxu3 %v7855_v42  ;;  %v2339_v9 = vadd.f32 %v12225_v2, %v2326_v51  ;;  %v8890_v2 = vld [vmem:[%s15220_s7 + $0xa48] sm:$0xf]  ;;  %v8107_v38 = vor.u32 %v9824_v27, %v8106_v26  ;;  %v9817_v41 = vld [vmem:[%s15220_s7 + $0x408] sm:$0xf0]  ;;  %v8835_v21 = vor.u32 %v10006_v56, %v8834_v55 }
 0x205   :  { %5542 = vmatpush.bf16.msrb.mxu0 %v8191_v8  ;;  %5555 = vmatpush.bf16.msrb.mxu1 %v8415_v44  ;;  %v8891_v32 = vor.u32 %v10020_v18, %v8890_v2  ;;  %v12486_v50 = vpack.c.b16 %v3187_v19, %v3187_v19  ;;  %v12488_v37 = vpack.c.b16 %v3188_v24, %v3188_v24  ;;  %v8554_v19 = vld [vmem:[%s15220_s7 + $0x7a8] sm:$0xf]  ;;  %v9992_v24 = vld [vmem:[%s15220_s7 + $0x980] sm:$0xf0]  ;;  %v9793_v56 = vld [vmem:[%s15220_s7 + $0x34c] sm:$0xf] }
 0x206   :  { %v2352_v28 = vadd.f32 %v12227_v3, %v2339_v9  ;;  %v8862_v3 = vld [vmem:[%s15220_s7 + $0xa10] sm:$0xf]  ;;  %v8639_v8 = vor.u32 %v9957_v34, %v8638_v33  ;;  %v8806_v9 = vld [vmem:[%s15220_s7 + $0x9a0] sm:$0xf]  ;;  %v8051_v46 = vor.u32 %v9810_v58, %v8050_v57  ;;  %v8275_v14 = vor.u32 %v9866_v60, %v8274_v59  ;;  %v9985_v34 = vld [vmem:[%s15220_s7 + $0x948] sm:$0xf0] }
 0x207   :  { %v8863_v44 = vor.u32 %v10013_v35, %v8862_v3  ;;  %v2392_v48 = vpop.f32.mrf.mxu0  ;;  %v2405_v53 = vpop.f32.mrf.mxu1  ;;  %v8807_v18 = vor.u32 %v9999_v10, %v8806_v9  ;;  %v8750_v33 = vld [vmem:[%s15220_s7 + $0x930] sm:$0xf]  ;;  %v7772_v55 = vld [vmem:[%s15220_s7 + $0x1a4] sm:$0xf0]  ;;  %v9730_v60 = vld [vmem:[%s15220_s7 + $0x154] sm:$0xf] }
 0x208   :  { %5521 = vmatpush.bf16.msra.mxu2 %v7603_v52  ;;  %5534 = vmatpush.bf16.msra.mxu3 %v7827_v5  ;;  %v2616_v36 = vpack.c.bf16 %v2404_v29, %v2352_v28  ;;  %v8079_v52 = vor.u32 %v9817_v41, %v8078_v40  ;;  %v8303_v5 = vor.u32 %v9873_v7, %v8302_v20  ;;  %v9922_v40 = vld [vmem:[%s15220_s7 + $0x750] sm:$0xf0]  ;;  %v8722_v41 = vld [vmem:[%s15220_s7 + $0x8f8] sm:$0xf]  ;;  %v8694_v48 = vld [vmem:[%s15220_s7 + $0x8c0] sm:$0xf] }
 0x209   :  { %5543 = vmatpush.bf16.msrb.mxu0 %v8163_v62  ;;  %5556 = vmatpush.bf16.msrb.mxu1 %v8387_v63  ;;  %v8582_v62 = vld [vmem:[%s15220_s7 + $0x7e0] sm:$0xf]  ;;  %v9943_v63 = vld [vmem:[%s15220_s7 + $0x7f8] sm:$0xf0]  ;;  %v7775_v58 = vor.u32 %v9737_v54, %v7772_v55  ;;  %v7940_v10 = vld [vmem:[%s15220_s7 + $0x2f4] sm:$0xf0] }
 0x20a   :  { %v2621_v42 = vunpack.c.l.bf16 %v2616_v36  ;;  %v2622_v45 = vunpack.c.h.bf16 %v2616_v36  ;;  %v8583_v2 = vor.u32 %v9943_v63, %v8582_v62  ;;  %v9971_v53 = vld [vmem:[%s15220_s7 + $0x8d8] sm:$0xf0]  ;;  %v7968_v62 = vld [vmem:[%s15220_s7 + $0x32c] sm:$0xf0] }
 0x20b   :  { %v8695_v57 = vor.u32 %v9971_v53, %v8694_v48  ;;  %v9779_v9 = vld [vmem:[%s15220_s7 + $0x2dc] sm:$0xf]  ;;  %v10125_v48 = vld [vmem:[%s15220_s7 + $0xda8] sm:$0xf0] }
 0x20c   :  { %5522 = vmatpush.bf16.msra.mxu2 %v7575_v23  ;;  %5535 = vmatpush.bf16.msra.mxu3 %v7799_v6  ;;  %v2637_v11 = vmul.f32 0.20019531, %v2621_v42  ;;  %v2638_v51 = vmul.f32 0.20019531, %v2622_v45  ;;  %vm12534_vm13 = vcmp.gt.f32.partialorder %v2621_v42, 0.0  ;;  %vm12538_vm14 = vcmp.gt.f32.partialorder %v2622_v45, 0.0  ;;  %v9936_v23 = vld [vmem:[%s15220_s7 + $0x7c0] sm:$0xf0] }
 0x20d   :  { %5544 = vmatpush.bf16.msrb.mxu0 %v8135_v49  ;;  %5557 = vmatpush.bf16.msrb.mxu1 %v8359_v25  ;;  %vm2648_vm15 = vmpackc.low %vm12538_vm14, %vm12534_vm13  ;;  %v8778_v6 = vld [vmem:[%s15220_s7 + $0x968] sm:$0xf]  ;;  %v8023_v49 = vor.u32 %v9803_v15, %v8022_v12  ;;  %v8247_v25 = vor.u32 %v9859_v17, %v8246_v16  ;;  %v8555_v30 = vor.u32 %v9936_v23, %v8554_v19  ;;  %v9978_v42 = vld [vmem:[%s15220_s7 + $0x910] sm:$0xf0] }
 0x20e   :  { %v2644_v4 = vpack.c.bf16 %v2638_v51, %v2637_v11  ;;  %v8779_v31 = vor.u32 %v9992_v24, %v8778_v6  ;;  %v7996_v11 = vld [vmem:[%s15220_s7 + $0x364] sm:$0xf0]  ;;  %v7943_v15 = vor.u32 %v9779_v9, %v7940_v10  ;;  %v9716_v16 = vld [vmem:[%s15220_s7 + $0xe4] sm:$0xf]  ;;  %v7688_v17 = vld [vmem:[%s15220_s7 + $0xfc] sm:$0xf0] }
 0x20f   :  { %5523 = vmatmul.bf16.vlgmr.msra.gmra.mxu2 %v12486_v50  ;;  %5536 = vmatmul.bf16.vlgmr.msra.gmra.mxu3 %v12488_v37  ;;  %v7999_v59 = vor.u32 %v9793_v56, %v7996_v11  ;;  %v7691_v19 = vor.u32 %v9716_v16, %v7688_v17  ;;  %v9709_v23 = vld [vmem:[%s15220_s7 + $0xac] sm:$0xf]  ;;  %v7660_v6 = vld [vmem:[%s15220_s7 + $0xc4] sm:$0xf0]  ;;  %v9751_v55 = vld [vmem:[%s15220_s7 + $0x1fc] sm:$0xf] }
 0x210   :  { %5567 = vmatpush.bf16.msrb.mxu2 %v8667_v43  ;;  %5580 = vmatpush.bf16.msrb.mxu3 %v8891_v32  ;;  %v2652_v22 = vsel %vm2648_vm15, %v2616_v36, %v2644_v4  ;;  %v8526_v43 = vld [vmem:[%s15220_s7 + $0x770] sm:$0xf]  ;;  %v9929_v32 = vld [vmem:[%s15220_s7 + $0x788] sm:$0xf0]  ;;  %v7716_v4 = vld [vmem:[%s15220_s7 + $0x134] sm:$0xf0] }
 0x211   :  { %5545 = vmatpush.bf16.msrb.mxu0 %v8107_v38  ;;  %5558 = vmatpush.bf16.msrb.mxu1 %v8331_v39  ;;  %v3189_v26 = vunpack.c.l.b16 %v2652_v22  ;;  %v3190_v27 = vunpack.c.h.b16 %v2652_v22  ;;  %v8527_v3 = vor.u32 %v9929_v32, %v8526_v43  ;;  %v8751_v38 = vor.u32 %v9985_v34, %v8750_v33  ;;  %v8498_v39 = vld [vmem:[%s15220_s7 + $0x738] sm:$0xf]  ;;  %v9765_v24 = vld [vmem:[%s15220_s7 + $0x26c] sm:$0xf]  ;;  %v10132_v43 = vld [vmem:[%s15220_s7 + $0xde0] sm:$0xf0] }
 0x212   :  { %v12576_v28 = vpop.f32.mrf.mxu2  ;;  %v12578_v29 = vpop.f32.mrf.mxu3  ;;  %v8499_v7 = vor.u32 %v9922_v40, %v8498_v39  ;;  %v7719_v12 = vor.u32 %v9723_v1, %v7716_v4  ;;  %v894_v32 = vperm.slane %v12137_v13, 5  ;;  %v7663_v33 = vor.u32 %v9709_v23, %v7660_v6  ;;  %v7828_v56 = vld [vmem:[%s15220_s7 + $0x214] sm:$0xf0]  ;;  %v7576_v10 = vld [vmem:[%s15220_s7 + $0x1c] sm:$0xf0] }
 0x213   :  { %v12592_v35 = vpack.c.b16 %v3189_v26, %v3189_v26  ;;  %v12594_v36 = vpack.c.b16 %v3190_v27, %v3190_v27  ;;  %v10076_v26 = vld [vmem:[%s15220_s7 + $0xc20] sm:$0xf0]  ;;  %v9338_v27 = vld [vmem:[%s15220_s7 + $0xdc8] sm:$0xf] }
 0x214   :  { %5568 = vmatpush.bf16.msrb.mxu2 %v8639_v8  ;;  %5581 = vmatpush.bf16.msrb.mxu3 %v8863_v44  ;;  %v8723_v8 = vor.u32 %v9978_v42, %v8722_v41  ;;  %v8470_v44 = vld [vmem:[%s15220_s7 + $0x700] sm:$0xf]  ;;  %v7632_v41 = vld [vmem:[%s15220_s7 + $0x8c] sm:$0xf0]  ;;  %v9758_v42 = vld [vmem:[%s15220_s7 + $0x234] sm:$0xf] }
 0x215   :  { %5546 = vmatpush.bf16.msrb.mxu0 %v8079_v52  ;;  %5559 = vmatpush.bf16.msrb.mxu1 %v8303_v5  ;;  %v8471_v5 = vor.u32 %v9915_v47, %v8470_v44  ;;  %v7604_v44 = vld [vmem:[%s15220_s7 + $0x54] sm:$0xf0] }
 0x218   :  { %5569 = vmatpush.bf16.msrb.mxu2 %v8611_v61  ;;  %5582 = vmatpush.bf16.msrb.mxu3 %v8835_v21  ;;  %v7744_v61 = vld [vmem:[%s15220_s7 + $0x16c] sm:$0xf0]  ;;  %v9786_v21 = vld [vmem:[%s15220_s7 + $0x314] sm:$0xf] }
 0x219   :  { %5547 = vmatpush.bf16.msrb.mxu0 %v8051_v46  ;;  %5560 = vmatpush.bf16.msrb.mxu1 %v8275_v14  ;;  %v7747_v63 = vor.u32 %v9730_v60, %v7744_v61  ;;  %v7971_v0 = vor.u32 %v9786_v21, %v7968_v62  ;;  %v10118_v60 = vld [vmem:[%s15220_s7 + $0xd70] sm:$0xf0] }
 0x21a   :  { %v2418_v45 = vpop.f32.mrf.mxu2  ;;  %v2431_v20 = vpop.f32.mrf.mxu3 }
 0x21b   :  { %v9086_v45 = vld [vmem:[%s15220_s7 + $0xbd0] sm:$0xf]  ;;  %v10069_v20 = vld [vmem:[%s15220_s7 + $0xbe8] sm:$0xf0] }
 0x21c   :  { %5570 = vmatpush.bf16.msrb.mxu2 %v8583_v2  ;;  %5583 = vmatpush.bf16.msrb.mxu3 %v8807_v18  ;;  %v9772_v2 = vld [vmem:[%s15220_s7 + $0x2a4] sm:$0xf]  ;;  %v7912_v18 = vld [vmem:[%s15220_s7 + $0x2bc] sm:$0xf0]  ;;  %v9087_v47 = vor.u32 %v10069_v20, %v9086_v45  ;;  %v8946_v20 = vld [vmem:[%s15220_s7 + $0xab8] sm:$0xf] }
 0x21d   :  { %5548 = vmatpush.bf16.msrb.mxu0 %v8023_v49  ;;  %5561 = vmatpush.bf16.msrb.mxu1 %v8247_v25  ;;  %v7915_v22 = vor.u32 %v9772_v2, %v7912_v18  ;;  %v7884_v49 = vld [vmem:[%s15220_s7 + $0x284] sm:$0xf0]  ;;  %v10111_v18 = vld [vmem:[%s15220_s7 + $0xd38] sm:$0xf0] }
 0x21e   :  { %v9114_v25 = vld [vmem:[%s15220_s7 + $0xc08] sm:$0xf]  ;;  %v7887_v34 = vor.u32 %v9765_v24, %v7884_v49 }
 0x21f   :  { %v12634_v51 = vpop.f32.mrf.mxu0  ;;  %v12636_v52 = vpop.f32.mrf.mxu1 }
 0x220   :  { %5571 = vmatpush.bf16.msrb.mxu2 %v8555_v30  ;;  %5584 = vmatpush.bf16.msrb.mxu3 %v8779_v31  ;;  %v893_v30 = vperm.slane %v12137_v13, 4  ;;  %v9115_v31 = vor.u32 %v10076_v26, %v9114_v25  ;;  %v7856_v13 = vld [vmem:[%s15220_s7 + $0x24c] sm:$0xf0]  ;;  %v9002_v25 = vld [vmem:[%s15220_s7 + $0xb28] sm:$0xf] }
 0x221   :  { %5549 = vmatmul.bf16.vlgmr.msrb.gmra.mxu0 %v12592_v35  ;;  %5562 = vmatmul.bf16.vlgmr.msrb.gmra.mxu1 %v12594_v36  ;;  %v7859_v54 = vor.u32 %v9758_v42, %v7856_v13  ;;  %v9226_v26 = vld [vmem:[%s15220_s7 + $0xce8] sm:$0xf] }
 0x222   :  { %5593 = vmatpush.bf16.msra.mxu0 %v9115_v31 }
 0x224   :  { %5572 = vmatpush.bf16.msrb.mxu2 %v8527_v3  ;;  %5585 = vmatpush.bf16.msrb.mxu3 %v8751_v38  ;;  %v9702_v3 = vld [vmem:[%s15220_s7 + $0x74] sm:$0xf]  ;;  %v9339_v38 = vor.u32 %v10132_v43, %v9338_v27 }
 0x225   :  { %v7635_v53 = vor.u32 %v9702_v3, %v7632_v41  ;;  %v10041_v3 = vld [vmem:[%s15220_s7 + $0xb08] sm:$0xf0] }
 0x226   :  { %5606 = vmatpush.bf16.msra.mxu1 %v9339_v38  ;;  %5594 = vmatpush.bf16.msra.mxu0 %v9087_v47  ;;  %v9198_v38 = vld [vmem:[%s15220_s7 + $0xcb0] sm:$0xf]  ;;  %v10097_v41 = vld [vmem:[%s15220_s7 + $0xcc8] sm:$0xf0] }
 0x227   :  { %v2444_v46 = vpop.f32.mrf.mxu0  ;;  %v2457_v14 = vpop.f32.mrf.mxu1  ;;  %v9199_v45 = vor.u32 %v10097_v41, %v9198_v38  ;;  %v9835_v38 = vld [vmem:[%s15220_s7 + $0x49c] sm:$0xf] }
 0x228   :  { %5573 = vmatpush.bf16.msrb.mxu2 %v8499_v7  ;;  %5586 = vmatpush.bf16.msrb.mxu3 %v8723_v8  ;;  %v9310_v7 = vld [vmem:[%s15220_s7 + $0xd90] sm:$0xf]  ;;  %v9695_v8 = vld [vmem:[%s15220_s7 + $0x3c] sm:$0xf]  ;;  %v9744_v46 = vld [vmem:[%s15220_s7 + $0x1c4] sm:$0xf] }
 0x229   :  { %v9311_v11 = vor.u32 %v10125_v48, %v9310_v7  ;;  %v7800_v14 = vld [vmem:[%s15220_s7 + $0x1dc] sm:$0xf0]  ;;  %v10034_v48 = vld [vmem:[%s15220_s7 + $0xad0] sm:$0xf0] }
 0x22a   :  { %v7803_v6 = vor.u32 %v9744_v46, %v7800_v14  ;;  %v9849_v14 = vld [vmem:[%s15220_s7 + $0x50c] sm:$0xf]  ;;  %v8808_v7 = vld [vmem:[%s15220_s7 + $0x9bc] sm:$0xf0] }
 0x22b   :  { %5607 = vmatpush.bf16.msra.mxu1 %v9311_v11 }
 0x22c   :  { %5574 = vmatpush.bf16.msrb.mxu2 %v8471_v5  ;;  %5587 = vmatpush.bf16.msrb.mxu3 %v8695_v57  ;;  %v9058_v5 = vld [vmem:[%s15220_s7 + $0xb98] sm:$0xf]  ;;  %v2417_v57 = vadd.f32 %v12576_v28, %v893_v30  ;;  %v7607_v28 = vor.u32 %v9695_v8, %v7604_v44  ;;  %v10104_v30 = vld [vmem:[%s15220_s7 + $0xd00] sm:$0xf0] }
 0x22e   :  { %v2430_v1 = vadd.f32 %v12578_v29, %v2417_v57  ;;  %v9030_v29 = vld [vmem:[%s15220_s7 + $0xb60] sm:$0xf]  ;;  %v10017_v57 = vld [vmem:[%s15220_s7 + $0xa4c] sm:$0xf] }
 0x230   :  { %5619 = vmatpush.bf16.msra.mxu2 %v7775_v58  ;;  %5632 = vmatpush.bf16.msra.mxu3 %v7999_v59  ;;  %v10062_v58 = vld [vmem:[%s15220_s7 + $0xbb0] sm:$0xf0]  ;;  %v9282_v59 = vld [vmem:[%s15220_s7 + $0xd58] sm:$0xf]  ;;  %v2443_v16 = vadd.f32 %v12634_v51, %v2430_v1  ;;  %v10048_v51 = vld [vmem:[%s15220_s7 + $0xb40] sm:$0xf0] }
 0x231   :  { %v9059_v61 = vor.u32 %v10062_v58, %v9058_v5  ;;  %v9283_v21 = vor.u32 %v10118_v60, %v9282_v59  ;;  %v9003_v27 = vor.u32 %v10048_v51, %v9002_v25  ;;  %v8668_v5 = vld [vmem:[%s15220_s7 + $0x8a4] sm:$0xf0]  ;;  %v8918_v60 = vld [vmem:[%s15220_s7 + $0xa80] sm:$0xf] }
 0x232   :  { %v2468_v39 = vpop.f32.mrf.mxu2  ;;  %v2481_v40 = vpop.f32.mrf.mxu3  ;;  %v2456_v31 = vadd.f32 %v12636_v52, %v2443_v16  ;;  %v8892_v58 = vld [vmem:[%s15220_s7 + $0xa64] sm:$0xf0] }
 0x233   :  { %v2469_v62 = vadd.f32 %v2468_v39, %v894_v32  ;;  %5595 = vmatpush.bf16.msra.mxu0 %v9059_v61  ;;  %5608 = vmatpush.bf16.msra.mxu1 %v9283_v21  ;;  %v9227_v32 = vor.u32 %v10104_v30, %v9226_v26  ;;  %v10027_v61 = vld [vmem:[%s15220_s7 + $0xa98] sm:$0xf0]  ;;  %v8895_v46 = vor.u32 %v10017_v57, %v8892_v58  ;;  %v8192_v30 = vld [vmem:[%s15220_s7 + $0x4ec] sm:$0xf0]  ;;  %v9884_v57 = vld [vmem:[%s15220_s7 + $0x624] sm:$0xf] }
 0x234   :  { %5620 = vmatpush.bf16.msra.mxu2 %v7747_v63  ;;  %5633 = vmatpush.bf16.msra.mxu3 %v7971_v0  ;;  %v7831_v63 = vor.u32 %v9751_v55, %v7828_v56  ;;  %v9688_v0 = vld [vmem:[%s15220_s7 + $0x4] sm:$0xf]  ;;  %v9170_v55 = vld [vmem:[%s15220_s7 + $0xc78] sm:$0xf]  ;;  %v10090_v56 = vld [vmem:[%s15220_s7 + $0xc90] sm:$0xf0] }
 0x235   :  { %v2482_v17 = vadd.f32 %v2481_v40, %v2469_v62  ;;  %v7579_v23 = vor.u32 %v9688_v0, %v7576_v10  ;;  %v9171_v59 = vor.u32 %v10090_v56, %v9170_v55  ;;  %v8919_v62 = vor.u32 %v10027_v61, %v8918_v60  ;;  %v9989_v58 = vld [vmem:[%s15220_s7 + $0x96c] sm:$0xf]  ;;  %v8360_v61 = vld [vmem:[%s15220_s7 + $0x63c] sm:$0xf0] }
 0x238   :  { %5621 = vmatpush.bf16.msra.mxu2 %v7719_v12  ;;  %5634 = vmatpush.bf16.msra.mxu3 %v7943_v15  ;;  %v10055_v12 = vld [vmem:[%s15220_s7 + $0xb78] sm:$0xf0]  ;;  %v9254_v15 = vld [vmem:[%s15220_s7 + $0xd20] sm:$0xf] }
 0x239   :  { %v9031_v2 = vor.u32 %v10055_v12, %v9030_v29  ;;  %v9255_v24 = vor.u32 %v10111_v18, %v9254_v15  ;;  %v8220_v29 = vld [vmem:[%s15220_s7 + $0x524] sm:$0xf0]  ;;  %v9905_v12 = vld [vmem:[%s15220_s7 + $0x6cc] sm:$0xf] }
 0x23a   :  { %v2470_v4 = vpop.f32.mrf.mxu2  ;;  %v2483_v9 = vpop.f32.mrf.mxu3 }
 0x23b   :  { %5596 = vmatpush.bf16.msra.mxu0 %v9031_v2  ;;  %5609 = vmatpush.bf16.msra.mxu1 %v9255_v24  ;;  %v9954_v4 = vld [vmem:[%s15220_s7 + $0x854] sm:$0xf]  ;;  %v8640_v9 = vld [vmem:[%s15220_s7 + $0x86c] sm:$0xf0]  ;;  %v8612_v24 = vld [vmem:[%s15220_s7 + $0x834] sm:$0xf0] }
 0x23c   :  { %5622 = vmatpush.bf16.msra.mxu2 %v7691_v19  ;;  %5635 = vmatpush.bf16.msra.mxu3 %v7915_v22  ;;  %v8864_v2 = vld [vmem:[%s15220_s7 + $0xa2c] sm:$0xf0]  ;;  %v8643_v51 = vor.u32 %v9954_v4, %v8640_v9  ;;  %v9821_v9 = vld [vmem:[%s15220_s7 + $0x42c] sm:$0xf] }
 0x23f   :  { %v2494_v19 = vpop.f32.mrf.mxu0  ;;  %v2507_v22 = vpop.f32.mrf.mxu1  ;;  %5597 = vmatpush.bf16.msra.mxu0 %v9003_v27  ;;  %5610 = vmatpush.bf16.msra.mxu1 %v9227_v32  ;;  %v9842_v27 = vld [vmem:[%s15220_s7 + $0x4d4] sm:$0xf]  ;;  %v8836_v32 = vld [vmem:[%s15220_s7 + $0x9f4] sm:$0xf0] }
 0x240   :  { %5623 = vmatpush.bf16.msra.mxu2 %v7663_v33  ;;  %5636 = vmatpush.bf16.msra.mxu3 %v7887_v34  ;;  %v2495_v49 = vadd.f32 %v2494_v19, %v2482_v17  ;;  %v8974_v34 = vld [vmem:[%s15220_s7 + $0xaf0] sm:$0xf]  ;;  %v10010_v17 = vld [vmem:[%s15220_s7 + $0xa14] sm:$0xf]  ;;  %v8223_v19 = vor.u32 %v9849_v14, %v8220_v29 }
 0x241   :  { %v8975_v40 = vor.u32 %v10041_v3, %v8974_v34  ;;  %v8867_v26 = vor.u32 %v10010_v17, %v8864_v2  ;;  %v8416_v34 = vld [vmem:[%s15220_s7 + $0x6ac] sm:$0xf0]  ;;  %v9982_v14 = vld [vmem:[%s15220_s7 + $0x934] sm:$0xf]  ;;  %v8332_v17 = vld [vmem:[%s15220_s7 + $0x604] sm:$0xf0] }
 0x242   :  { %v2508_v43 = vadd.f32 %v2507_v22, %v2495_v49  ;;  %v8444_v22 = vld [vmem:[%s15220_s7 + $0x6e4] sm:$0xf0]  ;;  %v8752_v29 = vld [vmem:[%s15220_s7 + $0x94c] sm:$0xf0] }
 0x243   :  { %5598 = vmatpush.bf16.msra.mxu0 %v8975_v40  ;;  %5611 = vmatpush.bf16.msra.mxu1 %v9199_v45  ;;  %v8388_v40 = vld [vmem:[%s15220_s7 + $0x674] sm:$0xf0]  ;;  %v8584_v45 = vld [vmem:[%s15220_s7 + $0x7fc] sm:$0xf0] }
 0x244   :  { %5624 = vmatpush.bf16.msra.mxu2 %v7635_v53  ;;  %5637 = vmatpush.bf16.msra.mxu3 %v7859_v54  ;;  %v2617_v33 = vpack.c.bf16 %v2508_v43, %v2456_v31  ;;  %v9961_v53 = vld [vmem:[%s15220_s7 + $0x88c] sm:$0xf]  ;;  %v8947_v54 = vor.u32 %v10034_v48, %v8946_v20  ;;  %v9898_v31 = vld [vmem:[%s15220_s7 + $0x694] sm:$0xf]  ;;  %v10003_v43 = vld [vmem:[%s15220_s7 + $0x9dc] sm:$0xf] }
 0x245   :  { %v8671_v10 = vor.u32 %v9961_v53, %v8668_v5  ;;  %v8419_v3 = vor.u32 %v9898_v31, %v8416_v34  ;;  %v9996_v20 = vld [vmem:[%s15220_s7 + $0x9a4] sm:$0xf]  ;;  %v8556_v48 = vld [vmem:[%s15220_s7 + $0x7c4] sm:$0xf0]  ;;  %v8136_v5 = vld [vmem:[%s15220_s7 + $0x47c] sm:$0xf0] }
 0x246   :  { %v2623_v52 = vunpack.c.l.bf16 %v2617_v33  ;;  %v2624_v39 = vunpack.c.h.bf16 %v2617_v33  ;;  %v8811_v56 = vor.u32 %v9996_v20, %v8808_v7  ;;  %v8304_v31 = vld [vmem:[%s15220_s7 + $0x5cc] sm:$0xf0]  ;;  %v9912_v34 = vld [vmem:[%s15220_s7 + $0x704] sm:$0xf]  ;;  %v8276_v7 = vld [vmem:[%s15220_s7 + $0x594] sm:$0xf0] }
 0x247   :  { %v2496_v42 = vpop.f32.mrf.mxu0  ;;  %v2509_v13 = vpop.f32.mrf.mxu1  ;;  %5599 = vmatpush.bf16.msra.mxu0 %v8947_v54  ;;  %5612 = vmatpush.bf16.msra.mxu1 %v9171_v59  ;;  %v8780_v59 = vld [vmem:[%s15220_s7 + $0x984] sm:$0xf0] }
 0x248   :  { %5625 = vmatpush.bf16.msra.mxu2 %v7607_v28  ;;  %5638 = vmatpush.bf16.msra.mxu3 %v7831_v63  ;;  %vm12803_vm0 = vcmp.gt.f32.partialorder %v2623_v52, 0.0  ;;  %vm12807_vm1 = vcmp.gt.f32.partialorder %v2624_v39, 0.0  ;;  %v2639_v44 = vmul.f32 0.20019531, %v2623_v52  ;;  %v2640_v47 = vmul.f32 0.20019531, %v2624_v39  ;;  %v9142_v28 = vld [vmem:[%s15220_s7 + $0xc40] sm:$0xf] }
 0x249   :  { %vm2649_vm2 = vmpackc.low %vm12807_vm1, %vm12803_vm0  ;;  %v10083_v63 = vld [vmem:[%s15220_s7 + $0xc58] sm:$0xf0]  ;;  %v8164_v52 = vld [vmem:[%s15220_s7 + $0x4b4] sm:$0xf0]  ;;  %v8839_v42 = vor.u32 %v10003_v43, %v8836_v32  ;;  %v8783_v4 = vor.u32 %v9989_v58, %v8780_v59 }
 0x24a   :  { %v2645_v11 = vpack.c.bf16 %v2640_v47, %v2639_v44  ;;  %v9143_v18 = vor.u32 %v10083_v63, %v9142_v28  ;;  %v9891_v39 = vld [vmem:[%s15220_s7 + $0x65c] sm:$0xf]  ;;  %v9940_v13 = vld [vmem:[%s15220_s7 + $0x7e4] sm:$0xf]  ;;  %v8167_v8 = vor.u32 %v9835_v38, %v8164_v52  ;;  %v9933_v47 = vld [vmem:[%s15220_s7 + $0x7ac] sm:$0xf] }
 0x24b   :  { %5600 = vmatpush.bf16.msra.mxu0 %v8919_v62  ;;  %v8391_v44 = vor.u32 %v9891_v39, %v8388_v40  ;;  %v8587_v55 = vor.u32 %v9940_v13, %v8584_v45  ;;  %v9926_v63 = vld [vmem:[%s15220_s7 + $0x774] sm:$0xf]  ;;  %v9968_v38 = vld [vmem:[%s15220_s7 + $0x8c4] sm:$0xf]  ;;  %v9807_v40 = vld [vmem:[%s15220_s7 + $0x3bc] sm:$0xf] }
 0x24c   :  { %5626 = vmatpush.bf16.msra.mxu2 %v7579_v23  ;;  %5639 = vmatpush.bf16.msra.mxu3 %v7803_v6  ;;  %v2653_v21 = vsel %vm2649_vm2, %v2617_v33, %v2645_v11  ;;  %v8447_v23 = vor.u32 %v9905_v12, %v8444_v22  ;;  %v9947_v6 = vld [vmem:[%s15220_s7 + $0x81c] sm:$0xf]  ;;  %v8195_v33 = vor.u32 %v9842_v27, %v8192_v30  ;;  %v9828_v11 = vld [vmem:[%s15220_s7 + $0x464] sm:$0xf]  ;;  %v8724_v27 = vld [vmem:[%s15220_s7 + $0x914] sm:$0xf0] }
 0x24d   :  { %v3191_v0 = vunpack.c.l.b16 %v2653_v21  ;;  %v3192_v1 = vunpack.c.h.b16 %v2653_v21  ;;  %5613 = vmatpush.bf16.msra.mxu1 %v9143_v18  ;;  %v8615_v41 = vor.u32 %v9947_v6, %v8612_v24  ;;  %v8139_v60 = vor.u32 %v9828_v11, %v8136_v5  ;;  %v9919_v18 = vld [vmem:[%s15220_s7 + $0x73c] sm:$0xf]  ;;  %v9814_v6 = vld [vmem:[%s15220_s7 + $0x3f4] sm:$0xf]  ;;  %v8080_v24 = vld [vmem:[%s15220_s7 + $0x40c] sm:$0xf0] }
 0x24e   :  { %v8363_v21 = vor.u32 %v9884_v57, %v8360_v61  ;;  %v8083_v30 = vor.u32 %v9814_v6, %v8080_v24  ;;  %v8696_v13 = vld [vmem:[%s15220_s7 + $0x8dc] sm:$0xf0]  ;;  %v7778_v45 = vld [vmem:[%s15220_s7 + $0x190] sm:$0xf]  ;;  %v9856_v11 = vld [vmem:[%s15220_s7 + $0x544] sm:$0xf] }
 0x24f   :  { %v12863_v15 = vpack.c.b16 %v3191_v0, %v3191_v0  ;;  %v12865_v16 = vpack.c.b16 %v3192_v1, %v3192_v1  ;;  %5645 = vmatpush.bf16.msrb.mxu0 %v8223_v19  ;;  %v8528_v0 = vld [vmem:[%s15220_s7 + $0x78c] sm:$0xf0]  ;;  %v8559_v1 = vor.u32 %v9933_v47, %v8556_v48  ;;  %v8500_v19 = vld [vmem:[%s15220_s7 + $0x754] sm:$0xf0]  ;;  %v9797_v47 = vld [vmem:[%s15220_s7 + $0x368] sm:$0xf0] }
 0x250   :  { %v8531_v22 = vor.u32 %v9926_v63, %v8528_v0  ;;  %v8503_v52 = vor.u32 %v9919_v18, %v8500_v19  ;;  %v7750_v58 = vld [vmem:[%s15220_s7 + $0x158] sm:$0xf]  ;;  %v8248_v59 = vld [vmem:[%s15220_s7 + $0x55c] sm:$0xf0]  ;;  %v9720_v24 = vld [vmem:[%s15220_s7 + $0x100] sm:$0xf0] }
 0x251   :  { %5575 = vmatmul.bf16.vlgmr.msrb.gmra.mxu2 %v12863_v15  ;;  %5588 = vmatmul.bf16.vlgmr.msrb.gmra.mxu3 %v12865_v16  ;;  %v7974_v61 = vld [vmem:[%s15220_s7 + $0x318] sm:$0xf]  ;;  %v8251_v0 = vor.u32 %v9856_v11, %v8248_v59 }
 0x252   :  { %5671 = vmatpush.bf16.msrb.mxu2 %v8671_v10  ;;  %5684 = vmatpush.bf16.msrb.mxu3 %v8895_v46  ;;  %v12884_v49 = vpop.f32.mrf.mxu2  ;;  %v12886_v25 = vpop.f32.mrf.mxu3  ;;  %v8108_v10 = vld [vmem:[%s15220_s7 + $0x444] sm:$0xf0]  ;;  %v9877_v46 = vld [vmem:[%s15220_s7 + $0x5ec] sm:$0xf] }
 0x253   :  { %5658 = vmatpush.bf16.msrb.mxu1 %v8447_v23  ;;  %5646 = vmatpush.bf16.msrb.mxu0 %v8195_v33  ;;  %v8111_v12 = vor.u32 %v9821_v9, %v8108_v10  ;;  %v8335_v2 = vor.u32 %v9877_v46, %v8332_v17  ;;  %v8755_v23 = vor.u32 %v9982_v14, %v8752_v29  ;;  %v7722_v46 = vld [vmem:[%s15220_s7 + $0x120] sm:$0xf] }
 0x254   :  { %v7946_v17 = vld [vmem:[%s15220_s7 + $0x2e0] sm:$0xf] }
 0x256   :  { %5672 = vmatpush.bf16.msrb.mxu2 %v8643_v51  ;;  %5685 = vmatpush.bf16.msrb.mxu3 %v8867_v26  ;;  %v9870_v51 = vld [vmem:[%s15220_s7 + $0x5b4] sm:$0xf]  ;;  %v9975_v26 = vld [vmem:[%s15220_s7 + $0x8fc] sm:$0xf] }
 0x257   :  { %5659 = vmatpush.bf16.msrb.mxu1 %v8419_v3  ;;  %5647 = vmatpush.bf16.msrb.mxu0 %v8167_v8  ;;  %v8307_v43 = vor.u32 %v9870_v51, %v8304_v31  ;;  %v8472_v3 = vld [vmem:[%s15220_s7 + $0x71c] sm:$0xf0]  ;;  %v8727_v39 = vor.u32 %v9975_v26, %v8724_v27  ;;  %v9741_v8 = vld [vmem:[%s15220_s7 + $0x1a8] sm:$0xf0]  ;;  %v7918_v51 = vld [vmem:[%s15220_s7 + $0x2a8] sm:$0xf] }
 0x258   :  { %v7779_v5 = vor.u32 %v9741_v8, %v7778_v45  ;;  %v9776_v26 = vld [vmem:[%s15220_s7 + $0x2c0] sm:$0xf0] }
 0x259   :  { %v7919_v31 = vor.u32 %v9776_v26, %v7918_v51 }
 0x25a   :  { %5673 = vmatpush.bf16.msrb.mxu2 %v8615_v41  ;;  %5686 = vmatpush.bf16.msrb.mxu3 %v8839_v42  ;;  %v2522_v53 = vpop.f32.mrf.mxu2  ;;  %v2535_v54 = vpop.f32.mrf.mxu3  ;;  %v8052_v41 = vld [vmem:[%s15220_s7 + $0x3d4] sm:$0xf0]  ;;  %v9863_v42 = vld [vmem:[%s15220_s7 + $0x57c] sm:$0xf] }
 0x25b   :  { %5660 = vmatpush.bf16.msrb.mxu1 %v8391_v44  ;;  %5648 = vmatpush.bf16.msrb.mxu0 %v8139_v60  ;;  %v8055_v20 = vor.u32 %v9807_v40, %v8052_v41  ;;  %v8002_v44 = vld [vmem:[%s15220_s7 + $0x350] sm:$0xf]  ;;  %v8279_v48 = vor.u32 %v9863_v42, %v8276_v7  ;;  %v8475_v53 = vor.u32 %v9912_v34, %v8472_v3  ;;  %v9734_v60 = vld [vmem:[%s15220_s7 + $0x170] sm:$0xf0]  ;;  %v9713_v34 = vld [vmem:[%s15220_s7 + $0xc8] sm:$0xf0] }
 0x25c   :  { %v8699_v54 = vor.u32 %v9968_v38, %v8696_v13  ;;  %v8003_v57 = vor.u32 %v9797_v47, %v8002_v44  ;;  %v7751_v9 = vor.u32 %v9734_v60, %v7750_v58  ;;  %v7890_v3 = vld [vmem:[%s15220_s7 + $0x270] sm:$0xf]  ;;  %v9769_v38 = vld [vmem:[%s15220_s7 + $0x288] sm:$0xf0]  ;;  %v7638_v13 = vld [vmem:[%s15220_s7 + $0x78] sm:$0xf] }
 0x25d   :  { %v7891_v42 = vor.u32 %v9769_v38, %v7890_v3  ;;  %v9762_v7 = vld [vmem:[%s15220_s7 + $0x250] sm:$0xf0] }
 0x25e   :  { %5674 = vmatpush.bf16.msrb.mxu2 %v8587_v55  ;;  %5687 = vmatpush.bf16.msrb.mxu3 %v8811_v56  ;;  %v9800_v55 = vld [vmem:[%s15220_s7 + $0x384] sm:$0xf]  ;;  %v8024_v56 = vld [vmem:[%s15220_s7 + $0x39c] sm:$0xf0] }
 0x25f   :  { %v12954_v62 = vpop.f32.mrf.mxu0  ;;  %v12956_v28 = vpop.f32.mrf.mxu1  ;;  %5661 = vmatpush.bf16.msrb.mxu1 %v8363_v21  ;;  %5649 = vmatpush.bf16.msrb.mxu0 %v8111_v12  ;;  %v9790_v21 = vld [vmem:[%s15220_s7 + $0x330] sm:$0xf0]  ;;  %v8027_v63 = vor.u32 %v9800_v55, %v8024_v56  ;;  %v9727_v12 = vld [vmem:[%s15220_s7 + $0x138] sm:$0xf0]  ;;  %v7834_v56 = vld [vmem:[%s15220_s7 + $0x200] sm:$0xf] }
 0x260   :  { %v7975_v10 = vor.u32 %v9790_v21, %v7974_v61  ;;  %v7723_v19 = vor.u32 %v9727_v12, %v7722_v46  ;;  %v9699_v55 = vld [vmem:[%s15220_s7 + $0x58] sm:$0xf0]  ;;  %v9692_v21 = vld [vmem:[%s15220_s7 + $0x20] sm:$0xf0]  ;;  %v8674_v46 = vld [vmem:[%s15220_s7 + $0x890] sm:$0xf] }
 0x261   :  { %5627 = vmatmul.bf16.vlgmr.msra.gmra.mxu2 %v12486_v50  ;;  %5640 = vmatmul.bf16.vlgmr.msra.gmra.mxu3 %v12488_v37  ;;  %v10021_v12 = vld [vmem:[%s15220_s7 + $0xa68] sm:$0xf0] }
 0x262   :  { %5675 = vmatpush.bf16.msrb.mxu2 %v8559_v1  ;;  %5688 = vmatpush.bf16.msrb.mxu3 %v8783_v4  ;;  %v10151_v1 = vld [vmem:[%s15219_s6] sm:$0xff] }
 0x263   :  { %5662 = vmatpush.bf16.msrb.mxu1 %v8335_v2  ;;  %5650 = vmatpush.bf16.msrb.mxu0 %v8083_v30  ;;  %v895_v4 = vperm.slane %v10151_v1, 6  ;;  %v9783_v2 = vld [vmem:[%s15220_s7 + $0x2f8] sm:$0xf0]  ;;  %v896_v18 = vperm.slane %v10151_v1, 7  ;;  %v10052_v1 = vld [vmem:[%s15220_s7 + $0xb64] sm:$0xf] }
 0x265   :  { %v2521_v6 = vadd.f32 %v12884_v49, %v895_v4  ;;  %v7666_v49 = vld [vmem:[%s15220_s7 + $0xb0] sm:$0xf]  ;;  %v9032_v4 = vld [vmem:[%s15220_s7 + $0xb7c] sm:$0xf0] }
 0x266   :  { %5676 = vmatpush.bf16.msrb.mxu2 %v8531_v22  ;;  %5689 = vmatpush.bf16.msrb.mxu3 %v8755_v23  ;;  %v7947_v22 = vor.u32 %v9783_v2, %v7946_v17  ;;  %v7694_v23 = vld [vmem:[%s15220_s7 + $0xe8] sm:$0xf]  ;;  %v10073_v2 = vld [vmem:[%s15220_s7 + $0xc0c] sm:$0xf] }
 0x267   :  { %v2548_v32 = vpop.f32.mrf.mxu0  ;;  %v2561_v33 = vpop.f32.mrf.mxu1  ;;  %5663 = vmatpush.bf16.msrb.mxu1 %v8307_v43  ;;  %5651 = vmatpush.bf16.msrb.mxu0 %v8055_v20  ;;  %v7695_v30 = vor.u32 %v9720_v24, %v7694_v23  ;;  %v2534_v43 = vadd.f32 %v12886_v25, %v2521_v6  ;;  %v7667_v25 = vor.u32 %v9713_v34, %v7666_v49  ;;  %v9706_v20 = vld [vmem:[%s15220_s7 + $0x90] sm:$0xf0]  ;;  %v9340_v6 = vld [vmem:[%s15220_s7 + $0xde4] sm:$0xf0]  ;;  %v3167_v24 = vld [vmem:[%s15221_s8] sm:$0x7f] }
 0x268   :  { %v7639_v47 = vor.u32 %v9706_v20, %v7638_v13  ;;  %v3169_v38 = vperm.slane %v3167_v24, 0  ;;  %v8618_v20 = vld [vmem:[%s15220_s7 + $0x820] sm:$0xf]  ;;  %v9004_v24 = vld [vmem:[%s15220_s7 + $0xb44] sm:$0xf0] }
 0x26a   :  { %5677 = vmatpush.bf16.msrb.mxu2 %v8503_v52  ;;  %5690 = vmatpush.bf16.msrb.mxu3 %v8727_v39  ;;  %v2547_v52 = vadd.f32 %v12954_v62, %v2534_v43  ;;  %v7862_v62 = vld [vmem:[%s15220_s7 + $0x238] sm:$0xf]  ;;  %v9958_v43 = vld [vmem:[%s15220_s7 + $0x870] sm:$0xf0] }
 0x26b   :  { %5664 = vmatpush.bf16.msrb.mxu1 %v8279_v48  ;;  %5652 = vmatpush.bf16.msrb.mxu0 %v8027_v63  ;;  %v7863_v48 = vor.u32 %v9762_v7, %v7862_v62  ;;  %v7806_v63 = vld [vmem:[%s15220_s7 + $0x1c8] sm:$0xf]  ;;  %v9951_v62 = vld [vmem:[%s15220_s7 + $0x838] sm:$0xf0]  ;;  %v8842_v7 = vld [vmem:[%s15220_s7 + $0x9e0] sm:$0xf] }
 0x26c   :  { %v2560_v8 = vadd.f32 %v12956_v28, %v2547_v52  ;;  %v9755_v28 = vld [vmem:[%s15220_s7 + $0x218] sm:$0xf0]  ;;  %v10066_v52 = vld [vmem:[%s15220_s7 + $0xbd4] sm:$0xf] }
 0x26d   :  { %v7835_v61 = vor.u32 %v9755_v28, %v7834_v56  ;;  %v9060_v56 = vld [vmem:[%s15220_s7 + $0xbb4] sm:$0xf0]  ;;  %v10115_v28 = vld [vmem:[%s15220_s7 + $0xd5c] sm:$0xf] }
 0x26e   :  { %5678 = vmatpush.bf16.msrb.mxu2 %v8475_v53  ;;  %5691 = vmatpush.bf16.msrb.mxu3 %v8699_v54  ;;  %v7610_v53 = vld [vmem:[%s15220_s7 + $0x40] sm:$0xf] }
 0x26f   :  { %5665 = vmatpush.bf16.msrb.mxu1 %v8251_v0  ;;  %v7611_v60 = vor.u32 %v9699_v55, %v7610_v53  ;;  %v9748_v0 = vld [vmem:[%s15220_s7 + $0x1e0] sm:$0xf0] }
 0x270   :  { %v7807_v23 = vor.u32 %v9748_v0, %v7806_v63 }
 0x271   :  { %5679 = vmatmul.bf16.vlgmr.msrb.gmra.mxu2 %v12863_v15  ;;  %5692 = vmatmul.bf16.vlgmr.msrb.gmra.mxu3 %v12865_v16 }
 0x272   :  { %5723 = vmatpush.bf16.msra.mxu2 %v7779_v5  ;;  %5736 = vmatpush.bf16.msra.mxu3 %v8003_v57  ;;  %v2572_v14 = vpop.f32.mrf.mxu2  ;;  %v2585_v29 = vpop.f32.mrf.mxu3  ;;  %v7582_v57 = vld [vmem:[%s15220_s7 + $0x8] sm:$0xf] }
 0x273   :  { %v2573_v27 = vadd.f32 %v2572_v14, %v896_v18  ;;  %v9965_v14 = vld [vmem:[%s15220_s7 + $0x8a8] sm:$0xf0]  ;;  %v9116_v18 = vld [vmem:[%s15220_s7 + $0xc24] sm:$0xf0] }
 0x274   :  { %v8675_v26 = vor.u32 %v9965_v14, %v8674_v46  ;;  %v9119_v34 = vor.u32 %v10073_v2, %v9116_v18  ;;  %v9993_v2 = vld [vmem:[%s15220_s7 + $0x988] sm:$0xf0] }
 0x275   :  { %v2586_v39 = vadd.f32 %v2585_v29, %v2573_v27  ;;  %v8898_v29 = vld [vmem:[%s15220_s7 + $0xa50] sm:$0xf] }
 0x276   :  { %5724 = vmatpush.bf16.msra.mxu2 %v7751_v9  ;;  %5737 = vmatpush.bf16.msra.mxu3 %v7975_v10  ;;  %v8899_v27 = vor.u32 %v10021_v12, %v8898_v29  ;;  %v8562_v29 = vld [vmem:[%s15220_s7 + $0x7b0] sm:$0xf]  ;;  %v9937_v12 = vld [vmem:[%s15220_s7 + $0x7c8] sm:$0xf0] }
 0x27a   :  { %5725 = vmatpush.bf16.msra.mxu2 %v7723_v19  ;;  %5738 = vmatpush.bf16.msra.mxu3 %v7947_v22  ;;  %v2574_v32 = vpop.f32.mrf.mxu2  ;;  %v2587_v33 = vpop.f32.mrf.mxu3  ;;  %v10129_v19 = vld [vmem:[%s15220_s7 + $0xdcc] sm:$0xf]  ;;  %v7583_v22 = vor.u32 %v9692_v21, %v7582_v57  ;;  %v10000_v21 = vld [vmem:[%s15220_s7 + $0x9c0] sm:$0xf0] }
 0x27b   :  { %v8870_v32 = vld [vmem:[%s15220_s7 + $0xa18] sm:$0xf]  ;;  %v10014_v33 = vld [vmem:[%s15220_s7 + $0xa30] sm:$0xf0]  ;;  %v9343_v3 = vor.u32 %v10129_v19, %v9340_v6  ;;  %v10045_v6 = vld [vmem:[%s15220_s7 + $0xb2c] sm:$0xf] }
 0x27e   :  { %5726 = vmatpush.bf16.msra.mxu2 %v7695_v30  ;;  %5739 = vmatpush.bf16.msra.mxu3 %v7919_v31  ;;  %v8646_v30 = vld [vmem:[%s15220_s7 + $0x858] sm:$0xf] }
 0x27f   :  { %v2598_v40 = vpop.f32.mrf.mxu0  ;;  %v2611_v41 = vpop.f32.mrf.mxu1  ;;  %v8647_v13 = vor.u32 %v9958_v43, %v8646_v30 }
 0x280   :  { %v2599_v45 = vadd.f32 %v2598_v40, %v2586_v39 }
 0x282   :  { %v2612_v44 = vadd.f32 %v2611_v41, %v2599_v45  ;;  %5727 = vmatpush.bf16.msra.mxu2 %v7667_v25  ;;  %5740 = vmatpush.bf16.msra.mxu3 %v7891_v42  ;;  %v9088_v41 = vld [vmem:[%s15220_s7 + $0xbec] sm:$0xf0]  ;;  %v10122_v25 = vld [vmem:[%s15220_s7 + $0xd94] sm:$0xf]  ;;  %v8871_v45 = vor.u32 %v10014_v33, %v8870_v32  ;;  %v8758_v33 = vld [vmem:[%s15220_s7 + $0x938] sm:$0xf] }
 0x283   :  { %v9312_v42 = vld [vmem:[%s15220_s7 + $0xdac] sm:$0xf0]  ;;  %v9930_v32 = vld [vmem:[%s15220_s7 + $0x790] sm:$0xf0] }
 0x284   :  { %v2618_v54 = vpack.c.bf16 %v2612_v44, %v2560_v8  ;;  %v10007_v8 = vld [vmem:[%s15220_s7 + $0x9f8] sm:$0xf0]  ;;  %v9315_v53 = vor.u32 %v10122_v25, %v9312_v42  ;;  %v8976_v25 = vld [vmem:[%s15220_s7 + $0xb0c] sm:$0xf0]  ;;  %v10094_v42 = vld [vmem:[%s15220_s7 + $0xcb4] sm:$0xf] }
 0x285   :  { %v8843_v57 = vor.u32 %v10007_v8, %v8842_v7  ;;  %v8506_v7 = vld [vmem:[%s15220_s7 + $0x740] sm:$0xf]  ;;  %v9923_v8 = vld [vmem:[%s15220_s7 + $0x758] sm:$0xf0] }
 0x286   :  { %v2625_v11 = vunpack.c.l.bf16 %v2618_v54  ;;  %v2626_v5 = vunpack.c.h.bf16 %v2618_v54  ;;  %5728 = vmatpush.bf16.msra.mxu2 %v7639_v47  ;;  %5741 = vmatpush.bf16.msra.mxu3 %v7863_v48  ;;  %v9091_v48 = vor.u32 %v10066_v52, %v9088_v41  ;;  %v10038_v41 = vld [vmem:[%s15220_s7 + $0xaf4] sm:$0xf] }
 0x287   :  { %v2600_v58 = vpop.f32.mrf.mxu0  ;;  %v2613_v59 = vpop.f32.mrf.mxu1 }
 0x288   :  { %vm13149_vm3 = vcmp.gt.f32.partialorder %v2625_v11, 0.0  ;;  %vm13153_vm4 = vcmp.gt.f32.partialorder %v2626_v5, 0.0  ;;  %v2641_v9 = vmul.f32 0.20019531, %v2625_v11  ;;  %v2642_v10 = vmul.f32 0.20019531, %v2626_v5  ;;  %v9284_v11 = vld [vmem:[%s15220_s7 + $0xd74] sm:$0xf0] }
 0x289   :  { %vm2650_vm5 = vmpackc.low %vm13153_vm4, %vm13149_vm3  ;;  %v8619_v5 = vor.u32 %v9951_v62, %v8618_v20  ;;  %v8590_v58 = vld [vmem:[%s15220_s7 + $0x7e8] sm:$0xf]  ;;  %v9287_v0 = vor.u32 %v10115_v28, %v9284_v11  ;;  %v9172_v28 = vld [vmem:[%s15220_s7 + $0xc94] sm:$0xf0]  ;;  %v8507_v11 = vor.u32 %v9923_v8, %v8506_v7 }
 0x28a   :  { %v2646_v17 = vpack.c.bf16 %v2642_v10, %v2641_v9  ;;  %5729 = vmatpush.bf16.msra.mxu2 %v7611_v60  ;;  %5742 = vmatpush.bf16.msra.mxu3 %v7835_v61  ;;  %v9944_v60 = vld [vmem:[%s15220_s7 + $0x800] sm:$0xf0]  ;;  %v8814_v61 = vld [vmem:[%s15220_s7 + $0x9a8] sm:$0xf]  ;;  %v9256_v10 = vld [vmem:[%s15220_s7 + $0xd3c] sm:$0xf0] }
 0x28b   :  { %v10108_v9 = vld [vmem:[%s15220_s7 + $0xd24] sm:$0xf]  ;;  %v8591_v46 = vor.u32 %v9944_v60, %v8590_v58  ;;  %v8815_v14 = vor.u32 %v10000_v21, %v8814_v61  ;;  %v8920_v21 = vld [vmem:[%s15220_s7 + $0xa9c] sm:$0xf0] }
 0x28c   :  { %v2654_v51 = vsel %vm2650_vm5, %v2618_v54, %v2646_v17  ;;  %v10059_v54 = vld [vmem:[%s15220_s7 + $0xb9c] sm:$0xf]  ;;  %v8786_v17 = vld [vmem:[%s15220_s7 + $0x970] sm:$0xf]  ;;  %v9916_v58 = vld [vmem:[%s15220_s7 + $0x720] sm:$0xf0] }
 0x28d   :  { %v3193_v31 = vunpack.c.l.b16 %v2654_v51  ;;  %v3194_v49 = vunpack.c.h.b16 %v2654_v51  ;;  %v9063_v63 = vor.u32 %v10059_v54, %v9060_v56  ;;  %v10101_v51 = vld [vmem:[%s15220_s7 + $0xcec] sm:$0xf]  ;;  %v8787_v30 = vor.u32 %v9993_v2, %v8786_v17  ;;  %v10031_v54 = vld [vmem:[%s15220_s7 + $0xabc] sm:$0xf]  ;;  %v10024_v61 = vld [vmem:[%s15220_s7 + $0xa84] sm:$0xf] }
 0x28e   :  { %5730 = vmatpush.bf16.msra.mxu2 %v7583_v22  ;;  %5743 = vmatpush.bf16.msra.mxu3 %v7807_v23  ;;  %v9035_v22 = vor.u32 %v10052_v1, %v9032_v4  ;;  %v9259_v23 = vor.u32 %v10108_v9, %v9256_v10  ;;  %v10087_v56 = vld [vmem:[%s15220_s7 + $0xc7c] sm:$0xf]  ;;  %v9738_v1 = vld [vmem:[%s15220_s7 + $0x194] sm:$0xf]  ;;  %v7780_v10 = vld [vmem:[%s15220_s7 + $0x1ac] sm:$0xf0] }
 0x28f   :  { %v13203_v39 = vpack.c.b16 %v3193_v31, %v3193_v31  ;;  %v13205_v40 = vpack.c.b16 %v3194_v49, %v3194_v49  ;;  %v8534_v31 = vld [vmem:[%s15220_s7 + $0x778] sm:$0xf]  ;;  %v9175_v9 = vor.u32 %v10087_v56, %v9172_v28  ;;  %v8226_v17 = vld [vmem:[%s15220_s7 + $0x510] sm:$0xf]  ;;  %v9780_v7 = vld [vmem:[%s15220_s7 + $0x2e4] sm:$0xf] }
 0x290   :  { %v8535_v20 = vor.u32 %v9930_v32, %v8534_v31  ;;  %v9787_v32 = vld [vmem:[%s15220_s7 + $0x31c] sm:$0xf]  ;;  %v7948_v8 = vld [vmem:[%s15220_s7 + $0x2fc] sm:$0xf0]  ;;  %v9717_v56 = vld [vmem:[%s15220_s7 + $0xec] sm:$0xf] }
 0x291   :  { %5601 = vmatmul.bf16.vlgmr.msra.gmra.mxu0 %v13203_v39  ;;  %5614 = vmatmul.bf16.vlgmr.msra.gmra.mxu1 %v13205_v40 }
 0x292   :  { %5775 = vmatpush.bf16.msrb.mxu2 %v8675_v26  ;;  %5788 = vmatpush.bf16.msrb.mxu3 %v8899_v27  ;;  %v5524_v44 = vpop.f32.mrf.mxu2  ;;  %v5537_v47 = vpop.f32.mrf.mxu3  ;;  %v9228_v26 = vld [vmem:[%s15220_s7 + $0xd04] sm:$0xf0]  ;;  %v8563_v27 = vor.u32 %v9937_v12, %v8562_v29  ;;  %v10080_v29 = vld [vmem:[%s15220_s7 + $0xc44] sm:$0xf]  ;;  %v9144_v12 = vld [vmem:[%s15220_s7 + $0xc5c] sm:$0xf0] }
 0x293   :  { %5697 = vmatpush.bf16.msra.mxu0 %v9119_v34  ;;  %5710 = vmatpush.bf16.msra.mxu1 %v9343_v3  ;;  %v5525_v55 = vadd.f32 %v5524_v44, %v3169_v38  ;;  %v9986_v34 = vld [vmem:[%s15220_s7 + $0x950] sm:$0xf0]  ;;  %v9007_v38 = vor.u32 %v10045_v6, %v9004_v24  ;;  %v9231_v52 = vor.u32 %v10101_v51, %v9228_v26  ;;  %v8730_v44 = vld [vmem:[%s15220_s7 + $0x900] sm:$0xf] }
 0x294   :  { %5731 = vmatmul.bf16.vlgmr.msra.gmra.mxu2 %v12486_v50  ;;  %5744 = vmatmul.bf16.vlgmr.msra.gmra.mxu3 %v12488_v37  ;;  %v8759_v62 = vor.u32 %v9986_v34, %v8758_v33  ;;  %v7783_v6 = vor.u32 %v9738_v1, %v7780_v10  ;;  %v8923_v51 = vor.u32 %v10024_v61, %v8920_v21  ;;  %v7976_v33 = vld [vmem:[%s15220_s7 + $0x334] sm:$0xf0]  ;;  %v9846_v34 = vld [vmem:[%s15220_s7 + $0x4f0] sm:$0xf0]  ;;  %v9888_v61 = vld [vmem:[%s15220_s7 + $0x640] sm:$0xf0] }
 0x295   :  { %v5538_v59 = vadd.f32 %v5537_v47, %v5525_v55  ;;  %v9979_v47 = vld [vmem:[%s15220_s7 + $0x918] sm:$0xf0]  ;;  %v8948_v55 = vld [vmem:[%s15220_s7 + $0xad4] sm:$0xf0]  ;;  %v9147_v26 = vor.u32 %v10080_v29, %v9144_v12  ;;  %v9710_v1 = vld [vmem:[%s15220_s7 + $0xb4] sm:$0xf] }
 0x296   :  { %5776 = vmatpush.bf16.msrb.mxu2 %v8647_v13  ;;  %5789 = vmatpush.bf16.msrb.mxu3 %v8871_v45  ;;  %v9200_v13 = vld [vmem:[%s15220_s7 + $0xccc] sm:$0xf0]  ;;  %v8951_v4 = vor.u32 %v10031_v54, %v8948_v55  ;;  %v7951_v54 = vor.u32 %v9780_v7, %v7948_v8  ;;  %v8142_v55 = vld [vmem:[%s15220_s7 + $0x468] sm:$0xf]  ;;  %v9825_v29 = vld [vmem:[%s15220_s7 + $0x448] sm:$0xf0] }
 0x297   :  { %5698 = vmatpush.bf16.msra.mxu0 %v9091_v48  ;;  %5711 = vmatpush.bf16.msra.mxu1 %v9315_v53  ;;  %v8979_v48 = vor.u32 %v10038_v41, %v8976_v25  ;;  %v9203_v53 = vor.u32 %v10094_v42, %v9200_v13  ;;  %v7979_v41 = vor.u32 %v9787_v32, %v7976_v33  ;;  %v8170_v25 = vld [vmem:[%s15220_s7 + $0x4a0] sm:$0xf]  ;;  %v9724_v42 = vld [vmem:[%s15220_s7 + $0x124] sm:$0xf]  ;;  %v7668_v10 = vld [vmem:[%s15220_s7 + $0xcc] sm:$0xf0] }
 0x298   :  { %v8338_v12 = vld [vmem:[%s15220_s7 + $0x5f0] sm:$0xf]  ;;  %v8058_v32 = vld [vmem:[%s15220_s7 + $0x3c0] sm:$0xf]  ;;  %v9696_v33 = vld [vmem:[%s15220_s7 + $0x44] sm:$0xf] }
 0x299   :  { %v8030_v7 = vld [vmem:[%s15220_s7 + $0x388] sm:$0xf]  ;;  %v9804_v8 = vld [vmem:[%s15220_s7 + $0x3a0] sm:$0xf0] }
 0x29a   :  { %5777 = vmatpush.bf16.msrb.mxu2 %v8619_v5  ;;  %5790 = vmatpush.bf16.msrb.mxu3 %v8843_v57  ;;  %v5526_v18 = vpop.f32.mrf.mxu2  ;;  %v5539_v19 = vpop.f32.mrf.mxu3  ;;  %v8731_v5 = vor.u32 %v9979_v47, %v8730_v44  ;;  %v8478_v57 = vld [vmem:[%s15220_s7 + $0x708] sm:$0xf]  ;;  %v9839_v44 = vld [vmem:[%s15220_s7 + $0x4b8] sm:$0xf0]  ;;  %v8394_v47 = vld [vmem:[%s15220_s7 + $0x660] sm:$0xf] }
 0x29b   :  { %5699 = vmatpush.bf16.msra.mxu0 %v9063_v63  ;;  %5712 = vmatpush.bf16.msra.mxu1 %v9287_v0  ;;  %v8702_v63 = vld [vmem:[%s15220_s7 + $0x8c8] sm:$0xf]  ;;  %v9972_v0 = vld [vmem:[%s15220_s7 + $0x8e0] sm:$0xf0]  ;;  %v8479_v2 = vor.u32 %v9916_v58, %v8478_v57  ;;  %v9853_v19 = vld [vmem:[%s15220_s7 + $0x528] sm:$0xf0]  ;;  %v8171_v28 = vor.u32 %v9839_v44, %v8170_v25 }
 0x29c   :  { %v8703_v18 = vor.u32 %v9972_v0, %v8702_v63  ;;  %v8227_v31 = vor.u32 %v9853_v19, %v8226_v17  ;;  %v9773_v57 = vld [vmem:[%s15220_s7 + $0x2ac] sm:$0xf]  ;;  %v7920_v58 = vld [vmem:[%s15220_s7 + $0x2c4] sm:$0xf0]  ;;  %v8114_v0 = vld [vmem:[%s15220_s7 + $0x430] sm:$0xf] }
 0x29d   :  { %v7923_v63 = vor.u32 %v9773_v57, %v7920_v58  ;;  %v9881_v17 = vld [vmem:[%s15220_s7 + $0x608] sm:$0xf0]  ;;  %v8086_v19 = vld [vmem:[%s15220_s7 + $0x3f8] sm:$0xf]  ;;  %v9811_v25 = vld [vmem:[%s15220_s7 + $0x3d8] sm:$0xf0] }
 0x29e   :  { %5778 = vmatpush.bf16.msrb.mxu2 %v8591_v46  ;;  %5791 = vmatpush.bf16.msrb.mxu3 %v8815_v14  ;;  %v5550_v49 = vpop.f32.mrf.mxu0  ;;  %v5563_v43 = vpop.f32.mrf.mxu1  ;;  %v9794_v46 = vld [vmem:[%s15220_s7 + $0x354] sm:$0xf]  ;;  %v8004_v14 = vld [vmem:[%s15220_s7 + $0x36c] sm:$0xf0]  ;;  %v8254_v44 = vld [vmem:[%s15220_s7 + $0x548] sm:$0xf] }
 0x29f   :  { %v5551_v3 = vadd.f32 %v5550_v49, %v5538_v59  ;;  %5700 = vmatpush.bf16.msra.mxu0 %v9035_v22  ;;  %5713 = vmatpush.bf16.msra.mxu1 %v9259_v23  ;;  %v8450_v22 = vld [vmem:[%s15220_s7 + $0x6d0] sm:$0xf]  ;;  %v9909_v23 = vld [vmem:[%s15220_s7 + $0x6e8] sm:$0xf0]  ;;  %v8007_v24 = vor.u32 %v9794_v46, %v8004_v14  ;;  %v9766_v46 = vld [vmem:[%s15220_s7 + $0x274] sm:$0xf] }
 0x2a0   :  { %v8451_v49 = vor.u32 %v9909_v23, %v8450_v22  ;;  %v7892_v14 = vld [vmem:[%s15220_s7 + $0x28c] sm:$0xf0]  ;;  %v9703_v22 = vld [vmem:[%s15220_s7 + $0x7c] sm:$0xf]  ;;  %v8115_v23 = vor.u32 %v9825_v29, %v8114_v0  ;;  %v10133_v58 = vld [vmem:[%s15220_s7 + $0xde8] sm:$0xf0] }
 0x2a1   :  { %v13316_v45 = vadd.f32 %v5563_v43, %v5551_v3  ;;  %5653 = vmatmul.bf16.vlgmr.msrb.gmra.mxu0 %v12592_v35  ;;  %5666 = vmatmul.bf16.vlgmr.msrb.gmra.mxu1 %v12594_v36  ;;  %v7752_v43 = vld [vmem:[%s15220_s7 + $0x174] sm:$0xf0]  ;;  %v9346_v57 = vld [vmem:[%s15220_s7 + $0xdd0] sm:$0xf] }
 0x2a2   :  { %5779 = vmatpush.bf16.msrb.mxu2 %v8563_v27  ;;  %5792 = vmatpush.bf16.msrb.mxu3 %v8787_v30  ;;  %v8198_v27 = vld [vmem:[%s15220_s7 + $0x4d8] sm:$0xf]  ;;  %v9731_v30 = vld [vmem:[%s15220_s7 + $0x15c] sm:$0xf]  ;;  %v8900_v0 = vld [vmem:[%s15220_s7 + $0xa6c] sm:$0xf0] }
 0x2a3   :  { %5701 = vmatpush.bf16.msra.mxu0 %v9007_v38  ;;  %5714 = vmatpush.bf16.msra.mxu1 %v9231_v52  ;;  %v8422_v3 = vld [vmem:[%s15220_s7 + $0x698] sm:$0xf]  ;;  %v9902_v38 = vld [vmem:[%s15220_s7 + $0x6b0] sm:$0xf0]  ;;  %v7755_v52 = vor.u32 %v9731_v30, %v7752_v43  ;;  %v8199_v13 = vor.u32 %v9846_v34, %v8198_v27 }
 0x2a4   :  { %v9818_v27 = vld [vmem:[%s15220_s7 + $0x410] sm:$0xf0]  ;;  %v8310_v30 = vld [vmem:[%s15220_s7 + $0x5b8] sm:$0xf] }
 0x2a5   :  { %v8087_v34 = vor.u32 %v9818_v27, %v8086_v19  ;;  %v8648_v19 = vld [vmem:[%s15220_s7 + $0x874] sm:$0xf0] }
 0x2a6   :  { %5780 = vmatpush.bf16.msrb.mxu2 %v8535_v20  ;;  %5793 = vmatpush.bf16.msrb.mxu3 %v8759_v62  ;;  %v5552_v59 = vpop.f32.mrf.mxu0  ;;  %v5565_v60 = vpop.f32.mrf.mxu1  ;;  %v8423_v20 = vor.u32 %v9902_v38, %v8422_v3  ;;  %v7724_v62 = vld [vmem:[%s15220_s7 + $0x13c] sm:$0xf0] }
 0x2a7   :  { %5702 = vmatpush.bf16.msra.mxu0 %v8979_v48  ;;  %5715 = vmatpush.bf16.msra.mxu1 %v9203_v53  ;;  %v9895_v48 = vld [vmem:[%s15220_s7 + $0x678] sm:$0xf0]  ;;  %v7727_v53 = vor.u32 %v9724_v42, %v7724_v62  ;;  %v9832_v59 = vld [vmem:[%s15220_s7 + $0x480] sm:$0xf0]  ;;  %v8366_v60 = vld [vmem:[%s15220_s7 + $0x628] sm:$0xf] }
 0x2a8   :  { %v7612_v38 = vld [vmem:[%s15220_s7 + $0x5c] sm:$0xf0] }
 0x2a9   :  { %v8282_v42 = vld [vmem:[%s15220_s7 + $0x580] sm:$0xf] }
 0x2aa   :  { %5781 = vmatpush.bf16.msrb.mxu2 %v8507_v11  ;;  %5794 = vmatpush.bf16.msrb.mxu3 %v8731_v5  ;;  %v8395_v11 = vor.u32 %v9895_v48, %v8394_v47  ;;  %v7696_v5 = vld [vmem:[%s15220_s7 + $0x104] sm:$0xf0]  ;;  %v9689_v47 = vld [vmem:[%s15220_s7 + $0xc] sm:$0xf]  ;;  %v8059_v48 = vor.u32 %v9811_v25, %v8058_v32  ;;  %v8620_v32 = vld [vmem:[%s15220_s7 + $0x83c] sm:$0xf0] }
 0x2ab   :  { %5703 = vmatpush.bf16.msra.mxu0 %v8951_v4  ;;  %5716 = vmatpush.bf16.msra.mxu1 %v9175_v9  ;;  %v7699_v21 = vor.u32 %v9717_v56, %v7696_v5  ;;  %v8143_v4 = vor.u32 %v9832_v59, %v8142_v55  ;;  %v8367_v9 = vor.u32 %v9888_v61, %v8366_v60  ;;  %v9745_v55 = vld [vmem:[%s15220_s7 + $0x1cc] sm:$0xf]  ;;  %v7808_v56 = vld [vmem:[%s15220_s7 + $0x1e4] sm:$0xf0]  ;;  %v9962_v59 = vld [vmem:[%s15220_s7 + $0x894] sm:$0xf] }
 0x2ac   :  { %v10077_v5 = vld [vmem:[%s15220_s7 + $0xc28] sm:$0xf0]  ;;  %v7811_v61 = vor.u32 %v9745_v55, %v7808_v56 }
 0x2ae   :  { %5782 = vmatpush.bf16.msrb.mxu2 %v8479_v2  ;;  %5795 = vmatpush.bf16.msrb.mxu3 %v8703_v18  ;;  %v7671_v2 = vor.u32 %v9710_v1, %v7668_v10  ;;  %v7895_v18 = vor.u32 %v9766_v46, %v7892_v14  ;;  %v8031_v1 = vor.u32 %v9804_v8, %v8030_v7  ;;  %v9094_v46 = vld [vmem:[%s15220_s7 + $0xbd8] sm:$0xf]  ;;  %v10070_v14 = vld [vmem:[%s15220_s7 + $0xbf0] sm:$0xf0]  ;;  %v8592_v7 = vld [vmem:[%s15220_s7 + $0x804] sm:$0xf0] }
 0x2af   :  { %5704 = vmatpush.bf16.msra.mxu0 %v8923_v51  ;;  %5717 = vmatpush.bf16.msra.mxu1 %v9147_v26  ;;  %v9759_v51 = vld [vmem:[%s15220_s7 + $0x23c] sm:$0xf]  ;;  %v7864_v26 = vld [vmem:[%s15220_s7 + $0x254] sm:$0xf0]  ;;  %v9347_v10 = vor.u32 %v10133_v58, %v9346_v57  ;;  %v9997_v8 = vld [vmem:[%s15220_s7 + $0x9ac] sm:$0xf] }
 0x2b0   :  { %v7867_v43 = vor.u32 %v9759_v51, %v7864_v26  ;;  %v9066_v51 = vld [vmem:[%s15220_s7 + $0xba0] sm:$0xf]  ;;  %v10063_v26 = vld [vmem:[%s15220_s7 + $0xbb8] sm:$0xf0]  ;;  %v8564_v57 = vld [vmem:[%s15220_s7 + $0x7cc] sm:$0xf0] }
 0x2b1   :  { %5783 = vmatmul.bf16.vlgmr.msrb.gmra.mxu2 %v12863_v15  ;;  %5796 = vmatmul.bf16.vlgmr.msrb.gmra.mxu3 %v12865_v16  ;;  %v9990_v58 = vld [vmem:[%s15220_s7 + $0x974] sm:$0xf] }
 0x2b2   :  { %5827 = vmatpush.bf16.msra.mxu2 %v7783_v6  ;;  %5840 = vmatpush.bf16.msra.mxu3 %v8007_v24  ;;  %v8339_v6 = vor.u32 %v9881_v17, %v8338_v12  ;;  %v7640_v24 = vld [vmem:[%s15220_s7 + $0x94] sm:$0xf0] }
 0x2b3   :  { %5749 = vmatpush.bf16.msrb.mxu0 %v8227_v31  ;;  %5762 = vmatpush.bf16.msrb.mxu1 %v8451_v49  ;;  %v9874_v31 = vld [vmem:[%s15220_s7 + $0x5d0] sm:$0xf0]  ;;  %v7643_v49 = vor.u32 %v9703_v22, %v7640_v24  ;;  %v9318_v17 = vld [vmem:[%s15220_s7 + $0xd98] sm:$0xf]  ;;  %v10011_v22 = vld [vmem:[%s15220_s7 + $0xa1c] sm:$0xf] }
 0x2b4   :  { %5705 = vmatmul.bf16.vlgmr.msra.gmra.mxu0 %v13203_v39  ;;  %5718 = vmatmul.bf16.vlgmr.msra.gmra.mxu1 %v13205_v40  ;;  %v8311_v3 = vor.u32 %v9874_v31, %v8310_v30  ;;  %v9290_v31 = vld [vmem:[%s15220_s7 + $0xd60] sm:$0xf] }
 0x2b6   :  { %5828 = vmatpush.bf16.msra.mxu2 %v7755_v52  ;;  %5841 = vmatpush.bf16.msra.mxu3 %v7979_v41  ;;  %v9752_v52 = vld [vmem:[%s15220_s7 + $0x204] sm:$0xf]  ;;  %v7836_v41 = vld [vmem:[%s15220_s7 + $0x21c] sm:$0xf0] }
 0x2b7   :  { %5750 = vmatpush.bf16.msrb.mxu0 %v8199_v13  ;;  %5763 = vmatpush.bf16.msrb.mxu1 %v8423_v20  ;;  %v9867_v13 = vld [vmem:[%s15220_s7 + $0x598] sm:$0xf0]  ;;  %v7615_v20 = vor.u32 %v9696_v33, %v7612_v38  ;;  %v7839_v62 = vor.u32 %v9752_v52, %v7836_v41  ;;  %v10004_v33 = vld [vmem:[%s15220_s7 + $0x9e4] sm:$0xf]  ;;  %v9038_v52 = vld [vmem:[%s15220_s7 + $0xb68] sm:$0xf] }
 0x2b8   :  { %v10056_v41 = vld [vmem:[%s15220_s7 + $0xb80] sm:$0xf0] }
 0x2ba   :  { %5829 = vmatpush.bf16.msra.mxu2 %v7727_v53  ;;  %5842 = vmatpush.bf16.msra.mxu3 %v7951_v54  ;;  %v8283_v53 = vor.u32 %v9867_v13, %v8282_v42  ;;  %v7584_v54 = vld [vmem:[%s15220_s7 + $0x24] sm:$0xf0] }
 0x2bb   :  { %5751 = vmatpush.bf16.msrb.mxu0 %v8171_v28  ;;  %5764 = vmatpush.bf16.msrb.mxu1 %v8395_v11  ;;  %v9860_v28 = vld [vmem:[%s15220_s7 + $0x560] sm:$0xf0]  ;;  %v9122_v11 = vld [vmem:[%s15220_s7 + $0xc10] sm:$0xf]  ;;  %v7587_v60 = vor.u32 %v9689_v47, %v7584_v54  ;;  %v9262_v13 = vld [vmem:[%s15220_s7 + $0xd28] sm:$0xf]  ;;  %v9039_v47 = vor.u32 %v10056_v41, %v9038_v52 }
 0x2bc   :  { %v10049_v54 = vld [vmem:[%s15220_s7 + $0xb48] sm:$0xf0]  ;;  %v10084_v52 = vld [vmem:[%s15220_s7 + $0xc60] sm:$0xf0] }
 0x2be   :  { %5830 = vmatpush.bf16.msra.mxu2 %v7699_v21  ;;  %5843 = vmatpush.bf16.msra.mxu3 %v7923_v63  ;;  %v8676_v21 = vld [vmem:[%s15220_s7 + $0x8ac] sm:$0xf0]  ;;  %v10018_v63 = vld [vmem:[%s15220_s7 + $0xa54] sm:$0xf] }
 0x2bf   :  { %5752 = vmatpush.bf16.msrb.mxu0 %v8143_v4  ;;  %5765 = vmatpush.bf16.msrb.mxu1 %v8367_v9  ;;  %v8255_v4 = vor.u32 %v9860_v28, %v8254_v44  ;;  %v9123_v9 = vor.u32 %v10077_v5, %v9122_v11  ;;  %v8679_v29 = vor.u32 %v9962_v59, %v8676_v21  ;;  %v8816_v44 = vld [vmem:[%s15220_s7 + $0x9c4] sm:$0xf0]  ;;  %v9234_v28 = vld [vmem:[%s15220_s7 + $0xcf0] sm:$0xf]  ;;  %v10105_v11 = vld [vmem:[%s15220_s7 + $0xd08] sm:$0xf0] }
 0x2c0   :  { %v8903_v12 = vor.u32 %v10018_v63, %v8900_v0  ;;  %v8819_v56 = vor.u32 %v9997_v8, %v8816_v44  ;;  %v9934_v5 = vld [vmem:[%s15220_s7 + $0x7b4] sm:$0xf]  ;;  %v8788_v59 = vld [vmem:[%s15220_s7 + $0x98c] sm:$0xf0]  ;;  %v9235_v63 = vor.u32 %v10105_v11, %v9234_v28  ;;  %v8982_v0 = vld [vmem:[%s15220_s7 + $0xaf8] sm:$0xf] }
 0x2c1   :  { %v8228_v8 = vld [vmem:[%s15220_s7 + $0x52c] sm:$0xf0]  ;;  %v9906_v44 = vld [vmem:[%s15220_s7 + $0x6d4] sm:$0xf] }
 0x2c2   :  { %5831 = vmatpush.bf16.msra.mxu2 %v7671_v2  ;;  %5844 = vmatpush.bf16.msra.mxu3 %v7895_v18  ;;  %v10126_v2 = vld [vmem:[%s15220_s7 + $0xdb0] sm:$0xf0]  ;;  %v9955_v18 = vld [vmem:[%s15220_s7 + $0x85c] sm:$0xf] }
 0x2c3   :  { %5753 = vmatpush.bf16.msrb.mxu0 %v8115_v23  ;;  %5766 = vmatpush.bf16.msrb.mxu1 %v8339_v6  ;;  %v8872_v23 = vld [vmem:[%s15220_s7 + $0xa34] sm:$0xf0]  ;;  %v9095_v6 = vor.u32 %v10070_v14, %v9094_v46  ;;  %v9319_v24 = vor.u32 %v10126_v2, %v9318_v17  ;;  %v8651_v27 = vor.u32 %v9955_v18, %v8648_v19  ;;  %v10098_v46 = vld [vmem:[%s15220_s7 + $0xcd0] sm:$0xf0]  ;;  %v9927_v14 = vld [vmem:[%s15220_s7 + $0x77c] sm:$0xf] }
 0x2c4   :  { %v8875_v30 = vor.u32 %v10011_v22, %v8872_v23  ;;  %v8760_v17 = vld [vmem:[%s15220_s7 + $0x954] sm:$0xf0]  ;;  %v8954_v19 = vld [vmem:[%s15220_s7 + $0xac0] sm:$0xf]  ;;  %v10035_v22 = vld [vmem:[%s15220_s7 + $0xad8] sm:$0xf0] }
 0x2c5   :  { %v9798_v28 = vld [vmem:[%s15220_s7 + $0x370] sm:$0xf0] }
 0x2c6   :  { %5832 = vmatpush.bf16.msra.mxu2 %v7643_v49  ;;  %5845 = vmatpush.bf16.msra.mxu3 %v7867_v43  ;;  %v10119_v49 = vld [vmem:[%s15220_s7 + $0xd78] sm:$0xf0]  ;;  %v9948_v43 = vld [vmem:[%s15220_s7 + $0x824] sm:$0xf] }
 0x2c7   :  { %5754 = vmatpush.bf16.msrb.mxu0 %v8087_v34  ;;  %5767 = vmatpush.bf16.msrb.mxu1 %v8311_v3  ;;  %v8844_v34 = vld [vmem:[%s15220_s7 + $0x9fc] sm:$0xf0]  ;;  %v9067_v3 = vor.u32 %v10063_v26, %v9066_v51  ;;  %v9291_v38 = vor.u32 %v10119_v49, %v9290_v31  ;;  %v8623_v25 = vor.u32 %v9948_v43, %v8620_v32  ;;  %v10091_v51 = vld [vmem:[%s15220_s7 + $0xc98] sm:$0xf0]  ;;  %v9920_v26 = vld [vmem:[%s15220_s7 + $0x744] sm:$0xf] }
 0x2c8   :  { %v8847_v42 = vor.u32 %v10004_v33, %v8844_v34  ;;  %v8732_v31 = vld [vmem:[%s15220_s7 + $0x91c] sm:$0xf0]  ;;  %v8926_v49 = vld [vmem:[%s15220_s7 + $0xa88] sm:$0xf]  ;;  %v8955_v33 = vor.u32 %v10035_v22, %v8954_v19 }
 0x2c9   :  { %v8172_v19 = vld [vmem:[%s15220_s7 + $0x4bc] sm:$0xf0] }
 0x2ca   :  { %5833 = vmatpush.bf16.msra.mxu2 %v7615_v20  ;;  %5846 = vmatpush.bf16.msra.mxu3 %v7839_v62  ;;  %v10112_v20 = vld [vmem:[%s15220_s7 + $0xd40] sm:$0xf0]  ;;  %v9941_v62 = vld [vmem:[%s15220_s7 + $0x7ec] sm:$0xf] }
 0x2cb   :  { %5755 = vmatpush.bf16.msrb.mxu0 %v8059_v48  ;;  %5768 = vmatpush.bf16.msrb.mxu1 %v8283_v53  ;;  %v9263_v48 = vor.u32 %v10112_v20, %v9262_v13  ;;  %v9010_v53 = vld [vmem:[%s15220_s7 + $0xb30] sm:$0xf]  ;;  %v8595_v55 = vor.u32 %v9941_v62, %v8592_v7  ;;  %v8480_v13 = vld [vmem:[%s15220_s7 + $0x724] sm:$0xf0]  ;;  %v9969_v20 = vld [vmem:[%s15220_s7 + $0x8cc] sm:$0xf] }
 0x2cc   :  { %v9011_v21 = vor.u32 %v10049_v54, %v9010_v53  ;;  %v8704_v62 = vld [vmem:[%s15220_s7 + $0x8e4] sm:$0xf0]  ;;  %v9850_v7 = vld [vmem:[%s15220_s7 + $0x514] sm:$0xf] }
 0x2ce   :  { %5834 = vmatpush.bf16.msra.mxu2 %v7587_v60  ;;  %5847 = vmatpush.bf16.msra.mxu3 %v7811_v61 }
 0x2cf   :  { %5756 = vmatpush.bf16.msrb.mxu0 %v8031_v1  ;;  %5769 = vmatpush.bf16.msrb.mxu1 %v8255_v4  ;;  %v10042_v1 = vld [vmem:[%s15220_s7 + $0xb10] sm:$0xf0]  ;;  %v8567_v4 = vor.u32 %v9934_v5, %v8564_v57  ;;  %v8707_v5 = vor.u32 %v9969_v20, %v8704_v62  ;;  %v8231_v57 = vor.u32 %v9850_v7, %v8228_v8  ;;  %v9777_v20 = vld [vmem:[%s15220_s7 + $0x2c8] sm:$0xf0] }
 0x2d0   :  { %v8983_v2 = vor.u32 %v10042_v1, %v8982_v0  ;;  %v9899_v1 = vld [vmem:[%s15220_s7 + $0x69c] sm:$0xf]  ;;  %v9822_v8 = vld [vmem:[%s15220_s7 + $0x434] sm:$0xf] }
 0x2d1   :  { %5835 = vmatmul.bf16.vlgmr.msra.gmra.mxu2 %v12486_v50  ;;  %5848 = vmatmul.bf16.vlgmr.msra.gmra.mxu3 %v12488_v37 }
 0x2d2   :  { %5879 = vmatpush.bf16.msrb.mxu2 %v8679_v29  ;;  %5892 = vmatpush.bf16.msrb.mxu3 %v8903_v12  ;;  %v8536_v29 = vld [vmem:[%s15220_s7 + $0x794] sm:$0xf0]  ;;  %v9983_v12 = vld [vmem:[%s15220_s7 + $0x93c] sm:$0xf] }
 0x2d3   :  { %5801 = vmatpush.bf16.msra.mxu0 %v9123_v9  ;;  %5814 = vmatpush.bf16.msra.mxu1 %v9347_v10  ;;  %v8791_v9 = vor.u32 %v9990_v58, %v8788_v59  ;;  %v9206_v10 = vld [vmem:[%s15220_s7 + $0xcb8] sm:$0xf]  ;;  %v8539_v23 = vor.u32 %v9927_v14, %v8536_v29  ;;  %v9843_v59 = vld [vmem:[%s15220_s7 + $0x4dc] sm:$0xf]  ;;  %v7982_v29 = vld [vmem:[%s15220_s7 + $0x320] sm:$0xf] }
 0x2d4   :  { %5757 = vmatmul.bf16.vlgmr.msrb.gmra.mxu0 %v12592_v35  ;;  %5770 = vmatmul.bf16.vlgmr.msrb.gmra.mxu1 %v12594_v36  ;;  %v13688_v60 = vpop.f32.mrf.mxu2  ;;  %v13690_v61 = vpop.f32.mrf.mxu3  ;;  %v9207_v18 = vor.u32 %v10098_v46, %v9206_v10  ;;  %v9735_v14 = vld [vmem:[%s15220_s7 + $0x178] sm:$0xf0] }
 0x2d6   :  { %5880 = vmatpush.bf16.msrb.mxu2 %v8651_v27  ;;  %5893 = vmatpush.bf16.msrb.mxu3 %v8875_v30  ;;  %v8508_v27 = vld [vmem:[%s15220_s7 + $0x75c] sm:$0xf0]  ;;  %v9976_v30 = vld [vmem:[%s15220_s7 + $0x904] sm:$0xf] }
 0x2d7   :  { %5802 = vmatpush.bf16.msra.mxu0 %v9095_v6  ;;  %5815 = vmatpush.bf16.msra.mxu1 %v9319_v24  ;;  %v8763_v6 = vor.u32 %v9983_v12, %v8760_v17  ;;  %v9178_v24 = vld [vmem:[%s15220_s7 + $0xc80] sm:$0xf]  ;;  %v8511_v41 = vor.u32 %v9920_v26, %v8508_v27  ;;  %v9791_v12 = vld [vmem:[%s15220_s7 + $0x338] sm:$0xf0]  ;;  %v9728_v26 = vld [vmem:[%s15220_s7 + $0x140] sm:$0xf0] }
 0x2d8   :  { %v9179_v34 = vor.u32 %v10091_v51, %v9178_v24  ;;  %v8396_v24 = vld [vmem:[%s15220_s7 + $0x67c] sm:$0xf0]  ;;  %v7730_v51 = vld [vmem:[%s15220_s7 + $0x128] sm:$0xf] }
 0x2d9   :  { %v7954_v27 = vld [vmem:[%s15220_s7 + $0x2e8] sm:$0xf] }
 0x2da   :  { %5881 = vmatpush.bf16.msrb.mxu2 %v8623_v25  ;;  %5894 = vmatpush.bf16.msrb.mxu3 %v8847_v42  ;;  %v8735_v25 = vor.u32 %v9976_v30, %v8732_v31  ;;  %v9913_v42 = vld [vmem:[%s15220_s7 + $0x70c] sm:$0xf]  ;;  %v9784_v30 = vld [vmem:[%s15220_s7 + $0x300] sm:$0xf0] }
 0x2db   :  { %5803 = vmatpush.bf16.msra.mxu0 %v9067_v3  ;;  %5816 = vmatpush.bf16.msra.mxu1 %v9291_v38  ;;  %v10028_v3 = vld [vmem:[%s15220_s7 + $0xaa0] sm:$0xf0]  ;;  %v9150_v38 = vld [vmem:[%s15220_s7 + $0xc48] sm:$0xf]  ;;  %v8483_v11 = vor.u32 %v9913_v42, %v8480_v13  ;;  %v9721_v42 = vld [vmem:[%s15220_s7 + $0x108] sm:$0xf0] }
 0x2dc   :  { %v5578_v43 = vpop.f32.mrf.mxu2  ;;  %v5591_v32 = vpop.f32.mrf.mxu3  ;;  %v8927_v53 = vor.u32 %v10028_v3, %v8926_v49  ;;  %v9151_v54 = vor.u32 %v10084_v52, %v9150_v38  ;;  %v9885_v3 = vld [vmem:[%s15220_s7 + $0x62c] sm:$0xf]  ;;  %v8368_v38 = vld [vmem:[%s15220_s7 + $0x644] sm:$0xf0]  ;;  %v7702_v52 = vld [vmem:[%s15220_s7 + $0xf0] sm:$0xf] }
 0x2dd   :  { %v9829_v43 = vld [vmem:[%s15220_s7 + $0x46c] sm:$0xf]  ;;  %v8144_v32 = vld [vmem:[%s15220_s7 + $0x484] sm:$0xf0]  ;;  %v7926_v13 = vld [vmem:[%s15220_s7 + $0x2b0] sm:$0xf]  ;;  %v8371_v7 = vor.u32 %v9885_v3, %v8368_v38 }
 0x2de   :  { %5882 = vmatpush.bf16.msrb.mxu2 %v8595_v55  ;;  %5895 = vmatpush.bf16.msrb.mxu3 %v8819_v56  ;;  %v9742_v55 = vld [vmem:[%s15220_s7 + $0x1b0] sm:$0xf0]  ;;  %v8010_v56 = vld [vmem:[%s15220_s7 + $0x358] sm:$0xf]  ;;  %v8147_v62 = vor.u32 %v9829_v43, %v8144_v32  ;;  %v8256_v3 = vld [vmem:[%s15220_s7 + $0x564] sm:$0xf0] }
 0x2df   :  { %5804 = vmatpush.bf16.msra.mxu0 %v9039_v47  ;;  %5817 = vmatpush.bf16.msra.mxu1 %v9263_v48  ;;  %v8452_v47 = vld [vmem:[%s15220_s7 + $0x6ec] sm:$0xf0]  ;;  %v7786_v48 = vld [vmem:[%s15220_s7 + $0x198] sm:$0xf]  ;;  %v8011_v0 = vor.u32 %v9798_v28, %v8010_v56  ;;  %v9714_v56 = vld [vmem:[%s15220_s7 + $0xd0] sm:$0xf0] }
 0x2e0   :  { %v8455_v58 = vor.u32 %v9906_v44, %v8452_v47  ;;  %v8116_v44 = vld [vmem:[%s15220_s7 + $0x44c] sm:$0xf0]  ;;  %v7703_v47 = vor.u32 %v9721_v42, %v7702_v52  ;;  %v7898_v28 = vld [vmem:[%s15220_s7 + $0x278] sm:$0xf] }
 0x2e1   :  { %v7814_v42 = vld [vmem:[%s15220_s7 + $0x1d0] sm:$0xf] }
 0x2e2   :  { %5883 = vmatpush.bf16.msrb.mxu2 %v8567_v4  ;;  %5896 = vmatpush.bf16.msrb.mxu3 %v8791_v9  ;;  %v8424_v4 = vld [vmem:[%s15220_s7 + $0x6b4] sm:$0xf0]  ;;  %v7758_v9 = vld [vmem:[%s15220_s7 + $0x160] sm:$0xf] }
 0x2e3   :  { %5805 = vmatpush.bf16.msra.mxu0 %v9011_v21  ;;  %5818 = vmatpush.bf16.msra.mxu1 %v9235_v63  ;;  %v8200_v21 = vld [vmem:[%s15220_s7 + $0x4f4] sm:$0xf0]  ;;  %v7787_v63 = vor.u32 %v9742_v55, %v7786_v48  ;;  %v7759_v22 = vor.u32 %v9735_v14, %v7758_v9  ;;  %v7927_v48 = vor.u32 %v9777_v20, %v7926_v13 }
 0x2e4   :  { %v13803_v10 = vpop.f32.mrf.mxu2  ;;  %v13805_v46 = vpop.f32.mrf.mxu3  ;;  %v8203_v17 = vor.u32 %v9843_v59, %v8200_v21  ;;  %v7674_v55 = vld [vmem:[%s15220_s7 + $0xb8] sm:$0xf] }
 0x2e5   :  { %v8088_v59 = vld [vmem:[%s15220_s7 + $0x414] sm:$0xf0]  ;;  %v7675_v21 = vor.u32 %v9714_v56, %v7674_v55  ;;  %v9966_v55 = vld [vmem:[%s15220_s7 + $0x8b0] sm:$0xf0] }
 0x2e6   :  { %5884 = vmatpush.bf16.msrb.mxu2 %v8539_v23  ;;  %5897 = vmatpush.bf16.msrb.mxu3 %v8763_v6  ;;  %v7983_v23 = vor.u32 %v9791_v12, %v7982_v29  ;;  %v9892_v6 = vld [vmem:[%s15220_s7 + $0x664] sm:$0xf]  ;;  %v9707_v29 = vld [vmem:[%s15220_s7 + $0x98] sm:$0xf0]  ;;  %v7870_v12 = vld [vmem:[%s15220_s7 + $0x240] sm:$0xf] }
 0x2e7   :  { %5806 = vmatpush.bf16.msra.mxu0 %v8983_v2  ;;  %5819 = vmatpush.bf16.msra.mxu1 %v9207_v18  ;;  %v8427_v2 = vor.u32 %v9899_v1, %v8424_v4  ;;  %v9836_v18 = vld [vmem:[%s15220_s7 + $0x4a4] sm:$0xf]  ;;  %v8399_v49 = vor.u32 %v9892_v6, %v8396_v24  ;;  %v8312_v1 = vld [vmem:[%s15220_s7 + $0x5d4] sm:$0xf0]  ;;  %v7646_v4 = vld [vmem:[%s15220_s7 + $0x80] sm:$0xf] }
 0x2e8   :  { %v8175_v31 = vor.u32 %v9836_v18, %v8172_v19  ;;  %v9808_v19 = vld [vmem:[%s15220_s7 + $0x3c4] sm:$0xf]  ;;  %v8906_v56 = vld [vmem:[%s15220_s7 + $0xa58] sm:$0xf] }
 0x2e9   :  { %v9864_v24 = vld [vmem:[%s15220_s7 + $0x584] sm:$0xf] }
 0x2ea   :  { %5885 = vmatpush.bf16.msrb.mxu2 %v8511_v41  ;;  %5898 = vmatpush.bf16.msrb.mxu3 %v8735_v25 }
 0x2eb   :  { %5807 = vmatpush.bf16.msra.mxu0 %v8955_v33  ;;  %5820 = vmatpush.bf16.msra.mxu1 %v9179_v34  ;;  %v7731_v33 = vor.u32 %v9728_v26, %v7730_v51  ;;  %v7955_v34 = vor.u32 %v9784_v30, %v7954_v27  ;;  %v8284_v51 = vld [vmem:[%s15220_s7 + $0x59c] sm:$0xf0]  ;;  %v7618_v26 = vld [vmem:[%s15220_s7 + $0x48] sm:$0xf]  ;;  %v9700_v27 = vld [vmem:[%s15220_s7 + $0x60] sm:$0xf0] }
 0x2ec   :  { %v5630_v41 = vpop.f32.mrf.mxu2  ;;  %v5643_v25 = vpop.f32.mrf.mxu3  ;;  %v7842_v30 = vld [vmem:[%s15220_s7 + $0x208] sm:$0xf]  ;;  %v8287_v32 = vor.u32 %v9864_v24, %v8284_v51  ;;  %v7619_v38 = vor.u32 %v9700_v27, %v7618_v26  ;;  %v10116_v26 = vld [vmem:[%s15220_s7 + $0xd64] sm:$0xf]  ;;  %v9292_v27 = vld [vmem:[%s15220_s7 + $0xd7c] sm:$0xf0] }
 0x2ed   :  { %v7590_v41 = vld [vmem:[%s15220_s7 + $0x10] sm:$0xf]  ;;  %v9693_v25 = vld [vmem:[%s15220_s7 + $0x28] sm:$0xf0] }
 0x2ee   :  { %5886 = vmatpush.bf16.msrb.mxu2 %v8483_v11  ;;  %5899 = vmatpush.bf16.msrb.mxu3 %v8707_v5  ;;  %v9770_v11 = vld [vmem:[%s15220_s7 + $0x290] sm:$0xf0]  ;;  %v8119_v5 = vor.u32 %v9822_v8, %v8116_v44  ;;  %v9124_v8 = vld [vmem:[%s15220_s7 + $0xc2c] sm:$0xf0] }
 0x2ef   :  { %5808 = vmatpush.bf16.msra.mxu0 %v8927_v53  ;;  %5821 = vmatpush.bf16.msra.mxu1 %v9151_v54  ;;  %v9878_v53 = vld [vmem:[%s15220_s7 + $0x5f4] sm:$0xf]  ;;  %v8340_v54 = vld [vmem:[%s15220_s7 + $0x60c] sm:$0xf0] }
 0x2f0   :  { %v10130_v44 = vld [vmem:[%s15220_s7 + $0xdd4] sm:$0xf] }
 0x2f1   :  { %5887 = vmatmul.bf16.vlgmr.msrb.gmra.mxu2 %v12863_v15  ;;  %5900 = vmatmul.bf16.vlgmr.msrb.gmra.mxu3 %v12865_v16 }
 0x2f2   :  { %5931 = vmatpush.bf16.msra.mxu2 %v7787_v63  ;;  %5944 = vmatpush.bf16.msra.mxu3 %v8011_v0  ;;  %v7899_v63 = vor.u32 %v9770_v11, %v7898_v28  ;;  %v9871_v0 = vld [vmem:[%s15220_s7 + $0x5bc] sm:$0xf]  ;;  %v10022_v28 = vld [vmem:[%s15220_s7 + $0xa70] sm:$0xf0]  ;;  %v7591_v11 = vor.u32 %v9693_v25, %v7590_v41  ;;  %v9264_v41 = vld [vmem:[%s15220_s7 + $0xd44] sm:$0xf0] }
 0x2f3   :  { %5853 = vmatpush.bf16.msrb.mxu0 %v8231_v57  ;;  %5866 = vmatpush.bf16.msrb.mxu1 %v8455_v58  ;;  %v8343_v57 = vor.u32 %v9878_v53, %v8340_v54  ;;  %v9815_v58 = vld [vmem:[%s15220_s7 + $0x3fc] sm:$0xf]  ;;  %v8315_v18 = vor.u32 %v9871_v0, %v8312_v1  ;;  %v8907_v0 = vor.u32 %v10022_v28, %v8906_v56  ;;  %v8598_v25 = vld [vmem:[%s15220_s7 + $0x7f0] sm:$0xf]  ;;  %v10102_v56 = vld [vmem:[%s15220_s7 + $0xcf4] sm:$0xf] }
 0x2f4   :  { %5809 = vmatmul.bf16.vlgmr.msra.gmra.mxu0 %v13203_v39  ;;  %5822 = vmatmul.bf16.vlgmr.msra.gmra.mxu1 %v13205_v40  ;;  %v13907_v9 = vpop.f32.mrf.mxu2  ;;  %v13909_v14 = vpop.f32.mrf.mxu3  ;;  %v10123_v1 = vld [vmem:[%s15220_s7 + $0xd9c] sm:$0xf]  ;;  %v9236_v28 = vld [vmem:[%s15220_s7 + $0xd0c] sm:$0xf0] }
 0x2f6   :  { %5932 = vmatpush.bf16.msra.mxu2 %v7759_v22  ;;  %5945 = vmatpush.bf16.msra.mxu3 %v7983_v23  ;;  %v8060_v22 = vld [vmem:[%s15220_s7 + $0x3dc] sm:$0xf0]  ;;  %v7647_v23 = vor.u32 %v9707_v29, %v7646_v4  ;;  %v9320_v4 = vld [vmem:[%s15220_s7 + $0xdb4] sm:$0xf0] }
 0x2f7   :  { %5854 = vmatpush.bf16.msrb.mxu0 %v8203_v17  ;;  %5867 = vmatpush.bf16.msrb.mxu1 %v8427_v2  ;;  %v9763_v17 = vld [vmem:[%s15220_s7 + $0x258] sm:$0xf0]  ;;  %v8091_v2 = vor.u32 %v9815_v58, %v8088_v59  ;;  %v8063_v43 = vor.u32 %v9808_v19, %v8060_v22  ;;  %v8654_v29 = vld [vmem:[%s15220_s7 + $0x860] sm:$0xf]  ;;  %v9323_v19 = vor.u32 %v10123_v1, %v9320_v4  ;;  %v10060_v22 = vld [vmem:[%s15220_s7 + $0xba4] sm:$0xf] }
 0x2f8   :  { %v7871_v6 = vor.u32 %v9763_v17, %v7870_v12  ;;  %v10067_v59 = vld [vmem:[%s15220_s7 + $0xbdc] sm:$0xf]  ;;  %v8878_v17 = vld [vmem:[%s15220_s7 + $0xa20] sm:$0xf]  ;;  %v8984_v4 = vld [vmem:[%s15220_s7 + $0xb14] sm:$0xf0] }
 0x2f9   :  { %v9959_v12 = vld [vmem:[%s15220_s7 + $0x878] sm:$0xf0] }
 0x2fa   :  { %5933 = vmatpush.bf16.msra.mxu2 %v7731_v33  ;;  %5946 = vmatpush.bf16.msra.mxu3 %v7955_v34  ;;  %v8032_v33 = vld [vmem:[%s15220_s7 + $0x3a4] sm:$0xf0]  ;;  %v9857_v34 = vld [vmem:[%s15220_s7 + $0x54c] sm:$0xf]  ;;  %v8655_v24 = vor.u32 %v9959_v12, %v8654_v29  ;;  %v10039_v1 = vld [vmem:[%s15220_s7 + $0xafc] sm:$0xf] }
 0x2fb   :  { %5855 = vmatpush.bf16.msrb.mxu0 %v8175_v31  ;;  %5868 = vmatpush.bf16.msrb.mxu1 %v8399_v49  ;;  %v9756_v31 = vld [vmem:[%s15220_s7 + $0x220] sm:$0xf0]  ;;  %v9801_v49 = vld [vmem:[%s15220_s7 + $0x38c] sm:$0xf]  ;;  %v8259_v54 = vor.u32 %v9857_v34, %v8256_v3 }
 0x2fc   :  { %v7843_v52 = vor.u32 %v9756_v31, %v7842_v30  ;;  %v5682_v13 = vpop.f32.mrf.mxu2  ;;  %v5695_v20 = vpop.f32.mrf.mxu3  ;;  %v8035_v53 = vor.u32 %v9801_v49, %v8032_v33  ;;  %v8626_v30 = vld [vmem:[%s15220_s7 + $0x828] sm:$0xf]  ;;  %v10008_v31 = vld [vmem:[%s15220_s7 + $0xa00] sm:$0xf0] }
 0x2fd   :  { %v9040_v33 = vld [vmem:[%s15220_s7 + $0xb84] sm:$0xf0]  ;;  %v8822_v20 = vld [vmem:[%s15220_s7 + $0x9b0] sm:$0xf] }
 0x2fe   :  { %5934 = vmatpush.bf16.msra.mxu2 %v7703_v47  ;;  %5947 = vmatpush.bf16.msra.mxu3 %v7927_v48  ;;  %v9348_v47 = vld [vmem:[%s15220_s7 + $0xdec] sm:$0xf0]  ;;  %v8682_v48 = vld [vmem:[%s15220_s7 + $0x898] sm:$0xf] }
 0x2ff   :  { %5856 = vmatpush.bf16.msrb.mxu0 %v8147_v62  ;;  %5869 = vmatpush.bf16.msrb.mxu1 %v8371_v7  ;;  %v9749_v62 = vld [vmem:[%s15220_s7 + $0x1e8] sm:$0xf0]  ;;  %v10074_v7 = vld [vmem:[%s15220_s7 + $0xc14] sm:$0xf]  ;;  %v9351_v58 = vor.u32 %v10130_v44, %v9348_v47 }
 0x300   :  { %v10046_v47 = vld [vmem:[%s15220_s7 + $0xb34] sm:$0xf] }
 0x302   :  { %5935 = vmatpush.bf16.msra.mxu2 %v7675_v21  ;;  %5948 = vmatpush.bf16.msra.mxu3 %v7899_v63  ;;  %v9096_v21 = vld [vmem:[%s15220_s7 + $0xbf4] sm:$0xf0]  ;;  %v8683_v63 = vor.u32 %v9966_v55, %v8682_v48  ;;  %v9012_v48 = vld [vmem:[%s15220_s7 + $0xb4c] sm:$0xf0] }
 0x303   :  { %5857 = vmatpush.bf16.msrb.mxu0 %v8119_v5  ;;  %5870 = vmatpush.bf16.msrb.mxu1 %v8343_v57  ;;  %v7815_v5 = vor.u32 %v9749_v62, %v7814_v42  ;;  %v9127_v57 = vor.u32 %v10074_v7, %v9124_v8  ;;  %v10001_v62 = vld [vmem:[%s15220_s7 + $0x9c8] sm:$0xf0] }
 0x304   :  { %v8823_v55 = vor.u32 %v10001_v62, %v8822_v20 }
 0x306   :  { %5936 = vmatpush.bf16.msra.mxu2 %v7647_v23  ;;  %5949 = vmatpush.bf16.msra.mxu3 %v7871_v6  ;;  %v9068_v23 = vld [vmem:[%s15220_s7 + $0xbbc] sm:$0xf0]  ;;  %v5577_v6 = vadd.f32 %v13688_v60, %v13316_v45  ;;  %v9952_v45 = vld [vmem:[%s15220_s7 + $0x840] sm:$0xf0]  ;;  %v8850_v60 = vld [vmem:[%s15220_s7 + $0x9e8] sm:$0xf] }
 0x307   :  { %5858 = vmatpush.bf16.msrb.mxu0 %v8091_v2  ;;  %5871 = vmatpush.bf16.msrb.mxu1 %v8315_v18  ;;  %v10015_v2 = vld [vmem:[%s15220_s7 + $0xa38] sm:$0xf0]  ;;  %v9099_v18 = vor.u32 %v10067_v59, %v9096_v21  ;;  %v9071_v49 = vor.u32 %v10060_v22, %v9068_v23  ;;  %v8627_v3 = vor.u32 %v9952_v45, %v8626_v30 }
 0x308   :  { %v8879_v51 = vor.u32 %v10015_v2, %v8878_v17  ;;  %v5590_v34 = vadd.f32 %v13690_v61, %v5577_v6  ;;  %v9945_v61 = vld [vmem:[%s15220_s7 + $0x808] sm:$0xf0]  ;;  %v9015_v59 = vor.u32 %v10046_v47, %v9012_v48  ;;  %v9239_v21 = vor.u32 %v10102_v56, %v9236_v28  ;;  %v10095_v17 = vld [vmem:[%s15220_s7 + $0xcbc] sm:$0xf]  ;;  %v9208_v2 = vld [vmem:[%s15220_s7 + $0xcd4] sm:$0xf0] }
 0x309   :  { %v9931_v23 = vld [vmem:[%s15220_s7 + $0x798] sm:$0xf0]  ;;  %v8766_v6 = vld [vmem:[%s15220_s7 + $0x940] sm:$0xf]  ;;  %v8987_v45 = vor.u32 %v10039_v1, %v8984_v4  ;;  %v8486_v48 = vld [vmem:[%s15220_s7 + $0x710] sm:$0xf] }
 0x30a   :  { %5937 = vmatpush.bf16.msra.mxu2 %v7619_v38  ;;  %5950 = vmatpush.bf16.msra.mxu3 %v7843_v52  ;;  %v8851_v38 = vor.u32 %v10008_v31, %v8850_v60  ;;  %v10109_v52 = vld [vmem:[%s15220_s7 + $0xd2c] sm:$0xf]  ;;  %v9211_v60 = vor.u32 %v10095_v17, %v9208_v2  ;;  %v10032_v31 = vld [vmem:[%s15220_s7 + $0xac4] sm:$0xf]  ;;  %v9739_v1 = vld [vmem:[%s15220_s7 + $0x19c] sm:$0xf] }
 0x30b   :  { %5859 = vmatpush.bf16.msrb.mxu0 %v8063_v43  ;;  %5872 = vmatpush.bf16.msrb.mxu1 %v8287_v32  ;;  %v9295_v43 = vor.u32 %v10116_v26, %v9292_v27  ;;  %v10053_v32 = vld [vmem:[%s15220_s7 + $0xb6c] sm:$0xf]  ;;  %v9267_v44 = vor.u32 %v10109_v52, %v9264_v41  ;;  %v9924_v52 = vld [vmem:[%s15220_s7 + $0x760] sm:$0xf0]  ;;  %v8012_v17 = vld [vmem:[%s15220_s7 + $0x374] sm:$0xf0] }
 0x30c   :  { %v9043_v8 = vor.u32 %v10053_v32, %v9040_v33  ;;  %v9973_v28 = vld [vmem:[%s15220_s7 + $0x8e8] sm:$0xf0] }
 0x30e   :  { %5938 = vmatpush.bf16.msra.mxu2 %v7591_v11  ;;  %5951 = vmatpush.bf16.msra.mxu3 %v7815_v5  ;;  %v5602_v42 = vpop.f32.mrf.mxu0  ;;  %v5615_v13 = vpop.f32.mrf.mxu1  ;;  %v8570_v11 = vld [vmem:[%s15220_s7 + $0x7b8] sm:$0xf]  ;;  %v9938_v5 = vld [vmem:[%s15220_s7 + $0x7d0] sm:$0xf0] }
 0x30f   :  { %5860 = vmatpush.bf16.msrb.mxu0 %v8035_v53  ;;  %5873 = vmatpush.bf16.msrb.mxu1 %v8259_v54  ;;  %v5603_v7 = vadd.f32 %v5602_v42, %v5590_v34  ;;  %v8599_v54 = vor.u32 %v9945_v61, %v8598_v25  ;;  %v8571_v29 = vor.u32 %v9938_v5, %v8570_v11  ;;  %v8738_v25 = vld [vmem:[%s15220_s7 + $0x908] sm:$0xf]  ;;  %v9980_v42 = vld [vmem:[%s15220_s7 + $0x920] sm:$0xf0]  ;;  %v10025_v61 = vld [vmem:[%s15220_s7 + $0xa8c] sm:$0xf] }
 0x310   :  { %v8739_v47 = vor.u32 %v9980_v42, %v8738_v25  ;;  %v8234_v11 = vld [vmem:[%s15220_s7 + $0x518] sm:$0xf]  ;;  %v9854_v5 = vld [vmem:[%s15220_s7 + $0x530] sm:$0xf0] }
 0x311   :  { %5939 = vmatmul.bf16.vlgmr.msra.gmra.mxu2 %v12486_v50  ;;  %5952 = vmatmul.bf16.vlgmr.msra.gmra.mxu3 %v12488_v37  ;;  %v5616_v53 = vadd.f32 %v5615_v13, %v5603_v7  ;;  %v8928_v7 = vld [vmem:[%s15220_s7 + $0xaa4] sm:$0xf0] }
 0x312   :  { %5983 = vmatpush.bf16.msrb.mxu2 %v8683_v63  ;;  %5996 = vmatpush.bf16.msrb.mxu3 %v8907_v0  ;;  %v14098_v63 = vld [vmem:[%s15221_s8] sm:$0x7f]  ;;  %v8931_v4 = vor.u32 %v10025_v61, %v8928_v7  ;;  %v9781_v7 = vld [vmem:[%s15220_s7 + $0x2ec] sm:$0xf] }
 0x313   :  { %5905 = vmatpush.bf16.msra.mxu0 %v9127_v57  ;;  %5918 = vmatpush.bf16.msra.mxu1 %v9351_v58  ;;  %v8794_v57 = vld [vmem:[%s15220_s7 + $0x978] sm:$0xf]  ;;  %v9994_v58 = vld [vmem:[%s15220_s7 + $0x990] sm:$0xf0]  ;;  %10137 = vtanh.f32 %v5616_v53  ;;  %v3171_v0 = vperm.slane %v14098_v63, 2 }
 0x314   :  { %5861 = vmatmul.bf16.vlgmr.msrb.gmra.mxu0 %v12592_v35  ;;  %5874 = vmatmul.bf16.vlgmr.msrb.gmra.mxu1 %v12594_v36  ;;  %v8795_v12 = vor.u32 %v9994_v58, %v8794_v57  ;;  %v9917_v53 = vld [vmem:[%s15220_s7 + $0x728] sm:$0xf0]  ;;  %v9896_v61 = vld [vmem:[%s15220_s7 + $0x680] sm:$0xf0] }
 0x316   :  { %5984 = vmatpush.bf16.msrb.mxu2 %v8655_v24  ;;  %5997 = vmatpush.bf16.msrb.mxu3 %v8879_v51  ;;  %v5617_v22 = vpop.f32.mrf.mxu1  ;;  %v9987_v24 = vld [vmem:[%s15220_s7 + $0x958] sm:$0xf0]  ;;  %v3170_v51 = vperm.slane %v14098_v63, 1 }
 0x317   :  { %5906 = vmatpush.bf16.msra.mxu0 %v9099_v18  ;;  %5919 = vmatpush.bf16.msra.mxu1 %v9323_v19  ;;  %v8542_v18 = vld [vmem:[%s15220_s7 + $0x780] sm:$0xf]  ;;  %v5604_v19 = vpop.f32.mrf.mxu0  ;;  %v5732_v26 = vpop.f32.mrf.mxu2  ;;  %v8767_v34 = vor.u32 %v9987_v24, %v8766_v6  ;;  %v8235_v22 = vor.u32 %v9854_v5, %v8234_v11  ;;  %v9847_v24 = vld [vmem:[%s15220_s7 + $0x4f8] sm:$0xf0]  ;;  %v7704_v11 = vld [vmem:[%s15220_s7 + $0x10c] sm:$0xf0] }
 0x318   :  { %v5745_v27 = vpop.f32.mrf.mxu3  ;;  %v5733_v30 = vadd.f32 %v5732_v26, %v3171_v0  ;;  %v8543_v33 = vor.u32 %v9931_v23, %v8542_v18  ;;  %v5629_v13 = vadd.f32 %v13803_v10, %v3170_v51  ;;  %v9152_v10 = vld [vmem:[%s15220_s7 + $0xc64] sm:$0xf0]  ;;  %v9910_v0 = vld [vmem:[%s15220_s7 + $0x6f0] sm:$0xf0]  ;;  %v8487_v18 = vor.u32 %v9917_v53, %v8486_v48  ;;  %v8206_v6 = vld [vmem:[%s15220_s7 + $0x4e0] sm:$0xf] }
 0x319   :  { %v10138_v32 = vpop.eup %10137  ;;  %v8150_v48 = vld [vmem:[%s15220_s7 + $0x470] sm:$0xf]  ;;  %v9833_v53 = vld [vmem:[%s15220_s7 + $0x488] sm:$0xf0]  ;;  %v9774_v5 = vld [vmem:[%s15220_s7 + $0x2b4] sm:$0xf] }
 0x31a   :  { %5985 = vmatpush.bf16.msrb.mxu2 %v8627_v3  ;;  %5998 = vmatpush.bf16.msrb.mxu3 %v8851_v38  ;;  %v9180_v3 = vld [vmem:[%s15220_s7 + $0xc9c] sm:$0xf0]  ;;  %v8514_v38 = vld [vmem:[%s15220_s7 + $0x748] sm:$0xf]  ;;  %6250 = vst [vmem:[#allocation2] sm:$0xff] %v10138_v32  ;;  %v14144_v41 = vadd.f32 %v5745_v27, %v5733_v30  ;;  %v5642_v57 = vadd.f32 %v13805_v46, %v5629_v13 }
 0x31b   :  { %5907 = vmatpush.bf16.msra.mxu0 %v9071_v49  ;;  %5920 = vmatpush.bf16.msra.mxu1 %v9295_v43  ;;  %v8956_v49 = vld [vmem:[%s15220_s7 + $0xadc] sm:$0xf0]  ;;  %v10088_v43 = vld [vmem:[%s15220_s7 + $0xc84] sm:$0xf]  ;;  %v7788_v46 = vld [vmem:[%s15220_s7 + $0x1b4] sm:$0xf0] }
 0x31c   :  { %v8959_v20 = vor.u32 %v10032_v31, %v8956_v49  ;;  %v9183_v62 = vor.u32 %v10088_v43, %v9180_v3  ;;  %v7791_v51 = vor.u32 %v9739_v1, %v7788_v46  ;;  %v8430_v27 = vld [vmem:[%s15220_s7 + $0x6a0] sm:$0xf]  ;;  %v9903_v30 = vld [vmem:[%s15220_s7 + $0x6b8] sm:$0xf0]  ;;  %v9788_v31 = vld [vmem:[%s15220_s7 + $0x324] sm:$0xf] }
 0x31d   :  { %v7984_v49 = vld [vmem:[%s15220_s7 + $0x33c] sm:$0xf0]  ;;  %v8431_v3 = vor.u32 %v9903_v30, %v8430_v27  ;;  %v8402_v13 = vld [vmem:[%s15220_s7 + $0x668] sm:$0xf]  ;;  %v9819_v27 = vld [vmem:[%s15220_s7 + $0x418] sm:$0xf0] }
 0x31e   :  { %5986 = vmatpush.bf16.msrb.mxu2 %v8599_v54  ;;  %5999 = vmatpush.bf16.msrb.mxu3 %v8823_v55  ;;  %v8710_v54 = vld [vmem:[%s15220_s7 + $0x8d0] sm:$0xf]  ;;  %v5667_v56 = vpop.f32.mrf.mxu1  ;;  %v7987_v42 = vor.u32 %v9788_v31, %v7984_v49  ;;  %v8318_v49 = vld [vmem:[%s15220_s7 + $0x5c0] sm:$0xf] }
 0x31f   :  { %5908 = vmatpush.bf16.msra.mxu0 %v9043_v8  ;;  %5921 = vmatpush.bf16.msra.mxu1 %v9267_v44  ;;  %v10081_v8 = vld [vmem:[%s15220_s7 + $0xc4c] sm:$0xf]  ;;  %v8515_v44 = vor.u32 %v9924_v52, %v8514_v38  ;;  %v5654_v55 = vpop.f32.mrf.mxu0  ;;  %v5734_v58 = vpop.f32.mrf.mxu2  ;;  %v8711_v19 = vor.u32 %v9973_v28, %v8710_v54  ;;  %v8178_v38 = vld [vmem:[%s15220_s7 + $0x4a8] sm:$0xf]  ;;  %v9840_v52 = vld [vmem:[%s15220_s7 + $0x4c0] sm:$0xf0] }
 0x320   :  { %v5655_v2 = vadd.f32 %v5654_v55, %v5642_v57  ;;  %v8374_v55 = vld [vmem:[%s15220_s7 + $0x630] sm:$0xf]  ;;  %v9718_v28 = vld [vmem:[%s15220_s7 + $0xf4] sm:$0xf] }
 0x321   :  { %v7928_v57 = vld [vmem:[%s15220_s7 + $0x2cc] sm:$0xf0] }
 0x322   :  { %5987 = vmatpush.bf16.msrb.mxu2 %v8571_v29  ;;  %6000 = vmatpush.bf16.msrb.mxu3 %v8795_v12  ;;  %v9155_v29 = vor.u32 %v10081_v8, %v9152_v10  ;;  %v9795_v12 = vld [vmem:[%s15220_s7 + $0x35c] sm:$0xf]  ;;  %v5668_v43 = vadd.f32 %v5667_v56, %v5655_v2  ;;  %v7956_v8 = vld [vmem:[%s15220_s7 + $0x304] sm:$0xf0]  ;;  %v9889_v56 = vld [vmem:[%s15220_s7 + $0x648] sm:$0xf0] }
 0x323   :  { %5909 = vmatpush.bf16.msra.mxu0 %v9015_v59  ;;  %5922 = vmatpush.bf16.msra.mxu1 %v9239_v21  ;;  %v5747_v59 = vpop.f32.mrf.mxu3  ;;  %v8458_v21 = vld [vmem:[%s15220_s7 + $0x6d8] sm:$0xf]  ;;  %v8015_v26 = vor.u32 %v9795_v12, %v8012_v17  ;;  %v8375_v1 = vor.u32 %v9889_v56, %v8374_v55  ;;  %v7707_v12 = vor.u32 %v9718_v28, %v7704_v11  ;;  %v9882_v2 = vld [vmem:[%s15220_s7 + $0x610] sm:$0xf0]  ;;  %v8262_v28 = vld [vmem:[%s15220_s7 + $0x550] sm:$0xf] }
 0x324   :  { %v8459_v23 = vor.u32 %v9910_v0, %v8458_v21  ;;  %v5681_v10 = vadd.f32 %v13907_v9, %v5668_v43  ;;  %v7959_v9 = vor.u32 %v9781_v7, %v7956_v8  ;;  %v8151_v0 = vor.u32 %v9833_v53, %v8150_v48  ;;  %v9875_v43 = vld [vmem:[%s15220_s7 + $0x5d8] sm:$0xf0]  ;;  %v8290_v7 = vld [vmem:[%s15220_s7 + $0x588] sm:$0xf]  ;;  %v9868_v8 = vld [vmem:[%s15220_s7 + $0x5a0] sm:$0xf0] }
 0x325   :  { %v7931_v17 = vor.u32 %v9774_v5, %v7928_v57  ;;  %v7844_v48 = vld [vmem:[%s15220_s7 + $0x224] sm:$0xf0]  ;;  %v8291_v56 = vor.u32 %v9868_v8, %v8290_v7  ;;  %v9861_v11 = vld [vmem:[%s15220_s7 + $0x568] sm:$0xf0]  ;;  %v10120_v7 = vld [vmem:[%s15220_s7 + $0xd80] sm:$0xf0] }
 0x326   :  { %5988 = vmatpush.bf16.msrb.mxu2 %v8543_v33  ;;  %6001 = vmatpush.bf16.msrb.mxu3 %v8767_v34  ;;  %v5669_v33 = vpop.f32.mrf.mxu1  ;;  %v8207_v34 = vor.u32 %v9847_v24, %v8206_v6  ;;  %v5694_v58 = vadd.f32 %v13909_v14, %v5681_v10  ;;  %v8346_v14 = vld [vmem:[%s15220_s7 + $0x5f8] sm:$0xf]  ;;  %v9697_v10 = vld [vmem:[%s15220_s7 + $0x4c] sm:$0xf] }
 0x327   :  { %5910 = vmatpush.bf16.msra.mxu0 %v8987_v45  ;;  %5923 = vmatpush.bf16.msra.mxu1 %v9211_v60  ;;  %v9732_v45 = vld [vmem:[%s15220_s7 + $0x164] sm:$0xf]  ;;  %v7760_v60 = vld [vmem:[%s15220_s7 + $0x17c] sm:$0xf0]  ;;  %v5656_v32 = vpop.f32.mrf.mxu0  ;;  %v9949_v8 = vld [vmem:[%s15220_s7 + $0x82c] sm:$0xf] }
 0x328   :  { %v7763_v25 = vor.u32 %v9732_v45, %v7760_v60  ;;  %v9704_v32 = vld [vmem:[%s15220_s7 + $0x84] sm:$0xf]  ;;  %v7648_v33 = vld [vmem:[%s15220_s7 + $0x9c] sm:$0xf0] }
 0x32a   :  { %5989 = vmatpush.bf16.msrb.mxu2 %v8515_v44  ;;  %6002 = vmatpush.bf16.msrb.mxu3 %v8739_v47  ;;  %v8179_v44 = vor.u32 %v9840_v52, %v8178_v38  ;;  %v8403_v47 = vor.u32 %v9896_v61, %v8402_v13  ;;  %v8066_v13 = vld [vmem:[%s15220_s7 + $0x3c8] sm:$0xf]  ;;  %v9812_v61 = vld [vmem:[%s15220_s7 + $0x3e0] sm:$0xf0] }
 0x32b   :  { %5911 = vmatpush.bf16.msra.mxu0 %v8959_v20  ;;  %5924 = vmatpush.bf16.msra.mxu1 %v9183_v62  ;;  %v9725_v20 = vld [vmem:[%s15220_s7 + $0x12c] sm:$0xf]  ;;  %v7732_v62 = vld [vmem:[%s15220_s7 + $0x144] sm:$0xf0]  ;;  %v8067_v55 = vor.u32 %v9812_v61, %v8066_v13  ;;  %v10064_v13 = vld [vmem:[%s15220_s7 + $0xbc0] sm:$0xf0] }
 0x32c   :  { %v7735_v54 = vor.u32 %v9725_v20, %v7732_v62  ;;  %v7651_v20 = vor.u32 %v9704_v32, %v7648_v33  ;;  %v10127_v32 = vld [vmem:[%s15220_s7 + $0xdb8] sm:$0xf0]  ;;  %v9956_v33 = vld [vmem:[%s15220_s7 + $0x864] sm:$0xf] }
 0x32e   :  { %5990 = vmatpush.bf16.msrb.mxu2 %v8487_v18  ;;  %6003 = vmatpush.bf16.msrb.mxu3 %v8711_v19  ;;  %v9711_v18 = vld [vmem:[%s15220_s7 + $0xbc] sm:$0xf]  ;;  %v7676_v19 = vld [vmem:[%s15220_s7 + $0xd4] sm:$0xf0] }
 0x32f   :  { %5912 = vmatpush.bf16.msra.mxu0 %v8931_v4  ;;  %5925 = vmatpush.bf16.msra.mxu1 %v9155_v29  ;;  %v8122_v4 = vld [vmem:[%s15220_s7 + $0x438] sm:$0xf]  ;;  %v9826_v29 = vld [vmem:[%s15220_s7 + $0x450] sm:$0xf0]  ;;  %v7679_v30 = vor.u32 %v9711_v18, %v7676_v19  ;;  %v8263_v18 = vor.u32 %v9861_v11, %v8262_v28  ;;  %v9270_v28 = vld [vmem:[%s15220_s7 + $0xd30] sm:$0xf] }
 0x330   :  { %v8123_v24 = vor.u32 %v9826_v29, %v8122_v4  ;;  %v7816_v4 = vld [vmem:[%s15220_s7 + $0x1ec] sm:$0xf0]  ;;  %v9130_v29 = vld [vmem:[%s15220_s7 + $0xc18] sm:$0xf]  ;;  %v10113_v11 = vld [vmem:[%s15220_s7 + $0xd48] sm:$0xf0] }
 0x331   :  { %5991 = vmatmul.bf16.vlgmr.msrb.gmra.mxu2 %v12863_v15  ;;  %6004 = vmatmul.bf16.vlgmr.msrb.gmra.mxu3 %v12865_v16  ;;  %v5706_v59 = vpop.f32.mrf.mxu0  ;;  %v5719_v21 = vpop.f32.mrf.mxu1  ;;  %v8684_v19 = vld [vmem:[%s15220_s7 + $0x8b4] sm:$0xf0] }
 0x332   :  { %6035 = vmatpush.bf16.msra.mxu2 %v7791_v51  ;;  %6048 = vmatpush.bf16.msra.mxu3 %v8015_v26  ;;  %v5707_v46 = vadd.f32 %v5706_v59, %v5694_v58  ;;  %v8347_v51 = vor.u32 %v9882_v2, %v8346_v14  ;;  %v8094_v26 = vld [vmem:[%s15220_s7 + $0x400] sm:$0xf]  ;;  %v9963_v14 = vld [vmem:[%s15220_s7 + $0x89c] sm:$0xf] }
 0x333   :  { %5957 = vmatpush.bf16.msrb.mxu0 %v8235_v22  ;;  %5970 = vmatpush.bf16.msrb.mxu1 %v8459_v23  ;;  %v9767_v22 = vld [vmem:[%s15220_s7 + $0x27c] sm:$0xf]  ;;  %v7900_v23 = vld [vmem:[%s15220_s7 + $0x294] sm:$0xf0] }
 0x334   :  { %5913 = vmatmul.bf16.vlgmr.msra.gmra.mxu0 %v13203_v39  ;;  %5926 = vmatmul.bf16.vlgmr.msra.gmra.mxu1 %v13205_v40  ;;  %v5720_v6 = vadd.f32 %v5719_v21, %v5707_v46  ;;  %v7903_v45 = vor.u32 %v9767_v22, %v7900_v23  ;;  %v14310_v60 = vpop.f32.mrf.mxu2  ;;  %v14312_v31 = vpop.f32.mrf.mxu3  ;;  %v9690_v21 = vld [vmem:[%s15220_s7 + $0x14] sm:$0xf]  ;;  %v10019_v22 = vld [vmem:[%s15220_s7 + $0xa5c] sm:$0xf]  ;;  %v8908_v23 = vld [vmem:[%s15220_s7 + $0xa74] sm:$0xf0] }
 0x335   :  { %v10078_v46 = vld [vmem:[%s15220_s7 + $0xc30] sm:$0xf0] }
 0x336   :  { %6036 = vmatpush.bf16.msra.mxu2 %v7763_v25  ;;  %6049 = vmatpush.bf16.msra.mxu3 %v7987_v42  ;;  %10139 = vtanh.f32 %v5720_v6  ;;  %v8095_v25 = vor.u32 %v9819_v27, %v8094_v26  ;;  %v8319_v42 = vor.u32 %v9875_v43, %v8318_v49  ;;  %v9102_v27 = vld [vmem:[%s15220_s7 + $0xbe0] sm:$0xf]  ;;  %v8911_v49 = vor.u32 %v10019_v22, %v8908_v23  ;;  %v9991_v22 = vld [vmem:[%s15220_s7 + $0x97c] sm:$0xf]  ;;  %v8796_v23 = vld [vmem:[%s15220_s7 + $0x994] sm:$0xf0] }
 0x337   :  { %5958 = vmatpush.bf16.msrb.mxu0 %v8207_v34  ;;  %5971 = vmatpush.bf16.msrb.mxu1 %v8431_v3  ;;  %v9760_v34 = vld [vmem:[%s15220_s7 + $0x244] sm:$0xf]  ;;  %v7872_v3 = vld [vmem:[%s15220_s7 + $0x25c] sm:$0xf0] }
 0x338   :  { %v7875_v62 = vor.u32 %v9760_v34, %v7872_v3  ;;  %v9326_v43 = vld [vmem:[%s15220_s7 + $0xda0] sm:$0xf]  ;;  %v10012_v3 = vld [vmem:[%s15220_s7 + $0xa24] sm:$0xf] }
 0x339   :  { %v5708_v38 = vpop.f32.mrf.mxu0  ;;  %v5721_v52 = vpop.f32.mrf.mxu1  ;;  %v8656_v34 = vld [vmem:[%s15220_s7 + $0x87c] sm:$0xf0] }
 0x33a   :  { %6037 = vmatpush.bf16.msra.mxu2 %v7735_v54  ;;  %6050 = vmatpush.bf16.msra.mxu3 %v7959_v9  ;;  %v8038_v54 = vld [vmem:[%s15220_s7 + $0x390] sm:$0xf]  ;;  %v9805_v9 = vld [vmem:[%s15220_s7 + $0x3a8] sm:$0xf0]  ;;  %v8880_v38 = vld [vmem:[%s15220_s7 + $0xa3c] sm:$0xf0]  ;;  %v8659_v61 = vor.u32 %v9956_v33, %v8656_v34 }
 0x33b   :  { %5959 = vmatpush.bf16.msrb.mxu0 %v8179_v44  ;;  %5972 = vmatpush.bf16.msrb.mxu1 %v8403_v47  ;;  %v7620_v44 = vld [vmem:[%s15220_s7 + $0x64] sm:$0xf0]  ;;  %v9753_v47 = vld [vmem:[%s15220_s7 + $0x20c] sm:$0xf]  ;;  %v8039_v2 = vor.u32 %v9805_v9, %v8038_v54  ;;  %v9046_v54 = vld [vmem:[%s15220_s7 + $0xb70] sm:$0xf] }
 0x33c   :  { %v10140_v53 = vpop.eup %10139  ;;  %v7623_v5 = vor.u32 %v9697_v10, %v7620_v44  ;;  %v7847_v57 = vor.u32 %v9753_v47, %v7844_v48  ;;  %v5786_v58 = vpop.f32.mrf.mxu2  ;;  %v8628_v10 = vld [vmem:[%s15220_s7 + $0x844] sm:$0xf0]  ;;  %v10005_v44 = vld [vmem:[%s15220_s7 + $0x9ec] sm:$0xf]  ;;  %v8544_v34 = vld [vmem:[%s15220_s7 + $0x79c] sm:$0xf0] }
 0x33d   :  { %6251 = vst [vmem:[#allocation2 + $0x8] sm:$0xff] %v10140_v53  ;;  %v5799_v59 = vpop.f32.mrf.mxu3  ;;  %v8852_v47 = vld [vmem:[%s15220_s7 + $0xa04] sm:$0xf0]  ;;  %v10057_v9 = vld [vmem:[%s15220_s7 + $0xb88] sm:$0xf0] }
 0x33e   :  { %6038 = vmatpush.bf16.msra.mxu2 %v7707_v12  ;;  %6051 = vmatpush.bf16.msra.mxu3 %v7931_v17  ;;  %v9354_v12 = vld [vmem:[%s15220_s7 + $0xdd8] sm:$0xf]  ;;  %v10134_v17 = vld [vmem:[%s15220_s7 + $0xdf0] sm:$0xf0]  ;;  %v8824_v59 = vld [vmem:[%s15220_s7 + $0x9cc] sm:$0xf0] }
 0x33f   :  { %5960 = vmatpush.bf16.msrb.mxu0 %v8151_v0  ;;  %5973 = vmatpush.bf16.msrb.mxu1 %v8375_v1  ;;  %v7592_v0 = vld [vmem:[%s15220_s7 + $0x2c] sm:$0xf0]  ;;  %v9746_v1 = vld [vmem:[%s15220_s7 + $0x1d4] sm:$0xf]  ;;  %v9355_v26 = vor.u32 %v10134_v17, %v9354_v12 }
 0x340   :  { %v7595_v6 = vor.u32 %v9690_v21, %v7592_v0  ;;  %v9998_v58 = vld [vmem:[%s15220_s7 + $0x9b4] sm:$0xf] }
 0x341   :  { %v8827_v17 = vor.u32 %v9998_v58, %v8824_v59 }
 0x342   :  { %6039 = vmatpush.bf16.msra.mxu2 %v7679_v30  ;;  %6052 = vmatpush.bf16.msra.mxu3 %v7903_v45  ;;  %v10071_v30 = vld [vmem:[%s15220_s7 + $0xbf8] sm:$0xf0]  ;;  %v8687_v45 = vor.u32 %v9963_v14, %v8684_v19  ;;  %v9242_v14 = vld [vmem:[%s15220_s7 + $0xcf8] sm:$0xf] }
 0x343   :  { %5961 = vmatpush.bf16.msrb.mxu0 %v8123_v24  ;;  %5974 = vmatpush.bf16.msrb.mxu1 %v8347_v51  ;;  %v7819_v24 = vor.u32 %v9746_v1, %v7816_v4  ;;  %v9131_v51 = vor.u32 %v10078_v46, %v9130_v29  ;;  %v9103_v52 = vor.u32 %v10071_v30, %v9102_v27  ;;  %v9018_v29 = vld [vmem:[%s15220_s7 + $0xb38] sm:$0xf]  ;;  %v10050_v46 = vld [vmem:[%s15220_s7 + $0xb50] sm:$0xf0]  ;;  %v10043_v27 = vld [vmem:[%s15220_s7 + $0xb18] sm:$0xf0] }
 0x344   :  { %v9047_v1 = vor.u32 %v10057_v9, %v9046_v54  ;;  %v9271_v4 = vor.u32 %v10113_v11, %v9270_v28  ;;  %v8572_v19 = vld [vmem:[%s15220_s7 + $0x7d4] sm:$0xf0]  ;;  %v9977_v54 = vld [vmem:[%s15220_s7 + $0x90c] sm:$0xf]  ;;  %v8740_v9 = vld [vmem:[%s15220_s7 + $0x924] sm:$0xf0] }
 0x345   :  { %v10029_v11 = vld [vmem:[%s15220_s7 + $0xaa8] sm:$0xf0]  ;;  %v8743_v59 = vor.u32 %v9977_v54, %v8740_v9  ;;  %v7962_v54 = vld [vmem:[%s15220_s7 + $0x2f0] sm:$0xf] }
 0x346   :  { %6040 = vmatpush.bf16.msra.mxu2 %v7651_v20  ;;  %6053 = vmatpush.bf16.msra.mxu3 %v7875_v62  ;;  %v8883_v20 = vor.u32 %v10012_v3, %v8880_v38  ;;  %v9298_v62 = vld [vmem:[%s15220_s7 + $0xd68] sm:$0xf]  ;;  %v9984_v3 = vld [vmem:[%s15220_s7 + $0x944] sm:$0xf]  ;;  %v8768_v38 = vld [vmem:[%s15220_s7 + $0x95c] sm:$0xf0] }
 0x347   :  { %5962 = vmatpush.bf16.msrb.mxu0 %v8095_v25  ;;  %5975 = vmatpush.bf16.msrb.mxu1 %v8319_v42  ;;  %v9327_v25 = vor.u32 %v10127_v32, %v9326_v43  ;;  %v9074_v42 = vld [vmem:[%s15220_s7 + $0xba8] sm:$0xf]  ;;  %v9299_v53 = vor.u32 %v10120_v7, %v9298_v62  ;;  %v9928_v43 = vld [vmem:[%s15220_s7 + $0x784] sm:$0xf]  ;;  %v9785_v9 = vld [vmem:[%s15220_s7 + $0x308] sm:$0xf0] }
 0x348   :  { %v9075_v48 = vor.u32 %v10064_v13, %v9074_v42  ;;  %v10036_v62 = vld [vmem:[%s15220_s7 + $0xae0] sm:$0xf0] }
 0x34a   :  { %6041 = vmatpush.bf16.msra.mxu2 %v7623_v5  ;;  %6054 = vmatpush.bf16.msra.mxu3 %v7847_v57  ;;  %v9942_v5 = vld [vmem:[%s15220_s7 + $0x7f4] sm:$0xf]  ;;  %v8600_v57 = vld [vmem:[%s15220_s7 + $0x80c] sm:$0xf0] }
 0x34b   :  { %5963 = vmatpush.bf16.msrb.mxu0 %v8067_v55  ;;  %5976 = vmatpush.bf16.msrb.mxu1 %v8291_v56  ;;  %v8631_v55 = vor.u32 %v9949_v8, %v8628_v10  ;;  %v8855_v56 = vor.u32 %v10005_v44, %v8852_v47  ;;  %v8603_v12 = vor.u32 %v9942_v5, %v8600_v57  ;;  %v9186_v44 = vld [vmem:[%s15220_s7 + $0xc88] sm:$0xf]  ;;  %v10092_v47 = vld [vmem:[%s15220_s7 + $0xca0] sm:$0xf0]  ;;  %v9158_v5 = vld [vmem:[%s15220_s7 + $0xc50] sm:$0xf] }
 0x34c   :  { %v8547_v8 = vor.u32 %v9928_v43, %v8544_v34  ;;  %v8771_v10 = vor.u32 %v9984_v3, %v8768_v38  ;;  %v9187_v28 = vor.u32 %v10092_v47, %v9186_v44  ;;  %v10085_v57 = vld [vmem:[%s15220_s7 + $0xc68] sm:$0xf0]  ;;  %v8432_v34 = vld [vmem:[%s15220_s7 + $0x6bc] sm:$0xf0]  ;;  %v7766_v3 = vld [vmem:[%s15220_s7 + $0x168] sm:$0xf] }
 0x34d   :  { %v8404_v44 = vld [vmem:[%s15220_s7 + $0x684] sm:$0xf0]  ;;  %v7738_v47 = vld [vmem:[%s15220_s7 + $0x130] sm:$0xf] }
 0x34e   :  { %6042 = vmatpush.bf16.msra.mxu2 %v7595_v6  ;;  %6055 = vmatpush.bf16.msra.mxu3 %v7819_v24  ;;  %v3172_v6 = vperm.slane %v14098_v63, 3  ;;  %v9019_v24 = vor.u32 %v10050_v46, %v9018_v29  ;;  %v9214_v63 = vld [vmem:[%s15220_s7 + $0xcc0] sm:$0xf]  ;;  %v9970_v29 = vld [vmem:[%s15220_s7 + $0x8d4] sm:$0xf] }
 0x34f   :  { %5964 = vmatpush.bf16.msrb.mxu0 %v8039_v2  ;;  %5977 = vmatpush.bf16.msrb.mxu1 %v8263_v18  ;;  %v10106_v2 = vld [vmem:[%s15220_s7 + $0xd10] sm:$0xf0]  ;;  %v9935_v18 = vld [vmem:[%s15220_s7 + $0x7bc] sm:$0xf] }
 0x350   :  { %v8575_v30 = vor.u32 %v9935_v18, %v8572_v19  ;;  %v9907_v18 = vld [vmem:[%s15220_s7 + $0x6dc] sm:$0xf]  ;;  %v8460_v19 = vld [vmem:[%s15220_s7 + $0x6f4] sm:$0xf0] }
 0x351   :  { %6043 = vmatmul.bf16.vlgmr.msra.gmra.mxu2 %v12486_v50  ;;  %6056 = vmatmul.bf16.vlgmr.msra.gmra.mxu3 %v12488_v37  ;;  %v14480_v21 = vpop.f32.mrf.mxu0  ;;  %v14482_v0 = vpop.f32.mrf.mxu1 }
 0x352   :  { %6087 = vmatpush.bf16.msrb.mxu2 %v8687_v45  ;;  %6100 = vmatpush.bf16.msrb.mxu3 %v8911_v49  ;;  %v8799_v45 = vor.u32 %v9991_v22, %v8796_v23  ;;  %v10099_v49 = vld [vmem:[%s15220_s7 + $0xcd8] sm:$0xf0]  ;;  %v7794_v22 = vld [vmem:[%s15220_s7 + $0x1a0] sm:$0xf]  ;;  %v5759_v23 = vadd.f32 %v14480_v21, %v14144_v41 }
 0x353   :  { %6009 = vmatpush.bf16.msra.mxu0 %v9131_v51  ;;  %6022 = vmatpush.bf16.msra.mxu1 %v9355_v26  ;;  %v9243_v51 = vor.u32 %v10106_v2, %v9242_v14  ;;  %v8990_v26 = vld [vmem:[%s15220_s7 + $0xb00] sm:$0xf]  ;;  %v9851_v14 = vld [vmem:[%s15220_s7 + $0x51c] sm:$0xf]  ;;  %v8236_v2 = vld [vmem:[%s15220_s7 + $0x534] sm:$0xf0] }
 0x354   :  { %5965 = vmatmul.bf16.vlgmr.msrb.gmra.mxu0 %v12592_v35  ;;  %5978 = vmatmul.bf16.vlgmr.msrb.gmra.mxu1 %v12594_v36  ;;  %v5836_v32 = vpop.f32.mrf.mxu2  ;;  %v5849_v33 = vpop.f32.mrf.mxu3  ;;  %v8991_v13 = vor.u32 %v10043_v27, %v8990_v26  ;;  %v8018_v26 = vld [vmem:[%s15220_s7 + $0x360] sm:$0xf]  ;;  %v9799_v27 = vld [vmem:[%s15220_s7 + $0x378] sm:$0xf0]  ;;  %v8239_v21 = vor.u32 %v9851_v14, %v8236_v2  ;;  %v5772_v38 = vadd.f32 %v14482_v0, %v5759_v23 }
 0x356   :  { %6088 = vmatpush.bf16.msrb.mxu2 %v8659_v61  ;;  %6101 = vmatpush.bf16.msrb.mxu3 %v8883_v20  ;;  %v9215_v61 = vor.u32 %v10099_v49, %v9214_v63  ;;  %v8962_v20 = vld [vmem:[%s15220_s7 + $0xac8] sm:$0xf]  ;;  %v9844_v63 = vld [vmem:[%s15220_s7 + $0x4e4] sm:$0xf]  ;;  %v8208_v49 = vld [vmem:[%s15220_s7 + $0x4fc] sm:$0xf0] }
 0x357   :  { %6010 = vmatpush.bf16.msra.mxu0 %v9103_v52  ;;  %6023 = vmatpush.bf16.msra.mxu1 %v9327_v25  ;;  %v5837_v52 = vadd.f32 %v5836_v32, %v3172_v6  ;;  %v8019_v32 = vor.u32 %v9799_v27, %v8018_v26  ;;  %v9715_v27 = vld [vmem:[%s15220_s7 + $0xd8] sm:$0xf0] }
 0x359   :  { %v5760_v25 = vpop.f32.mrf.mxu0  ;;  %v5773_v42 = vpop.f32.mrf.mxu1  ;;  %v14539_v7 = vadd.f32 %v5849_v33, %v5837_v52  ;;  %v9900_v33 = vld [vmem:[%s15220_s7 + $0x6a4] sm:$0xf] }
 0x35a   :  { %6089 = vmatpush.bf16.msrb.mxu2 %v8631_v55  ;;  %6102 = vmatpush.bf16.msrb.mxu3 %v8855_v56  ;;  %v8934_v55 = vld [vmem:[%s15220_s7 + $0xa90] sm:$0xf]  ;;  %v8963_v56 = vor.u32 %v10036_v62, %v8962_v20  ;;  %v9736_v52 = vld [vmem:[%s15220_s7 + $0x180] sm:$0xf0]  ;;  %v7990_v25 = vld [vmem:[%s15220_s7 + $0x328] sm:$0xf]  ;;  %v8435_v0 = vor.u32 %v9900_v33, %v8432_v34 }
 0x35b   :  { %6011 = vmatpush.bf16.msra.mxu0 %v9075_v48  ;;  %6024 = vmatpush.bf16.msra.mxu1 %v9299_v53  ;;  %v9921_v48 = vld [vmem:[%s15220_s7 + $0x74c] sm:$0xf]  ;;  %v8516_v53 = vld [vmem:[%s15220_s7 + $0x764] sm:$0xf0]  ;;  %v8935_v6 = vor.u32 %v10029_v11, %v8934_v55  ;;  %v9792_v42 = vld [vmem:[%s15220_s7 + $0x340] sm:$0xf0]  ;;  %v7767_v62 = vor.u32 %v9736_v52, %v7766_v3 }
 0x35c   :  { %v8519_v58 = vor.u32 %v9921_v48, %v8516_v53  ;;  %v5838_v46 = vpop.f32.mrf.mxu2  ;;  %v8180_v20 = vld [vmem:[%s15220_s7 + $0x4c4] sm:$0xf0]  ;;  %v5785_v48 = vadd.f32 %v14310_v60, %v5772_v38  ;;  %v9729_v53 = vld [vmem:[%s15220_s7 + $0x148] sm:$0xf0]  ;;  %v9872_v33 = vld [vmem:[%s15220_s7 + $0x5c4] sm:$0xf] }
 0x35d   :  { %v7739_v11 = vor.u32 %v9729_v53, %v7738_v47  ;;  %v9778_v46 = vld [vmem:[%s15220_s7 + $0x2d0] sm:$0xf0]  ;;  %v8320_v34 = vld [vmem:[%s15220_s7 + $0x5dc] sm:$0xf0]  ;;  %v7654_v3 = vld [vmem:[%s15220_s7 + $0x88] sm:$0xf] }
 0x35e   :  { %6090 = vmatpush.bf16.msrb.mxu2 %v8603_v12  ;;  %6103 = vmatpush.bf16.msrb.mxu3 %v8827_v17  ;;  %v5851_v12 = vpop.f32.mrf.mxu3  ;;  %v8712_v17 = vld [vmem:[%s15220_s7 + $0x8ec] sm:$0xf0]  ;;  %v8292_v53 = vld [vmem:[%s15220_s7 + $0x5a4] sm:$0xf0] }
 0x35f   :  { %6012 = vmatpush.bf16.msra.mxu0 %v9047_v1  ;;  %6025 = vmatpush.bf16.msra.mxu1 %v9271_v4  ;;  %v9914_v1 = vld [vmem:[%s15220_s7 + $0x714] sm:$0xf]  ;;  %v8488_v4 = vld [vmem:[%s15220_s7 + $0x72c] sm:$0xf0]  ;;  %v8715_v41 = vor.u32 %v9970_v29, %v8712_v17  ;;  %v7934_v29 = vld [vmem:[%s15220_s7 + $0x2b8] sm:$0xf] }
 0x360   :  { %v7935_v23 = vor.u32 %v9778_v46, %v7934_v29  ;;  %v7598_v29 = vld [vmem:[%s15220_s7 + $0x18] sm:$0xf]  ;;  %v9694_v46 = vld [vmem:[%s15220_s7 + $0x30] sm:$0xf0] }
 0x362   :  { %6091 = vmatpush.bf16.msrb.mxu2 %v8575_v30  ;;  %6104 = vmatpush.bf16.msrb.mxu3 %v8799_v45  ;;  %v8491_v30 = vor.u32 %v9914_v1, %v8488_v4  ;;  %v8463_v45 = vor.u32 %v9907_v18, %v8460_v19  ;;  %v5798_v1 = vadd.f32 %v14312_v31, %v5785_v48  ;;  %v9722_v4 = vld [vmem:[%s15220_s7 + $0x110] sm:$0xf0]  ;;  %v9823_v31 = vld [vmem:[%s15220_s7 + $0x43c] sm:$0xf]  ;;  %v8124_v19 = vld [vmem:[%s15220_s7 + $0x454] sm:$0xf0] }
 0x363   :  { %6013 = vmatpush.bf16.msra.mxu0 %v9019_v24  ;;  %6026 = vmatpush.bf16.msra.mxu1 %v9243_v51  ;;  %v9159_v24 = vor.u32 %v10085_v57, %v9158_v5  ;;  %v9743_v51 = vld [vmem:[%s15220_s7 + $0x1b8] sm:$0xf0]  ;;  %v7963_v5 = vor.u32 %v9785_v9, %v7962_v54  ;;  %v9886_v57 = vld [vmem:[%s15220_s7 + $0x634] sm:$0xf]  ;;  %v9865_v48 = vld [vmem:[%s15220_s7 + $0x58c] sm:$0xf] }
 0x364   :  { %v7795_v43 = vor.u32 %v9743_v51, %v7794_v22  ;;  %v7682_v51 = vld [vmem:[%s15220_s7 + $0xc0] sm:$0xf]  ;;  %v7626_v54 = vld [vmem:[%s15220_s7 + $0x50] sm:$0xf] }
 0x366   :  { %6092 = vmatpush.bf16.msrb.mxu2 %v8547_v8  ;;  %6105 = vmatpush.bf16.msrb.mxu3 %v8771_v10  ;;  %v7991_v8 = vor.u32 %v9792_v42, %v7990_v25  ;;  %v9893_v10 = vld [vmem:[%s15220_s7 + $0x66c] sm:$0xf]  ;;  %v9708_v25 = vld [vmem:[%s15220_s7 + $0xa0] sm:$0xf0]  ;;  %v7878_v42 = vld [vmem:[%s15220_s7 + $0x248] sm:$0xf] }
 0x367   :  { %6014 = vmatpush.bf16.msra.mxu0 %v8991_v13  ;;  %6027 = vmatpush.bf16.msra.mxu1 %v9215_v61  ;;  %v8211_v13 = vor.u32 %v9844_v63, %v8208_v49  ;;  %v9837_v61 = vld [vmem:[%s15220_s7 + $0x4ac] sm:$0xf]  ;;  %v8407_v55 = vor.u32 %v9893_v10, %v8404_v44  ;;  %v9816_v63 = vld [vmem:[%s15220_s7 + $0x404] sm:$0xf]  ;;  %v8096_v49 = vld [vmem:[%s15220_s7 + $0x41c] sm:$0xf0]  ;;  %v7655_v44 = vor.u32 %v9708_v25, %v7654_v3 }
 0x368   :  { %v8183_v60 = vor.u32 %v9837_v61, %v8180_v20  ;;  %v8099_v20 = vor.u32 %v9816_v63, %v8096_v49  ;;  %v8068_v10 = vld [vmem:[%s15220_s7 + $0x3e4] sm:$0xf0]  ;;  %v10068_v63 = vld [vmem:[%s15220_s7 + $0xbe4] sm:$0xf]  ;;  %v9104_v49 = vld [vmem:[%s15220_s7 + $0xbfc] sm:$0xf0] }
 0x369   :  { %v8662_v3 = vld [vmem:[%s15220_s7 + $0x868] sm:$0xf]  ;;  %v9960_v25 = vld [vmem:[%s15220_s7 + $0x880] sm:$0xf0] }
 0x36a   :  { %6093 = vmatpush.bf16.msrb.mxu2 %v8519_v58  ;;  %6106 = vmatpush.bf16.msrb.mxu3 %v8743_v59  ;;  %v8376_v58 = vld [vmem:[%s15220_s7 + $0x64c] sm:$0xf0]  ;;  %v7710_v59 = vld [vmem:[%s15220_s7 + $0xf8] sm:$0xf] }
 0x36b   :  { %6015 = vmatpush.bf16.msra.mxu0 %v8963_v56  ;;  %6028 = vmatpush.bf16.msra.mxu1 %v9187_v28  ;;  %v9830_v56 = vld [vmem:[%s15220_s7 + $0x474] sm:$0xf]  ;;  %v8152_v28 = vld [vmem:[%s15220_s7 + $0x48c] sm:$0xf0]  ;;  %v8379_v18 = vor.u32 %v9886_v57, %v8376_v58  ;;  %v7711_v22 = vor.u32 %v9722_v4, %v7710_v59 }
 0x36c   :  { %v8155_v2 = vor.u32 %v9830_v56, %v8152_v28  ;;  %v9757_v56 = vld [vmem:[%s15220_s7 + $0x228] sm:$0xf0]  ;;  %v9802_v28 = vld [vmem:[%s15220_s7 + $0x394] sm:$0xf]  ;;  %v8040_v57 = vld [vmem:[%s15220_s7 + $0x3ac] sm:$0xf0] }
 0x36d   :  { %v9858_v58 = vld [vmem:[%s15220_s7 + $0x554] sm:$0xf]  ;;  %v8264_v59 = vld [vmem:[%s15220_s7 + $0x56c] sm:$0xf0] }
 0x36e   :  { %6094 = vmatpush.bf16.msrb.mxu2 %v8491_v30  ;;  %6107 = vmatpush.bf16.msrb.mxu3 %v8715_v41  ;;  %v7906_v30 = vld [vmem:[%s15220_s7 + $0x280] sm:$0xf]  ;;  %v9771_v41 = vld [vmem:[%s15220_s7 + $0x298] sm:$0xf0] }
 0x36f   :  { %6016 = vmatpush.bf16.msra.mxu0 %v8935_v6  ;;  %6029 = vmatpush.bf16.msra.mxu1 %v9159_v24  ;;  %v9879_v6 = vld [vmem:[%s15220_s7 + $0x5fc] sm:$0xf]  ;;  %v8348_v24 = vld [vmem:[%s15220_s7 + $0x614] sm:$0xf0] }
 0x371   :  { %6095 = vmatmul.bf16.vlgmr.msrb.gmra.mxu2 %v12863_v15  ;;  %6108 = vmatmul.bf16.vlgmr.msrb.gmra.mxu3 %v12865_v16  ;;  %v5810_v12 = vpop.f32.mrf.mxu0  ;;  %v5823_v17 = vpop.f32.mrf.mxu1 }
 0x372   :  { %6139 = vmatpush.bf16.msra.mxu2 %v7795_v43  ;;  %6152 = vmatpush.bf16.msra.mxu3 %v8019_v32  ;;  %v5811_v14 = vadd.f32 %v5810_v12, %v5798_v1  ;;  %v7683_v43 = vor.u32 %v9715_v27, %v7682_v51  ;;  %v7907_v32 = vor.u32 %v9771_v41, %v7906_v30  ;;  %v7822_v12 = vld [vmem:[%s15220_s7 + $0x1d8] sm:$0xf]  ;;  %v9967_v51 = vld [vmem:[%s15220_s7 + $0x8b8] sm:$0xf0] }
 0x373   :  { %6061 = vmatpush.bf16.msrb.mxu0 %v8239_v21  ;;  %6074 = vmatpush.bf16.msrb.mxu1 %v8463_v45  ;;  %v8127_v21 = vor.u32 %v9823_v31, %v8124_v19  ;;  %v8351_v45 = vor.u32 %v9879_v6, %v8348_v24  ;;  %v9132_v31 = vld [vmem:[%s15220_s7 + $0xc34] sm:$0xf0]  ;;  %v10131_v19 = vld [vmem:[%s15220_s7 + $0xddc] sm:$0xf]  ;;  %v8043_v6 = vor.u32 %v9802_v28, %v8040_v57  ;;  %v9048_v28 = vld [vmem:[%s15220_s7 + $0xb8c] sm:$0xf0] }
 0x374   :  { %6017 = vmatmul.bf16.vlgmr.msra.gmra.mxu0 %v13203_v39  ;;  %6030 = vmatmul.bf16.vlgmr.msra.gmra.mxu1 %v13205_v40  ;;  %v5824_v26 = vadd.f32 %v5823_v17, %v5811_v14  ;;  %v14727_v38 = vpop.f32.mrf.mxu2  ;;  %v14729_v52 = vpop.f32.mrf.mxu3  ;;  %v8267_v24 = vor.u32 %v9858_v58, %v8264_v59  ;;  %v10023_v27 = vld [vmem:[%s15220_s7 + $0xa78] sm:$0xf0]  ;;  %v7599_v30 = vor.u32 %v9694_v46, %v7598_v29  ;;  %v8606_v57 = vld [vmem:[%s15220_s7 + $0x7f8] sm:$0xf]  ;;  %v9946_v58 = vld [vmem:[%s15220_s7 + $0x810] sm:$0xf0] }
 0x375   :  { %v8830_v59 = vld [vmem:[%s15220_s7 + $0x9b8] sm:$0xf] }
 0x376   :  { %6140 = vmatpush.bf16.msra.mxu2 %v7767_v62  ;;  %6153 = vmatpush.bf16.msra.mxu3 %v7991_v8  ;;  %10141 = vtanh.f32 %v5824_v26  ;;  %v8323_v62 = vor.u32 %v9872_v33, %v8320_v34  ;;  %v9809_v8 = vld [vmem:[%s15220_s7 + $0x3cc] sm:$0xf]  ;;  %v8914_v26 = vld [vmem:[%s15220_s7 + $0xa60] sm:$0xf]  ;;  %v10124_v33 = vld [vmem:[%s15220_s7 + $0xda4] sm:$0xf] }
 0x377   :  { %6062 = vmatpush.bf16.msrb.mxu0 %v8211_v13  ;;  %6075 = vmatpush.bf16.msrb.mxu1 %v8435_v0  ;;  %v9764_v13 = vld [vmem:[%s15220_s7 + $0x260] sm:$0xf0]  ;;  %v9328_v34 = vld [vmem:[%s15220_s7 + $0xdbc] sm:$0xf0] }
 0x378   :  { %v7879_v47 = vor.u32 %v9764_v13, %v7878_v42  ;;  %v8886_v42 = vld [vmem:[%s15220_s7 + $0xa28] sm:$0xf]  ;;  %v10016_v13 = vld [vmem:[%s15220_s7 + $0xa40] sm:$0xf0] }
 0x379   :  { %v5812_v0 = vpop.f32.mrf.mxu0  ;;  %v5825_v61 = vpop.f32.mrf.mxu1 }
 0x37a   :  { %6141 = vmatpush.bf16.msra.mxu2 %v7739_v11  ;;  %6154 = vmatpush.bf16.msra.mxu3 %v7963_v5  ;;  %v8071_v11 = vor.u32 %v9809_v8, %v8068_v10  ;;  %v8295_v5 = vor.u32 %v9865_v48, %v8292_v53  ;;  %v9107_v0 = vor.u32 %v10068_v63, %v9104_v49  ;;  %v8634_v48 = vld [vmem:[%s15220_s7 + $0x830] sm:$0xf]  ;;  %v9953_v53 = vld [vmem:[%s15220_s7 + $0x848] sm:$0xf0]  ;;  %v10096_v49 = vld [vmem:[%s15220_s7 + $0xcc4] sm:$0xf] }
 0x37b   :  { %6063 = vmatpush.bf16.msrb.mxu0 %v8183_v60  ;;  %6076 = vmatpush.bf16.msrb.mxu1 %v8407_v55  ;;  %v9701_v60 = vld [vmem:[%s15220_s7 + $0x68] sm:$0xf0]  ;;  %v7850_v55 = vld [vmem:[%s15220_s7 + $0x210] sm:$0xf]  ;;  %v9331_v61 = vor.u32 %v10124_v33, %v9328_v34  ;;  %v8663_v8 = vor.u32 %v9960_v25, %v8662_v3  ;;  %v8887_v10 = vor.u32 %v10016_v13, %v8886_v42  ;;  %v9932_v3 = vld [vmem:[%s15220_s7 + $0x7a0] sm:$0xf0] }
 0x37c   :  { %v10142_v9 = vpop.eup %10141  ;;  %v7627_v1 = vor.u32 %v9701_v60, %v7626_v54  ;;  %v7851_v4 = vor.u32 %v9757_v56, %v7850_v55  ;;  %v5890_v17 = vpop.f32.mrf.mxu2  ;;  %v8858_v54 = vld [vmem:[%s15220_s7 + $0x9f0] sm:$0xf]  ;;  %v10054_v56 = vld [vmem:[%s15220_s7 + $0xb74] sm:$0xf]  ;;  %v8774_v25 = vld [vmem:[%s15220_s7 + $0x948] sm:$0xf] }
 0x37d   :  { %6252 = vst [vmem:[#allocation2 + $0x10] sm:$0xff] %v10142_v9  ;;  %v5903_v14 = vpop.f32.mrf.mxu3  ;;  %v10009_v9 = vld [vmem:[%s15220_s7 + $0xa08] sm:$0xf0]  ;;  %v9051_v46 = vor.u32 %v10054_v56, %v9048_v28  ;;  %v10047_v17 = vld [vmem:[%s15220_s7 + $0xb3c] sm:$0xf] }
 0x37e   :  { %6142 = vmatpush.bf16.msra.mxu2 %v7711_v22  ;;  %6155 = vmatpush.bf16.msra.mxu3 %v7935_v23  ;;  %v9356_v22 = vld [vmem:[%s15220_s7 + $0xdf4] sm:$0xf0]  ;;  %v8690_v23 = vld [vmem:[%s15220_s7 + $0x8a0] sm:$0xf]  ;;  %v9988_v42 = vld [vmem:[%s15220_s7 + $0x960] sm:$0xf0] }
 0x37f   :  { %6064 = vmatpush.bf16.msrb.mxu0 %v8155_v2  ;;  %6077 = vmatpush.bf16.msrb.mxu1 %v8379_v18  ;;  %v9750_v2 = vld [vmem:[%s15220_s7 + $0x1f0] sm:$0xf0]  ;;  %v10075_v18 = vld [vmem:[%s15220_s7 + $0xc1c] sm:$0xf]  ;;  %v9020_v14 = vld [vmem:[%s15220_s7 + $0xb54] sm:$0xf0] }
 0x380   :  { %v7823_v41 = vor.u32 %v9750_v2, %v7822_v12  ;;  %v8607_v2 = vor.u32 %v9946_v58, %v8606_v57  ;;  %v9981_v56 = vld [vmem:[%s15220_s7 + $0x928] sm:$0xf0] }
 0x382   :  { %6143 = vmatpush.bf16.msra.mxu2 %v7683_v43  ;;  %6156 = vmatpush.bf16.msra.mxu3 %v7907_v32  ;;  %v8691_v43 = vor.u32 %v9967_v51, %v8690_v23  ;;  %v8915_v32 = vor.u32 %v10023_v27, %v8914_v26  ;;  %v9939_v23 = vld [vmem:[%s15220_s7 + $0x7d8] sm:$0xf0]  ;;  %v14919_v51 = vld [vmem:[%s15221_s8] sm:$0x7f]  ;;  %v9023_v27 = vor.u32 %v10047_v17, %v9020_v14  ;;  %v8718_v14 = vld [vmem:[%s15220_s7 + $0x8d8] sm:$0xf] }
 0x383   :  { %6065 = vmatpush.bf16.msrb.mxu0 %v8127_v21  ;;  %6078 = vmatpush.bf16.msrb.mxu1 %v8351_v45  ;;  %v9135_v21 = vor.u32 %v10075_v18, %v9132_v31  ;;  %v9359_v45 = vor.u32 %v10131_v19, %v9356_v22  ;;  %v10103_v31 = vld [vmem:[%s15220_s7 + $0xcfc] sm:$0xf]  ;;  %v9244_v19 = vld [vmem:[%s15220_s7 + $0xd14] sm:$0xf0]  ;;  %v8578_v22 = vld [vmem:[%s15220_s7 + $0x7c0] sm:$0xf] }
 0x384   :  { %v3173_v26 = vperm.slane %v14919_v51, 4 }
 0x386   :  { %6144 = vmatpush.bf16.msra.mxu2 %v7655_v44  ;;  %6157 = vmatpush.bf16.msra.mxu3 %v7879_v47  ;;  %v10117_v44 = vld [vmem:[%s15220_s7 + $0xd6c] sm:$0xf]  ;;  %v9300_v47 = vld [vmem:[%s15220_s7 + $0xd84] sm:$0xf0] }
 0x387   :  { %6066 = vmatpush.bf16.msrb.mxu0 %v8099_v20  ;;  %6079 = vmatpush.bf16.msrb.mxu1 %v8323_v62  ;;  %v10061_v20 = vld [vmem:[%s15220_s7 + $0xbac] sm:$0xf]  ;;  %v9076_v62 = vld [vmem:[%s15220_s7 + $0xbc4] sm:$0xf0]  ;;  %v9303_v55 = vor.u32 %v10117_v44, %v9300_v47 }
 0x388   :  { %v9079_v60 = vor.u32 %v10061_v20, %v9076_v62 }
 0x38a   :  { %6145 = vmatpush.bf16.msra.mxu2 %v7627_v1  ;;  %6158 = vmatpush.bf16.msra.mxu3 %v7851_v4  ;;  %v10002_v1 = vld [vmem:[%s15220_s7 + $0x9d0] sm:$0xf0] }
 0x38b   :  { %6067 = vmatpush.bf16.msrb.mxu0 %v8071_v11  ;;  %6080 = vmatpush.bf16.msrb.mxu1 %v8295_v5  ;;  %v8635_v11 = vor.u32 %v9953_v53, %v8634_v48  ;;  %v8859_v5 = vor.u32 %v10009_v9, %v8858_v54  ;;  %v8831_v18 = vor.u32 %v10002_v1, %v8830_v59  ;;  %v10089_v53 = vld [vmem:[%s15220_s7 + $0xc8c] sm:$0xf]  ;;  %v9188_v54 = vld [vmem:[%s15220_s7 + $0xca4] sm:$0xf0]  ;;  %v8522_v9 = vld [vmem:[%s15220_s7 + $0x750] sm:$0xf] }
 0x38c   :  { %v8775_v48 = vor.u32 %v9988_v42, %v8774_v25  ;;  %v9160_v59 = vld [vmem:[%s15220_s7 + $0xc6c] sm:$0xf0]  ;;  %v8494_v1 = vld [vmem:[%s15220_s7 + $0x718] sm:$0xf] }
 0x38e   :  { %6146 = vmatpush.bf16.msra.mxu2 %v7599_v30  ;;  %6159 = vmatpush.bf16.msra.mxu3 %v7823_v41  ;;  %v9247_v30 = vor.u32 %v10103_v31, %v9244_v19  ;;  %v10040_v41 = vld [vmem:[%s15220_s7 + $0xb04] sm:$0xf]  ;;  %v9855_v31 = vld [vmem:[%s15220_s7 + $0x538] sm:$0xf0]  ;;  %v8466_v19 = vld [vmem:[%s15220_s7 + $0x6e0] sm:$0xf] }
 0x38f   :  { %6068 = vmatpush.bf16.msrb.mxu0 %v8043_v6  ;;  %6081 = vmatpush.bf16.msrb.mxu1 %v8267_v24  ;;  %v8802_v6 = vld [vmem:[%s15220_s7 + $0x980] sm:$0xf]  ;;  %v9995_v24 = vld [vmem:[%s15220_s7 + $0x998] sm:$0xf0] }
 0x390   :  { %v8803_v63 = vor.u32 %v9995_v24, %v8802_v6 }
 0x391   :  { %6147 = vmatmul.bf16.vlgmr.msra.gmra.mxu2 %v12486_v50  ;;  %6160 = vmatmul.bf16.vlgmr.msra.gmra.mxu3 %v12488_v37  ;;  %v10110_v50 = vld [vmem:[%s15220_s7 + $0xd34] sm:$0xf]  ;;  %v9272_v37 = vld [vmem:[%s15220_s7 + $0xd4c] sm:$0xf0]  ;;  %v14888_v4 = vpop.f32.mrf.mxu0  ;;  %v14890_v29 = vpop.f32.mrf.mxu1 }
 0x392   :  { %6191 = vmatpush.bf16.msrb.mxu2 %v8691_v43  ;;  %6204 = vmatpush.bf16.msrb.mxu3 %v8915_v32  ;;  %v9275_v12 = vor.u32 %v10110_v50, %v9272_v37  ;;  %v9216_v43 = vld [vmem:[%s15220_s7 + $0xcdc] sm:$0xf0]  ;;  %v8550_v32 = vld [vmem:[%s15220_s7 + $0x788] sm:$0xf]  ;;  %v8936_v50 = vld [vmem:[%s15220_s7 + $0xaac] sm:$0xf0] }
 0x393   :  { %6113 = vmatpush.bf16.msra.mxu0 %v9135_v21  ;;  %6126 = vmatpush.bf16.msra.mxu1 %v9359_v45  ;;  %v8992_v21 = vld [vmem:[%s15220_s7 + $0xb1c] sm:$0xf0]  ;;  %v8579_v45 = vor.u32 %v9939_v23, %v8578_v22  ;;  %v9219_v62 = vor.u32 %v10096_v49, %v9216_v43  ;;  %v8551_v47 = vor.u32 %v9932_v3, %v8550_v32  ;;  %v10082_v37 = vld [vmem:[%s15220_s7 + $0xc54] sm:$0xf]  ;;  %v9911_v22 = vld [vmem:[%s15220_s7 + $0x6f8] sm:$0xf0] }
 0x394   :  { %6069 = vmatmul.bf16.vlgmr.msrb.gmra.mxu0 %v12592_v35  ;;  %6082 = vmatmul.bf16.vlgmr.msrb.gmra.mxu1 %v12594_v36  ;;  %v5940_v33 = vpop.f32.mrf.mxu2  ;;  %v5953_v34 = vpop.f32.mrf.mxu3  ;;  %v8995_v20 = vor.u32 %v10040_v41, %v8992_v21  ;;  %v5863_v23 = vadd.f32 %v14888_v4, %v14539_v7  ;;  %v9163_v24 = vor.u32 %v10082_v37, %v9160_v59  ;;  %v8214_v21 = vld [vmem:[%s15220_s7 + $0x4e8] sm:$0xf]  ;;  %v9904_v4 = vld [vmem:[%s15220_s7 + $0x6c0] sm:$0xf0]  ;;  %v8186_v32 = vld [vmem:[%s15220_s7 + $0x4b0] sm:$0xf] }
 0x395   :  { %v5941_v13 = vadd.f32 %v5940_v33, %v3173_v26  ;;  %v8467_v41 = vor.u32 %v9911_v22, %v8466_v19  ;;  %v8438_v7 = vld [vmem:[%s15220_s7 + $0x6a8] sm:$0xf]  ;;  %v8410_v33 = vld [vmem:[%s15220_s7 + $0x670] sm:$0xf]  ;;  %v9806_v19 = vld [vmem:[%s15220_s7 + $0x3b0] sm:$0xf0] }
 0x396   :  { %6192 = vmatpush.bf16.msrb.mxu2 %v8663_v8  ;;  %6205 = vmatpush.bf16.msrb.mxu3 %v8887_v10  ;;  %v10033_v8 = vld [vmem:[%s15220_s7 + $0xacc] sm:$0xf]  ;;  %v8964_v10 = vld [vmem:[%s15220_s7 + $0xae4] sm:$0xf0]  ;;  %v8439_v43 = vor.u32 %v9904_v4, %v8438_v7  ;;  %v8270_v22 = vld [vmem:[%s15220_s7 + $0x558] sm:$0xf] }
 0x397   :  { %6114 = vmatpush.bf16.msra.mxu0 %v9107_v0  ;;  %6127 = vmatpush.bf16.msra.mxu1 %v9331_v61  ;;  %v14952_v44 = vadd.f32 %v5953_v34, %v5941_v13  ;;  %v8967_v28 = vor.u32 %v10033_v8, %v8964_v10  ;;  %v9897_v34 = vld [vmem:[%s15220_s7 + $0x688] sm:$0xf0]  ;;  %v8158_v13 = vld [vmem:[%s15220_s7 + $0x478] sm:$0xf] }
 0x398   :  { %v8411_v42 = vor.u32 %v9897_v34, %v8410_v33  ;;  %v9082_v34 = vld [vmem:[%s15220_s7 + $0xbb0] sm:$0xf] }
 0x399   :  { %v5864_v0 = vpop.f32.mrf.mxu0  ;;  %v5877_v61 = vpop.f32.mrf.mxu1 }
 0x39a   :  { %6193 = vmatpush.bf16.msrb.mxu2 %v8635_v11  ;;  %6206 = vmatpush.bf16.msrb.mxu3 %v8859_v5  ;;  %v9191_v11 = vor.u32 %v10089_v53, %v9188_v54  ;;  %v10026_v5 = vld [vmem:[%s15220_s7 + $0xa94] sm:$0xf]  ;;  %v8354_v53 = vld [vmem:[%s15220_s7 + $0x600] sm:$0xf] }
 0x39b   :  { %6115 = vmatpush.bf16.msra.mxu0 %v9079_v60  ;;  %6128 = vmatpush.bf16.msra.mxu1 %v9303_v55  ;;  %v9925_v60 = vld [vmem:[%s15220_s7 + $0x768] sm:$0xf0]  ;;  %v8746_v55 = vld [vmem:[%s15220_s7 + $0x910] sm:$0xf]  ;;  %v8939_v6 = vor.u32 %v10026_v5, %v8936_v50  ;;  %v9834_v0 = vld [vmem:[%s15220_s7 + $0x490] sm:$0xf0] }
 0x39c   :  { %v8523_v57 = vor.u32 %v9925_v60, %v8522_v9  ;;  %v8747_v58 = vor.u32 %v9981_v56, %v8746_v55  ;;  %v5955_v17 = vpop.f32.mrf.mxu3  ;;  %v8159_v8 = vor.u32 %v9834_v0, %v8158_v13  ;;  %v8102_v55 = vld [vmem:[%s15220_s7 + $0x408] sm:$0xf]  ;;  %v9820_v56 = vld [vmem:[%s15220_s7 + $0x420] sm:$0xf0] }
 0x39d   :  { %v9869_v17 = vld [vmem:[%s15220_s7 + $0x5a8] sm:$0xf0] }
 0x39e   :  { %6194 = vmatpush.bf16.msrb.mxu2 %v8607_v2  ;;  %6207 = vmatpush.bf16.msrb.mxu3 %v8831_v18  ;;  %v9974_v2 = vld [vmem:[%s15220_s7 + $0x8f0] sm:$0xf0]  ;;  %v8242_v18 = vld [vmem:[%s15220_s7 + $0x520] sm:$0xf] }
 0x39f   :  { %6116 = vmatpush.bf16.msra.mxu0 %v9051_v46  ;;  %6129 = vmatpush.bf16.msra.mxu1 %v9275_v12  ;;  %v9918_v46 = vld [vmem:[%s15220_s7 + $0x730] sm:$0xf0]  ;;  %v5942_v12 = vpop.f32.mrf.mxu2 }
 0x3a0   :  { %v8495_v26 = vor.u32 %v9918_v46, %v8494_v1  ;;  %v8074_v1 = vld [vmem:[%s15220_s7 + $0x3d0] sm:$0xf]  ;;  %v9813_v46 = vld [vmem:[%s15220_s7 + $0x3e8] sm:$0xf0] }
 0x3a1   :  { %v8298_v12 = vld [vmem:[%s15220_s7 + $0x590] sm:$0xf] }
 0x3a2   :  { %6195 = vmatpush.bf16.msrb.mxu2 %v8579_v45  ;;  %6208 = vmatpush.bf16.msrb.mxu3 %v8803_v63  ;;  %v9848_v45 = vld [vmem:[%s15220_s7 + $0x500] sm:$0xf0]  ;;  %v5876_v63 = vadd.f32 %v14890_v29, %v5863_v23  ;;  %v9841_v29 = vld [vmem:[%s15220_s7 + $0x4c8] sm:$0xf0]  ;;  %v9862_v23 = vld [vmem:[%s15220_s7 + $0x570] sm:$0xf0] }
 0x3a3   :  { %6117 = vmatpush.bf16.msra.mxu0 %v9023_v27  ;;  %6130 = vmatpush.bf16.msra.mxu1 %v9247_v30  ;;  %v8719_v27 = vor.u32 %v9974_v2, %v8718_v14  ;;  %v8243_v30 = vor.u32 %v9855_v31, %v8242_v18  ;;  %v8215_v49 = vor.u32 %v9848_v45, %v8214_v21  ;;  %v8046_v31 = vld [vmem:[%s15220_s7 + $0x398] sm:$0xf] }
 0x3a4   :  { %v5889_v3 = vadd.f32 %v14727_v38, %v5876_v63  ;;  %v8187_v25 = vor.u32 %v9841_v29, %v8186_v32  ;;  %v8382_v38 = vld [vmem:[%s15220_s7 + $0x638] sm:$0xf]  ;;  %v8075_v2 = vor.u32 %v9813_v46, %v8074_v1  ;;  %v8299_v18 = vor.u32 %v9869_v17, %v8298_v12  ;;  %v9110_v63 = vld [vmem:[%s15220_s7 + $0xbe8] sm:$0xf]  ;;  %v10128_v32 = vld [vmem:[%s15220_s7 + $0xdc0] sm:$0xf0] }
 0x3a5   :  { %v8047_v21 = vor.u32 %v9806_v19, %v8046_v31  ;;  %v8271_v45 = vor.u32 %v9862_v23, %v8270_v22  ;;  %v8970_v46 = vld [vmem:[%s15220_s7 + $0xad0] sm:$0xf]  ;;  %v10037_v12 = vld [vmem:[%s15220_s7 + $0xae8] sm:$0xf0]  ;;  %v8942_v19 = vld [vmem:[%s15220_s7 + $0xa98] sm:$0xf] }
 0x3a6   :  { %6196 = vmatpush.bf16.msrb.mxu2 %v8551_v47  ;;  %6209 = vmatpush.bf16.msrb.mxu3 %v8775_v48  ;;  %v8130_v47 = vld [vmem:[%s15220_s7 + $0x440] sm:$0xf]  ;;  %v9827_v48 = vld [vmem:[%s15220_s7 + $0x458] sm:$0xf0]  ;;  %v9194_v17 = vld [vmem:[%s15220_s7 + $0xc90] sm:$0xf] }
 0x3a7   :  { %6118 = vmatpush.bf16.msra.mxu0 %v8995_v20  ;;  %6131 = vmatpush.bf16.msra.mxu1 %v9219_v62  ;;  %v8131_v9 = vor.u32 %v9827_v48, %v8130_v47  ;;  %v9250_v47 = vld [vmem:[%s15220_s7 + $0xd00] sm:$0xf]  ;;  %v10107_v48 = vld [vmem:[%s15220_s7 + $0xd18] sm:$0xf0]  ;;  %v10030_v22 = vld [vmem:[%s15220_s7 + $0xab0] sm:$0xf0] }
 0x3a8   :  { %v9166_v23 = vld [vmem:[%s15220_s7 + $0xc58] sm:$0xf] }
 0x3aa   :  { %6197 = vmatpush.bf16.msrb.mxu2 %v8523_v57  ;;  %6210 = vmatpush.bf16.msrb.mxu3 %v8747_v58  ;;  %v8103_v58 = vor.u32 %v9820_v56, %v8102_v55  ;;  %v9222_v55 = vld [vmem:[%s15220_s7 + $0xcc8] sm:$0xf]  ;;  %v10100_v56 = vld [vmem:[%s15220_s7 + $0xce0] sm:$0xf0] }
 0x3ab   :  { %6119 = vmatpush.bf16.msra.mxu0 %v8967_v28  ;;  %6132 = vmatpush.bf16.msra.mxu1 %v9191_v11  ;;  %v8326_v28 = vld [vmem:[%s15220_s7 + $0x5c8] sm:$0xf]  ;;  %v9876_v11 = vld [vmem:[%s15220_s7 + $0x5e0] sm:$0xf0]  ;;  %v9223_v1 = vor.u32 %v10100_v56, %v9222_v55 }
 0x3ac   :  { %v8327_v59 = vor.u32 %v9876_v11, %v8326_v28 }
 0x3ae   :  { %6198 = vmatpush.bf16.msrb.mxu2 %v8495_v26  ;;  %6211 = vmatpush.bf16.msrb.mxu3 %v8719_v27  ;;  %v10079_v27 = vld [vmem:[%s15220_s7 + $0xc38] sm:$0xf0] }
 0x3af   :  { %6120 = vmatpush.bf16.msra.mxu0 %v8939_v6  ;;  %6133 = vmatpush.bf16.msra.mxu1 %v9163_v24  ;;  %v9138_v6 = vld [vmem:[%s15220_s7 + $0xc20] sm:$0xf] }
 0x3b0   :  { %v9139_v7 = vor.u32 %v10079_v27, %v9138_v6  ;;  %v10086_v6 = vld [vmem:[%s15220_s7 + $0xc70] sm:$0xf0]  ;;  %v8943_v27 = vor.u32 %v10030_v22, %v8942_v19 }
 0x3b1   :  { %6199 = vmatmul.bf16.vlgmr.msrb.gmra.mxu2 %v12863_v15  ;;  %6212 = vmatmul.bf16.vlgmr.msrb.gmra.mxu3 %v12865_v16  ;;  %v9890_v15 = vld [vmem:[%s15220_s7 + $0x650] sm:$0xf0]  ;;  %v5902_v16 = vadd.f32 %v14729_v52, %v5889_v3  ;;  %v5914_v61 = vpop.f32.mrf.mxu0  ;;  %v5927_v20 = vpop.f32.mrf.mxu1  ;;  %v9883_v52 = vld [vmem:[%s15220_s7 + $0x618] sm:$0xf0]  ;;  %v10065_v3 = vld [vmem:[%s15220_s7 + $0xbc8] sm:$0xf0] }
 0x3b2   :  { %6121 = vmatmul.bf16.vlgmr.msra.gmra.mxu0 %v13203_v39  ;;  %6134 = vmatmul.bf16.vlgmr.msra.gmra.mxu1 %v13205_v40  ;;  %v8383_v10 = vor.u32 %v9890_v15, %v8382_v38  ;;  %v8355_v60 = vor.u32 %v9883_v52, %v8354_v53  ;;  %v9083_v13 = vor.u32 %v10065_v3, %v9082_v34  ;;  %v9054_v38 = vld [vmem:[%s15220_s7 + $0xb78] sm:$0xf]  ;;  %v10058_v15 = vld [vmem:[%s15220_s7 + $0xb90] sm:$0xf0] }
 0x3b3   :  { %6165 = vmatpush.bf16.msrb.mxu0 %v8243_v30  ;;  %6178 = vmatpush.bf16.msrb.mxu1 %v8467_v41  ;;  %v5915_v62 = vadd.f32 %v5914_v61, %v5902_v16  ;;  %v9362_v30 = vld [vmem:[%s15220_s7 + $0xde0] sm:$0xf]  ;;  %v10135_v41 = vld [vmem:[%s15220_s7 + $0xdf8] sm:$0xf0]  ;;  %v9278_v16 = vld [vmem:[%s15220_s7 + $0xd38] sm:$0xf]  ;;  %v9251_v52 = vor.u32 %v10107_v48, %v9250_v47 }
 0x3b4   :  { %v15077_v5 = vpop.f32.mrf.mxu2  ;;  %v15079_v50 = vpop.f32.mrf.mxu3  ;;  %v9363_v4 = vor.u32 %v10135_v41, %v9362_v30  ;;  %v9167_v30 = vor.u32 %v10086_v6, %v9166_v23 }
 0x3b5   :  { %v5928_v54 = vadd.f32 %v5927_v20, %v5915_v62  ;;  %v9055_v20 = vor.u32 %v10058_v15, %v9054_v38 }
 0x3b7   :  { %6166 = vmatpush.bf16.msrb.mxu0 %v8215_v49  ;;  %6179 = vmatpush.bf16.msrb.mxu1 %v8439_v43  ;;  %10143 = vtanh.f32 %v5928_v54  ;;  %v10072_v49 = vld [vmem:[%s15220_s7 + $0xc00] sm:$0xf0]  ;;  %v9334_v43 = vld [vmem:[%s15220_s7 + $0xda8] sm:$0xf]  ;;  %v3174_v54 = vperm.slane %v14919_v51, 5 }
 0x3b8   :  { %v9111_v29 = vor.u32 %v10072_v49, %v9110_v63  ;;  %v9335_v33 = vor.u32 %v10128_v32, %v9334_v43 }
 0x3b9   :  { %v5916_v37 = vpop.f32.mrf.mxu0  ;;  %v5929_v57 = vpop.f32.mrf.mxu1 }
 0x3bb   :  { %6167 = vmatpush.bf16.msrb.mxu0 %v8187_v25  ;;  %6180 = vmatpush.bf16.msrb.mxu1 %v8411_v42  ;;  %v9306_v25 = vld [vmem:[%s15220_s7 + $0xd70] sm:$0xf]  ;;  %v10121_v42 = vld [vmem:[%s15220_s7 + $0xd88] sm:$0xf0] }
 0x3bc   :  { %v5994_v24 = vpop.f32.mrf.mxu2  ;;  %v6007_v26 = vpop.f32.mrf.mxu3  ;;  %v9307_v0 = vor.u32 %v10121_v42, %v9306_v25 }
 0x3bd   :  { %v10144_v14 = vpop.eup %10143 }
 0x3be   :  { %6253 = vst [vmem:[#allocation2 + $0x18] sm:$0xff] %v10144_v14  ;;  %v10093_v14 = vld [vmem:[%s15220_s7 + $0xca8] sm:$0xf0] }
 0x3bf   :  { %6168 = vmatpush.bf16.msrb.mxu0 %v8159_v8  ;;  %6181 = vmatpush.bf16.msrb.mxu1 %v8383_v10  ;;  %v9026_v8 = vld [vmem:[%s15220_s7 + $0xb40] sm:$0xf]  ;;  %v10051_v10 = vld [vmem:[%s15220_s7 + $0xb58] sm:$0xf0]  ;;  %v9195_v31 = vor.u32 %v10093_v14, %v9194_v17 }
 0x3c0   :  { %v9027_v53 = vor.u32 %v10051_v10, %v9026_v8 }
 0x3c3   :  { %6169 = vmatpush.bf16.msrb.mxu0 %v8131_v9  ;;  %6182 = vmatpush.bf16.msrb.mxu1 %v8355_v60  ;;  %v8998_v9 = vld [vmem:[%s15220_s7 + $0xb08] sm:$0xf]  ;;  %v10044_v60 = vld [vmem:[%s15220_s7 + $0xb20] sm:$0xf0] }
 0x3c7   :  { %6170 = vmatpush.bf16.msrb.mxu0 %v8103_v58  ;;  %6183 = vmatpush.bf16.msrb.mxu1 %v8327_v59  ;;  %v8999_v59 = vor.u32 %v10044_v60, %v8998_v9 }
 0x3cb   :  { %6171 = vmatpush.bf16.msrb.mxu0 %v8075_v2  ;;  %6184 = vmatpush.bf16.msrb.mxu1 %v8299_v18  ;;  %v8971_v18 = vor.u32 %v10037_v12, %v8970_v46 }
 0x3cf   :  { %6172 = vmatpush.bf16.msrb.mxu0 %v8047_v21  ;;  %6185 = vmatpush.bf16.msrb.mxu1 %v8271_v45 }
 0x3d1   :  { %v5979_v61 = vpop.f32.mrf.mxu1 }
 0x3d2   :  { %6173 = vmatmul.bf16.vlgmr.msrb.gmra.mxu0 %v12592_v35  ;;  %6186 = vmatmul.bf16.vlgmr.msrb.gmra.mxu1 %v12594_v36  ;;  %v10114_v35 = vld [vmem:[%s15220_s7 + $0xd50] sm:$0xf0]  ;;  %v5966_v36 = vpop.f32.mrf.mxu0  ;;  %s10180_s7 = smov [#allocation2]  }
 0x3d3   :  { %6217 = vmatpush.bf16.msra.mxu0 %v9139_v7  ;;  %6230 = vmatpush.bf16.msra.mxu1 %v9363_v4  ;;  %v9279_v62 = vor.u32 %v10114_v35, %v9278_v16  ;;  %v5967_v41 = vadd.f32 %v5966_v36, %v14952_v44  ;;  %s6263_s2 = sshll.u32 %s10180_s7, 4  ;;  %s6264_s2 = int_to_ptr.vmem [resolvable:$true] %s6263_s2 }
 0x3d4   :  { %v6044_v28 = vpop.f32.mrf.mxu2  ;;  %v6057_v11 = vpop.f32.mrf.mxu3 }
 0x3d5   :  { %v6045_v37 = vadd.f32 %v6044_v28, %v3174_v54  ;;  %v5980_v21 = vadd.f32 %v5979_v61, %v5967_v41 }
 0x3d7   :  { %6218 = vmatpush.bf16.msra.mxu0 %v9111_v29  ;;  %6231 = vmatpush.bf16.msra.mxu1 %v9335_v33  ;;  %v6058_v2 = vadd.f32 %v6057_v11, %v6045_v37  ;;  %v5993_v45 = vadd.f32 %v15077_v5, %v5980_v21 }
 0x3d9   :  { %v5981_v58 = vpop.f32.mrf.mxu1  ;;  %v6006_v7 = vadd.f32 %v15079_v50, %v5993_v45 }
 0x3da   :  { %v5968_v57 = vpop.f32.mrf.mxu0 }
 0x3db   :  { %6219 = vmatpush.bf16.msra.mxu0 %v9083_v13  ;;  %6232 = vmatpush.bf16.msra.mxu1 %v9307_v0 }
 0x3dc   :  { %v6046_v24 = vpop.f32.mrf.mxu2  ;;  %v6059_v26 = vpop.f32.mrf.mxu3 }
 0x3df   :  { %6220 = vmatpush.bf16.msra.mxu0 %v9055_v20  ;;  %6233 = vmatpush.bf16.msra.mxu1 %v9279_v62 }
 0x3e3   :  { %6221 = vmatpush.bf16.msra.mxu0 %v9027_v53  ;;  %6234 = vmatpush.bf16.msra.mxu1 %v9251_v52 }
 0x3e7   :  { %6222 = vmatpush.bf16.msra.mxu0 %v8999_v59  ;;  %6235 = vmatpush.bf16.msra.mxu1 %v9223_v1 }
 0x3eb   :  { %6223 = vmatpush.bf16.msra.mxu0 %v8971_v18  ;;  %6236 = vmatpush.bf16.msra.mxu1 %v9195_v31 }
 0x3ef   :  { %6224 = vmatpush.bf16.msra.mxu0 %v8943_v27  ;;  %6237 = vmatpush.bf16.msra.mxu1 %v9167_v30 }
 0x3f1   :  { %v6018_v4 = vpop.f32.mrf.mxu0  ;;  %v6031_v63 = vpop.f32.mrf.mxu1 }
 0x3f2   :  { %6225 = vmatmul.bf16.vlgmr.msra.gmra.mxu0 %v13203_v39  ;;  %6238 = vmatmul.bf16.vlgmr.msra.gmra.mxu1 %v13205_v40  ;;  %v6019_v49 = vadd.f32 %v6018_v4, %v6006_v7  ;;  %v3175_v40 = vperm.slane %v14919_v51, 6 }
 0x3f4   :  { %v6032_v43 = vadd.f32 %v6031_v63, %v6019_v49  ;;  %v6096_v32 = vpop.f32.mrf.mxu2  ;;  %v6109_v29 = vpop.f32.mrf.mxu3 }
 0x3f6   :  { %10145 = vtanh.f32 %v6032_v43 }
 0x3f9   :  { %v6020_v33 = vpop.f32.mrf.mxu0  ;;  %v6033_v44 = vpop.f32.mrf.mxu1 }
 0x3fc   :  { %v10146_v34 = vpop.eup %10145  ;;  %v6098_v3 = vpop.f32.mrf.mxu2 }
 0x3fd   :  { %6254 = vst [vmem:[#allocation2 + $0x20] sm:$0xff] %v10146_v34  ;;  %v6111_v25 = vpop.f32.mrf.mxu3 }
 0x411   :  { %v6070_v39 = vpop.f32.mrf.mxu0  ;;  %v6083_v42 = vpop.f32.mrf.mxu1 }
 0x412   :  { %v6071_v36 = vadd.f32 %v6070_v39, %v6058_v2 }
 0x414   :  { %v6148_v5 = vpop.f32.mrf.mxu2  ;;  %v6161_v13 = vpop.f32.mrf.mxu3  ;;  %v6084_v61 = vadd.f32 %v6083_v42, %v6071_v36 }
 0x415   :  { %v6149_v50 = vadd.f32 %v6148_v5, %v3175_v40 }
 0x416   :  { %v6097_v20 = vadd.f32 %v6096_v32, %v6084_v61 }
 0x417   :  { %v6162_v15 = vadd.f32 %v6161_v13, %v6149_v50 }
 0x418   :  { %v6110_v62 = vadd.f32 %v6109_v29, %v6097_v20 }
 0x419   :  { %v6072_v0 = vpop.f32.mrf.mxu0  ;;  %v6085_v38 = vpop.f32.mrf.mxu1 }
 0x41c   :  { %v6150_v16 = vpop.f32.mrf.mxu2  ;;  %v6163_v35 = vpop.f32.mrf.mxu3 }
 0x42f   :  { %v6122_v8 = vpop.f32.mrf.mxu0  ;;  %v6135_v10 = vpop.f32.mrf.mxu1 }
 0x430   :  { %v6123_v47 = vadd.f32 %v6122_v8, %v6110_v62 }
 0x432   :  { %v6136_v48 = vadd.f32 %v6135_v10, %v6123_v47 }
 0x434   :  { %10147 = vtanh.f32 %v6136_v48  ;;  %v6200_v53 = vpop.f32.mrf.mxu2  ;;  %v6213_v52 = vpop.f32.mrf.mxu3 }
 0x437   :  { %v6124_v51 = vpop.f32.mrf.mxu0  ;;  %v6137_v54 = vpop.f32.mrf.mxu1 }
 0x43a   :  { %v10148_v9 = vpop.eup %10147 }
 0x43b   :  { %6255 = vst [vmem:[#allocation2 + $0x28] sm:$0xff] %v10148_v9 }
 0x43c   :  { %v6202_v60 = vpop.f32.mrf.mxu2  ;;  %v6215_v55 = vpop.f32.mrf.mxu3 }
 0x44f   :  { %v6174_v56 = vpop.f32.mrf.mxu0  ;;  %v6187_v28 = vpop.f32.mrf.mxu1 }
 0x450   :  { %v6175_v57 = vadd.f32 %v6174_v56, %v6162_v15 }
 0x452   :  { %v6188_v58 = vadd.f32 %v6187_v28, %v6175_v57 }
 0x454   :  { %v6201_v59 = vadd.f32 %v6200_v53, %v6188_v58 }
 0x456   :  { %v6214_v1 = vadd.f32 %v6213_v52, %v6201_v59 }
 0x457   :  { %v6176_v11 = vpop.f32.mrf.mxu0  ;;  %v6189_v37 = vpop.f32.mrf.mxu1 }
 0x46f   :  { %v6226_v46 = vpop.f32.mrf.mxu0  ;;  %v6239_v12 = vpop.f32.mrf.mxu1 }
 0x470   :  { %v6227_v17 = vadd.f32 %v6226_v46, %v6214_v1 }
 0x472   :  { %v6240_v14 = vadd.f32 %v6239_v12, %v6227_v17 }
 0x474   :  { %10149 = vtanh.f32 %v6240_v14 }
 0x477   :  { %v6228_v2 = vpop.f32.mrf.mxu0  ;;  %v6241_v18 = vpop.f32.mrf.mxu1 }
 0x47a   :  { %v10150_v31 = vpop.eup %10149 }
 0x47b   :  { %6257 = vst.msk [vmem:[#allocation2 + $0x30] sm:$0xff] %vm6256_vm6, %v10150_v31 }
 0x47c   :  { %6268 = dma.vmem_to_hbm [thread:$0]  %s6264_s2, 896, %s6266_s4, [#allocation3]  }
 0x47d   :  { %10178 = dma.done.wait [#allocation3], 896  }
 0x47e   :  { %10179 = vsyncadd [#allocation3], 4294966400 }
 0x47f   :  { %6273 = vsyncpa [#allocation3], 1 }

// kernel: tpu_custom_call.1
= control target key start
LH: loop header
LB: loop body
LE: loop exit
PB: predicated region body
PF: predicated region fallthrough
CT: control target
= control target key end

     0   :  { %vm66_vm0 = vcmask 261120   ;;  %s15213_s0 = inlined_call_operand.vmem [shape: f32[8,32], index: 0, kind: input, shape index: {}]   ;;  %s15214_s1 = inlined_call_operand.vmem [shape: bf16[32,256], index: 1, kind: input, shape index: {}]   ;;  %s15215_s2 = inlined_call_operand.vmem [shape: f32[1,256], index: 2, kind: input, shape index: {}]   ;;  %s15216_s3 = inlined_call_operand.vmem [shape: bf16[256,512], index: 3, kind: input, shape index: {}]   ;;  %s15217_s4 = inlined_call_operand.vmem [shape: f32[1,512], index: 4, kind: input, shape index: {}]   ;;  %s15218_s5 = inlined_call_operand.vmem [shape: bf16[512,1024], index: 5, kind: input, shape index: {}]   ;;  %s15219_s6 = inlined_call_operand.vmem [shape: f32[1,1024], index: 6, kind: input, shape index: {}]   ;;  %s15220_s7 = inlined_call_operand.vmem [shape: bf16[1024,784], index: 7, kind: input, shape index: {}]   ;;  %s15221_s8 = inlined_call_operand.vmem [shape: f32[1,784], index: 8, kind: input, shape index: {}]   ;;  %s15222_s9 = inlined_call_operand.hbm [shape: f32[8,784], index: 9, kind: output, shape index: {}]  }
   0x1   :  { %v6284_v0 = vld [vmem:[%s15214_s1 + $0x10] sm:$0xf]  ;;  %v9367_v1 = vld [vmem:[%s15214_s1 + $0x14] sm:$0xf0]  ;;  %v9366_v2 = vld [vmem:[%s15214_s1 + $0x14] sm:$0xf] }
   0x2   :  { %v6285_v3 = vor.u32 %v9367_v1, %v6284_v0  ;;  %v6286_v4 = vld [vmem:[%s15214_s1 + $0x18] sm:$0xf0]  ;;  %v6276_v5 = vld [vmem:[%s15214_s1] sm:$0xf]  ;;  %v9365_v6 = vld [vmem:[%s15214_s1 + $0x4] sm:$0xf0] }
   0x3   :  { %v6289_v7 = vor.u32 %v9366_v2, %v6286_v4  ;;  %v9364_v8 = vld [vmem:[%s15214_s1 + $0x4] sm:$0xf]  ;;  %v6278_v9 = vld [vmem:[%s15214_s1 + $0x8] sm:$0xf0]  ;;  %v6277_v11 = vor.u32 %v9365_v6, %v6276_v5  ;;  %v6406_v12 = vld [vmem:[%s15216_s3 + $0xe0] sm:$0xf] }
   0x4   :  { %v34_v10 = vld [vmem:[%s15213_s0] sm:$0xff]  ;;  %76 = vmatpush.bf16.msra.mxu0 %v6285_v3  ;;  %v9398_v13 = vld [vmem:[%s15216_s3 + $0xec] sm:$0xf0]  ;;  %v6281_v15 = vor.u32 %v9364_v8, %v6278_v9  ;;  %v6408_v19 = vld [vmem:[%s15216_s3 + $0xf0] sm:$0xf0] }
   0x5   :  { %v6534_v14 = vld [vmem:[%s15216_s3 + $0x1e0] sm:$0xf]  ;;  %89 = vmatpush.bf16.msra.mxu1 %v6289_v7  ;;  %v6407_v16 = vor.u32 %v9398_v13, %v6406_v12  ;;  %v9430_v17 = vld [vmem:[%s15216_s3 + $0x1ec] sm:$0xf0]  ;;  %v9396_v18 = vld [vmem:[%s15216_s3 + $0xe4] sm:$0xf]  ;;  %v35_v25 = vpack.c.bf16 %v34_v10, %v34_v10 }
   0x6   :  { %v6535_v20 = vor.u32 %v9430_v17, %v6534_v14  ;;  %v6411_v21 = vor.u32 %v9396_v18, %v6408_v19  ;;  %v9428_v22 = vld [vmem:[%s15216_s3 + $0x1e4] sm:$0xf]  ;;  %v6536_v23 = vld [vmem:[%s15216_s3 + $0x1f0] sm:$0xf0]  ;;  %v6390_v24 = vld [vmem:[%s15216_s3 + $0xc0] sm:$0xf] }
   0x7   :  { %507 = vmatpush.bf16.msra.mxu2 %v6407_v16  ;;  %v6539_v26 = vor.u32 %v9428_v22, %v6536_v23  ;;  %v9394_v27 = vld [vmem:[%s15216_s3 + $0xcc] sm:$0xf0]  ;;  %v6518_v28 = vld [vmem:[%s15216_s3 + $0x1c0] sm:$0xf]  ;;  %v9392_v32 = vld [vmem:[%s15216_s3 + $0xc4] sm:$0xf] }
   0x8   :  { %v9426_v29 = vld [vmem:[%s15216_s3 + $0x1cc] sm:$0xf0]  ;;  %77 = vmatpush.bf16.msra.mxu0 %v6277_v11  ;;  %520 = vmatpush.bf16.msra.mxu3 %v6535_v20  ;;  %v6391_v30 = vor.u32 %v9394_v27, %v6390_v24  ;;  %v6392_v33 = vld [vmem:[%s15216_s3 + $0xd0] sm:$0xf0]  ;;  %v9424_v34 = vld [vmem:[%s15216_s3 + $0x1c4] sm:$0xf] }
   0x9   :  { %v6519_v31 = vor.u32 %v9426_v29, %v6518_v28  ;;  %90 = vmatpush.bf16.msra.mxu1 %v6281_v15  ;;  %v6395_v35 = vor.u32 %v9392_v32, %v6392_v33  ;;  %v6520_v36 = vld [vmem:[%s15216_s3 + $0x1d0] sm:$0xf0]  ;;  %v6374_v37 = vld [vmem:[%s15216_s3 + $0xa0] sm:$0xf]  ;;  %v9390_v38 = vld [vmem:[%s15216_s3 + $0xac] sm:$0xf0] }
   0xa   :  { %v6523_v39 = vor.u32 %v9424_v34, %v6520_v36  ;;  %v6502_v40 = vld [vmem:[%s15216_s3 + $0x1a0] sm:$0xf]  ;;  %v9422_v41 = vld [vmem:[%s15216_s3 + $0x1ac] sm:$0xf0]  ;;  %v9388_v42 = vld [vmem:[%s15216_s3 + $0xa4] sm:$0xf]  ;;  %v6375_v43 = vor.u32 %v9390_v38, %v6374_v37 }
   0xb   :  { %6290 = vmatmul.msk.bf16.vlgmr.msra.gmra.mxu0 %vm66_vm0, %v35_v25  ;;  %508 = vmatpush.bf16.msra.mxu2 %v6391_v30  ;;  %v6376_v44 = vld [vmem:[%s15216_s3 + $0xb0] sm:$0xf0]  ;;  %v9420_v45 = vld [vmem:[%s15216_s3 + $0x1a4] sm:$0xf]  ;;  %v6503_v47 = vor.u32 %v9422_v41, %v6502_v40  ;;  %v6358_v48 = vld [vmem:[%s15216_s3 + $0x80] sm:$0xf] }
   0xc   :  { %533 = vmatpush.bf16.msrb.mxu0 %v6411_v21  ;;  %v6504_v46 = vld [vmem:[%s15216_s3 + $0x1b0] sm:$0xf0]  ;;  %6291 = vmatmul.msk.bf16.vlgmr.msra.gmra.mxu1 %vm66_vm0, %v35_v25  ;;  %v9386_v49 = vld [vmem:[%s15216_s3 + $0x8c] sm:$0xf0]  ;;  %v6379_v50 = vor.u32 %v9388_v42, %v6376_v44  ;;  %v6486_v51 = vld [vmem:[%s15216_s3 + $0x180] sm:$0xf] }
   0xd   :  { %546 = vmatpush.bf16.msrb.mxu1 %v6539_v26  ;;  %521 = vmatpush.bf16.msra.mxu3 %v6519_v31  ;;  %v9418_v52 = vld [vmem:[%s15216_s3 + $0x18c] sm:$0xf0]  ;;  %v6507_v53 = vor.u32 %v9420_v45, %v6504_v46  ;;  %v9384_v54 = vld [vmem:[%s15216_s3 + $0x84] sm:$0xf]  ;;  %v6360_v55 = vld [vmem:[%s15216_s3 + $0x90] sm:$0xf0]  ;;  %v6359_v56 = vor.u32 %v9386_v49, %v6358_v48 }
   0xe   :  { %v9416_v57 = vld [vmem:[%s15216_s3 + $0x184] sm:$0xf]  ;;  %v6488_v58 = vld [vmem:[%s15216_s3 + $0x190] sm:$0xf0]  ;;  %v6487_v59 = vor.u32 %v9418_v52, %v6486_v51  ;;  %v6342_v60 = vld [vmem:[%s15216_s3 + $0x60] sm:$0xf]  ;;  %v6363_v62 = vor.u32 %v9384_v54, %v6360_v55 }
   0xf   :  { %509 = vmatpush.bf16.msra.mxu2 %v6375_v43  ;;  %v9382_v61 = vld [vmem:[%s15216_s3 + $0x6c] sm:$0xf0]  ;;  %v6470_v63 = vld [vmem:[%s15216_s3 + $0x160] sm:$0xf]  ;;  %v6491_v1 = vor.u32 %v9416_v57, %v6488_v58  ;;  %v9380_v2 = vld [vmem:[%s15216_s3 + $0x64] sm:$0xf] }
  0x10   :  { %534 = vmatpush.bf16.msrb.mxu0 %v6395_v35  ;;  %v9414_v0 = vld [vmem:[%s15216_s3 + $0x16c] sm:$0xf0]  ;;  %v6344_v3 = vld [vmem:[%s15216_s3 + $0x70] sm:$0xf0]  ;;  %v6343_v4 = vor.u32 %v9382_v61, %v6342_v60  ;;  %v9412_v5 = vld [vmem:[%s15216_s3 + $0x164] sm:$0xf] }
  0x11   :  { %547 = vmatpush.bf16.msrb.mxu1 %v6523_v39  ;;  %522 = vmatpush.bf16.msra.mxu3 %v6503_v47  ;;  %v6472_v6 = vld [vmem:[%s15216_s3 + $0x170] sm:$0xf0]  ;;  %v6471_v7 = vor.u32 %v9414_v0, %v6470_v63  ;;  %v6326_v8 = vld [vmem:[%s15216_s3 + $0x40] sm:$0xf]  ;;  %v9378_v9 = vld [vmem:[%s15216_s3 + $0x4c] sm:$0xf0]  ;;  %v6347_v10 = vor.u32 %v9380_v2, %v6344_v3 }
  0x12   :  { %v6454_v11 = vld [vmem:[%s15216_s3 + $0x140] sm:$0xf]  ;;  %v9410_v12 = vld [vmem:[%s15216_s3 + $0x14c] sm:$0xf0]  ;;  %v6475_v13 = vor.u32 %v9412_v5, %v6472_v6  ;;  %v9376_v14 = vld [vmem:[%s15216_s3 + $0x44] sm:$0xf]  ;;  %v6327_v16 = vor.u32 %v9378_v9, %v6326_v8 }
  0x13   :  { %510 = vmatpush.bf16.msra.mxu2 %v6359_v56  ;;  %v6328_v15 = vld [vmem:[%s15216_s3 + $0x50] sm:$0xf0]  ;;  %v9408_v17 = vld [vmem:[%s15216_s3 + $0x144] sm:$0xf] }
  0x14   :  { %535 = vmatpush.bf16.msrb.mxu0 %v6379_v50  ;;  %v6456_v18 = vld [vmem:[%s15216_s3 + $0x150] sm:$0xf0] }
  0x15   :  { %548 = vmatpush.bf16.msrb.mxu1 %v6507_v53  ;;  %523 = vmatpush.bf16.msra.mxu3 %v6487_v59 }
  0x17   :  { %511 = vmatpush.bf16.msra.mxu2 %v6343_v4 }
  0x18   :  { %536 = vmatpush.bf16.msrb.mxu0 %v6363_v62 }
  0x19   :  { %549 = vmatpush.bf16.msrb.mxu1 %v6491_v1 }
  0x1a   :  { %14 = vsyncpa [#allocation3], 0  ;;  %524 = vmatpush.bf16.msra.mxu3 %v6471_v7  ;;  %v6455_v19 = vor.u32 %v9410_v12, %v6454_v11  ;;  %v6310_v20 = vld [vmem:[%s15216_s3 + $0x20] sm:$0xf]  ;;  %v9374_v21 = vld [vmem:[%s15216_s3 + $0x2c] sm:$0xf0]  ;;  %v6331_v22 = vor.u32 %v9376_v14, %v6328_v15  ;;  %v6459_v25 = vor.u32 %v9408_v17, %v6456_v18 }
  0x1b   :  { %v6438_v23 = vld [vmem:[%s15216_s3 + $0x120] sm:$0xf]  ;;  %v9406_v24 = vld [vmem:[%s15216_s3 + $0x12c] sm:$0xf0]  ;;  %v9372_v26 = vld [vmem:[%s15216_s3 + $0x24] sm:$0xf]  ;;  %512 = vmatpush.bf16.msra.mxu2 %v6327_v16  ;;  %v6311_v28 = vor.u32 %v9374_v21, %v6310_v20 }
  0x1c   :  { %537 = vmatpush.bf16.msrb.mxu0 %v6347_v10  ;;  %v6312_v27 = vld [vmem:[%s15216_s3 + $0x30] sm:$0xf0]  ;;  %v9404_v29 = vld [vmem:[%s15216_s3 + $0x124] sm:$0xf]  ;;  %v6439_v31 = vor.u32 %v9406_v24, %v6438_v23  ;;  %v6294_v34 = vld [vmem:[%s15216_s3] sm:$0xf] }
  0x1d   :  { %550 = vmatpush.bf16.msrb.mxu1 %v6475_v13  ;;  %v6440_v30 = vld [vmem:[%s15216_s3 + $0x130] sm:$0xf0]  ;;  %v6315_v32 = vor.u32 %v9372_v26, %v6312_v27  ;;  %v9370_v35 = vld [vmem:[%s15216_s3 + $0xc] sm:$0xf0]  ;;  %v6422_v36 = vld [vmem:[%s15216_s3 + $0x100] sm:$0xf] }
  0x1e   :  { %525 = vmatpush.bf16.msra.mxu3 %v6455_v19  ;;  %v6443_v33 = vor.u32 %v9404_v29, %v6440_v30  ;;  %v6295_v37 = vor.u32 %v9370_v35, %v6294_v34  ;;  %v9402_v38 = vld [vmem:[%s15216_s3 + $0x10c] sm:$0xf0]  ;;  %v9368_v39 = vld [vmem:[%s15216_s3 + $0x4] sm:$0xf]  ;;  %v6296_v40 = vld [vmem:[%s15216_s3 + $0x10] sm:$0xf0] }
  0x1f   :  { %513 = vmatpush.bf16.msra.mxu2 %v6311_v28  ;;  %v6423_v41 = vor.u32 %v9402_v38, %v6422_v36  ;;  %v6299_v42 = vor.u32 %v9368_v39, %v6296_v40  ;;  %v9400_v43 = vld [vmem:[%s15216_s3 + $0x104] sm:$0xf]  ;;  %v6424_v44 = vld [vmem:[%s15216_s3 + $0x110] sm:$0xf0]  ;;  %v6414_v46 = vld [vmem:[%s15216_s3 + $0xe8] sm:$0xf] }
  0x20   :  { %538 = vmatpush.bf16.msrb.mxu0 %v6331_v22  ;;  %v6427_v45 = vor.u32 %v9400_v43, %v6424_v44  ;;  %v9399_v47 = vld [vmem:[%s15216_s3 + $0xf4] sm:$0xf0]  ;;  %v6542_v48 = vld [vmem:[%s15216_s3 + $0x1e8] sm:$0xf]  ;;  %v9397_v51 = vld [vmem:[%s15216_s3 + $0xec] sm:$0xf] }
  0x21   :  { %551 = vmatpush.bf16.msrb.mxu1 %v6459_v25  ;;  %v6415_v49 = vor.u32 %v9399_v47, %v6414_v46  ;;  %v9431_v50 = vld [vmem:[%s15216_s3 + $0x1f4] sm:$0xf0]  ;;  %v6416_v52 = vld [vmem:[%s15216_s3 + $0xf8] sm:$0xf0]  ;;  %v9429_v55 = vld [vmem:[%s15216_s3 + $0x1ec] sm:$0xf] }
  0x22   :  { %526 = vmatpush.bf16.msra.mxu3 %v6439_v31  ;;  %v6543_v53 = vor.u32 %v9431_v50, %v6542_v48  ;;  %v6419_v54 = vor.u32 %v9397_v51, %v6416_v52  ;;  %v6544_v56 = vld [vmem:[%s15216_s3 + $0x1f8] sm:$0xf0]  ;;  %v6398_v57 = vld [vmem:[%s15216_s3 + $0xc8] sm:$0xf]  ;;  %v9395_v59 = vld [vmem:[%s15216_s3 + $0xd4] sm:$0xf0] }
  0x23   :  { %514 = vmatpush.bf16.msra.mxu2 %v6295_v37  ;;  %v6547_v58 = vor.u32 %v9429_v55, %v6544_v56  ;;  %v6526_v60 = vld [vmem:[%s15216_s3 + $0x1c8] sm:$0xf]  ;;  %v9427_v61 = vld [vmem:[%s15216_s3 + $0x1d4] sm:$0xf0]  ;;  %v6399_v62 = vor.u32 %v9395_v59, %v6398_v57  ;;  %v9393_v0 = vld [vmem:[%s15216_s3 + $0xcc] sm:$0xf] }
  0x24   :  { %539 = vmatpush.bf16.msrb.mxu0 %v6315_v32  ;;  %v6527_v63 = vor.u32 %v9427_v61, %v6526_v60  ;;  %v6400_v1 = vld [vmem:[%s15216_s3 + $0xd8] sm:$0xf0]  ;;  %v9425_v2 = vld [vmem:[%s15216_s3 + $0x1cc] sm:$0xf]  ;;  %v6382_v6 = vld [vmem:[%s15216_s3 + $0xa8] sm:$0xf] }
  0x25   :  { %552 = vmatpush.bf16.msrb.mxu1 %v6443_v33  ;;  %v6403_v3 = vor.u32 %v9393_v0, %v6400_v1  ;;  %v6528_v4 = vld [vmem:[%s15216_s3 + $0x1d8] sm:$0xf0]  ;;  %v9391_v7 = vld [vmem:[%s15216_s3 + $0xb4] sm:$0xf0]  ;;  %v6510_v8 = vld [vmem:[%s15216_s3 + $0x1a8] sm:$0xf] }
  0x26   :  { %527 = vmatpush.bf16.msra.mxu3 %v6423_v41  ;;  %v6531_v5 = vor.u32 %v9425_v2, %v6528_v4  ;;  %v6383_v9 = vor.u32 %v9391_v7, %v6382_v6  ;;  %v9423_v10 = vld [vmem:[%s15216_s3 + $0x1b4] sm:$0xf0]  ;;  %v9389_v11 = vld [vmem:[%s15216_s3 + $0xac] sm:$0xf]  ;;  %v6384_v12 = vld [vmem:[%s15216_s3 + $0xb8] sm:$0xf0] }
  0x27   :  { %559 = vmatpush.bf16.msrb.mxu2 %v6415_v49  ;;  %v6511_v13 = vor.u32 %v9423_v10, %v6510_v8  ;;  %v6387_v14 = vor.u32 %v9389_v11, %v6384_v12  ;;  %v9421_v15 = vld [vmem:[%s15216_s3 + $0x1ac] sm:$0xf]  ;;  %v6512_v16 = vld [vmem:[%s15216_s3 + $0x1b8] sm:$0xf0]  ;;  %v6366_v18 = vld [vmem:[%s15216_s3 + $0x88] sm:$0xf] }
  0x28   :  { %540 = vmatpush.bf16.msrb.mxu0 %v6299_v42  ;;  %v6515_v17 = vor.u32 %v9421_v15, %v6512_v16  ;;  %v9387_v19 = vld [vmem:[%s15216_s3 + $0x94] sm:$0xf0]  ;;  %v6494_v20 = vld [vmem:[%s15216_s3 + $0x188] sm:$0xf]  ;;  %v9385_v23 = vld [vmem:[%s15216_s3 + $0x8c] sm:$0xf] }
  0x29   :  { %553 = vmatpush.bf16.msrb.mxu1 %v6427_v45  ;;  %v6367_v21 = vor.u32 %v9387_v19, %v6366_v18  ;;  %v9419_v22 = vld [vmem:[%s15216_s3 + $0x194] sm:$0xf0]  ;;  %v6368_v24 = vld [vmem:[%s15216_s3 + $0x98] sm:$0xf0]  ;;  %v9417_v27 = vld [vmem:[%s15216_s3 + $0x18c] sm:$0xf] }
  0x2a   :  { %572 = vmatpush.bf16.msrb.mxu3 %v6543_v53  ;;  %v6495_v25 = vor.u32 %v9419_v22, %v6494_v20  ;;  %v6371_v26 = vor.u32 %v9385_v23, %v6368_v24  ;;  %v6496_v28 = vld [vmem:[%s15216_s3 + $0x198] sm:$0xf0]  ;;  %v6350_v30 = vld [vmem:[%s15216_s3 + $0x68] sm:$0xf]  ;;  %v9383_v31 = vld [vmem:[%s15216_s3 + $0x74] sm:$0xf0] }
  0x2b   :  { %560 = vmatpush.bf16.msrb.mxu2 %v6399_v62  ;;  %v6499_v29 = vor.u32 %v9417_v27, %v6496_v28  ;;  %v6478_v32 = vld [vmem:[%s15216_s3 + $0x168] sm:$0xf]  ;;  %v6351_v33 = vor.u32 %v9383_v31, %v6350_v30  ;;  %v9415_v34 = vld [vmem:[%s15216_s3 + $0x174] sm:$0xf0]  ;;  %v9381_v35 = vld [vmem:[%s15216_s3 + $0x6c] sm:$0xf] }
  0x2c   :  { %585 = vmatpush.bf16.msra.mxu0 %v6419_v54  ;;  %v6352_v36 = vld [vmem:[%s15216_s3 + $0x78] sm:$0xf0]  ;;  %v6479_v37 = vor.u32 %v9415_v34, %v6478_v32  ;;  %v9413_v39 = vld [vmem:[%s15216_s3 + $0x16c] sm:$0xf]  ;;  %v6334_v41 = vld [vmem:[%s15216_s3 + $0x48] sm:$0xf] }
  0x2d   :  { %598 = vmatpush.bf16.msra.mxu1 %v6547_v58  ;;  %v6355_v38 = vor.u32 %v9381_v35, %v6352_v36  ;;  %v6480_v40 = vld [vmem:[%s15216_s3 + $0x178] sm:$0xf0]  ;;  %v9379_v43 = vld [vmem:[%s15216_s3 + $0x54] sm:$0xf0]  ;;  %v6462_v44 = vld [vmem:[%s15216_s3 + $0x148] sm:$0xf] }
  0x2e   :  { %573 = vmatpush.bf16.msrb.mxu3 %v6527_v63  ;;  %v6483_v42 = vor.u32 %v9413_v39, %v6480_v40  ;;  %v9411_v45 = vld [vmem:[%s15216_s3 + $0x154] sm:$0xf0]  ;;  %v6335_v46 = vor.u32 %v9379_v43, %v6334_v41  ;;  %v9377_v47 = vld [vmem:[%s15216_s3 + $0x4c] sm:$0xf]  ;;  %v6336_v48 = vld [vmem:[%s15216_s3 + $0x58] sm:$0xf0] }
  0x2f   :  { %561 = vmatpush.bf16.msrb.mxu2 %v6383_v9  ;;  %v9409_v49 = vld [vmem:[%s15216_s3 + $0x14c] sm:$0xf]  ;;  %v6463_v50 = vor.u32 %v9411_v45, %v6462_v44  ;;  %v6339_v51 = vor.u32 %v9377_v47, %v6336_v48  ;;  %v6464_v52 = vld [vmem:[%s15216_s3 + $0x158] sm:$0xf0]  ;;  %v6318_v53 = vld [vmem:[%s15216_s3 + $0x28] sm:$0xf] }
  0x30   :  { %586 = vmatpush.bf16.msra.mxu0 %v6403_v3  ;;  %v9375_v54 = vld [vmem:[%s15216_s3 + $0x34] sm:$0xf0]  ;;  %v6467_v55 = vor.u32 %v9409_v49, %v6464_v52  ;;  %v6446_v56 = vld [vmem:[%s15216_s3 + $0x128] sm:$0xf]  ;;  %v9373_v58 = vld [vmem:[%s15216_s3 + $0x2c] sm:$0xf] }
  0x31   :  { %599 = vmatpush.bf16.msra.mxu1 %v6531_v5  ;;  %v9407_v57 = vld [vmem:[%s15216_s3 + $0x134] sm:$0xf0]  ;;  %v6320_v59 = vld [vmem:[%s15216_s3 + $0x38] sm:$0xf0]  ;;  %v9405_v60 = vld [vmem:[%s15216_s3 + $0x12c] sm:$0xf]  ;;  %v6319_v63 = vor.u32 %v9375_v54, %v6318_v53 }
  0x32   :  { %574 = vmatpush.bf16.msrb.mxu3 %v6511_v13  ;;  %v6448_v61 = vld [vmem:[%s15216_s3 + $0x138] sm:$0xf0]  ;;  %v40_v62 = vld [vmem:[%s15215_s2] sm:$0x3]  ;;  %v6447_v0 = vor.u32 %v9407_v57, %v6446_v56  ;;  %v6323_v1 = vor.u32 %v9373_v58, %v6320_v59  ;;  %v6302_v2 = vld [vmem:[%s15216_s3 + $0x8] sm:$0xf] }
  0x33   :  { %562 = vmatpush.bf16.msrb.mxu2 %v6367_v21  ;;  %v9371_v3 = vld [vmem:[%s15216_s3 + $0x14] sm:$0xf0]  ;;  %v6430_v4 = vld [vmem:[%s15216_s3 + $0x108] sm:$0xf]  ;;  %v6451_v5 = vor.u32 %v9405_v60, %v6448_v61  ;;  %v9369_v7 = vld [vmem:[%s15216_s3 + $0xc] sm:$0xf] }
  0x34   :  { %587 = vmatpush.bf16.msra.mxu0 %v6387_v14  ;;  %v9403_v6 = vld [vmem:[%s15216_s3 + $0x114] sm:$0xf0]  ;;  %v6304_v8 = vld [vmem:[%s15216_s3 + $0x18] sm:$0xf0]  ;;  %v9401_v9 = vld [vmem:[%s15216_s3 + $0x10c] sm:$0xf]  ;;  %v6303_v11 = vor.u32 %v9371_v3, %v6302_v2 }
  0x35   :  { %600 = vmatpush.bf16.msra.mxu1 %v6515_v17  ;;  %v6432_v10 = vld [vmem:[%s15216_s3 + $0x118] sm:$0xf0]  ;;  %v42_v12 = vperm.slane %v40_v62, 0  ;;  %v6431_v13 = vor.u32 %v9403_v6, %v6430_v4  ;;  %v6307_v14 = vor.u32 %v9369_v7, %v6304_v8  ;;  %v43_v15 = vperm.slane %v40_v62, 1  ;;  %v9492_v30 = vld [vmem:[%s15218_s5 + $0x1dc] sm:$0xf0] }
  0x36   :  { %575 = vmatpush.bf16.msrb.mxu3 %v6495_v25  ;;  %v6435_v16 = vor.u32 %v9401_v9, %v6432_v10  ;;  %v7030_v32 = vld [vmem:[%s15218_s5 + $0x3c0] sm:$0xf] }
  0x37   :  { %563 = vmatpush.bf16.msrb.mxu2 %v6351_v33  ;;  %v9556_v33 = vld [vmem:[%s15218_s5 + $0x3dc] sm:$0xf0] }
  0x38   :  { %588 = vmatpush.bf16.msra.mxu0 %v6371_v26  ;;  %v7286_v34 = vld [vmem:[%s15218_s5 + $0x5c0] sm:$0xf]  ;;  %v7031_v43 = vor.u32 %v9556_v33, %v7030_v32 }
  0x39   :  { %601 = vmatpush.bf16.msra.mxu1 %v6499_v29  ;;  %v6774_v29 = vld [vmem:[%s15218_s5 + $0x1c0] sm:$0xf] }
  0x3a   :  { %576 = vmatpush.bf16.msrb.mxu3 %v6479_v37  ;;  %v9620_v37 = vld [vmem:[%s15218_s5 + $0x5dc] sm:$0xf0] }
  0x3b   :  { %564 = vmatpush.bf16.msrb.mxu2 %v6335_v46  ;;  %v9684_v39 = vld [vmem:[%s15218_s5 + $0x7dc] sm:$0xf0]  ;;  %v7287_v48 = vor.u32 %v9620_v37, %v7286_v34 }
  0x3c   :  { %589 = vmatpush.bf16.msra.mxu0 %v6355_v38  ;;  %v7542_v38 = vld [vmem:[%s15218_s5 + $0x7c0] sm:$0xf] }
  0x3d   :  { %602 = vmatpush.bf16.msra.mxu1 %v6483_v42  ;;  %v6775_v42 = vor.u32 %v9492_v30, %v6774_v29  ;;  %v6742_v44 = vld [vmem:[%s15218_s5 + $0x180] sm:$0xf]  ;;  %v7543_v49 = vor.u32 %v9684_v39, %v7542_v38 }
  0x3e   :  { %577 = vmatpush.bf16.msrb.mxu3 %v6463_v50  ;;  %v9484_v45 = vld [vmem:[%s15218_s5 + $0x19c] sm:$0xf0] }
  0x3f   :  { %565 = vmatpush.bf16.msrb.mxu2 %v6319_v63  ;;  %v6998_v46 = vld [vmem:[%s15218_s5 + $0x380] sm:$0xf]  ;;  %v6743_v54 = vor.u32 %v9484_v45, %v6742_v44 }
  0x40   :  { %590 = vmatpush.bf16.msra.mxu0 %v6339_v51  ;;  %v9548_v47 = vld [vmem:[%s15218_s5 + $0x39c] sm:$0xf0] }
  0x41   :  { %603 = vmatpush.bf16.msra.mxu1 %v6467_v55  ;;  %v7254_v50 = vld [vmem:[%s15218_s5 + $0x580] sm:$0xf]  ;;  %v6999_v55 = vor.u32 %v9548_v47, %v6998_v46  ;;  %v9488_v46 = vld [vmem:[%s15218_s5 + $0x1c4] sm:$0xf] }
  0x42   :  { %578 = vmatpush.bf16.msrb.mxu3 %v6447_v0  ;;  %v9612_v51 = vld [vmem:[%s15218_s5 + $0x59c] sm:$0xf0]  ;;  %v6776_v47 = vld [vmem:[%s15218_s5 + $0x1e0] sm:$0xf0] }
  0x43   :  { %566 = vmatpush.bf16.msrb.mxu2 %v6303_v11  ;;  %v7510_v52 = vld [vmem:[%s15218_s5 + $0x780] sm:$0xf]  ;;  %v7255_v60 = vor.u32 %v9612_v51, %v7254_v50 }
  0x44   :  { %591 = vmatpush.bf16.msra.mxu0 %v6323_v1  ;;  %v9676_v53 = vld [vmem:[%s15218_s5 + $0x79c] sm:$0xf0] }
  0x45   :  { %604 = vmatpush.bf16.msra.mxu1 %v6451_v5  ;;  %v6710_v56 = vld [vmem:[%s15218_s5 + $0x140] sm:$0xf]  ;;  %v7511_v61 = vor.u32 %v9676_v53, %v7510_v52  ;;  %v6779_v52 = vor.u32 %v9488_v46, %v6776_v47  ;;  %v9672_v47 = vld [vmem:[%s15218_s5 + $0x784] sm:$0xf] }
  0x46   :  { %579 = vmatpush.bf16.msrb.mxu3 %v6431_v13  ;;  %v9476_v57 = vld [vmem:[%s15218_s5 + $0x15c] sm:$0xf0] }
  0x47   :  { %v6966_v58 = vld [vmem:[%s15218_s5 + $0x340] sm:$0xf]  ;;  %v6711_v2 = vor.u32 %v9476_v57, %v6710_v56  ;;  %v9544_v56 = vld [vmem:[%s15218_s5 + $0x384] sm:$0xf] }
  0x48   :  { %592 = vmatpush.bf16.msra.mxu0 %v6307_v14  ;;  %v9540_v59 = vld [vmem:[%s15218_s5 + $0x35c] sm:$0xf0]  ;;  %v7000_v57 = vld [vmem:[%s15218_s5 + $0x3a0] sm:$0xf0] }
  0x49   :  { %605 = vmatpush.bf16.msra.mxu1 %v6435_v16  ;;  %v7222_v62 = vld [vmem:[%s15218_s5 + $0x540] sm:$0xf]  ;;  %v6967_v3 = vor.u32 %v9540_v59, %v6966_v58  ;;  %v7003_v59 = vor.u32 %v9544_v56, %v7000_v57  ;;  %v7224_v56 = vld [vmem:[%s15218_s5 + $0x560] sm:$0xf0] }
  0x4a   :  { %v9604_v63 = vld [vmem:[%s15218_s5 + $0x55c] sm:$0xf0] }
  0x4b   :  { %v7478_v0 = vld [vmem:[%s15218_s5 + $0x740] sm:$0xf]  ;;  %v7223_v8 = vor.u32 %v9604_v63, %v7222_v62 }
  0x4c   :  { %v9668_v1 = vld [vmem:[%s15218_s5 + $0x75c] sm:$0xf0] }
  0x4d   :  { %v6678_v4 = vld [vmem:[%s15218_s5 + $0x100] sm:$0xf]  ;;  %v7479_v9 = vor.u32 %v9668_v1, %v7478_v0  ;;  %v9472_v1 = vld [vmem:[%s15218_s5 + $0x144] sm:$0xf] }
  0x4e   :  { %v9468_v5 = vld [vmem:[%s15218_s5 + $0x11c] sm:$0xf0] }
  0x4f   :  { %v6934_v6 = vld [vmem:[%s15218_s5 + $0x300] sm:$0xf]  ;;  %v6679_v14 = vor.u32 %v9468_v5, %v6678_v4  ;;  %v9536_v5 = vld [vmem:[%s15218_s5 + $0x344] sm:$0xf] }
  0x50   :  { %v9532_v7 = vld [vmem:[%s15218_s5 + $0x31c] sm:$0xf0] }
  0x51   :  { %v7190_v10 = vld [vmem:[%s15218_s5 + $0x500] sm:$0xf] }
  0x52   :  { %v9596_v11 = vld [vmem:[%s15218_s5 + $0x51c] sm:$0xf0] }
  0x53   :  { %v9660_v13 = vld [vmem:[%s15218_s5 + $0x71c] sm:$0xf0] }
  0x54   :  { %v6646_v16 = vld [vmem:[%s15218_s5 + $0xc0] sm:$0xf] }
  0x55   :  { %v9452_v29 = vld [vmem:[%s15218_s5 + $0x9c] sm:$0xf0] }
  0x56   :  { %v6870_v30 = vld [vmem:[%s15218_s5 + $0x280] sm:$0xf] }
  0x57   :  { %v9444_v37 = vld [vmem:[%s15218_s5 + $0x5c] sm:$0xf0] }
  0x58   :  { %v6838_v38 = vld [vmem:[%s15218_s5 + $0x240] sm:$0xf] }
  0x59   :  { %v9508_v39 = vld [vmem:[%s15218_s5 + $0x25c] sm:$0xf0] }
  0x5a   :  { %v6806_v44 = vld [vmem:[%s15218_s5 + $0x200] sm:$0xf] }
  0x5b   :  { %v9500_v45 = vld [vmem:[%s15218_s5 + $0x21c] sm:$0xf0] }
  0x5c   :  { %v6807_v51 = vor.u32 %v9500_v45, %v6806_v44  ;;  %v7382_v62 = vld [vmem:[%s15218_s5 + $0x680] sm:$0xf]  ;;  %v7256_v44 = vld [vmem:[%s15218_s5 + $0x5a0] sm:$0xf0] }
  0x5d   :  { %v9644_v0 = vld [vmem:[%s15218_s5 + $0x69c] sm:$0xf0] }
  0x88   :  { %v79_v17 = vpop.f32.mrf.mxu0 }
  0x89   :  { %v80_v18 = vadd.f32 %v79_v17, %v42_v12  ;;  %v92_v19 = vpop.f32.mrf.mxu1  ;;  %v7446_v12 = vld [vmem:[%s15218_s5 + $0x700] sm:$0xf] }
  0x8a   :  { %v93_v20 = vadd.f32 %v92_v19, %v43_v15  ;;  %v6935_v15 = vor.u32 %v9532_v7, %v6934_v6  ;;  %v9460_v17 = vld [vmem:[%s15218_s5 + $0xdc] sm:$0xf0]  ;;  %v6968_v6 = vld [vmem:[%s15218_s5 + $0x360] sm:$0xf0] }
  0x8b   :  { %v9524_v19 = vld [vmem:[%s15218_s5 + $0x2dc] sm:$0xf0]  ;;  %v6971_v7 = vor.u32 %v9536_v5, %v6968_v6  ;;  %v7192_v5 = vld [vmem:[%s15218_s5 + $0x520] sm:$0xf0] }
  0x8c   :  { %v96_v21 = vpack.c.bf16 %v93_v20, %v80_v18  ;;  %v6902_v18 = vld [vmem:[%s15218_s5 + $0x2c0] sm:$0xf]  ;;  %v7191_v20 = vor.u32 %v9596_v11, %v7190_v10  ;;  %v9656_v6 = vld [vmem:[%s15218_s5 + $0x704] sm:$0xf] }
  0x8d   :  { %v7350_v11 = vld [vmem:[%s15218_s5 + $0x640] sm:$0xf] }
  0x8e   :  { %v97_v22 = vunpack.c.l.bf16 %v96_v21  ;;  %v98_v23 = vunpack.c.h.bf16 %v96_v21 }
  0x90   :  { %vm99_vm1 = vcmp.gt.f32.partialorder %v97_v22, 0.0  ;;  %vm100_vm2 = vcmp.gt.f32.partialorder %v98_v23, 0.0  ;;  %v101_v24 = vmul.f32 0.20019531, %v97_v22  ;;  %v102_v25 = vmul.f32 0.20019531, %v98_v23  ;;  %v81_v26 = vpop.f32.mrf.mxu0  ;;  %v7158_v22 = vld [vmem:[%s15218_s5 + $0x4c0] sm:$0xf] }
  0x91   :  { %v94_v27 = vpop.f32.mrf.mxu1  ;;  %vm104_vm3 = vmpackc.low %vm100_vm2, %vm99_vm1  ;;  %v9588_v23 = vld [vmem:[%s15218_s5 + $0x4dc] sm:$0xf0]  ;;  %v6647_v26 = vor.u32 %v9460_v17, %v6646_v16  ;;  %v9528_v16 = vld [vmem:[%s15218_s5 + $0x304] sm:$0xf] }
  0x92   :  { %v103_v28 = vpack.c.bf16 %v102_v25, %v101_v24  ;;  %v7414_v24 = vld [vmem:[%s15218_s5 + $0x6c0] sm:$0xf]  ;;  %v6903_v27 = vor.u32 %v9524_v19, %v6902_v18  ;;  %v7159_v32 = vor.u32 %v9588_v23, %v7158_v22  ;;  %v6936_v17 = vld [vmem:[%s15218_s5 + $0x320] sm:$0xf0] }
  0x93   :  { %v9652_v25 = vld [vmem:[%s15218_s5 + $0x6dc] sm:$0xf0]  ;;  %v6939_v19 = vor.u32 %v9528_v16, %v6936_v17  ;;  %v9576_v17 = vld [vmem:[%s15218_s5 + $0x484] sm:$0xf] }
  0x94   :  { %v105_v31 = vsel %vm104_vm3, %v96_v21, %v103_v28  ;;  %v7447_v21 = vor.u32 %v9660_v13, %v7446_v12  ;;  %v6614_v28 = vld [vmem:[%s15218_s5 + $0x80] sm:$0xf]  ;;  %v7415_v33 = vor.u32 %v9652_v25, %v7414_v24  ;;  %v9464_v13 = vld [vmem:[%s15218_s5 + $0x104] sm:$0xf] }
  0x95   :  { %v181_v35 = vunpack.c.l.b16 %v105_v31  ;;  %v182_v36 = vunpack.c.h.b16 %v105_v31  ;;  %v9516_v31 = vld [vmem:[%s15218_s5 + $0x29c] sm:$0xf0]  ;;  %v6615_v34 = vor.u32 %v9452_v29, %v6614_v28  ;;  %v9456_v25 = vld [vmem:[%s15218_s5 + $0xc4] sm:$0xf] }
  0x96   :  { %v9636_v12 = vld [vmem:[%s15218_s5 + $0x65c] sm:$0xf0]  ;;  %v9520_v29 = vld [vmem:[%s15218_s5 + $0x2c4] sm:$0xf] }
  0x97   :  { %v10671_v40 = vpack.c.b16 %v181_v35, %v181_v35  ;;  %v10673_v41 = vpack.c.b16 %v182_v36, %v182_v36  ;;  %v6871_v35 = vor.u32 %v9516_v31, %v6870_v30  ;;  %v6582_v36 = vld [vmem:[%s15218_s5 + $0x40] sm:$0xf]  ;;  %v6904_v30 = vld [vmem:[%s15218_s5 + $0x2e0] sm:$0xf0] }
  0x98   :  { %v7318_v22 = vld [vmem:[%s15218_s5 + $0x600] sm:$0xf]  ;;  %v9616_v31 = vld [vmem:[%s15218_s5 + $0x5c4] sm:$0xf] }
  0x99   :  { %515 = vmatmul.bf16.vlgmr.msra.gmra.mxu2 %v10671_v40  ;;  %528 = vmatmul.bf16.vlgmr.msra.gmra.mxu3 %v10673_v41  ;;  %v9628_v24 = vld [vmem:[%s15218_s5 + $0x61c] sm:$0xf0] }
  0x9a   :  { %541 = vmatmul.bf16.vlgmr.msrb.gmra.mxu0 %v10671_v40  ;;  %554 = vmatmul.bf16.vlgmr.msrb.gmra.mxu1 %v10673_v41  ;;  %v11010_v16 = vld [vmem:[%s15217_s4] sm:$0xf]  ;;  %s6265_s4 = sshll.u32 %s15222_s9, 4  ;;  %s6266_s4 = int_to_ptr.hbm [resolvable:$true] %s6265_s4 }
  0x9b   :  { %2199 = vmatpush.bf16.msra.mxu2 %v6775_v42  ;;  %2212 = vmatpush.bf16.msra.mxu3 %v7031_v43  ;;  %v6550_v42 = vld [vmem:[%s15218_s5] sm:$0xf] }
  0x9c   :  { %2225 = vmatpush.bf16.msrb.mxu0 %v7287_v48  ;;  %2238 = vmatpush.bf16.msrb.mxu1 %v7543_v49  ;;  %v9436_v43 = vld [vmem:[%s15218_s5 + $0x1c] sm:$0xf0]  ;;  %v9552_v48 = vld [vmem:[%s15218_s5 + $0x3c4] sm:$0xf] }
  0x9d   :  { %v7032_v49 = vld [vmem:[%s15218_s5 + $0x3e0] sm:$0xf0]  ;;  %v6551_v50 = vor.u32 %v9436_v43, %v6550_v42 }
  0x9e   :  { %v7035_v53 = vor.u32 %v9552_v48, %v7032_v49  ;;  %v6872_v42 = vld [vmem:[%s15218_s5 + $0x2a0] sm:$0xf0] }
  0x9f   :  { %2200 = vmatpush.bf16.msra.mxu2 %v6743_v54  ;;  %2213 = vmatpush.bf16.msra.mxu3 %v6999_v55  ;;  %v9480_v54 = vld [vmem:[%s15218_s5 + $0x184] sm:$0xf] }
  0xa0   :  { %2226 = vmatpush.bf16.msrb.mxu0 %v7255_v60  ;;  %2239 = vmatpush.bf16.msrb.mxu1 %v7511_v61  ;;  %v6744_v55 = vld [vmem:[%s15218_s5 + $0x1a0] sm:$0xf0]  ;;  %v7126_v60 = vld [vmem:[%s15218_s5 + $0x480] sm:$0xf] }
  0xa1   :  { %v6747_v58 = vor.u32 %v9480_v54, %v6744_v55  ;;  %v9580_v61 = vld [vmem:[%s15218_s5 + $0x49c] sm:$0xf0]  ;;  %v9608_v43 = vld [vmem:[%s15218_s5 + $0x584] sm:$0xf] }
  0xa2   :  { %v7127_v63 = vor.u32 %v9580_v61, %v7126_v60  ;;  %v7259_v46 = vor.u32 %v9608_v43, %v7256_v44  ;;  %v7512_v48 = vld [vmem:[%s15218_s5 + $0x7a0] sm:$0xf0] }
  0xa3   :  { %2201 = vmatpush.bf16.msra.mxu2 %v6711_v2  ;;  %2214 = vmatpush.bf16.msra.mxu3 %v6967_v3  ;;  %v6712_v2 = vld [vmem:[%s15218_s5 + $0x160] sm:$0xf0]  ;;  %v7383_v3 = vor.u32 %v9644_v0, %v7382_v62  ;;  %v7515_v49 = vor.u32 %v9672_v47, %v7512_v48 }
  0xa4   :  { %2227 = vmatpush.bf16.msrb.mxu0 %v7223_v8  ;;  %2240 = vmatpush.bf16.msrb.mxu1 %v7479_v9  ;;  %v6715_v4 = vor.u32 %v9472_v1, %v6712_v2  ;;  %v7094_v8 = vld [vmem:[%s15218_s5 + $0x440] sm:$0xf]  ;;  %v6840_v54 = vld [vmem:[%s15218_s5 + $0x260] sm:$0xf0] }
  0xa5   :  { %v9572_v9 = vld [vmem:[%s15218_s5 + $0x45c] sm:$0xf0]  ;;  %v9600_v55 = vld [vmem:[%s15218_s5 + $0x544] sm:$0xf] }
  0xa6   :  { %v7095_v10 = vor.u32 %v9572_v9, %v7094_v8  ;;  %v7480_v60 = vld [vmem:[%s15218_s5 + $0x760] sm:$0xf0] }
  0xa7   :  { %2202 = vmatpush.bf16.msra.mxu2 %v6679_v14  ;;  %2215 = vmatpush.bf16.msra.mxu3 %v6935_v15  ;;  %v7351_v14 = vor.u32 %v9636_v12, %v7350_v11  ;;  %v6680_v15 = vld [vmem:[%s15218_s5 + $0x120] sm:$0xf0] }
  0xa8   :  { %2228 = vmatpush.bf16.msrb.mxu0 %v7191_v20  ;;  %2241 = vmatpush.bf16.msrb.mxu1 %v7447_v21  ;;  %v6683_v18 = vor.u32 %v9464_v13, %v6680_v15  ;;  %v7062_v20 = vld [vmem:[%s15218_s5 + $0x400] sm:$0xf]  ;;  %v9432_v62 = vld [vmem:[%s15218_s5 + $0x4] sm:$0xf] }
  0xa9   :  { %567 = vmatmul.bf16.vlgmr.msrb.gmra.mxu2 %v10671_v40  ;;  %580 = vmatmul.bf16.vlgmr.msrb.gmra.mxu3 %v10673_v41  ;;  %v9564_v21 = vld [vmem:[%s15218_s5 + $0x41c] sm:$0xf0]  ;;  %v9496_v0 = vld [vmem:[%s15218_s5 + $0x204] sm:$0xf] }
  0xaa   :  { %593 = vmatmul.bf16.vlgmr.msra.gmra.mxu0 %v10671_v40  ;;  %606 = vmatmul.bf16.vlgmr.msra.gmra.mxu1 %v10673_v41  ;;  %v6583_v40 = vor.u32 %v9444_v37, %v6582_v36  ;;  %v6839_v41 = vor.u32 %v9508_v39, %v6838_v38  ;;  %v7063_v23 = vor.u32 %v9564_v21, %v7062_v20  ;;  %v9448_v38 = vld [vmem:[%s15218_s5 + $0x84] sm:$0xf] }
  0xab   :  { %2203 = vmatpush.bf16.msra.mxu2 %v6647_v26  ;;  %2216 = vmatpush.bf16.msra.mxu3 %v6903_v27  ;;  %v6648_v26 = vld [vmem:[%s15218_s5 + $0xe0] sm:$0xf0]  ;;  %v7319_v27 = vor.u32 %v9628_v24, %v7318_v22 }
  0xac   :  { %2229 = vmatpush.bf16.msrb.mxu0 %v7159_v32  ;;  %2242 = vmatpush.bf16.msrb.mxu1 %v7415_v33  ;;  %v6651_v28 = vor.u32 %v9456_v25, %v6648_v26  ;;  %v6907_v32 = vor.u32 %v9520_v29, %v6904_v30  ;;  %v7288_v33 = vld [vmem:[%s15218_s5 + $0x5e0] sm:$0xf0] }
  0xad   :  { %v7291_v36 = vor.u32 %v9616_v31, %v7288_v33  ;;  %v6616_v39 = vld [vmem:[%s15218_s5 + $0xa0] sm:$0xf0]  ;;  %v172_v31 = vperm.slane %v11010_v16, 0 }
  0xae   :  { %v6808_v2 = vld [vmem:[%s15218_s5 + $0x220] sm:$0xf0] }
  0xaf   :  { %2204 = vmatpush.bf16.msra.mxu2 %v6615_v34  ;;  %2217 = vmatpush.bf16.msra.mxu3 %v6871_v35  ;;  %v9680_v34 = vld [vmem:[%s15218_s5 + $0x7c4] sm:$0xf] }
  0xb0   :  { %2230 = vmatpush.bf16.msrb.mxu0 %v7127_v63  ;;  %2243 = vmatpush.bf16.msrb.mxu1 %v7383_v3  ;;  %v7544_v35 = vld [vmem:[%s15218_s5 + $0x7e0] sm:$0xf0] }
  0xb1   :  { %v7547_v37 = vor.u32 %v9680_v34, %v7544_v35  ;;  %v6552_v63 = vld [vmem:[%s15218_s5 + $0x20] sm:$0xf0] }
  0xb2   :  { %v6555_v1 = vor.u32 %v9432_v62, %v6552_v63  ;;  %v9592_v3 = vld [vmem:[%s15218_s5 + $0x504] sm:$0xf]  ;;  %v174_v63 = vperm.slane %v11010_v16, 2 }
  0xb3   :  { %2205 = vmatpush.bf16.msra.mxu2 %v6583_v40  ;;  %2218 = vmatpush.bf16.msra.mxu3 %v6839_v41  ;;  %v9512_v40 = vld [vmem:[%s15218_s5 + $0x284] sm:$0xf]  ;;  %v6619_v41 = vor.u32 %v9448_v38, %v6616_v39  ;;  %v7195_v8 = vor.u32 %v9592_v3, %v7192_v5  ;;  %v6750_v5 = vld [vmem:[%s15218_s5 + $0x188] sm:$0xf] }
  0xb4   :  { %2231 = vmatpush.bf16.msrb.mxu0 %v7095_v10  ;;  %2244 = vmatpush.bf16.msrb.mxu1 %v7351_v14  ;;  %v6875_v45 = vor.u32 %v9512_v40, %v6872_v42  ;;  %v9584_v10 = vld [vmem:[%s15218_s5 + $0x4c4] sm:$0xf] }
  0xb5   :  { %v7160_v11 = vld [vmem:[%s15218_s5 + $0x4e0] sm:$0xf0] }
  0xb6   :  { %v7163_v12 = vor.u32 %v9584_v10, %v7160_v11  ;;  %v9648_v13 = vld [vmem:[%s15218_s5 + $0x6c4] sm:$0xf]  ;;  %v7006_v11 = vld [vmem:[%s15218_s5 + $0x388] sm:$0xf] }
  0xb7   :  { %2206 = vmatpush.bf16.msra.mxu2 %v6551_v50  ;;  %2219 = vmatpush.bf16.msra.mxu3 %v6807_v51  ;;  %v9440_v50 = vld [vmem:[%s15218_s5 + $0x44] sm:$0xf] }
  0xb8   :  { %2232 = vmatpush.bf16.msrb.mxu0 %v7063_v23  ;;  %2245 = vmatpush.bf16.msrb.mxu1 %v7319_v27  ;;  %v6584_v51 = vld [vmem:[%s15218_s5 + $0x60] sm:$0xf0]  ;;  %v173_v23 = vperm.slane %v11010_v16, 1 }
  0xb9   :  { %v7416_v14 = vld [vmem:[%s15218_s5 + $0x6e0] sm:$0xf0] }
  0xba   :  { %v7419_v15 = vor.u32 %v9648_v13, %v7416_v14  ;;  %v7384_v21 = vld [vmem:[%s15218_s5 + $0x6a0] sm:$0xf0] }
  0xbb   :  { %2251 = vmatpush.bf16.msrb.mxu2 %v6779_v52  ;;  %2264 = vmatpush.bf16.msrb.mxu3 %v7035_v53  ;;  %v9504_v52 = vld [vmem:[%s15218_s5 + $0x244] sm:$0xf]  ;;  %v6587_v53 = vor.u32 %v9440_v50, %v6584_v51 }
  0xbc   :  { %2277 = vmatpush.bf16.msra.mxu0 %v7291_v36  ;;  %2290 = vmatpush.bf16.msra.mxu1 %v7547_v37  ;;  %v6843_v57 = vor.u32 %v9504_v52, %v6840_v54  ;;  %v9568_v26 = vld [vmem:[%s15218_s5 + $0x444] sm:$0xf] }
  0xbd   :  { %v7096_v27 = vld [vmem:[%s15218_s5 + $0x460] sm:$0xf0] }
  0xbe   :  { %v7099_v29 = vor.u32 %v9568_v26, %v7096_v27  ;;  %v7352_v30 = vld [vmem:[%s15218_s5 + $0x660] sm:$0xf0] }
  0xbf   :  { %2252 = vmatpush.bf16.msrb.mxu2 %v6747_v58  ;;  %2265 = vmatpush.bf16.msrb.mxu3 %v7003_v59  ;;  %v7227_v58 = vor.u32 %v9600_v55, %v7224_v56  ;;  %v9664_v59 = vld [vmem:[%s15218_s5 + $0x744] sm:$0xf]  ;;  %v175_v55 = vperm.slane %v11010_v16, 3 }
  0xc0   :  { %2278 = vmatpush.bf16.msra.mxu0 %v7259_v46  ;;  %2291 = vmatpush.bf16.msra.mxu1 %v7515_v49  ;;  %v7483_v61 = vor.u32 %v9664_v59, %v7480_v60  ;;  %v9560_v34 = vld [vmem:[%s15218_s5 + $0x404] sm:$0xf]  ;;  %v9493_v59 = vld [vmem:[%s15218_s5 + $0x1e4] sm:$0xf0] }
  0xc1   :  { %v7064_v35 = vld [vmem:[%s15218_s5 + $0x420] sm:$0xf0]  ;;  %v7038_v60 = vld [vmem:[%s15218_s5 + $0x3c8] sm:$0xf] }
  0xc2   :  { %v9624_v36 = vld [vmem:[%s15218_s5 + $0x604] sm:$0xf]  ;;  %v7067_v39 = vor.u32 %v9560_v34, %v7064_v35  ;;  %v9533_v34 = vld [vmem:[%s15218_s5 + $0x324] sm:$0xf0] }
  0xc3   :  { %2253 = vmatpush.bf16.msrb.mxu2 %v6715_v4  ;;  %2266 = vmatpush.bf16.msrb.mxu3 %v6971_v7  ;;  %v6811_v4 = vor.u32 %v9496_v0, %v6808_v2  ;;  %v7448_v7 = vld [vmem:[%s15218_s5 + $0x720] sm:$0xf0] }
  0xc4   :  { %2279 = vmatpush.bf16.msra.mxu0 %v7227_v58  ;;  %2292 = vmatpush.bf16.msra.mxu1 %v7483_v61  ;;  %v7451_v9 = vor.u32 %v9656_v6, %v7448_v7  ;;  %v7320_v40 = vld [vmem:[%s15218_s5 + $0x620] sm:$0xf0]  ;;  %v6782_v58 = vld [vmem:[%s15218_s5 + $0x1c8] sm:$0xf] }
  0xc5   :  { %v7323_v42 = vor.u32 %v9624_v36, %v7320_v40  ;;  %v9557_v61 = vld [vmem:[%s15218_s5 + $0x3e4] sm:$0xf0]  ;;  %v6783_v3 = vor.u32 %v9493_v59, %v6782_v58 }
  0xc6   :  { %v9485_v6 = vld [vmem:[%s15218_s5 + $0x1a4] sm:$0xf0] }
  0xc7   :  { %2254 = vmatpush.bf16.msrb.mxu2 %v6683_v18  ;;  %2267 = vmatpush.bf16.msrb.mxu3 %v6939_v19  ;;  %v7128_v18 = vld [vmem:[%s15218_s5 + $0x4a0] sm:$0xf0]  ;;  %v6751_v14 = vor.u32 %v9485_v6, %v6750_v5  ;;  %v6654_v40 = vld [vmem:[%s15218_s5 + $0xc8] sm:$0xf] }
  0xc8   :  { %2280 = vmatpush.bf16.msra.mxu0 %v7195_v8  ;;  %2293 = vmatpush.bf16.msra.mxu1 %v7451_v9  ;;  %v9640_v19 = vld [vmem:[%s15218_s5 + $0x684] sm:$0xf]  ;;  %v7131_v20 = vor.u32 %v9576_v17, %v7128_v18  ;;  %v6878_v59 = vld [vmem:[%s15218_s5 + $0x288] sm:$0xf] }
  0xc9   :  { %v7387_v22 = vor.u32 %v9640_v19, %v7384_v21  ;;  %v9477_v21 = vld [vmem:[%s15218_s5 + $0x164] sm:$0xf0] }
  0xcb   :  { %2255 = vmatpush.bf16.msrb.mxu2 %v6651_v28  ;;  %2268 = vmatpush.bf16.msrb.mxu3 %v6907_v32  ;;  %v9632_v28 = vld [vmem:[%s15218_s5 + $0x644] sm:$0xf] }
  0xcc   :  { %2281 = vmatpush.bf16.msra.mxu0 %v7163_v12  ;;  %2294 = vmatpush.bf16.msra.mxu1 %v7419_v15  ;;  %v7355_v32 = vor.u32 %v9632_v28, %v7352_v30  ;;  %v9549_v12 = vld [vmem:[%s15218_s5 + $0x3a4] sm:$0xf0] }
  0xcd   :  { %v7007_v19 = vor.u32 %v9549_v12, %v7006_v11  ;;  %v7230_v11 = vld [vmem:[%s15218_s5 + $0x548] sm:$0xf] }
  0xce   :  { %v9605_v12 = vld [vmem:[%s15218_s5 + $0x564] sm:$0xf0] }
  0xcf   :  { %2256 = vmatpush.bf16.msrb.mxu2 %v6619_v41  ;;  %2269 = vmatpush.bf16.msrb.mxu3 %v6875_v45 }
  0xd0   :  { %2282 = vmatpush.bf16.msra.mxu0 %v7131_v20  ;;  %2295 = vmatpush.bf16.msra.mxu1 %v7387_v22  ;;  %v6718_v20 = vld [vmem:[%s15218_s5 + $0x148] sm:$0xf] }
  0xd1   :  { %v6974_v22 = vld [vmem:[%s15218_s5 + $0x348] sm:$0xf]  ;;  %v6719_v27 = vor.u32 %v9477_v21, %v6718_v20  ;;  %v7231_v20 = vor.u32 %v9605_v12, %v7230_v11 }
  0xd2   :  { %v7070_v11 = vld [vmem:[%s15218_s5 + $0x408] sm:$0xf] }
  0xd3   :  { %2257 = vmatpush.bf16.msrb.mxu2 %v6587_v53  ;;  %2270 = vmatpush.bf16.msrb.mxu3 %v6843_v57  ;;  %v9565_v12 = vld [vmem:[%s15218_s5 + $0x424] sm:$0xf0] }
  0xd4   :  { %2283 = vmatpush.bf16.msra.mxu0 %v7099_v29  ;;  %2296 = vmatpush.bf16.msra.mxu1 %v7355_v32  ;;  %v6686_v29 = vld [vmem:[%s15218_s5 + $0x108] sm:$0xf] }
  0xd5   :  { %v9469_v32 = vld [vmem:[%s15218_s5 + $0x124] sm:$0xf0] }
  0xd7   :  { %2258 = vmatpush.bf16.msrb.mxu2 %v6555_v1  ;;  %2271 = vmatpush.bf16.msrb.mxu3 %v6811_v4  ;;  %v7039_v4 = vor.u32 %v9557_v61, %v7038_v60  ;;  %v9517_v60 = vld [vmem:[%s15218_s5 + $0x2a4] sm:$0xf0] }
  0xd8   :  { %2284 = vmatpush.bf16.msra.mxu0 %v7067_v39  ;;  %2297 = vmatpush.bf16.msra.mxu1 %v7323_v42  ;;  %v7262_v61 = vld [vmem:[%s15218_s5 + $0x588] sm:$0xf] }
 0x117   :  { %v542_v24 = vpop.f32.mrf.mxu0  ;;  %v555_v25 = vpop.f32.mrf.mxu1 }
 0x118   :  { %v543_v33 = vadd.f32 %v542_v24, %v173_v23  ;;  %v9541_v23 = vld [vmem:[%s15218_s5 + $0x364] sm:$0xf0] }
 0x119   :  { %v6975_v28 = vor.u32 %v9541_v23, %v6974_v22  ;;  %v9501_v22 = vld [vmem:[%s15218_s5 + $0x224] sm:$0xf0] }
 0x11a   :  { %v556_v43 = vadd.f32 %v555_v25, %v543_v33  ;;  %v6942_v33 = vld [vmem:[%s15218_s5 + $0x308] sm:$0xf] }
 0x11b   :  { %v6943_v39 = vor.u32 %v9533_v34, %v6942_v33  ;;  %v7198_v23 = vld [vmem:[%s15218_s5 + $0x508] sm:$0xf] }
 0x11c   :  { %v516_v37 = vpop.f32.mrf.mxu2  ;;  %v529_v38 = vpop.f32.mrf.mxu3 }
 0x11d   :  { %v517_v41 = vadd.f32 %v516_v37, %v172_v31 }
 0x11f   :  { %v530_v44 = vadd.f32 %v529_v38, %v517_v41  ;;  %v544_v45 = vpop.f32.mrf.mxu0  ;;  %v557_v46 = vpop.f32.mrf.mxu1  ;;  %v6687_v38 = vor.u32 %v9469_v32, %v6686_v29  ;;  %v9461_v41 = vld [vmem:[%s15218_s5 + $0xe4] sm:$0xf0]  ;;  %v9553_v29 = vld [vmem:[%s15218_s5 + $0x3cc] sm:$0xf] }
 0x120   :  { %v7294_v45 = vld [vmem:[%s15218_s5 + $0x5c8] sm:$0xf] }
 0x121   :  { %v611_v47 = vpack.c.bf16 %v556_v43, %v530_v44  ;;  %v6910_v43 = vld [vmem:[%s15218_s5 + $0x2c8] sm:$0xf] }
 0x122   :  { %v9525_v44 = vld [vmem:[%s15218_s5 + $0x2e4] sm:$0xf0] }
 0x123   :  { %v613_v48 = vunpack.c.l.bf16 %v611_v47  ;;  %v614_v49 = vunpack.c.h.bf16 %v611_v47 }
 0x124   :  { %v518_v50 = vpop.f32.mrf.mxu2  ;;  %v531_v51 = vpop.f32.mrf.mxu3 }
 0x125   :  { %vm617_vm4 = vcmp.gt.f32.partialorder %v613_v48, 0.0  ;;  %vm618_vm5 = vcmp.gt.f32.partialorder %v614_v49, 0.0  ;;  %v621_v52 = vmul.f32 0.20019531, %v613_v48  ;;  %v622_v53 = vmul.f32 0.20019531, %v614_v49  ;;  %v9621_v48 = vld [vmem:[%s15218_s5 + $0x5e4] sm:$0xf0] }
 0x126   :  { %vm627_vm6 = vmpackc.low %vm618_vm5, %vm617_vm4  ;;  %v7550_v49 = vld [vmem:[%s15218_s5 + $0x7c8] sm:$0xf] }
 0x127   :  { %v625_v54 = vpack.c.bf16 %v622_v53, %v621_v52  ;;  %v594_v56 = vpop.f32.mrf.mxu0  ;;  %v607_v57 = vpop.f32.mrf.mxu1  ;;  %v9685_v50 = vld [vmem:[%s15218_s5 + $0x7e4] sm:$0xf0]  ;;  %v6655_v53 = vor.u32 %v9461_v41, %v6654_v40  ;;  %v9481_v41 = vld [vmem:[%s15218_s5 + $0x18c] sm:$0xf] }
 0x128   :  { %v595_v2 = vadd.f32 %v594_v56, %v175_v55  ;;  %v6622_v55 = vld [vmem:[%s15218_s5 + $0x88] sm:$0xf]  ;;  %v7551_v58 = vor.u32 %v9685_v50, %v7550_v49 }
 0x129   :  { %v629_v62 = vsel %vm627_vm6, %v611_v47, %v625_v54  ;;  %v6911_v54 = vor.u32 %v9525_v44, %v6910_v43  ;;  %v9453_v56 = vld [vmem:[%s15218_s5 + $0xa4] sm:$0xf0]  ;;  %v9545_v43 = vld [vmem:[%s15218_s5 + $0x38c] sm:$0xf]  ;;  %vm6256_vm6 = vcmask 130048  }
 0x12a   :  { %v907_v0 = vunpack.c.l.b16 %v629_v62  ;;  %v908_v1 = vunpack.c.h.b16 %v629_v62  ;;  %v608_v15 = vadd.f32 %v607_v57, %v595_v2  ;;  %v7295_v57 = vor.u32 %v9621_v48, %v7294_v45  ;;  %v9613_v62 = vld [vmem:[%s15218_s5 + $0x5a4] sm:$0xf0]  ;;  %v7008_v44 = vld [vmem:[%s15218_s5 + $0x3a8] sm:$0xf0] }
 0x12b   :  { %v6879_v2 = vor.u32 %v9517_v60, %v6878_v59  ;;  %v7263_v5 = vor.u32 %v9613_v62, %v7262_v61  ;;  %v9653_v40 = vld [vmem:[%s15218_s5 + $0x6e4] sm:$0xf0]  ;;  %v7011_v50 = vor.u32 %v9545_v43, %v7008_v44 }
 0x12c   :  { %v11070_v7 = vpack.c.b16 %v907_v0, %v907_v0  ;;  %v11072_v8 = vpack.c.b16 %v908_v1, %v908_v1  ;;  %v568_v9 = vpop.f32.mrf.mxu2  ;;  %v581_v10 = vpop.f32.mrf.mxu3  ;;  %v9677_v0 = vld [vmem:[%s15218_s5 + $0x7a4] sm:$0xf0]  ;;  %v6623_v1 = vor.u32 %v9453_v56, %v6622_v55  ;;  %v9473_v55 = vld [vmem:[%s15218_s5 + $0x14c] sm:$0xf] }
 0x12d   :  { %v569_v13 = vadd.f32 %v568_v9, %v174_v63  ;;  %v7518_v63 = vld [vmem:[%s15218_s5 + $0x788] sm:$0xf]  ;;  %v6720_v56 = vld [vmem:[%s15218_s5 + $0x168] sm:$0xf0] }
 0x12e   :  { %2207 = vmatmul.bf16.vlgmr.msra.gmra.mxu2 %v11070_v7  ;;  %2220 = vmatmul.bf16.vlgmr.msra.gmra.mxu3 %v11072_v8  ;;  %v7519_v6 = vor.u32 %v9677_v0, %v7518_v63  ;;  %v6846_v9 = vld [vmem:[%s15218_s5 + $0x248] sm:$0xf]  ;;  %v6723_v63 = vor.u32 %v9473_v55, %v6720_v56  ;;  %v9433_v55 = vld [vmem:[%s15218_s5 + $0xc] sm:$0xf] }
 0x12f   :  { %v582_v16 = vadd.f32 %v581_v10, %v569_v13  ;;  %v596_v17 = vpop.f32.mrf.mxu0  ;;  %v609_v18 = vpop.f32.mrf.mxu1  ;;  %2303 = vmatpush.bf16.msra.mxu2 %v6783_v3  ;;  %2316 = vmatpush.bf16.msra.mxu3 %v7039_v4  ;;  %v6590_v3 = vld [vmem:[%s15218_s5 + $0x48] sm:$0xf]  ;;  %v6560_v56 = vld [vmem:[%s15218_s5 + $0x28] sm:$0xf0] }
 0x130   :  { %v9445_v4 = vld [vmem:[%s15218_s5 + $0x64] sm:$0xf0] }
 0x131   :  { %v612_v24 = vpack.c.bf16 %v608_v15, %v582_v16  ;;  %v9509_v10 = vld [vmem:[%s15218_s5 + $0x264] sm:$0xf0]  ;;  %v6591_v15 = vor.u32 %v9445_v4, %v6590_v3  ;;  %v9465_v3 = vld [vmem:[%s15218_s5 + $0x10c] sm:$0xf] }
 0x132   :  { %v7486_v13 = vld [vmem:[%s15218_s5 + $0x748] sm:$0xf]  ;;  %v6847_v16 = vor.u32 %v9509_v10, %v6846_v9  ;;  %v6688_v4 = vld [vmem:[%s15218_s5 + $0x128] sm:$0xf0] }
 0x133   :  { %v615_v25 = vunpack.c.l.bf16 %v612_v24  ;;  %v616_v26 = vunpack.c.h.bf16 %v612_v24  ;;  %2304 = vmatpush.bf16.msra.mxu2 %v6751_v14  ;;  %2317 = vmatpush.bf16.msra.mxu3 %v7007_v19  ;;  %v9669_v14 = vld [vmem:[%s15218_s5 + $0x764] sm:$0xf0] }
 0x134   :  { %v570_v30 = vpop.f32.mrf.mxu2  ;;  %v583_v31 = vpop.f32.mrf.mxu3  ;;  %v6558_v17 = vld [vmem:[%s15218_s5 + $0x8] sm:$0xf]  ;;  %v7487_v21 = vor.u32 %v9669_v14, %v7486_v13  ;;  %v6691_v14 = vor.u32 %v9465_v3, %v6688_v4  ;;  %v7046_v3 = vld [vmem:[%s15218_s5 + $0x3d0] sm:$0xf] }
 0x135   :  { %vm619_vm7 = vcmp.gt.f32.partialorder %v615_v25, 0.0  ;;  %vm620_vm8 = vcmp.gt.f32.partialorder %v616_v26, 0.0  ;;  %v623_v35 = vmul.f32 0.20019531, %v615_v25  ;;  %v624_v36 = vmul.f32 0.20019531, %v616_v26  ;;  %v9437_v18 = vld [vmem:[%s15218_s5 + $0x24] sm:$0xf0] }
 0x136   :  { %vm628_vm9 = vmpackc.low %vm620_vm8, %vm619_vm7  ;;  %v6814_v19 = vld [vmem:[%s15218_s5 + $0x208] sm:$0xf]  ;;  %v7040_v30 = vld [vmem:[%s15218_s5 + $0x3e8] sm:$0xf0]  ;;  %v6559_v31 = vor.u32 %v9437_v18, %v6558_v17 }
 0x137   :  { %v626_v37 = vpack.c.bf16 %v624_v36, %v623_v35  ;;  %2305 = vmatpush.bf16.msra.mxu2 %v6719_v27  ;;  %2318 = vmatpush.bf16.msra.mxu3 %v6975_v28  ;;  %v7454_v25 = vld [vmem:[%s15218_s5 + $0x708] sm:$0xf]  ;;  %v9489_v27 = vld [vmem:[%s15218_s5 + $0x1cc] sm:$0xf]  ;;  %v6815_v32 = vor.u32 %v9501_v22, %v6814_v19  ;;  %v9558_v4 = vld [vmem:[%s15218_s5 + $0x3ec] sm:$0xf0] }
 0x138   :  { %v9661_v26 = vld [vmem:[%s15218_s5 + $0x724] sm:$0xf0]  ;;  %v6784_v28 = vld [vmem:[%s15218_s5 + $0x1e8] sm:$0xf0] }
 0x139   :  { %v630_v42 = vsel %vm628_vm9, %v612_v24, %v626_v37  ;;  %v9597_v24 = vld [vmem:[%s15218_s5 + $0x524] sm:$0xf0]  ;;  %v7455_v34 = vor.u32 %v9661_v26, %v7454_v25  ;;  %v6787_v37 = vor.u32 %v9489_v27, %v6784_v28  ;;  %v9457_v17 = vld [vmem:[%s15218_s5 + $0xcc] sm:$0xf]  ;;  %v7071_v25 = vor.u32 %v9565_v12, %v7070_v11 }
 0x13a   :  { %v909_v46 = vunpack.c.l.b16 %v630_v42  ;;  %v910_v47 = vunpack.c.h.b16 %v630_v42  ;;  %v7199_v33 = vor.u32 %v9597_v24, %v7198_v23  ;;  %v7166_v35 = vld [vmem:[%s15218_s5 + $0x4c8] sm:$0xf]  ;;  %v6752_v42 = vld [vmem:[%s15218_s5 + $0x1a8] sm:$0xf0] }
 0x13b   :  { %2306 = vmatpush.bf16.msra.mxu2 %v6687_v38  ;;  %2319 = vmatpush.bf16.msra.mxu3 %v6943_v39  ;;  %v9589_v36 = vld [vmem:[%s15218_s5 + $0x4e4] sm:$0xf0]  ;;  %v7043_v38 = vor.u32 %v9553_v29, %v7040_v30  ;;  %v6755_v49 = vor.u32 %v9481_v41, %v6752_v42  ;;  %v6656_v18 = vld [vmem:[%s15218_s5 + $0xe8] sm:$0xf0] }
 0x13c   :  { %v11130_v51 = vpack.c.b16 %v909_v46, %v909_v46  ;;  %v11132_v52 = vpack.c.b16 %v910_v47, %v910_v47  ;;  %v7422_v39 = vld [vmem:[%s15218_s5 + $0x6c8] sm:$0xf]  ;;  %v7167_v45 = vor.u32 %v9589_v36, %v7166_v35  ;;  %v9521_v19 = vld [vmem:[%s15218_s5 + $0x2cc] sm:$0xf]  ;;  %v6659_v27 = vor.u32 %v9457_v17, %v6656_v18  ;;  %v6758_v17 = vld [vmem:[%s15218_s5 + $0x190] sm:$0xf] }
 0x13d   :  { %v7423_v46 = vor.u32 %v9653_v40, %v7422_v39  ;;  %v7134_v47 = vld [vmem:[%s15218_s5 + $0x488] sm:$0xf]  ;;  %v7296_v22 = vld [vmem:[%s15218_s5 + $0x5e8] sm:$0xf0]  ;;  %v9486_v18 = vld [vmem:[%s15218_s5 + $0x1ac] sm:$0xf0] }
 0x13e   :  { %2233 = vmatmul.bf16.vlgmr.msrb.gmra.mxu0 %v11130_v51  ;;  %2246 = vmatmul.bf16.vlgmr.msrb.gmra.mxu1 %v11132_v52  ;;  %v9581_v48 = vld [vmem:[%s15218_s5 + $0x4a4] sm:$0xf0]  ;;  %v9681_v23 = vld [vmem:[%s15218_s5 + $0x7cc] sm:$0xf] }
 0x13f   :  { %2259 = vmatmul.bf16.vlgmr.msrb.gmra.mxu2 %v11070_v7  ;;  %2272 = vmatmul.bf16.vlgmr.msrb.gmra.mxu3 %v11072_v8  ;;  %v7135_v59 = vor.u32 %v9581_v48, %v7134_v47  ;;  %v7102_v61 = vld [vmem:[%s15218_s5 + $0x448] sm:$0xf]  ;;  %v7552_v24 = vld [vmem:[%s15218_s5 + $0x7e8] sm:$0xf0] }
 0x140   :  { %2307 = vmatpush.bf16.msra.mxu2 %v6655_v53  ;;  %2320 = vmatpush.bf16.msra.mxu3 %v6911_v54  ;;  %v7390_v53 = vld [vmem:[%s15218_s5 + $0x688] sm:$0xf]  ;;  %v9449_v29 = vld [vmem:[%s15218_s5 + $0x8c] sm:$0xf] }
 0x141   :  { %2329 = vmatpush.bf16.msrb.mxu0 %v7295_v57  ;;  %2342 = vmatpush.bf16.msrb.mxu1 %v7551_v58  ;;  %v9645_v54 = vld [vmem:[%s15218_s5 + $0x6a4] sm:$0xf0]  ;;  %v9537_v57 = vld [vmem:[%s15218_s5 + $0x34c] sm:$0xf] }
 0x142   :  { %v6976_v58 = vld [vmem:[%s15218_s5 + $0x368] sm:$0xf0]  ;;  %v7391_v60 = vor.u32 %v9645_v54, %v7390_v53  ;;  %v9573_v62 = vld [vmem:[%s15218_s5 + $0x464] sm:$0xf0] }
 0x143   :  { %v6979_v0 = vor.u32 %v9537_v57, %v6976_v58  ;;  %v7103_v9 = vor.u32 %v9573_v62, %v7102_v61  ;;  %v7326_v13 = vld [vmem:[%s15218_s5 + $0x608] sm:$0xf]  ;;  %v6624_v30 = vld [vmem:[%s15218_s5 + $0xa8] sm:$0xf0] }
 0x144   :  { %2308 = vmatpush.bf16.msra.mxu2 %v6623_v1  ;;  %2321 = vmatpush.bf16.msra.mxu3 %v6879_v2  ;;  %v7358_v1 = vld [vmem:[%s15218_s5 + $0x648] sm:$0xf]  ;;  %v9609_v35 = vld [vmem:[%s15218_s5 + $0x58c] sm:$0xf]  ;;  %v6627_v39 = vor.u32 %v9449_v29, %v6624_v30  ;;  %v6726_v29 = vld [vmem:[%s15218_s5 + $0x150] sm:$0xf] }
 0x145   :  { %2330 = vmatpush.bf16.msrb.mxu0 %v7263_v5  ;;  %2343 = vmatpush.bf16.msrb.mxu1 %v7519_v6  ;;  %v9637_v2 = vld [vmem:[%s15218_s5 + $0x664] sm:$0xf0]  ;;  %v9529_v5 = vld [vmem:[%s15218_s5 + $0x30c] sm:$0xf]  ;;  %v9478_v30 = vld [vmem:[%s15218_s5 + $0x16c] sm:$0xf0] }
 0x146   :  { %v6944_v6 = vld [vmem:[%s15218_s5 + $0x328] sm:$0xf0]  ;;  %v7359_v10 = vor.u32 %v9637_v2, %v7358_v1  ;;  %v6790_v1 = vld [vmem:[%s15218_s5 + $0x1d0] sm:$0xf] }
 0x147   :  { %v7264_v36 = vld [vmem:[%s15218_s5 + $0x5a8] sm:$0xf0]  ;;  %v9494_v2 = vld [vmem:[%s15218_s5 + $0x1ec] sm:$0xf0] }
 0x148   :  { %2309 = vmatpush.bf16.msra.mxu2 %v6591_v15  ;;  %2322 = vmatpush.bf16.msra.mxu3 %v6847_v16  ;;  %v6947_v15 = vor.u32 %v9529_v5, %v6944_v6  ;;  %v9629_v16 = vld [vmem:[%s15218_s5 + $0x624] sm:$0xf0]  ;;  %v9441_v41 = vld [vmem:[%s15218_s5 + $0x4c] sm:$0xf]  ;;  %v7267_v43 = vor.u32 %v9609_v35, %v7264_v36  ;;  %v6563_v5 = vor.u32 %v9433_v55, %v6560_v56  ;;  %v6662_v55 = vld [vmem:[%s15218_s5 + $0xd0] sm:$0xf] }
 0x149   :  { %2331 = vmatpush.bf16.msrb.mxu0 %v7231_v20  ;;  %2344 = vmatpush.bf16.msrb.mxu1 %v7487_v21  ;;  %v6912_v20 = vld [vmem:[%s15218_s5 + $0x2e8] sm:$0xf0]  ;;  %v7327_v26 = vor.u32 %v9629_v16, %v7326_v13  ;;  %v6791_v13 = vor.u32 %v9494_v2, %v6790_v1  ;;  %v9462_v56 = vld [vmem:[%s15218_s5 + $0xec] sm:$0xf0] }
 0x14a   :  { %v9617_v21 = vld [vmem:[%s15218_s5 + $0x5cc] sm:$0xf]  ;;  %v6915_v28 = vor.u32 %v9521_v19, %v6912_v20  ;;  %v7014_v19 = vld [vmem:[%s15218_s5 + $0x390] sm:$0xf]  ;;  %v6663_v1 = vor.u32 %v9462_v56, %v6662_v55  ;;  %v9482_v55 = vld [vmem:[%s15218_s5 + $0x194] sm:$0xf] }
 0x14b   :  { %v6592_v42 = vld [vmem:[%s15218_s5 + $0x68] sm:$0xf0]  ;;  %v9550_v20 = vld [vmem:[%s15218_s5 + $0x3ac] sm:$0xf0]  ;;  %v6760_v56 = vld [vmem:[%s15218_s5 + $0x1b0] sm:$0xf0] }
 0x14c   :  { %2310 = vmatpush.bf16.msra.mxu2 %v6559_v31  ;;  %2323 = vmatpush.bf16.msra.mxu3 %v6815_v32  ;;  %v7299_v31 = vor.u32 %v9617_v21, %v7296_v22  ;;  %v7555_v32 = vor.u32 %v9681_v23, %v7552_v24  ;;  %v9601_v47 = vld [vmem:[%s15218_s5 + $0x54c] sm:$0xf]  ;;  %v6595_v53 = vor.u32 %v9441_v41, %v6592_v42  ;;  %v6694_v41 = vld [vmem:[%s15218_s5 + $0x110] sm:$0xf] }
 0x14d   :  { %2332 = vmatpush.bf16.msrb.mxu0 %v7199_v33  ;;  %2345 = vmatpush.bf16.msrb.mxu1 %v7455_v34  ;;  %v9513_v33 = vld [vmem:[%s15218_s5 + $0x28c] sm:$0xf]  ;;  %v9470_v42 = vld [vmem:[%s15218_s5 + $0x12c] sm:$0xf0] }
 0x14e   :  { %2285 = vmatmul.bf16.vlgmr.msra.gmra.mxu0 %v11130_v51  ;;  %2298 = vmatmul.bf16.vlgmr.msra.gmra.mxu1 %v11132_v52  ;;  %v6880_v34 = vld [vmem:[%s15218_s5 + $0x2a8] sm:$0xf0] }
 0x14f   :  { %2311 = vmatmul.bf16.vlgmr.msra.gmra.mxu2 %v11070_v7  ;;  %2324 = vmatmul.bf16.vlgmr.msra.gmra.mxu3 %v11072_v8  ;;  %v6883_v40 = vor.u32 %v9513_v33, %v6880_v34  ;;  %v7232_v48 = vld [vmem:[%s15218_s5 + $0x568] sm:$0xf0] }
 0x150   :  { %2355 = vmatpush.bf16.msrb.mxu2 %v6787_v37  ;;  %2368 = vmatpush.bf16.msrb.mxu3 %v7043_v38  ;;  %v9673_v37 = vld [vmem:[%s15218_s5 + $0x78c] sm:$0xf]  ;;  %v7235_v58 = vor.u32 %v9601_v47, %v7232_v48 }
 0x151   :  { %2333 = vmatpush.bf16.msrb.mxu0 %v7167_v45  ;;  %2346 = vmatpush.bf16.msrb.mxu1 %v7423_v46  ;;  %v7520_v38 = vld [vmem:[%s15218_s5 + $0x7a8] sm:$0xf0] }
 0x152   :  { %v7523_v44 = vor.u32 %v9673_v37, %v7520_v38  ;;  %v9505_v45 = vld [vmem:[%s15218_s5 + $0x24c] sm:$0xf]  ;;  %v6727_v37 = vor.u32 %v9478_v30, %v6726_v29  ;;  %v6566_v29 = vld [vmem:[%s15218_s5 + $0x10] sm:$0xf] }
 0x153   :  { %v6848_v46 = vld [vmem:[%s15218_s5 + $0x268] sm:$0xf0]  ;;  %v9438_v30 = vld [vmem:[%s15218_s5 + $0x2c] sm:$0xf0] }
 0x154   :  { %2356 = vmatpush.bf16.msrb.mxu2 %v6755_v49  ;;  %2369 = vmatpush.bf16.msrb.mxu3 %v7011_v50  ;;  %v9665_v49 = vld [vmem:[%s15218_s5 + $0x74c] sm:$0xf]  ;;  %v6851_v54 = vor.u32 %v9505_v45, %v6848_v46 }
 0x155   :  { %2334 = vmatpush.bf16.msrb.mxu0 %v7135_v59  ;;  %2347 = vmatpush.bf16.msrb.mxu1 %v7391_v60  ;;  %v7488_v50 = vld [vmem:[%s15218_s5 + $0x768] sm:$0xf0] }
 0x156   :  { %v9497_v57 = vld [vmem:[%s15218_s5 + $0x20c] sm:$0xf]  ;;  %v7491_v59 = vor.u32 %v9665_v49, %v7488_v50  ;;  %v6695_v50 = vor.u32 %v9470_v42, %v6694_v41  ;;  %v9554_v41 = vld [vmem:[%s15218_s5 + $0x3d4] sm:$0xf] }
 0x157   :  { %v6816_v60 = vld [vmem:[%s15218_s5 + $0x228] sm:$0xf0]  ;;  %v7048_v42 = vld [vmem:[%s15218_s5 + $0x3f0] sm:$0xf0] }
 0x158   :  { %2357 = vmatpush.bf16.msrb.mxu2 %v6723_v63  ;;  %2370 = vmatpush.bf16.msrb.mxu3 %v6979_v0  ;;  %v9593_v61 = vld [vmem:[%s15218_s5 + $0x50c] sm:$0xf]  ;;  %v6819_v6 = vor.u32 %v9497_v57, %v6816_v60  ;;  %v6918_v57 = vld [vmem:[%s15218_s5 + $0x2d0] sm:$0xf] }
 0x159   :  { %2335 = vmatpush.bf16.msrb.mxu0 %v7103_v9  ;;  %2348 = vmatpush.bf16.msrb.mxu1 %v7359_v10  ;;  %v7200_v62 = vld [vmem:[%s15218_s5 + $0x528] sm:$0xf0]  ;;  %v9622_v60 = vld [vmem:[%s15218_s5 + $0x5ec] sm:$0xf0] }
 0x15a   :  { %v9657_v63 = vld [vmem:[%s15218_s5 + $0x70c] sm:$0xf]  ;;  %v7203_v9 = vor.u32 %v9593_v61, %v7200_v62  ;;  %v7558_v61 = vld [vmem:[%s15218_s5 + $0x7d0] sm:$0xf] }
 0x15b   :  { %v7456_v0 = vld [vmem:[%s15218_s5 + $0x728] sm:$0xf0]  ;;  %v9686_v62 = vld [vmem:[%s15218_s5 + $0x7ec] sm:$0xf0] }
 0x15c   :  { %2358 = vmatpush.bf16.msrb.mxu2 %v6691_v14  ;;  %2371 = vmatpush.bf16.msrb.mxu3 %v6947_v15  ;;  %v7459_v10 = vor.u32 %v9657_v63, %v7456_v0  ;;  %v9585_v11 = vld [vmem:[%s15218_s5 + $0x4cc] sm:$0xf]  ;;  %v7047_v14 = vor.u32 %v9558_v4, %v7046_v3  ;;  %v6630_v3 = vld [vmem:[%s15218_s5 + $0x90] sm:$0xf] }
 0x15d   :  { %2336 = vmatpush.bf16.msrb.mxu0 %v7071_v25  ;;  %2349 = vmatpush.bf16.msrb.mxu1 %v7327_v26  ;;  %v7168_v12 = vld [vmem:[%s15218_s5 + $0x4e8] sm:$0xf0]  ;;  %v6759_v25 = vor.u32 %v9486_v18, %v6758_v17  ;;  %v7015_v26 = vor.u32 %v9550_v20, %v7014_v19  ;;  %v9454_v4 = vld [vmem:[%s15218_s5 + $0xac] sm:$0xf0] }
 0x15e   :  { %v9649_v15 = vld [vmem:[%s15218_s5 + $0x6cc] sm:$0xf]  ;;  %v7171_v21 = vor.u32 %v9585_v11, %v7168_v12  ;;  %v7270_v11 = vld [vmem:[%s15218_s5 + $0x590] sm:$0xf] }
 0x15f   :  { %v7424_v16 = vld [vmem:[%s15218_s5 + $0x6e8] sm:$0xf0]  ;;  %v9614_v12 = vld [vmem:[%s15218_s5 + $0x5ac] sm:$0xf0] }
 0x160   :  { %2359 = vmatpush.bf16.msrb.mxu2 %v6659_v27  ;;  %2372 = vmatpush.bf16.msrb.mxu3 %v6915_v28  ;;  %v7427_v22 = vor.u32 %v9649_v15, %v7424_v16  ;;  %v9577_v23 = vld [vmem:[%s15218_s5 + $0x48c] sm:$0xf]  ;;  %v6631_v15 = vor.u32 %v9454_v4, %v6630_v3  ;;  %v6598_v17 = vld [vmem:[%s15218_s5 + $0x50] sm:$0xf]  ;;  %v7271_v19 = vor.u32 %v9614_v12, %v7270_v11  ;;  %v9474_v3 = vld [vmem:[%s15218_s5 + $0x154] sm:$0xf] }
 0x161   :  { %2381 = vmatpush.bf16.msra.mxu0 %v7299_v31  ;;  %2394 = vmatpush.bf16.msra.mxu1 %v7555_v32  ;;  %v7136_v24 = vld [vmem:[%s15218_s5 + $0x4a8] sm:$0xf0]  ;;  %v6982_v31 = vld [vmem:[%s15218_s5 + $0x350] sm:$0xf]  ;;  %v6728_v4 = vld [vmem:[%s15218_s5 + $0x170] sm:$0xf0] }
 0x162   :  { %2337 = vmatmul.bf16.vlgmr.msrb.gmra.mxu0 %v11130_v51  ;;  %2350 = vmatmul.bf16.vlgmr.msrb.gmra.mxu1 %v11132_v52  ;;  %v9641_v27 = vld [vmem:[%s15218_s5 + $0x68c] sm:$0xf]  ;;  %v9542_v32 = vld [vmem:[%s15218_s5 + $0x36c] sm:$0xf0]  ;;  %v7139_v33 = vor.u32 %v9577_v23, %v7136_v24 }
 0x163   :  { %v7392_v28 = vld [vmem:[%s15218_s5 + $0x6a8] sm:$0xf0]  ;;  %v6983_v38 = vor.u32 %v9542_v32, %v6982_v31  ;;  %v9446_v18 = vld [vmem:[%s15218_s5 + $0x6c] sm:$0xf0] }
 0x164   :  { %2360 = vmatpush.bf16.msrb.mxu2 %v6627_v39  ;;  %2373 = vmatpush.bf16.msrb.mxu3 %v6883_v40  ;;  %v7395_v34 = vor.u32 %v9641_v27, %v7392_v28  ;;  %v9569_v35 = vld [vmem:[%s15218_s5 + $0x44c] sm:$0xf]  ;;  %v7238_v23 = vld [vmem:[%s15218_s5 + $0x550] sm:$0xf]  ;;  %v6599_v27 = vor.u32 %v9446_v18, %v6598_v17  ;;  %v9466_v17 = vld [vmem:[%s15218_s5 + $0x114] sm:$0xf] }
 0x165   :  { %2382 = vmatpush.bf16.msra.mxu0 %v7267_v43  ;;  %2395 = vmatpush.bf16.msra.mxu1 %v7523_v44  ;;  %v7104_v36 = vld [vmem:[%s15218_s5 + $0x468] sm:$0xf0]  ;;  %v6950_v43 = vld [vmem:[%s15218_s5 + $0x310] sm:$0xf]  ;;  %v6696_v18 = vld [vmem:[%s15218_s5 + $0x130] sm:$0xf0] }
 0x166   :  { %v9633_v39 = vld [vmem:[%s15218_s5 + $0x64c] sm:$0xf]  ;;  %v9534_v44 = vld [vmem:[%s15218_s5 + $0x32c] sm:$0xf0]  ;;  %v7107_v45 = vor.u32 %v9569_v35, %v7104_v36 }
 0x167   :  { %v7360_v40 = vld [vmem:[%s15218_s5 + $0x668] sm:$0xf0]  ;;  %v9606_v24 = vld [vmem:[%s15218_s5 + $0x56c] sm:$0xf0] }
 0x168   :  { %2361 = vmatpush.bf16.msrb.mxu2 %v6595_v53  ;;  %2374 = vmatpush.bf16.msrb.mxu3 %v6851_v54  ;;  %v7363_v46 = vor.u32 %v9633_v39, %v7360_v40  ;;  %v9561_v47 = vld [vmem:[%s15218_s5 + $0x40c] sm:$0xf]  ;;  %v6951_v53 = vor.u32 %v9534_v44, %v6950_v43  ;;  %v6822_v31 = vld [vmem:[%s15218_s5 + $0x210] sm:$0xf]  ;;  %v7239_v32 = vor.u32 %v9606_v24, %v7238_v23  ;;  %v9490_v39 = vld [vmem:[%s15218_s5 + $0x1d4] sm:$0xf] }
 0x169   :  { %2383 = vmatpush.bf16.msra.mxu0 %v7235_v58  ;;  %2396 = vmatpush.bf16.msra.mxu1 %v7491_v59  ;;  %v7072_v48 = vld [vmem:[%s15218_s5 + $0x428] sm:$0xf0]  ;;  %v9526_v58 = vld [vmem:[%s15218_s5 + $0x2ec] sm:$0xf0]  ;;  %v6792_v40 = vld [vmem:[%s15218_s5 + $0x1f0] sm:$0xf0]  ;;  %v6567_v43 = vor.u32 %v9438_v30, %v6566_v29 }
 0x16a   :  { %v9625_v49 = vld [vmem:[%s15218_s5 + $0x60c] sm:$0xf]  ;;  %v7302_v59 = vld [vmem:[%s15218_s5 + $0x5d0] sm:$0xf]  ;;  %v7075_v63 = vor.u32 %v9561_v47, %v7072_v48  ;;  %v6919_v2 = vor.u32 %v9526_v58, %v6918_v57  ;;  %v9546_v57 = vld [vmem:[%s15218_s5 + $0x394] sm:$0xf] }
 0x16b   :  { %v7328_v54 = vld [vmem:[%s15218_s5 + $0x628] sm:$0xf0]  ;;  %v7206_v35 = vld [vmem:[%s15218_s5 + $0x510] sm:$0xf]  ;;  %v7016_v58 = vld [vmem:[%s15218_s5 + $0x3b0] sm:$0xf0] }
 0x16c   :  { %2362 = vmatpush.bf16.msrb.mxu2 %v6563_v5  ;;  %2375 = vmatpush.bf16.msrb.mxu3 %v6819_v6  ;;  %v7331_v0 = vor.u32 %v9625_v49, %v7328_v54  ;;  %v7303_v5 = vor.u32 %v9622_v60, %v7302_v59  ;;  %v7559_v6 = vor.u32 %v9686_v62, %v7558_v61  ;;  %v9598_v36 = vld [vmem:[%s15218_s5 + $0x52c] sm:$0xf0]  ;;  %v9458_v29 = vld [vmem:[%s15218_s5 + $0xd4] sm:$0xf] }
 0x16d   :  { %2384 = vmatpush.bf16.msra.mxu0 %v7203_v9  ;;  %2397 = vmatpush.bf16.msra.mxu1 %v7459_v10  ;;  %v6886_v9 = vld [vmem:[%s15218_s5 + $0x290] sm:$0xf]  ;;  %v6795_v49 = vor.u32 %v9490_v39, %v6792_v40  ;;  %v6664_v30 = vld [vmem:[%s15218_s5 + $0xf0] sm:$0xf0] }
 0x16e   :  { %v9518_v10 = vld [vmem:[%s15218_s5 + $0x2ac] sm:$0xf0]  ;;  %v6667_v39 = vor.u32 %v9458_v29, %v6664_v30  ;;  %v6766_v29 = vld [vmem:[%s15218_s5 + $0x198] sm:$0xf] }
 0x16f   :  { %2363 = vmatmul.bf16.vlgmr.msrb.gmra.mxu2 %v11070_v7  ;;  %2376 = vmatmul.bf16.vlgmr.msrb.gmra.mxu3 %v11072_v8  ;;  %v6887_v16 = vor.u32 %v9518_v10, %v6886_v9  ;;  %v7174_v47 = vld [vmem:[%s15218_s5 + $0x4d0] sm:$0xf]  ;;  %v9487_v30 = vld [vmem:[%s15218_s5 + $0x1b4] sm:$0xf0] }
 0x170   :  { %2407 = vmatpush.bf16.msra.mxu2 %v6791_v13  ;;  %2420 = vmatpush.bf16.msra.mxu3 %v7047_v14  ;;  %v7526_v13 = vld [vmem:[%s15218_s5 + $0x790] sm:$0xf] }
 0x171   :  { %2385 = vmatpush.bf16.msra.mxu0 %v7171_v21  ;;  %2398 = vmatpush.bf16.msra.mxu1 %v7427_v22  ;;  %v9678_v14 = vld [vmem:[%s15218_s5 + $0x7ac] sm:$0xf0] }
 0x172   :  { %v7527_v20 = vor.u32 %v9678_v14, %v7526_v13  ;;  %v6854_v21 = vld [vmem:[%s15218_s5 + $0x250] sm:$0xf]  ;;  %v6731_v13 = vor.u32 %v9474_v3, %v6728_v4  ;;  %v9434_v3 = vld [vmem:[%s15218_s5 + $0x14] sm:$0xf] }
 0x173   :  { %v9510_v22 = vld [vmem:[%s15218_s5 + $0x26c] sm:$0xf0]  ;;  %v6568_v4 = vld [vmem:[%s15218_s5 + $0x30] sm:$0xf0] }
 0x174   :  { %2408 = vmatpush.bf16.msra.mxu2 %v6759_v25  ;;  %2421 = vmatpush.bf16.msra.mxu3 %v7015_v26  ;;  %v7494_v25 = vld [vmem:[%s15218_s5 + $0x750] sm:$0xf]  ;;  %v6855_v28 = vor.u32 %v9510_v22, %v6854_v21 }
 0x175   :  { %2386 = vmatpush.bf16.msra.mxu0 %v7139_v33  ;;  %2399 = vmatpush.bf16.msra.mxu1 %v7395_v34  ;;  %v9670_v26 = vld [vmem:[%s15218_s5 + $0x76c] sm:$0xf0] }
 0x176   :  { %v7495_v33 = vor.u32 %v9670_v26, %v7494_v25  ;;  %v9502_v34 = vld [vmem:[%s15218_s5 + $0x22c] sm:$0xf0]  ;;  %v6699_v26 = vor.u32 %v9466_v17, %v6696_v18  ;;  %v7054_v17 = vld [vmem:[%s15218_s5 + $0x3d8] sm:$0xf] }
 0x177   :  { %v6823_v44 = vor.u32 %v9502_v34, %v6822_v31  ;;  %v9590_v48 = vld [vmem:[%s15218_s5 + $0x4ec] sm:$0xf0]  ;;  %v9522_v31 = vld [vmem:[%s15218_s5 + $0x2d4] sm:$0xf]  ;;  %v9559_v18 = vld [vmem:[%s15218_s5 + $0x3f4] sm:$0xf0] }
 0x178   :  { %2409 = vmatpush.bf16.msra.mxu2 %v6727_v37  ;;  %2422 = vmatpush.bf16.msra.mxu3 %v6983_v38  ;;  %v7462_v37 = vld [vmem:[%s15218_s5 + $0x710] sm:$0xf]  ;;  %v7175_v59 = vor.u32 %v9590_v48, %v7174_v47  ;;  %v7304_v34 = vld [vmem:[%s15218_s5 + $0x5f0] sm:$0xf0] }
 0x179   :  { %2387 = vmatpush.bf16.msra.mxu0 %v7107_v45  ;;  %2400 = vmatpush.bf16.msra.mxu1 %v7363_v46  ;;  %v9662_v38 = vld [vmem:[%s15218_s5 + $0x72c] sm:$0xf0]  ;;  %v7207_v45 = vor.u32 %v9598_v36, %v7206_v35  ;;  %v9682_v35 = vld [vmem:[%s15218_s5 + $0x7d4] sm:$0xf] }
 0x17a   :  { %v7463_v46 = vor.u32 %v9662_v38, %v7462_v37  ;;  %v9654_v54 = vld [vmem:[%s15218_s5 + $0x6ec] sm:$0xf0]  ;;  %v7560_v36 = vld [vmem:[%s15218_s5 + $0x7f0] sm:$0xf0] }
 0x17b   :  { %v7142_v61 = vld [vmem:[%s15218_s5 + $0x490] sm:$0xf]  ;;  %v9610_v47 = vld [vmem:[%s15218_s5 + $0x594] sm:$0xf] }
 0x17c   :  { %2410 = vmatpush.bf16.msra.mxu2 %v6695_v50  ;;  %2423 = vmatpush.bf16.msra.mxu3 %v6951_v53  ;;  %v7051_v50 = vor.u32 %v9554_v41, %v7048_v42  ;;  %v7430_v53 = vld [vmem:[%s15218_s5 + $0x6d0] sm:$0xf]  ;;  %v9450_v41 = vld [vmem:[%s15218_s5 + $0x94] sm:$0xf] }
 0x17d   :  { %2388 = vmatpush.bf16.msra.mxu0 %v7075_v63  ;;  %2401 = vmatpush.bf16.msra.mxu1 %v7331_v0  ;;  %v7431_v60 = vor.u32 %v9654_v54, %v7430_v53  ;;  %v9582_v62 = vld [vmem:[%s15218_s5 + $0x4ac] sm:$0xf0]  ;;  %v6763_v63 = vor.u32 %v9482_v55, %v6760_v56  ;;  %v7019_v0 = vor.u32 %v9546_v57, %v7016_v58  ;;  %v6632_v42 = vld [vmem:[%s15218_s5 + $0xb0] sm:$0xf0] }
 0x17e   :  { %v7143_v9 = vor.u32 %v9582_v62, %v7142_v61  ;;  %v7110_v11 = vld [vmem:[%s15218_s5 + $0x450] sm:$0xf]  ;;  %v7272_v48 = vld [vmem:[%s15218_s5 + $0x5b0] sm:$0xf0]  ;;  %v6635_v53 = vor.u32 %v9450_v41, %v6632_v42  ;;  %v6734_v41 = vld [vmem:[%s15218_s5 + $0x158] sm:$0xf] }
 0x17f   :  { %v9574_v12 = vld [vmem:[%s15218_s5 + $0x46c] sm:$0xf0]  ;;  %v9442_v55 = vld [vmem:[%s15218_s5 + $0x54] sm:$0xf]  ;;  %v7275_v57 = vor.u32 %v9610_v47, %v7272_v48  ;;  %v9479_v42 = vld [vmem:[%s15218_s5 + $0x174] sm:$0xf0] }
 0x180   :  { %2411 = vmatpush.bf16.msra.mxu2 %v6663_v1  ;;  %2424 = vmatpush.bf16.msra.mxu3 %v6919_v2  ;;  %v7398_v1 = vld [vmem:[%s15218_s5 + $0x690] sm:$0xf]  ;;  %v7111_v21 = vor.u32 %v9574_v12, %v7110_v11  ;;  %v6600_v56 = vld [vmem:[%s15218_s5 + $0x70] sm:$0xf0] }
 0x181   :  { %2433 = vmatpush.bf16.msrb.mxu0 %v7303_v5  ;;  %2446 = vmatpush.bf16.msrb.mxu1 %v7559_v6  ;;  %v9646_v2 = vld [vmem:[%s15218_s5 + $0x6ac] sm:$0xf0]  ;;  %v9538_v5 = vld [vmem:[%s15218_s5 + $0x354] sm:$0xf] }
 0x182   :  { %2389 = vmatmul.bf16.vlgmr.msra.gmra.mxu0 %v11130_v51  ;;  %2402 = vmatmul.bf16.vlgmr.msra.gmra.mxu1 %v11132_v52  ;;  %v6984_v6 = vld [vmem:[%s15218_s5 + $0x370] sm:$0xf0]  ;;  %v7399_v10 = vor.u32 %v9646_v2, %v7398_v1  ;;  %v7078_v23 = vld [vmem:[%s15218_s5 + $0x410] sm:$0xf]  ;;  %v6603_v1 = vor.u32 %v9442_v55, %v6600_v56  ;;  %v6702_v55 = vld [vmem:[%s15218_s5 + $0x118] sm:$0xf] }
 0x183   :  { %v6987_v14 = vor.u32 %v9538_v5, %v6984_v6  ;;  %v9566_v24 = vld [vmem:[%s15218_s5 + $0x42c] sm:$0xf0]  ;;  %v9602_v61 = vld [vmem:[%s15218_s5 + $0x554] sm:$0xf]  ;;  %v9471_v56 = vld [vmem:[%s15218_s5 + $0x134] sm:$0xf0] }
 0x184   :  { %2412 = vmatpush.bf16.msra.mxu2 %v6631_v15  ;;  %2425 = vmatpush.bf16.msra.mxu3 %v6887_v16  ;;  %v7366_v15 = vld [vmem:[%s15218_s5 + $0x650] sm:$0xf]  ;;  %v7079_v37 = vor.u32 %v9566_v24, %v7078_v23  ;;  %v7240_v62 = vld [vmem:[%s15218_s5 + $0x570] sm:$0xf0] }
 0x185   :  { %2434 = vmatpush.bf16.msrb.mxu0 %v7271_v19  ;;  %2447 = vmatpush.bf16.msrb.mxu1 %v7527_v20  ;;  %v9638_v16 = vld [vmem:[%s15218_s5 + $0x66c] sm:$0xf0]  ;;  %v9530_v19 = vld [vmem:[%s15218_s5 + $0x314] sm:$0xf]  ;;  %v7243_v6 = vor.u32 %v9602_v61, %v7240_v62 }
 0x186   :  { %v6952_v20 = vld [vmem:[%s15218_s5 + $0x330] sm:$0xf0]  ;;  %v7367_v22 = vor.u32 %v9638_v16, %v7366_v15  ;;  %v7334_v25 = vld [vmem:[%s15218_s5 + $0x610] sm:$0xf]  ;;  %v6798_v15 = vld [vmem:[%s15218_s5 + $0x1d8] sm:$0xf] }
 0x187   :  { %v9498_v5 = vld [vmem:[%s15218_s5 + $0x214] sm:$0xf]  ;;  %v9495_v16 = vld [vmem:[%s15218_s5 + $0x1f4] sm:$0xf0] }
 0x188   :  { %2413 = vmatpush.bf16.msra.mxu2 %v6599_v27  ;;  %2426 = vmatpush.bf16.msra.mxu3 %v6855_v28  ;;  %v6955_v27 = vor.u32 %v9530_v19, %v6952_v20  ;;  %v9630_v28 = vld [vmem:[%s15218_s5 + $0x62c] sm:$0xf0]  ;;  %v9594_v11 = vld [vmem:[%s15218_s5 + $0x514] sm:$0xf]  ;;  %v6571_v19 = vor.u32 %v9434_v3, %v6568_v4  ;;  %v6670_v3 = vld [vmem:[%s15218_s5 + $0xd8] sm:$0xf] }
 0x189   :  { %2435 = vmatpush.bf16.msrb.mxu0 %v7239_v32  ;;  %2448 = vmatpush.bf16.msrb.mxu1 %v7495_v33  ;;  %v6920_v32 = vld [vmem:[%s15218_s5 + $0x2f0] sm:$0xf0]  ;;  %v7335_v38 = vor.u32 %v9630_v28, %v7334_v25  ;;  %v6799_v25 = vor.u32 %v9495_v16, %v6798_v15  ;;  %v9463_v4 = vld [vmem:[%s15218_s5 + $0xf4] sm:$0xf0] }
 0x18a   :  { %v9618_v33 = vld [vmem:[%s15218_s5 + $0x5d4] sm:$0xf]  ;;  %v6923_v40 = vor.u32 %v9522_v31, %v6920_v32  ;;  %v7022_v31 = vld [vmem:[%s15218_s5 + $0x398] sm:$0xf] }
 0x18b   :  { %v7208_v12 = vld [vmem:[%s15218_s5 + $0x530] sm:$0xf0]  ;;  %v9551_v32 = vld [vmem:[%s15218_s5 + $0x3b4] sm:$0xf0] }
 0x18c   :  { %2414 = vmatpush.bf16.msra.mxu2 %v6567_v43  ;;  %2427 = vmatpush.bf16.msra.mxu3 %v6823_v44  ;;  %v7307_v43 = vor.u32 %v9618_v33, %v7304_v34  ;;  %v7563_v44 = vor.u32 %v9682_v35, %v7560_v36  ;;  %v9586_v23 = vld [vmem:[%s15218_s5 + $0x4d4] sm:$0xf] }
 0x18d   :  { %2436 = vmatpush.bf16.msrb.mxu0 %v7207_v45  ;;  %2449 = vmatpush.bf16.msrb.mxu1 %v7463_v46  ;;  %v9514_v45 = vld [vmem:[%s15218_s5 + $0x294] sm:$0xf] }
 0x18e   :  { %v6888_v46 = vld [vmem:[%s15218_s5 + $0x2b0] sm:$0xf0] }
 0x18f   :  { %2415 = vmatmul.bf16.vlgmr.msra.gmra.mxu2 %v11070_v7  ;;  %2428 = vmatmul.bf16.vlgmr.msra.gmra.mxu3 %v11072_v8  ;;  %v6891_v54 = vor.u32 %v9514_v45, %v6888_v46  ;;  %v7176_v24 = vld [vmem:[%s15218_s5 + $0x4f0] sm:$0xf0] }
 0x190   :  { %2459 = vmatpush.bf16.msrb.mxu2 %v6795_v49  ;;  %2472 = vmatpush.bf16.msrb.mxu3 %v7051_v50  ;;  %v9674_v49 = vld [vmem:[%s15218_s5 + $0x794] sm:$0xf]  ;;  %v7179_v33 = vor.u32 %v9586_v23, %v7176_v24  ;;  %v6894_v23 = vld [vmem:[%s15218_s5 + $0x298] sm:$0xf] }
 0x191   :  { %2437 = vmatpush.bf16.msrb.mxu0 %v7175_v59  ;;  %2450 = vmatpush.bf16.msrb.mxu1 %v7431_v60  ;;  %v7528_v50 = vld [vmem:[%s15218_s5 + $0x7b0] sm:$0xf0]  ;;  %v9519_v24 = vld [vmem:[%s15218_s5 + $0x2b4] sm:$0xf0] }
 0x192   :  { %v7531_v58 = vor.u32 %v9674_v49, %v7528_v50  ;;  %v9506_v59 = vld [vmem:[%s15218_s5 + $0x254] sm:$0xf]  ;;  %v6735_v49 = vor.u32 %v9479_v42, %v6734_v41  ;;  %v7502_v41 = vld [vmem:[%s15218_s5 + $0x758] sm:$0xf] }
 0x193   :  { %v6856_v60 = vld [vmem:[%s15218_s5 + $0x270] sm:$0xf0]  ;;  %v9671_v42 = vld [vmem:[%s15218_s5 + $0x774] sm:$0xf0] }
 0x194   :  { %2460 = vmatpush.bf16.msrb.mxu2 %v6763_v63  ;;  %2473 = vmatpush.bf16.msrb.mxu3 %v7019_v0  ;;  %v9666_v63 = vld [vmem:[%s15218_s5 + $0x754] sm:$0xf]  ;;  %v6859_v2 = vor.u32 %v9506_v59, %v6856_v60 }
 0x195   :  { %2438 = vmatpush.bf16.msrb.mxu0 %v7143_v9  ;;  %2451 = vmatpush.bf16.msrb.mxu1 %v7399_v10  ;;  %v7496_v0 = vld [vmem:[%s15218_s5 + $0x770] sm:$0xf0] }
 0x196   :  { %v7499_v9 = vor.u32 %v9666_v63, %v7496_v0  ;;  %v6824_v10 = vld [vmem:[%s15218_s5 + $0x230] sm:$0xf0]  ;;  %v6703_v0 = vor.u32 %v9471_v56, %v6702_v55  ;;  %v7214_v55 = vld [vmem:[%s15218_s5 + $0x518] sm:$0xf] }
 0x197   :  { %v6827_v20 = vor.u32 %v9498_v5, %v6824_v10  ;;  %v7432_v28 = vld [vmem:[%s15218_s5 + $0x6f0] sm:$0xf0]  ;;  %v9527_v10 = vld [vmem:[%s15218_s5 + $0x2f4] sm:$0xf0] }
 0x198   :  { %2461 = vmatpush.bf16.msrb.mxu2 %v6731_v13  ;;  %2474 = vmatpush.bf16.msrb.mxu3 %v6987_v14  ;;  %v9658_v13 = vld [vmem:[%s15218_s5 + $0x714] sm:$0xf]  ;;  %v9599_v56 = vld [vmem:[%s15218_s5 + $0x534] sm:$0xf0] }
 0x199   :  { %2439 = vmatpush.bf16.msrb.mxu0 %v7111_v21  ;;  %2452 = vmatpush.bf16.msrb.mxu1 %v7367_v22  ;;  %v7464_v14 = vld [vmem:[%s15218_s5 + $0x730] sm:$0xf0]  ;;  %v7211_v21 = vor.u32 %v9594_v11, %v7208_v12  ;;  %v7310_v11 = vld [vmem:[%s15218_s5 + $0x5d8] sm:$0xf] }
 0x19a   :  { %v7467_v22 = vor.u32 %v9658_v13, %v7464_v14  ;;  %v9578_v35 = vld [vmem:[%s15218_s5 + $0x494] sm:$0xf]  ;;  %v9623_v12 = vld [vmem:[%s15218_s5 + $0x5f4] sm:$0xf0] }
 0x19b   :  { %v7144_v36 = vld [vmem:[%s15218_s5 + $0x4b0] sm:$0xf0]  ;;  %v7566_v13 = vld [vmem:[%s15218_s5 + $0x7d8] sm:$0xf] }
 0x19c   :  { %2462 = vmatpush.bf16.msrb.mxu2 %v6699_v26  ;;  %2475 = vmatpush.bf16.msrb.mxu3 %v6955_v27  ;;  %v7055_v26 = vor.u32 %v9559_v18, %v7054_v17  ;;  %v9650_v27 = vld [vmem:[%s15218_s5 + $0x6d4] sm:$0xf]  ;;  %v7147_v45 = vor.u32 %v9578_v35, %v7144_v36  ;;  %v9687_v14 = vld [vmem:[%s15218_s5 + $0x7f4] sm:$0xf0]  ;;  %v6671_v17 = vor.u32 %v9463_v4, %v6670_v3 }
 0x19d   :  { %2440 = vmatpush.bf16.msrb.mxu0 %v7079_v37  ;;  %2453 = vmatpush.bf16.msrb.mxu1 %v7335_v38  ;;  %v7435_v34 = vor.u32 %v9650_v27, %v7432_v28  ;;  %v6767_v37 = vor.u32 %v9487_v30, %v6766_v29  ;;  %v7023_v38 = vor.u32 %v9551_v32, %v7022_v31  ;;  %v9570_v47 = vld [vmem:[%s15218_s5 + $0x454] sm:$0xf]  ;;  %v7534_v27 = vld [vmem:[%s15218_s5 + $0x798] sm:$0xf] }
 0x19e   :  { %v7112_v48 = vld [vmem:[%s15218_s5 + $0x470] sm:$0xf0]  ;;  %v9679_v28 = vld [vmem:[%s15218_s5 + $0x7b4] sm:$0xf0]  ;;  %v6895_v30 = vor.u32 %v9519_v24, %v6894_v23 }
 0x19f   :  { %v7115_v59 = vor.u32 %v9570_v47, %v7112_v48  ;;  %v9562_v61 = vld [vmem:[%s15218_s5 + $0x414] sm:$0xf]  ;;  %v6606_v31 = vld [vmem:[%s15218_s5 + $0x58] sm:$0xf] }
 0x1a0   :  { %2463 = vmatpush.bf16.msrb.mxu2 %v6667_v39  ;;  %2476 = vmatpush.bf16.msrb.mxu3 %v6923_v40  ;;  %v9642_v39 = vld [vmem:[%s15218_s5 + $0x694] sm:$0xf]  ;;  %v9447_v32 = vld [vmem:[%s15218_s5 + $0x74] sm:$0xf0] }
 0x1a1   :  { %2485 = vmatpush.bf16.msra.mxu0 %v7307_v43  ;;  %2498 = vmatpush.bf16.msra.mxu1 %v7563_v44  ;;  %v7400_v40 = vld [vmem:[%s15218_s5 + $0x6b0] sm:$0xf0]  ;;  %v6990_v43 = vld [vmem:[%s15218_s5 + $0x358] sm:$0xf] }
 0x1a2   :  { %2441 = vmatmul.bf16.vlgmr.msrb.gmra.mxu0 %v11130_v51  ;;  %2454 = vmatmul.bf16.vlgmr.msrb.gmra.mxu1 %v11132_v52  ;;  %v9543_v44 = vld [vmem:[%s15218_s5 + $0x374] sm:$0xf0]  ;;  %v7403_v46 = vor.u32 %v9642_v39, %v7400_v40  ;;  %v7080_v62 = vld [vmem:[%s15218_s5 + $0x430] sm:$0xf0] }
 0x1a3   :  { %v6991_v50 = vor.u32 %v9543_v44, %v6990_v43  ;;  %v9626_v63 = vld [vmem:[%s15218_s5 + $0x614] sm:$0xf]  ;;  %v7083_v15 = vor.u32 %v9562_v61, %v7080_v62  ;;  %v7246_v39 = vld [vmem:[%s15218_s5 + $0x558] sm:$0xf]  ;;  %v9555_v61 = vld [vmem:[%s15218_s5 + $0x3dc] sm:$0xf] }
 0x1a4   :  { %2464 = vmatpush.bf16.msrb.mxu2 %v6635_v53  ;;  %2477 = vmatpush.bf16.msrb.mxu3 %v6891_v54  ;;  %v9634_v53 = vld [vmem:[%s15218_s5 + $0x654] sm:$0xf]  ;;  %v9607_v40 = vld [vmem:[%s15218_s5 + $0x574] sm:$0xf0]  ;;  %v7056_v62 = vld [vmem:[%s15218_s5 + $0x3f8] sm:$0xf0] }
 0x1a5   :  { %2486 = vmatpush.bf16.msra.mxu0 %v7275_v57  ;;  %2499 = vmatpush.bf16.msra.mxu1 %v7531_v58  ;;  %v7368_v54 = vld [vmem:[%s15218_s5 + $0x670] sm:$0xf0]  ;;  %v6958_v57 = vld [vmem:[%s15218_s5 + $0x318] sm:$0xf] }
 0x1a6   :  { %v9535_v58 = vld [vmem:[%s15218_s5 + $0x334] sm:$0xf0]  ;;  %v7371_v60 = vor.u32 %v9634_v53, %v7368_v54  ;;  %v7503_v53 = vor.u32 %v9671_v42, %v7502_v41 }
 0x1a7   :  { %v6574_v47 = vld [vmem:[%s15218_s5 + $0x18] sm:$0xf] }
 0x1a8   :  { %2465 = vmatpush.bf16.msrb.mxu2 %v6603_v1  ;;  %2478 = vmatpush.bf16.msrb.mxu3 %v6859_v2  ;;  %v6959_v1 = vor.u32 %v9535_v58, %v6958_v57  ;;  %v7336_v2 = vld [vmem:[%s15218_s5 + $0x630] sm:$0xf0]  ;;  %v9439_v48 = vld [vmem:[%s15218_s5 + $0x34] sm:$0xf0] }
 0x1a9   :  { %2487 = vmatpush.bf16.msra.mxu0 %v7243_v6  ;;  %2500 = vmatpush.bf16.msra.mxu1 %v7499_v9  ;;  %v6926_v9 = vld [vmem:[%s15218_s5 + $0x2d8] sm:$0xf]  ;;  %v7339_v16 = vor.u32 %v9626_v63, %v7336_v2  ;;  %v6575_v63 = vor.u32 %v9439_v48, %v6574_v47  ;;  %v9531_v47 = vld [vmem:[%s15218_s5 + $0x31c] sm:$0xf] }
 0x1aa   :  { %v6927_v18 = vor.u32 %v9527_v10, %v6926_v9  ;;  %v9503_v54 = vld [vmem:[%s15218_s5 + $0x234] sm:$0xf0]  ;;  %v7059_v10 = vor.u32 %v9555_v61, %v7056_v62  ;;  %v6960_v48 = vld [vmem:[%s15218_s5 + $0x338] sm:$0xf0] }
 0x1ab   :  { %v7470_v57 = vld [vmem:[%s15218_s5 + $0x718] sm:$0xf]  ;;  %v9459_v61 = vld [vmem:[%s15218_s5 + $0xdc] sm:$0xf] }
 0x1ac   :  { %2466 = vmatpush.bf16.msrb.mxu2 %v6571_v19  ;;  %2479 = vmatpush.bf16.msrb.mxu3 %v6827_v20  ;;  %v6638_v19 = vld [vmem:[%s15218_s5 + $0x98] sm:$0xf]  ;;  %v6672_v62 = vld [vmem:[%s15218_s5 + $0xf8] sm:$0xf0] }
 0x1ad   :  { %2488 = vmatpush.bf16.msra.mxu0 %v7211_v21  ;;  %2501 = vmatpush.bf16.msra.mxu1 %v7467_v22  ;;  %v9455_v20 = vld [vmem:[%s15218_s5 + $0xb4] sm:$0xf0]  ;;  %v7311_v21 = vor.u32 %v9623_v12, %v7310_v11  ;;  %v7567_v22 = vor.u32 %v9687_v14, %v7566_v13 }
 0x1ae   :  { %v6639_v29 = vor.u32 %v9455_v20, %v6638_v19  ;;  %v9663_v58 = vld [vmem:[%s15218_s5 + $0x734] sm:$0xf0]  ;;  %v9547_v19 = vld [vmem:[%s15218_s5 + $0x39c] sm:$0xf] }
 0x1af   :  { %2467 = vmatmul.bf16.vlgmr.msrb.gmra.mxu2 %v11070_v7  ;;  %2480 = vmatmul.bf16.vlgmr.msrb.gmra.mxu3 %v11072_v8  ;;  %v7471_v2 = vor.u32 %v9663_v58, %v7470_v57  ;;  %v7182_v3 = vld [vmem:[%s15218_s5 + $0x4d8] sm:$0xf]  ;;  %v7024_v20 = vld [vmem:[%s15218_s5 + $0x3b8] sm:$0xf0] }
 0x1b0   :  { %2511 = vmatpush.bf16.msra.mxu2 %v6799_v25  ;;  %2524 = vmatpush.bf16.msra.mxu3 %v7055_v26  ;;  %v7278_v25 = vld [vmem:[%s15218_s5 + $0x598] sm:$0xf] }
 0x1b1   :  { %2489 = vmatpush.bf16.msra.mxu0 %v7179_v33  ;;  %2502 = vmatpush.bf16.msra.mxu1 %v7435_v34  ;;  %v11904_v5 = vpop.f32.mrf.mxu2  ;;  %v11906_v6 = vpop.f32.mrf.mxu3  ;;  %v9615_v26 = vld [vmem:[%s15218_s5 + $0x5b4] sm:$0xf0]  ;;  %v7535_v34 = vor.u32 %v9679_v28, %v7534_v27 }
 0x1b2   :  { %v7279_v33 = vor.u32 %v9615_v26, %v7278_v25  ;;  %v9591_v4 = vld [vmem:[%s15218_s5 + $0x4f4] sm:$0xf0]  ;;  %v7027_v26 = vor.u32 %v9547_v19, %v7024_v20 }
 0x1b3   :  { %v7438_v13 = vld [vmem:[%s15218_s5 + $0x6d8] sm:$0xf] }
 0x1b4   :  { %2512 = vmatpush.bf16.msra.mxu2 %v6767_v37  ;;  %2525 = vmatpush.bf16.msra.mxu3 %v7023_v38  ;;  %v6862_v37 = vld [vmem:[%s15218_s5 + $0x258] sm:$0xf] }
 0x1b5   :  { %2490 = vmatpush.bf16.msra.mxu0 %v7147_v45  ;;  %2503 = vmatpush.bf16.msra.mxu1 %v7403_v46  ;;  %v9511_v38 = vld [vmem:[%s15218_s5 + $0x274] sm:$0xf0]  ;;  %v6607_v45 = vor.u32 %v9447_v32, %v6606_v31  ;;  %v9539_v31 = vld [vmem:[%s15218_s5 + $0x35c] sm:$0xf] }
 0x1b6   :  { %v6863_v46 = vor.u32 %v9511_v38, %v6862_v37  ;;  %v9655_v14 = vld [vmem:[%s15218_s5 + $0x6f4] sm:$0xf0]  ;;  %v6992_v32 = vld [vmem:[%s15218_s5 + $0x378] sm:$0xf0] }
 0x1b7   :  { %v7150_v23 = vld [vmem:[%s15218_s5 + $0x498] sm:$0xf]  ;;  %v6995_v38 = vor.u32 %v9539_v31, %v6992_v32 }
 0x1b8   :  { %2513 = vmatpush.bf16.msra.mxu2 %v6735_v49  ;;  %2526 = vmatpush.bf16.msra.mxu3 %v6991_v50  ;;  %v6830_v49 = vld [vmem:[%s15218_s5 + $0x218] sm:$0xf]  ;;  %v7247_v50 = vor.u32 %v9607_v40, %v7246_v39 }
 0x1b9   :  { %2491 = vmatpush.bf16.msra.mxu0 %v7115_v59  ;;  %2504 = vmatpush.bf16.msra.mxu1 %v7371_v60  ;;  %v2210_v35 = vpop.f32.mrf.mxu2  ;;  %v2223_v36 = vpop.f32.mrf.mxu3  ;;  %v9491_v59 = vld [vmem:[%s15218_s5 + $0x1dc] sm:$0xf]  ;;  %v9583_v24 = vld [vmem:[%s15218_s5 + $0x4b4] sm:$0xf0] }
 0x1ba   :  { %v6800_v60 = vld [vmem:[%s15218_s5 + $0x1f8] sm:$0xf0]  ;;  %v7406_v27 = vld [vmem:[%s15218_s5 + $0x698] sm:$0xf] }
 0x1bb   :  { %v11976_v43 = vpop.f32.mrf.mxu0  ;;  %v11978_v44 = vpop.f32.mrf.mxu1  ;;  %v6803_v9 = vor.u32 %v9491_v59, %v6800_v60  ;;  %v9647_v28 = vld [vmem:[%s15218_s5 + $0x6b4] sm:$0xf0]  ;;  %v6963_v59 = vor.u32 %v9531_v47, %v6960_v48 }
 0x1bc   :  { %2514 = vmatpush.bf16.msra.mxu2 %v6703_v0  ;;  %2527 = vmatpush.bf16.msra.mxu3 %v6959_v1  ;;  %v6831_v0 = vor.u32 %v9503_v54, %v6830_v49  ;;  %v7215_v1 = vor.u32 %v9599_v56, %v7214_v55  ;;  %v7118_v35 = vld [vmem:[%s15218_s5 + $0x458] sm:$0xf] }
 0x1bd   :  { %2492 = vmatpush.bf16.msra.mxu0 %v7083_v15  ;;  %2505 = vmatpush.bf16.msra.mxu1 %v7339_v16  ;;  %v9483_v15 = vld [vmem:[%s15218_s5 + $0x19c] sm:$0xf]  ;;  %v9575_v36 = vld [vmem:[%s15218_s5 + $0x474] sm:$0xf0] }
 0x1be   :  { %v7374_v41 = vld [vmem:[%s15218_s5 + $0x658] sm:$0xf] }
 0x1bf   :  { %v9639_v42 = vld [vmem:[%s15218_s5 + $0x674] sm:$0xf0] }
 0x1c0   :  { %2515 = vmatpush.bf16.msra.mxu2 %v6671_v17  ;;  %2528 = vmatpush.bf16.msra.mxu3 %v6927_v18  ;;  %v6768_v18 = vld [vmem:[%s15218_s5 + $0x1b8] sm:$0xf0]  ;;  %v7375_v54 = vor.u32 %v9639_v42, %v7374_v41  ;;  %v7086_v55 = vld [vmem:[%s15218_s5 + $0x418] sm:$0xf] }
 0x1c1   :  { %2537 = vmatpush.bf16.msrb.mxu0 %v7311_v21  ;;  %2550 = vmatpush.bf16.msrb.mxu1 %v7567_v22  ;;  %v7183_v21 = vor.u32 %v9591_v4, %v7182_v3  ;;  %v7439_v22 = vor.u32 %v9655_v14, %v7438_v13  ;;  %v6771_v25 = vor.u32 %v9483_v15, %v6768_v18  ;;  %v9567_v56 = vld [vmem:[%s15218_s5 + $0x434] sm:$0xf0]  ;;  %v9683_v3 = vld [vmem:[%s15218_s5 + $0x7dc] sm:$0xf]  ;;  %v12137_v13 = vld [vmem:[%s15219_s6] sm:$0xff] }
 0x1c2   :  { %2493 = vmatmul.bf16.vlgmr.msra.gmra.mxu0 %v11130_v51  ;;  %2506 = vmatmul.bf16.vlgmr.msra.gmra.mxu1 %v11132_v52  ;;  %v12022_v11 = vpop.f32.mrf.mxu2  ;;  %v12024_v12 = vpop.f32.mrf.mxu3  ;;  %v7342_v57 = vld [vmem:[%s15218_s5 + $0x618] sm:$0xf]  ;;  %v7568_v4 = vld [vmem:[%s15218_s5 + $0x7f8] sm:$0xf0]  ;;  %v6675_v14 = vor.u32 %v9459_v61, %v6672_v62  ;;  %v889_v31 = vperm.slane %v12137_v13, 0 }
 0x1c3   :  { %v2236_v16 = vpop.f32.mrf.mxu0  ;;  %v2249_v17 = vpop.f32.mrf.mxu1  ;;  %v9631_v60 = vld [vmem:[%s15218_s5 + $0x634] sm:$0xf0]  ;;  %v7571_v19 = vor.u32 %v9683_v3, %v7568_v4  ;;  %v7248_v41 = vld [vmem:[%s15218_s5 + $0x578] sm:$0xf0]  ;;  %v9740_v4 = vld [vmem:[%s15220_s7 + $0x1a0] sm:$0xf0] }
 0x1c4   :  { %2516 = vmatpush.bf16.msra.mxu2 %v6639_v29  ;;  %2529 = vmatpush.bf16.msra.mxu3 %v6895_v30  ;;  %v9475_v29 = vld [vmem:[%s15218_s5 + $0x15c] sm:$0xf]  ;;  %v2209_v47 = vadd.f32 %v11904_v5, %v889_v31 }
 0x1c5   :  { %2538 = vmatpush.bf16.msrb.mxu0 %v7279_v33  ;;  %2551 = vmatpush.bf16.msrb.mxu1 %v7535_v34  ;;  %v6736_v30 = vld [vmem:[%s15218_s5 + $0x178] sm:$0xf0]  ;;  %v7151_v33 = vor.u32 %v9583_v24, %v7150_v23  ;;  %v7407_v34 = vor.u32 %v9647_v28, %v7406_v27 }
 0x1c6   :  { %v6739_v37 = vor.u32 %v9475_v29, %v6736_v30  ;;  %v9451_v16 = vld [vmem:[%s15218_s5 + $0x9c] sm:$0xf]  ;;  %v890_v30 = vperm.slane %v12137_v13, 1 }
 0x1c7   :  { %v6640_v17 = vld [vmem:[%s15218_s5 + $0xb8] sm:$0xf0] }
 0x1c8   :  { %2517 = vmatpush.bf16.msra.mxu2 %v6607_v45  ;;  %2530 = vmatpush.bf16.msra.mxu3 %v6863_v46  ;;  %v9467_v45 = vld [vmem:[%s15218_s5 + $0x11c] sm:$0xf]  ;;  %v6643_v32 = vor.u32 %v9451_v16, %v6640_v17 }
 0x1c9   :  { %2539 = vmatpush.bf16.msrb.mxu0 %v7247_v50  ;;  %2552 = vmatpush.bf16.msrb.mxu1 %v7503_v53  ;;  %v6704_v46 = vld [vmem:[%s15218_s5 + $0x138] sm:$0xf0]  ;;  %v7119_v53 = vor.u32 %v9575_v36, %v7118_v35 }
 0x1ca   :  { %v2262_v39 = vpop.f32.mrf.mxu2  ;;  %v2275_v40 = vpop.f32.mrf.mxu3  ;;  %v6707_v58 = vor.u32 %v9467_v45, %v6704_v46  ;;  %v6896_v23 = vld [vmem:[%s15218_s5 + $0x2b8] sm:$0xf0]  ;;  %v2261_v46 = vadd.f32 %v12022_v11, %v890_v30 }
 0x1cb   :  { %v12094_v49 = vpop.f32.mrf.mxu0  ;;  %v12096_v50 = vpop.f32.mrf.mxu1  ;;  %v9611_v24 = vld [vmem:[%s15218_s5 + $0x59c] sm:$0xf] }
 0x1cc   :  { %2518 = vmatpush.bf16.msra.mxu2 %v6575_v63  ;;  %2531 = vmatpush.bf16.msra.mxu3 %v6831_v0  ;;  %v9523_v63 = vld [vmem:[%s15218_s5 + $0x2dc] sm:$0xf] }
 0x1cd   :  { %2540 = vmatpush.bf16.msrb.mxu0 %v7215_v1  ;;  %2553 = vmatpush.bf16.msrb.mxu1 %v7471_v2  ;;  %v6928_v0 = vld [vmem:[%s15218_s5 + $0x2f8] sm:$0xf0] }
 0x1ce   :  { %v9619_v1 = vld [vmem:[%s15218_s5 + $0x5dc] sm:$0xf]  ;;  %v6931_v15 = vor.u32 %v9523_v63, %v6928_v0  ;;  %v7770_v0 = vld [vmem:[%s15220_s7 + $0x188] sm:$0xf] }
 0x1cf   :  { %2519 = vmatmul.bf16.vlgmr.msra.gmra.mxu2 %v11070_v7  ;;  %2532 = vmatmul.bf16.vlgmr.msra.gmra.mxu3 %v11072_v8  ;;  %v7312_v2 = vld [vmem:[%s15218_s5 + $0x5f8] sm:$0xf0] }
 0x1d0   :  { %2563 = vmatpush.bf16.msrb.mxu2 %v6803_v9  ;;  %2576 = vmatpush.bf16.msrb.mxu3 %v7059_v10  ;;  %v7087_v9 = vor.u32 %v9567_v56, %v7086_v55  ;;  %v7343_v10 = vor.u32 %v9631_v60, %v7342_v57  ;;  %v7315_v18 = vor.u32 %v9619_v1, %v7312_v2  ;;  %v7280_v27 = vld [vmem:[%s15218_s5 + $0x5b8] sm:$0xf0] }
 0x1d1   :  { %2541 = vmatpush.bf16.msrb.mxu0 %v7183_v21  ;;  %2554 = vmatpush.bf16.msrb.mxu1 %v7439_v22  ;;  %v9515_v22 = vld [vmem:[%s15218_s5 + $0x29c] sm:$0xf]  ;;  %v7283_v36 = vor.u32 %v9611_v24, %v7280_v27  ;;  %v2274_v1 = vadd.f32 %v12024_v12, %v2261_v46  ;;  %v9733_v27 = vld [vmem:[%s15220_s7 + $0x168] sm:$0xf0] }
 0x1d2   :  { %v12145_v20 = vpop.f32.mrf.mxu2  ;;  %v12147_v21 = vpop.f32.mrf.mxu3  ;;  %v9675_v28 = vld [vmem:[%s15218_s5 + $0x79c] sm:$0xf] }
 0x1d3   :  { %v7536_v29 = vld [vmem:[%s15218_s5 + $0x7b8] sm:$0xf0]  ;;  %v2287_v16 = vadd.f32 %v12094_v49, %v2274_v1 }
 0x1d4   :  { %2564 = vmatpush.bf16.msrb.mxu2 %v6771_v25  ;;  %2577 = vmatpush.bf16.msrb.mxu3 %v7027_v26  ;;  %v2288_v25 = vpop.f32.mrf.mxu0  ;;  %v2301_v26 = vpop.f32.mrf.mxu1  ;;  %v6608_v35 = vld [vmem:[%s15218_s5 + $0x78] sm:$0xf0] }
 0x1d5   :  { %2542 = vmatpush.bf16.msrb.mxu0 %v7151_v33  ;;  %2555 = vmatpush.bf16.msrb.mxu1 %v7407_v34  ;;  %v6899_v33 = vor.u32 %v9515_v22, %v6896_v23  ;;  %v9443_v34 = vld [vmem:[%s15218_s5 + $0x5c] sm:$0xf]  ;;  %v7771_v23 = vor.u32 %v9740_v4, %v7770_v0  ;;  %v7742_v25 = vld [vmem:[%s15220_s7 + $0x150] sm:$0xf]  ;;  %v2300_v30 = vadd.f32 %v12096_v50, %v2287_v16  ;;  %v8218_v16 = vld [vmem:[%s15220_s7 + $0x508] sm:$0xf] }
 0x1d6   :  { %v6864_v39 = vld [vmem:[%s15218_s5 + $0x278] sm:$0xf0]  ;;  %v6611_v48 = vor.u32 %v9443_v34, %v6608_v35  ;;  %v7743_v34 = vor.u32 %v9733_v27, %v7742_v25  ;;  %v892_v27 = vperm.slane %v12137_v13, 3 }
 0x1d7   :  { %v9603_v40 = vld [vmem:[%s15218_s5 + $0x55c] sm:$0xf] }
 0x1d8   :  { %2565 = vmatpush.bf16.msrb.mxu2 %v6739_v37  ;;  %2578 = vmatpush.bf16.msrb.mxu3 %v6995_v38  ;;  %v7539_v37 = vor.u32 %v9675_v28, %v7536_v29  ;;  %v9507_v38 = vld [vmem:[%s15218_s5 + $0x25c] sm:$0xf]  ;;  %v7251_v11 = vor.u32 %v9603_v40, %v7248_v41  ;;  %v7966_v28 = vld [vmem:[%s15220_s7 + $0x310] sm:$0xf]  ;;  %v9789_v29 = vld [vmem:[%s15220_s7 + $0x328] sm:$0xf0] }
 0x1d9   :  { %2543 = vmatpush.bf16.msrb.mxu0 %v7119_v53  ;;  %2556 = vmatpush.bf16.msrb.mxu1 %v7375_v54  ;;  %v9667_v42 = vld [vmem:[%s15218_s5 + $0x75c] sm:$0xf]  ;;  %v6867_v53 = vor.u32 %v9507_v38, %v6864_v39  ;;  %v7967_v35 = vor.u32 %v9789_v29, %v7966_v28  ;;  %v9726_v41 = vld [vmem:[%s15220_s7 + $0x130] sm:$0xf0] }
 0x1da   :  { %v7504_v45 = vld [vmem:[%s15218_s5 + $0x778] sm:$0xf0]  ;;  %v2314_v57 = vpop.f32.mrf.mxu2 }
 0x1db   :  { %v9435_v54 = vld [vmem:[%s15218_s5 + $0x1c] sm:$0xf]  ;;  %v7507_v5 = vor.u32 %v9667_v42, %v7504_v45  ;;  %v7938_v42 = vld [vmem:[%s15220_s7 + $0x2d8] sm:$0xf]  ;;  %v9782_v45 = vld [vmem:[%s15220_s7 + $0x2f0] sm:$0xf0] }
 0x1dc   :  { %2566 = vmatpush.bf16.msrb.mxu2 %v6707_v58  ;;  %2579 = vmatpush.bf16.msrb.mxu3 %v6963_v59  ;;  %v6576_v55 = vld [vmem:[%s15218_s5 + $0x38] sm:$0xf0]  ;;  %v2327_v58 = vpop.f32.mrf.mxu3 }
 0x1dd   :  { %2544 = vmatpush.bf16.msrb.mxu0 %v7087_v9  ;;  %2557 = vmatpush.bf16.msrb.mxu1 %v7343_v10  ;;  %v9499_v56 = vld [vmem:[%s15218_s5 + $0x21c] sm:$0xf]  ;;  %v7994_v9 = vld [vmem:[%s15220_s7 + $0x348] sm:$0xf]  ;;  %v9796_v10 = vld [vmem:[%s15220_s7 + $0x360] sm:$0xf0]  ;;  %v6579_v12 = vor.u32 %v9435_v54, %v6576_v55 }
 0x1de   :  { %v6832_v59 = vld [vmem:[%s15218_s5 + $0x238] sm:$0xf0] }
 0x1df   :  { %v9595_v60 = vld [vmem:[%s15218_s5 + $0x51c] sm:$0xf]  ;;  %v12225_v2 = vpop.f32.mrf.mxu0  ;;  %v12227_v3 = vpop.f32.mrf.mxu1 }
 0x1e0   :  { %2567 = vmatpush.bf16.msrb.mxu2 %v6675_v14  ;;  %2580 = vmatpush.bf16.msrb.mxu3 %v6931_v15  ;;  %v7216_v61 = vld [vmem:[%s15218_s5 + $0x538] sm:$0xf0]  ;;  %v2222_v14 = vadd.f32 %v11906_v6, %v2209_v47  ;;  %v6835_v15 = vor.u32 %v9499_v56, %v6832_v59  ;;  %v7995_v6 = vor.u32 %v9796_v10, %v7994_v9  ;;  %v7686_v56 = vld [vmem:[%s15220_s7 + $0xe0] sm:$0xf]  ;;  %v7658_v10 = vld [vmem:[%s15220_s7 + $0xa8] sm:$0xf] }
 0x1e1   :  { %2589 = vmatpush.bf16.msra.mxu0 %v7315_v18  ;;  %2602 = vmatpush.bf16.msra.mxu1 %v7571_v19  ;;  %v9659_v62 = vld [vmem:[%s15218_s5 + $0x71c] sm:$0xf]  ;;  %v7219_v17 = vor.u32 %v9595_v60, %v7216_v61 }
 0x1e2   :  { %2545 = vmatmul.bf16.vlgmr.msrb.gmra.mxu0 %v11130_v51  ;;  %2558 = vmatmul.bf16.vlgmr.msrb.gmra.mxu1 %v11132_v52  ;;  %v7472_v63 = vld [vmem:[%s15218_s5 + $0x738] sm:$0xf0]  ;;  %v2235_v26 = vadd.f32 %v11976_v43, %v2222_v14  ;;  %v9712_v14 = vld [vmem:[%s15220_s7 + $0xc0] sm:$0xf0] }
 0x1e3   :  { %v7475_v18 = vor.u32 %v9659_v62, %v7472_v63  ;;  %v9587_v19 = vld [vmem:[%s15218_s5 + $0x4dc] sm:$0xf]  ;;  %v7659_v25 = vor.u32 %v9712_v14, %v7658_v10 }
 0x1e4   :  { %2568 = vmatpush.bf16.msrb.mxu2 %v6643_v32  ;;  %2581 = vmatpush.bf16.msrb.mxu3 %v6899_v33  ;;  %v7184_v22 = vld [vmem:[%s15218_s5 + $0x4f8] sm:$0xf0]  ;;  %v2248_v38 = vadd.f32 %v11978_v44, %v2235_v26 }
 0x1e5   :  { %2590 = vmatpush.bf16.msra.mxu0 %v7283_v36  ;;  %2603 = vmatpush.bf16.msra.mxu1 %v7539_v37  ;;  %v9651_v24 = vld [vmem:[%s15218_s5 + $0x6dc] sm:$0xf]  ;;  %v7187_v31 = vor.u32 %v9587_v19, %v7184_v22  ;;  %v7714_v37 = vld [vmem:[%s15220_s7 + $0x118] sm:$0xf]  ;;  %v9908_v19 = vld [vmem:[%s15220_s7 + $0x6e0] sm:$0xf0] }
 0x1e6   :  { %v7440_v49 = vld [vmem:[%s15218_s5 + $0x6f8] sm:$0xf0]  ;;  %v12293_v46 = vpack.c.bf16 %v2300_v30, %v2248_v38  ;;  %v7630_v30 = vld [vmem:[%s15220_s7 + $0x70] sm:$0xf] }
 0x1e7   :  { %v7443_v43 = vor.u32 %v9651_v24, %v7440_v49  ;;  %v9579_v32 = vld [vmem:[%s15218_s5 + $0x49c] sm:$0xf]  ;;  %v2340_v39 = vpop.f32.mrf.mxu0  ;;  %v2353_v40 = vpop.f32.mrf.mxu1 }
 0x1e8   :  { %2569 = vmatpush.bf16.msrb.mxu2 %v6611_v48  ;;  %2582 = vmatpush.bf16.msrb.mxu3 %v6867_v53  ;;  %v7152_v33 = vld [vmem:[%s15218_s5 + $0x4b8] sm:$0xf0]  ;;  %v7715_v48 = vor.u32 %v9726_v41, %v7714_v37  ;;  %v7939_v53 = vor.u32 %v9782_v45, %v7938_v42  ;;  %v2619_v58 = vunpack.c.l.bf16 %v12293_v46  ;;  %v2620_v0 = vunpack.c.h.bf16 %v12293_v46  ;;  %v9901_v37 = vld [vmem:[%s15220_s7 + $0x6a8] sm:$0xf0]  ;;  %v7602_v45 = vld [vmem:[%s15220_s7 + $0x38] sm:$0xf] }
 0x1e9   :  { %2591 = vmatpush.bf16.msra.mxu0 %v7251_v11  ;;  %2604 = vmatpush.bf16.msra.mxu1 %v7507_v5  ;;  %v9643_v50 = vld [vmem:[%s15218_s5 + $0x69c] sm:$0xf]  ;;  %v7910_v5 = vld [vmem:[%s15220_s7 + $0x2a0] sm:$0xf]  ;;  %v8078_v40 = vld [vmem:[%s15220_s7 + $0x3f0] sm:$0xf] }
 0x1ea   :  { %v7408_v36 = vld [vmem:[%s15218_s5 + $0x6b8] sm:$0xf0]  ;;  %v2635_v22 = vmul.f32 0.20019531, %v2619_v58  ;;  %v2636_v49 = vmul.f32 0.20019531, %v2620_v0  ;;  %vm12384_vm10 = vcmp.gt.f32.partialorder %v2619_v58, 0.0  ;;  %vm12388_vm11 = vcmp.gt.f32.partialorder %v2620_v0, 0.0 }
 0x1eb   :  { %v9571_v44 = vld [vmem:[%s15218_s5 + $0x45c] sm:$0xf]  ;;  %vm2647_vm12 = vmpackc.low %vm12388_vm11, %vm12384_vm10 }
 0x1ec   :  { %2570 = vmatpush.bf16.msrb.mxu2 %v6579_v12  ;;  %2583 = vmatpush.bf16.msrb.mxu3 %v6835_v15  ;;  %v7120_v47 = vld [vmem:[%s15218_s5 + $0x478] sm:$0xf0]  ;;  %v7882_v12 = vld [vmem:[%s15220_s7 + $0x268] sm:$0xf]  ;;  %v9768_v15 = vld [vmem:[%s15220_s7 + $0x280] sm:$0xf0] }
 0x1ed   :  { %2592 = vmatpush.bf16.msra.mxu0 %v7219_v17  ;;  %2605 = vmatpush.bf16.msra.mxu1 %v7475_v18  ;;  %v9635_v54 = vld [vmem:[%s15218_s5 + $0x65c] sm:$0xf]  ;;  %v7123_v59 = vor.u32 %v9571_v44, %v7120_v47  ;;  %v9852_v17 = vld [vmem:[%s15220_s7 + $0x520] sm:$0xf0]  ;;  %v8442_v18 = vld [vmem:[%s15220_s7 + $0x6c8] sm:$0xf]  ;;  %v7883_v26 = vor.u32 %v9768_v15, %v7882_v12 }
 0x1ee   :  { %v7376_v55 = vld [vmem:[%s15218_s5 + $0x678] sm:$0xf0]  ;;  %v7826_v47 = vld [vmem:[%s15220_s7 + $0x1f8] sm:$0xf]  ;;  %v8666_v12 = vld [vmem:[%s15220_s7 + $0x888] sm:$0xf] }
 0x1ef   :  { %2571 = vmatmul.bf16.vlgmr.msrb.gmra.mxu2 %v11070_v7  ;;  %2584 = vmatmul.bf16.vlgmr.msrb.gmra.mxu3 %v11072_v8  ;;  %v7155_v7 = vor.u32 %v9579_v32, %v7152_v33  ;;  %v7411_v8 = vor.u32 %v9643_v50, %v7408_v36  ;;  %v9719_v11 = vld [vmem:[%s15220_s7 + $0xf8] sm:$0xf0]  ;;  %v7379_v60 = vor.u32 %v9635_v54, %v7376_v55  ;;  %v7854_v33 = vld [vmem:[%s15220_s7 + $0x230] sm:$0xf]  ;;  %v9845_v50 = vld [vmem:[%s15220_s7 + $0x4e8] sm:$0xf0] }
 0x1f0   :  { %5515 = vmatpush.bf16.msra.mxu2 %v7771_v23  ;;  %5528 = vmatpush.bf16.msra.mxu3 %v7995_v6  ;;  %v9775_v57 = vld [vmem:[%s15220_s7 + $0x2b8] sm:$0xf0]  ;;  %v7687_v1 = vor.u32 %v9719_v11, %v7686_v56  ;;  %v891_v23 = vperm.slane %v12137_v13, 2  ;;  %v8443_v32 = vor.u32 %v9908_v19, %v8442_v18  ;;  %v8414_v36 = vld [vmem:[%s15220_s7 + $0x690] sm:$0xf] }
 0x1f1   :  { %2593 = vmatpush.bf16.msra.mxu0 %v7187_v31  ;;  %2606 = vmatpush.bf16.msra.mxu1 %v7443_v43  ;;  %v9563_v61 = vld [vmem:[%s15218_s5 + $0x41c] sm:$0xf]  ;;  %v7911_v4 = vor.u32 %v9775_v57, %v7910_v5  ;;  %v9705_v31 = vld [vmem:[%s15220_s7 + $0x88] sm:$0xf0]  ;;  %v8219_v43 = vor.u32 %v9852_v17, %v8218_v16  ;;  %v8415_v44 = vor.u32 %v9901_v37, %v8414_v36  ;;  %v9838_v55 = vld [vmem:[%s15220_s7 + $0x4b0] sm:$0xf0] }
 0x1f2   :  { %v7088_v62 = vld [vmem:[%s15218_s5 + $0x438] sm:$0xf0]  ;;  %v2364_v28 = vpop.f32.mrf.mxu2  ;;  %v2377_v29 = vpop.f32.mrf.mxu3  ;;  %v2313_v38 = vadd.f32 %v12145_v20, %v891_v23  ;;  %v7631_v41 = vor.u32 %v9705_v31, %v7630_v30  ;;  %v9698_v20 = vld [vmem:[%s15220_s7 + $0x50] sm:$0xf0]  ;;  %v8386_v56 = vld [vmem:[%s15220_s7 + $0x658] sm:$0xf] }
 0x1f3   :  { %v9627_v63 = vld [vmem:[%s15218_s5 + $0x61c] sm:$0xf]  ;;  %v7091_v6 = vor.u32 %v9563_v61, %v7088_v62  ;;  %v2365_v54 = vadd.f32 %v2364_v28, %v892_v27  ;;  %v9894_v11 = vld [vmem:[%s15220_s7 + $0x670] sm:$0xf0]  ;;  %v7798_v61 = vld [vmem:[%s15220_s7 + $0x1c0] sm:$0xf] }
 0x1f4   :  { %5516 = vmatpush.bf16.msra.mxu2 %v7743_v34  ;;  %5529 = vmatpush.bf16.msra.mxu3 %v7967_v35  ;;  %v7344_v9 = vld [vmem:[%s15218_s5 + $0x638] sm:$0xf0]  ;;  %v9761_v34 = vld [vmem:[%s15220_s7 + $0x248] sm:$0xf0]  ;;  %v8190_v35 = vld [vmem:[%s15220_s7 + $0x4d0] sm:$0xf] }
 0x1f5   :  { %2594 = vmatpush.bf16.msra.mxu0 %v7155_v7  ;;  %2607 = vmatpush.bf16.msra.mxu1 %v7411_v8  ;;  %v7347_v24 = vor.u32 %v9627_v63, %v7344_v9  ;;  %v7855_v42 = vor.u32 %v9761_v34, %v7854_v33  ;;  %v2643_v7 = vpack.c.bf16 %v2636_v49, %v2635_v22  ;;  %v9747_v0 = vld [vmem:[%s15220_s7 + $0x1d8] sm:$0xf0]  ;;  %v9964_v17 = vld [vmem:[%s15220_s7 + $0x8a0] sm:$0xf0]  ;;  %v8330_v30 = vld [vmem:[%s15220_s7 + $0x5e8] sm:$0xf] }
 0x1f6   :  { %v8191_v8 = vor.u32 %v9845_v50, %v8190_v35  ;;  %v8387_v63 = vor.u32 %v9894_v11, %v8386_v56  ;;  %v2378_v10 = vadd.f32 %v2377_v29, %v2365_v54  ;;  %v9887_v14 = vld [vmem:[%s15220_s7 + $0x638] sm:$0xf0]  ;;  %v10020_v18 = vld [vmem:[%s15220_s7 + $0xa60] sm:$0xf0]  ;;  %v8638_v33 = vld [vmem:[%s15220_s7 + $0x850] sm:$0xf] }
 0x1f7   :  { %v9824_v27 = vld [vmem:[%s15220_s7 + $0x440] sm:$0xf0]  ;;  %v9957_v34 = vld [vmem:[%s15220_s7 + $0x868] sm:$0xf0]  ;;  %v9950_v54 = vld [vmem:[%s15220_s7 + $0x830] sm:$0xf0] }
 0x1f8   :  { %5517 = vmatpush.bf16.msra.mxu2 %v7715_v48  ;;  %5530 = vmatpush.bf16.msra.mxu3 %v7939_v53  ;;  %v9754_v48 = vld [vmem:[%s15220_s7 + $0x210] sm:$0xf0]  ;;  %v8162_v53 = vld [vmem:[%s15220_s7 + $0x498] sm:$0xf]  ;;  %v9880_v31 = vld [vmem:[%s15220_s7 + $0x600] sm:$0xf0] }
 0x1f9   :  { %2595 = vmatpush.bf16.msra.mxu0 %v7123_v59  ;;  %2608 = vmatpush.bf16.msra.mxu1 %v7379_v60  ;;  %v7827_v5 = vor.u32 %v9754_v48, %v7826_v47  ;;  %v7574_v59 = vld [vmem:[%s15220_s7] sm:$0xf]  ;;  %v9691_v60 = vld [vmem:[%s15220_s7 + $0x18] sm:$0xf0]  ;;  %v8163_v62 = vor.u32 %v9838_v55, %v8162_v53  ;;  %v10013_v35 = vld [vmem:[%s15220_s7 + $0xa28] sm:$0xf0]  ;;  %v8331_v39 = vor.u32 %v9880_v31, %v8330_v30 }
 0x1fa   :  { %v2366_v57 = vpop.f32.mrf.mxu2  ;;  %v2379_v58 = vpop.f32.mrf.mxu3  ;;  %v7575_v23 = vor.u32 %v9691_v60, %v7574_v59  ;;  %v8610_v47 = vld [vmem:[%s15220_s7 + $0x818] sm:$0xf]  ;;  %v10006_v56 = vld [vmem:[%s15220_s7 + $0x9f0] sm:$0xf0] }
 0x1fb   :  { %v8834_v55 = vld [vmem:[%s15220_s7 + $0x9d8] sm:$0xf]  ;;  %v9810_v58 = vld [vmem:[%s15220_s7 + $0x3d0] sm:$0xf0] }
 0x1fc   :  { %5518 = vmatpush.bf16.msra.mxu2 %v7687_v1  ;;  %5531 = vmatpush.bf16.msra.mxu3 %v7911_v4  ;;  %v8134_v1 = vld [vmem:[%s15220_s7 + $0x460] sm:$0xf]  ;;  %v9831_v4 = vld [vmem:[%s15220_s7 + $0x478] sm:$0xf0]  ;;  %v8050_v57 = vld [vmem:[%s15220_s7 + $0x3b8] sm:$0xf] }
 0x1fd   :  { %2596 = vmatpush.bf16.msra.mxu0 %v7091_v6  ;;  %2609 = vmatpush.bf16.msra.mxu1 %v7347_v24  ;;  %v7799_v6 = vor.u32 %v9747_v0, %v7798_v61  ;;  %v8135_v49 = vor.u32 %v9831_v4, %v8134_v1  ;;  %v8274_v59 = vld [vmem:[%s15220_s7 + $0x578] sm:$0xf]  ;;  %v9866_v60 = vld [vmem:[%s15220_s7 + $0x590] sm:$0xf0]  ;;  %v8611_v61 = vor.u32 %v9950_v54, %v8610_v47  ;;  %v9915_v47 = vld [vmem:[%s15220_s7 + $0x718] sm:$0xf0] }
 0x1fe   :  { %v9737_v54 = vld [vmem:[%s15220_s7 + $0x18c] sm:$0xf]  ;;  %v9723_v1 = vld [vmem:[%s15220_s7 + $0x11c] sm:$0xf] }
 0x1ff   :  { %v2390_v15 = vpop.f32.mrf.mxu0  ;;  %v2403_v16 = vpop.f32.mrf.mxu1 }
 0x200   :  { %5519 = vmatpush.bf16.msra.mxu2 %v7659_v25  ;;  %5532 = vmatpush.bf16.msra.mxu3 %v7883_v26  ;;  %v2391_v22 = vadd.f32 %v2390_v15, %v2378_v10  ;;  %v8106_v26 = vld [vmem:[%s15220_s7 + $0x428] sm:$0xf]  ;;  %v9999_v10 = vld [vmem:[%s15220_s7 + $0x9b8] sm:$0xf0] }
 0x201   :  { %5541 = vmatpush.bf16.msrb.mxu0 %v8219_v43  ;;  %5554 = vmatpush.bf16.msrb.mxu1 %v8443_v32  ;;  %v8667_v43 = vor.u32 %v9964_v17, %v8666_v12  ;;  %v8022_v12 = vld [vmem:[%s15220_s7 + $0x380] sm:$0xf]  ;;  %v9803_v15 = vld [vmem:[%s15220_s7 + $0x398] sm:$0xf0] }
 0x202   :  { %2597 = vmatmul.bf16.vlgmr.msra.gmra.mxu0 %v11130_v51  ;;  %2610 = vmatmul.bf16.vlgmr.msra.gmra.mxu1 %v11132_v52  ;;  %v2326_v51 = vadd.f32 %v12147_v21, %v2313_v38  ;;  %v7603_v52 = vor.u32 %v9698_v20, %v7602_v45  ;;  %v2651_v21 = vsel %vm2647_vm12, %v12293_v46, %v2643_v7  ;;  %v8358_v46 = vld [vmem:[%s15220_s7 + $0x620] sm:$0xf]  ;;  %v8302_v20 = vld [vmem:[%s15220_s7 + $0x5b0] sm:$0xf]  ;;  %v9873_v7 = vld [vmem:[%s15220_s7 + $0x5c8] sm:$0xf0] }
 0x203   :  { %v3187_v19 = vunpack.c.l.b16 %v2651_v21  ;;  %v3188_v24 = vunpack.c.h.b16 %v2651_v21  ;;  %v8359_v25 = vor.u32 %v9887_v14, %v8358_v46  ;;  %v2404_v29 = vadd.f32 %v2403_v16, %v2391_v22  ;;  %v8246_v16 = vld [vmem:[%s15220_s7 + $0x540] sm:$0xf]  ;;  %v9859_v17 = vld [vmem:[%s15220_s7 + $0x558] sm:$0xf0] }
 0x204   :  { %5520 = vmatpush.bf16.msra.mxu2 %v7631_v41  ;;  %5533 = vmatpush.bf16.msra.mxu3 %v7855_v42  ;;  %v2339_v9 = vadd.f32 %v12225_v2, %v2326_v51  ;;  %v8890_v2 = vld [vmem:[%s15220_s7 + $0xa48] sm:$0xf]  ;;  %v8107_v38 = vor.u32 %v9824_v27, %v8106_v26  ;;  %v9817_v41 = vld [vmem:[%s15220_s7 + $0x408] sm:$0xf0]  ;;  %v8835_v21 = vor.u32 %v10006_v56, %v8834_v55 }
 0x205   :  { %5542 = vmatpush.bf16.msrb.mxu0 %v8191_v8  ;;  %5555 = vmatpush.bf16.msrb.mxu1 %v8415_v44  ;;  %v8891_v32 = vor.u32 %v10020_v18, %v8890_v2  ;;  %v12486_v50 = vpack.c.b16 %v3187_v19, %v3187_v19  ;;  %v12488_v37 = vpack.c.b16 %v3188_v24, %v3188_v24  ;;  %v8554_v19 = vld [vmem:[%s15220_s7 + $0x7a8] sm:$0xf]  ;;  %v9992_v24 = vld [vmem:[%s15220_s7 + $0x980] sm:$0xf0]  ;;  %v9793_v56 = vld [vmem:[%s15220_s7 + $0x34c] sm:$0xf] }
 0x206   :  { %v2352_v28 = vadd.f32 %v12227_v3, %v2339_v9  ;;  %v8862_v3 = vld [vmem:[%s15220_s7 + $0xa10] sm:$0xf]  ;;  %v8639_v8 = vor.u32 %v9957_v34, %v8638_v33  ;;  %v8806_v9 = vld [vmem:[%s15220_s7 + $0x9a0] sm:$0xf]  ;;  %v8051_v46 = vor.u32 %v9810_v58, %v8050_v57  ;;  %v8275_v14 = vor.u32 %v9866_v60, %v8274_v59  ;;  %v9985_v34 = vld [vmem:[%s15220_s7 + $0x948] sm:$0xf0] }
 0x207   :  { %v8863_v44 = vor.u32 %v10013_v35, %v8862_v3  ;;  %v2392_v48 = vpop.f32.mrf.mxu0  ;;  %v2405_v53 = vpop.f32.mrf.mxu1  ;;  %v8807_v18 = vor.u32 %v9999_v10, %v8806_v9  ;;  %v8750_v33 = vld [vmem:[%s15220_s7 + $0x930] sm:$0xf]  ;;  %v7772_v55 = vld [vmem:[%s15220_s7 + $0x1a4] sm:$0xf0]  ;;  %v9730_v60 = vld [vmem:[%s15220_s7 + $0x154] sm:$0xf] }
 0x208   :  { %5521 = vmatpush.bf16.msra.mxu2 %v7603_v52  ;;  %5534 = vmatpush.bf16.msra.mxu3 %v7827_v5  ;;  %v2616_v36 = vpack.c.bf16 %v2404_v29, %v2352_v28  ;;  %v8079_v52 = vor.u32 %v9817_v41, %v8078_v40  ;;  %v8303_v5 = vor.u32 %v9873_v7, %v8302_v20  ;;  %v9922_v40 = vld [vmem:[%s15220_s7 + $0x750] sm:$0xf0]  ;;  %v8722_v41 = vld [vmem:[%s15220_s7 + $0x8f8] sm:$0xf]  ;;  %v8694_v48 = vld [vmem:[%s15220_s7 + $0x8c0] sm:$0xf] }
 0x209   :  { %5543 = vmatpush.bf16.msrb.mxu0 %v8163_v62  ;;  %5556 = vmatpush.bf16.msrb.mxu1 %v8387_v63  ;;  %v8582_v62 = vld [vmem:[%s15220_s7 + $0x7e0] sm:$0xf]  ;;  %v9943_v63 = vld [vmem:[%s15220_s7 + $0x7f8] sm:$0xf0]  ;;  %v7775_v58 = vor.u32 %v9737_v54, %v7772_v55  ;;  %v7940_v10 = vld [vmem:[%s15220_s7 + $0x2f4] sm:$0xf0] }
 0x20a   :  { %v2621_v42 = vunpack.c.l.bf16 %v2616_v36  ;;  %v2622_v45 = vunpack.c.h.bf16 %v2616_v36  ;;  %v8583_v2 = vor.u32 %v9943_v63, %v8582_v62  ;;  %v9971_v53 = vld [vmem:[%s15220_s7 + $0x8d8] sm:$0xf0]  ;;  %v7968_v62 = vld [vmem:[%s15220_s7 + $0x32c] sm:$0xf0] }
 0x20b   :  { %v8695_v57 = vor.u32 %v9971_v53, %v8694_v48  ;;  %v9779_v9 = vld [vmem:[%s15220_s7 + $0x2dc] sm:$0xf]  ;;  %v10125_v48 = vld [vmem:[%s15220_s7 + $0xda8] sm:$0xf0] }
 0x20c   :  { %5522 = vmatpush.bf16.msra.mxu2 %v7575_v23  ;;  %5535 = vmatpush.bf16.msra.mxu3 %v7799_v6  ;;  %v2637_v11 = vmul.f32 0.20019531, %v2621_v42  ;;  %v2638_v51 = vmul.f32 0.20019531, %v2622_v45  ;;  %vm12534_vm13 = vcmp.gt.f32.partialorder %v2621_v42, 0.0  ;;  %vm12538_vm14 = vcmp.gt.f32.partialorder %v2622_v45, 0.0  ;;  %v9936_v23 = vld [vmem:[%s15220_s7 + $0x7c0] sm:$0xf0] }
 0x20d   :  { %5544 = vmatpush.bf16.msrb.mxu0 %v8135_v49  ;;  %5557 = vmatpush.bf16.msrb.mxu1 %v8359_v25  ;;  %vm2648_vm15 = vmpackc.low %vm12538_vm14, %vm12534_vm13  ;;  %v8778_v6 = vld [vmem:[%s15220_s7 + $0x968] sm:$0xf]  ;;  %v8023_v49 = vor.u32 %v9803_v15, %v8022_v12  ;;  %v8247_v25 = vor.u32 %v9859_v17, %v8246_v16  ;;  %v8555_v30 = vor.u32 %v9936_v23, %v8554_v19  ;;  %v9978_v42 = vld [vmem:[%s15220_s7 + $0x910] sm:$0xf0] }
 0x20e   :  { %v2644_v4 = vpack.c.bf16 %v2638_v51, %v2637_v11  ;;  %v8779_v31 = vor.u32 %v9992_v24, %v8778_v6  ;;  %v7996_v11 = vld [vmem:[%s15220_s7 + $0x364] sm:$0xf0]  ;;  %v7943_v15 = vor.u32 %v9779_v9, %v7940_v10  ;;  %v9716_v16 = vld [vmem:[%s15220_s7 + $0xe4] sm:$0xf]  ;;  %v7688_v17 = vld [vmem:[%s15220_s7 + $0xfc] sm:$0xf0] }
 0x20f   :  { %5523 = vmatmul.bf16.vlgmr.msra.gmra.mxu2 %v12486_v50  ;;  %5536 = vmatmul.bf16.vlgmr.msra.gmra.mxu3 %v12488_v37  ;;  %v7999_v59 = vor.u32 %v9793_v56, %v7996_v11  ;;  %v7691_v19 = vor.u32 %v9716_v16, %v7688_v17  ;;  %v9709_v23 = vld [vmem:[%s15220_s7 + $0xac] sm:$0xf]  ;;  %v7660_v6 = vld [vmem:[%s15220_s7 + $0xc4] sm:$0xf0]  ;;  %v9751_v55 = vld [vmem:[%s15220_s7 + $0x1fc] sm:$0xf] }
 0x210   :  { %5567 = vmatpush.bf16.msrb.mxu2 %v8667_v43  ;;  %5580 = vmatpush.bf16.msrb.mxu3 %v8891_v32  ;;  %v2652_v22 = vsel %vm2648_vm15, %v2616_v36, %v2644_v4  ;;  %v8526_v43 = vld [vmem:[%s15220_s7 + $0x770] sm:$0xf]  ;;  %v9929_v32 = vld [vmem:[%s15220_s7 + $0x788] sm:$0xf0]  ;;  %v7716_v4 = vld [vmem:[%s15220_s7 + $0x134] sm:$0xf0] }
 0x211   :  { %5545 = vmatpush.bf16.msrb.mxu0 %v8107_v38  ;;  %5558 = vmatpush.bf16.msrb.mxu1 %v8331_v39  ;;  %v3189_v26 = vunpack.c.l.b16 %v2652_v22  ;;  %v3190_v27 = vunpack.c.h.b16 %v2652_v22  ;;  %v8527_v3 = vor.u32 %v9929_v32, %v8526_v43  ;;  %v8751_v38 = vor.u32 %v9985_v34, %v8750_v33  ;;  %v8498_v39 = vld [vmem:[%s15220_s7 + $0x738] sm:$0xf]  ;;  %v9765_v24 = vld [vmem:[%s15220_s7 + $0x26c] sm:$0xf]  ;;  %v10132_v43 = vld [vmem:[%s15220_s7 + $0xde0] sm:$0xf0] }
 0x212   :  { %v12576_v28 = vpop.f32.mrf.mxu2  ;;  %v12578_v29 = vpop.f32.mrf.mxu3  ;;  %v8499_v7 = vor.u32 %v9922_v40, %v8498_v39  ;;  %v7719_v12 = vor.u32 %v9723_v1, %v7716_v4  ;;  %v894_v32 = vperm.slane %v12137_v13, 5  ;;  %v7663_v33 = vor.u32 %v9709_v23, %v7660_v6  ;;  %v7828_v56 = vld [vmem:[%s15220_s7 + $0x214] sm:$0xf0]  ;;  %v7576_v10 = vld [vmem:[%s15220_s7 + $0x1c] sm:$0xf0] }
 0x213   :  { %v12592_v35 = vpack.c.b16 %v3189_v26, %v3189_v26  ;;  %v12594_v36 = vpack.c.b16 %v3190_v27, %v3190_v27  ;;  %v10076_v26 = vld [vmem:[%s15220_s7 + $0xc20] sm:$0xf0]  ;;  %v9338_v27 = vld [vmem:[%s15220_s7 + $0xdc8] sm:$0xf] }
 0x214   :  { %5568 = vmatpush.bf16.msrb.mxu2 %v8639_v8  ;;  %5581 = vmatpush.bf16.msrb.mxu3 %v8863_v44  ;;  %v8723_v8 = vor.u32 %v9978_v42, %v8722_v41  ;;  %v8470_v44 = vld [vmem:[%s15220_s7 + $0x700] sm:$0xf]  ;;  %v7632_v41 = vld [vmem:[%s15220_s7 + $0x8c] sm:$0xf0]  ;;  %v9758_v42 = vld [vmem:[%s15220_s7 + $0x234] sm:$0xf] }
 0x215   :  { %5546 = vmatpush.bf16.msrb.mxu0 %v8079_v52  ;;  %5559 = vmatpush.bf16.msrb.mxu1 %v8303_v5  ;;  %v8471_v5 = vor.u32 %v9915_v47, %v8470_v44  ;;  %v7604_v44 = vld [vmem:[%s15220_s7 + $0x54] sm:$0xf0] }
 0x218   :  { %5569 = vmatpush.bf16.msrb.mxu2 %v8611_v61  ;;  %5582 = vmatpush.bf16.msrb.mxu3 %v8835_v21  ;;  %v7744_v61 = vld [vmem:[%s15220_s7 + $0x16c] sm:$0xf0]  ;;  %v9786_v21 = vld [vmem:[%s15220_s7 + $0x314] sm:$0xf] }
 0x219   :  { %5547 = vmatpush.bf16.msrb.mxu0 %v8051_v46  ;;  %5560 = vmatpush.bf16.msrb.mxu1 %v8275_v14  ;;  %v7747_v63 = vor.u32 %v9730_v60, %v7744_v61  ;;  %v7971_v0 = vor.u32 %v9786_v21, %v7968_v62  ;;  %v10118_v60 = vld [vmem:[%s15220_s7 + $0xd70] sm:$0xf0] }
 0x21a   :  { %v2418_v45 = vpop.f32.mrf.mxu2  ;;  %v2431_v20 = vpop.f32.mrf.mxu3 }
 0x21b   :  { %v9086_v45 = vld [vmem:[%s15220_s7 + $0xbd0] sm:$0xf]  ;;  %v10069_v20 = vld [vmem:[%s15220_s7 + $0xbe8] sm:$0xf0] }
 0x21c   :  { %5570 = vmatpush.bf16.msrb.mxu2 %v8583_v2  ;;  %5583 = vmatpush.bf16.msrb.mxu3 %v8807_v18  ;;  %v9772_v2 = vld [vmem:[%s15220_s7 + $0x2a4] sm:$0xf]  ;;  %v7912_v18 = vld [vmem:[%s15220_s7 + $0x2bc] sm:$0xf0]  ;;  %v9087_v47 = vor.u32 %v10069_v20, %v9086_v45  ;;  %v8946_v20 = vld [vmem:[%s15220_s7 + $0xab8] sm:$0xf] }
 0x21d   :  { %5548 = vmatpush.bf16.msrb.mxu0 %v8023_v49  ;;  %5561 = vmatpush.bf16.msrb.mxu1 %v8247_v25  ;;  %v7915_v22 = vor.u32 %v9772_v2, %v7912_v18  ;;  %v7884_v49 = vld [vmem:[%s15220_s7 + $0x284] sm:$0xf0]  ;;  %v10111_v18 = vld [vmem:[%s15220_s7 + $0xd38] sm:$0xf0] }
 0x21e   :  { %v9114_v25 = vld [vmem:[%s15220_s7 + $0xc08] sm:$0xf]  ;;  %v7887_v34 = vor.u32 %v9765_v24, %v7884_v49 }
 0x21f   :  { %v12634_v51 = vpop.f32.mrf.mxu0  ;;  %v12636_v52 = vpop.f32.mrf.mxu1 }
 0x220   :  { %5571 = vmatpush.bf16.msrb.mxu2 %v8555_v30  ;;  %5584 = vmatpush.bf16.msrb.mxu3 %v8779_v31  ;;  %v893_v30 = vperm.slane %v12137_v13, 4  ;;  %v9115_v31 = vor.u32 %v10076_v26, %v9114_v25  ;;  %v7856_v13 = vld [vmem:[%s15220_s7 + $0x24c] sm:$0xf0]  ;;  %v9002_v25 = vld [vmem:[%s15220_s7 + $0xb28] sm:$0xf] }
 0x221   :  { %5549 = vmatmul.bf16.vlgmr.msrb.gmra.mxu0 %v12592_v35  ;;  %5562 = vmatmul.bf16.vlgmr.msrb.gmra.mxu1 %v12594_v36  ;;  %v7859_v54 = vor.u32 %v9758_v42, %v7856_v13  ;;  %v9226_v26 = vld [vmem:[%s15220_s7 + $0xce8] sm:$0xf] }
 0x222   :  { %5593 = vmatpush.bf16.msra.mxu0 %v9115_v31 }
 0x224   :  { %5572 = vmatpush.bf16.msrb.mxu2 %v8527_v3  ;;  %5585 = vmatpush.bf16.msrb.mxu3 %v8751_v38  ;;  %v9702_v3 = vld [vmem:[%s15220_s7 + $0x74] sm:$0xf]  ;;  %v9339_v38 = vor.u32 %v10132_v43, %v9338_v27 }
 0x225   :  { %v7635_v53 = vor.u32 %v9702_v3, %v7632_v41  ;;  %v10041_v3 = vld [vmem:[%s15220_s7 + $0xb08] sm:$0xf0] }
 0x226   :  { %5606 = vmatpush.bf16.msra.mxu1 %v9339_v38  ;;  %5594 = vmatpush.bf16.msra.mxu0 %v9087_v47  ;;  %v9198_v38 = vld [vmem:[%s15220_s7 + $0xcb0] sm:$0xf]  ;;  %v10097_v41 = vld [vmem:[%s15220_s7 + $0xcc8] sm:$0xf0] }
 0x227   :  { %v2444_v46 = vpop.f32.mrf.mxu0  ;;  %v2457_v14 = vpop.f32.mrf.mxu1  ;;  %v9199_v45 = vor.u32 %v10097_v41, %v9198_v38  ;;  %v9835_v38 = vld [vmem:[%s15220_s7 + $0x49c] sm:$0xf] }
 0x228   :  { %5573 = vmatpush.bf16.msrb.mxu2 %v8499_v7  ;;  %5586 = vmatpush.bf16.msrb.mxu3 %v8723_v8  ;;  %v9310_v7 = vld [vmem:[%s15220_s7 + $0xd90] sm:$0xf]  ;;  %v9695_v8 = vld [vmem:[%s15220_s7 + $0x3c] sm:$0xf]  ;;  %v9744_v46 = vld [vmem:[%s15220_s7 + $0x1c4] sm:$0xf] }
 0x229   :  { %v9311_v11 = vor.u32 %v10125_v48, %v9310_v7  ;;  %v7800_v14 = vld [vmem:[%s15220_s7 + $0x1dc] sm:$0xf0]  ;;  %v10034_v48 = vld [vmem:[%s15220_s7 + $0xad0] sm:$0xf0] }
 0x22a   :  { %v7803_v6 = vor.u32 %v9744_v46, %v7800_v14  ;;  %v9849_v14 = vld [vmem:[%s15220_s7 + $0x50c] sm:$0xf]  ;;  %v8808_v7 = vld [vmem:[%s15220_s7 + $0x9bc] sm:$0xf0] }
 0x22b   :  { %5607 = vmatpush.bf16.msra.mxu1 %v9311_v11 }
 0x22c   :  { %5574 = vmatpush.bf16.msrb.mxu2 %v8471_v5  ;;  %5587 = vmatpush.bf16.msrb.mxu3 %v8695_v57  ;;  %v9058_v5 = vld [vmem:[%s15220_s7 + $0xb98] sm:$0xf]  ;;  %v2417_v57 = vadd.f32 %v12576_v28, %v893_v30  ;;  %v7607_v28 = vor.u32 %v9695_v8, %v7604_v44  ;;  %v10104_v30 = vld [vmem:[%s15220_s7 + $0xd00] sm:$0xf0] }
 0x22e   :  { %v2430_v1 = vadd.f32 %v12578_v29, %v2417_v57  ;;  %v9030_v29 = vld [vmem:[%s15220_s7 + $0xb60] sm:$0xf]  ;;  %v10017_v57 = vld [vmem:[%s15220_s7 + $0xa4c] sm:$0xf] }
 0x230   :  { %5619 = vmatpush.bf16.msra.mxu2 %v7775_v58  ;;  %5632 = vmatpush.bf16.msra.mxu3 %v7999_v59  ;;  %v10062_v58 = vld [vmem:[%s15220_s7 + $0xbb0] sm:$0xf0]  ;;  %v9282_v59 = vld [vmem:[%s15220_s7 + $0xd58] sm:$0xf]  ;;  %v2443_v16 = vadd.f32 %v12634_v51, %v2430_v1  ;;  %v10048_v51 = vld [vmem:[%s15220_s7 + $0xb40] sm:$0xf0] }
 0x231   :  { %v9059_v61 = vor.u32 %v10062_v58, %v9058_v5  ;;  %v9283_v21 = vor.u32 %v10118_v60, %v9282_v59  ;;  %v9003_v27 = vor.u32 %v10048_v51, %v9002_v25  ;;  %v8668_v5 = vld [vmem:[%s15220_s7 + $0x8a4] sm:$0xf0]  ;;  %v8918_v60 = vld [vmem:[%s15220_s7 + $0xa80] sm:$0xf] }
 0x232   :  { %v2468_v39 = vpop.f32.mrf.mxu2  ;;  %v2481_v40 = vpop.f32.mrf.mxu3  ;;  %v2456_v31 = vadd.f32 %v12636_v52, %v2443_v16  ;;  %v8892_v58 = vld [vmem:[%s15220_s7 + $0xa64] sm:$0xf0] }
 0x233   :  { %v2469_v62 = vadd.f32 %v2468_v39, %v894_v32  ;;  %5595 = vmatpush.bf16.msra.mxu0 %v9059_v61  ;;  %5608 = vmatpush.bf16.msra.mxu1 %v9283_v21  ;;  %v9227_v32 = vor.u32 %v10104_v30, %v9226_v26  ;;  %v10027_v61 = vld [vmem:[%s15220_s7 + $0xa98] sm:$0xf0]  ;;  %v8895_v46 = vor.u32 %v10017_v57, %v8892_v58  ;;  %v8192_v30 = vld [vmem:[%s15220_s7 + $0x4ec] sm:$0xf0]  ;;  %v9884_v57 = vld [vmem:[%s15220_s7 + $0x624] sm:$0xf] }
 0x234   :  { %5620 = vmatpush.bf16.msra.mxu2 %v7747_v63  ;;  %5633 = vmatpush.bf16.msra.mxu3 %v7971_v0  ;;  %v7831_v63 = vor.u32 %v9751_v55, %v7828_v56  ;;  %v9688_v0 = vld [vmem:[%s15220_s7 + $0x4] sm:$0xf]  ;;  %v9170_v55 = vld [vmem:[%s15220_s7 + $0xc78] sm:$0xf]  ;;  %v10090_v56 = vld [vmem:[%s15220_s7 + $0xc90] sm:$0xf0] }
 0x235   :  { %v2482_v17 = vadd.f32 %v2481_v40, %v2469_v62  ;;  %v7579_v23 = vor.u32 %v9688_v0, %v7576_v10  ;;  %v9171_v59 = vor.u32 %v10090_v56, %v9170_v55  ;;  %v8919_v62 = vor.u32 %v10027_v61, %v8918_v60  ;;  %v9989_v58 = vld [vmem:[%s15220_s7 + $0x96c] sm:$0xf]  ;;  %v8360_v61 = vld [vmem:[%s15220_s7 + $0x63c] sm:$0xf0] }
 0x238   :  { %5621 = vmatpush.bf16.msra.mxu2 %v7719_v12  ;;  %5634 = vmatpush.bf16.msra.mxu3 %v7943_v15  ;;  %v10055_v12 = vld [vmem:[%s15220_s7 + $0xb78] sm:$0xf0]  ;;  %v9254_v15 = vld [vmem:[%s15220_s7 + $0xd20] sm:$0xf] }
 0x239   :  { %v9031_v2 = vor.u32 %v10055_v12, %v9030_v29  ;;  %v9255_v24 = vor.u32 %v10111_v18, %v9254_v15  ;;  %v8220_v29 = vld [vmem:[%s15220_s7 + $0x524] sm:$0xf0]  ;;  %v9905_v12 = vld [vmem:[%s15220_s7 + $0x6cc] sm:$0xf] }
 0x23a   :  { %v2470_v4 = vpop.f32.mrf.mxu2  ;;  %v2483_v9 = vpop.f32.mrf.mxu3 }
 0x23b   :  { %5596 = vmatpush.bf16.msra.mxu0 %v9031_v2  ;;  %5609 = vmatpush.bf16.msra.mxu1 %v9255_v24  ;;  %v9954_v4 = vld [vmem:[%s15220_s7 + $0x854] sm:$0xf]  ;;  %v8640_v9 = vld [vmem:[%s15220_s7 + $0x86c] sm:$0xf0]  ;;  %v8612_v24 = vld [vmem:[%s15220_s7 + $0x834] sm:$0xf0] }
 0x23c   :  { %5622 = vmatpush.bf16.msra.mxu2 %v7691_v19  ;;  %5635 = vmatpush.bf16.msra.mxu3 %v7915_v22  ;;  %v8864_v2 = vld [vmem:[%s15220_s7 + $0xa2c] sm:$0xf0]  ;;  %v8643_v51 = vor.u32 %v9954_v4, %v8640_v9  ;;  %v9821_v9 = vld [vmem:[%s15220_s7 + $0x42c] sm:$0xf] }
 0x23f   :  { %v2494_v19 = vpop.f32.mrf.mxu0  ;;  %v2507_v22 = vpop.f32.mrf.mxu1  ;;  %5597 = vmatpush.bf16.msra.mxu0 %v9003_v27  ;;  %5610 = vmatpush.bf16.msra.mxu1 %v9227_v32  ;;  %v9842_v27 = vld [vmem:[%s15220_s7 + $0x4d4] sm:$0xf]  ;;  %v8836_v32 = vld [vmem:[%s15220_s7 + $0x9f4] sm:$0xf0] }
 0x240   :  { %5623 = vmatpush.bf16.msra.mxu2 %v7663_v33  ;;  %5636 = vmatpush.bf16.msra.mxu3 %v7887_v34  ;;  %v2495_v49 = vadd.f32 %v2494_v19, %v2482_v17  ;;  %v8974_v34 = vld [vmem:[%s15220_s7 + $0xaf0] sm:$0xf]  ;;  %v10010_v17 = vld [vmem:[%s15220_s7 + $0xa14] sm:$0xf]  ;;  %v8223_v19 = vor.u32 %v9849_v14, %v8220_v29 }
 0x241   :  { %v8975_v40 = vor.u32 %v10041_v3, %v8974_v34  ;;  %v8867_v26 = vor.u32 %v10010_v17, %v8864_v2  ;;  %v8416_v34 = vld [vmem:[%s15220_s7 + $0x6ac] sm:$0xf0]  ;;  %v9982_v14 = vld [vmem:[%s15220_s7 + $0x934] sm:$0xf]  ;;  %v8332_v17 = vld [vmem:[%s15220_s7 + $0x604] sm:$0xf0] }
 0x242   :  { %v2508_v43 = vadd.f32 %v2507_v22, %v2495_v49  ;;  %v8444_v22 = vld [vmem:[%s15220_s7 + $0x6e4] sm:$0xf0]  ;;  %v8752_v29 = vld [vmem:[%s15220_s7 + $0x94c] sm:$0xf0] }
 0x243   :  { %5598 = vmatpush.bf16.msra.mxu0 %v8975_v40  ;;  %5611 = vmatpush.bf16.msra.mxu1 %v9199_v45  ;;  %v8388_v40 = vld [vmem:[%s15220_s7 + $0x674] sm:$0xf0]  ;;  %v8584_v45 = vld [vmem:[%s15220_s7 + $0x7fc] sm:$0xf0] }
 0x244   :  { %5624 = vmatpush.bf16.msra.mxu2 %v7635_v53  ;;  %5637 = vmatpush.bf16.msra.mxu3 %v7859_v54  ;;  %v2617_v33 = vpack.c.bf16 %v2508_v43, %v2456_v31  ;;  %v9961_v53 = vld [vmem:[%s15220_s7 + $0x88c] sm:$0xf]  ;;  %v8947_v54 = vor.u32 %v10034_v48, %v8946_v20  ;;  %v9898_v31 = vld [vmem:[%s15220_s7 + $0x694] sm:$0xf]  ;;  %v10003_v43 = vld [vmem:[%s15220_s7 + $0x9dc] sm:$0xf] }
 0x245   :  { %v8671_v10 = vor.u32 %v9961_v53, %v8668_v5  ;;  %v8419_v3 = vor.u32 %v9898_v31, %v8416_v34  ;;  %v9996_v20 = vld [vmem:[%s15220_s7 + $0x9a4] sm:$0xf]  ;;  %v8556_v48 = vld [vmem:[%s15220_s7 + $0x7c4] sm:$0xf0]  ;;  %v8136_v5 = vld [vmem:[%s15220_s7 + $0x47c] sm:$0xf0] }
 0x246   :  { %v2623_v52 = vunpack.c.l.bf16 %v2617_v33  ;;  %v2624_v39 = vunpack.c.h.bf16 %v2617_v33  ;;  %v8811_v56 = vor.u32 %v9996_v20, %v8808_v7  ;;  %v8304_v31 = vld [vmem:[%s15220_s7 + $0x5cc] sm:$0xf0]  ;;  %v9912_v34 = vld [vmem:[%s15220_s7 + $0x704] sm:$0xf]  ;;  %v8276_v7 = vld [vmem:[%s15220_s7 + $0x594] sm:$0xf0] }
 0x247   :  { %v2496_v42 = vpop.f32.mrf.mxu0  ;;  %v2509_v13 = vpop.f32.mrf.mxu1  ;;  %5599 = vmatpush.bf16.msra.mxu0 %v8947_v54  ;;  %5612 = vmatpush.bf16.msra.mxu1 %v9171_v59  ;;  %v8780_v59 = vld [vmem:[%s15220_s7 + $0x984] sm:$0xf0] }
 0x248   :  { %5625 = vmatpush.bf16.msra.mxu2 %v7607_v28  ;;  %5638 = vmatpush.bf16.msra.mxu3 %v7831_v63  ;;  %vm12803_vm0 = vcmp.gt.f32.partialorder %v2623_v52, 0.0  ;;  %vm12807_vm1 = vcmp.gt.f32.partialorder %v2624_v39, 0.0  ;;  %v2639_v44 = vmul.f32 0.20019531, %v2623_v52  ;;  %v2640_v47 = vmul.f32 0.20019531, %v2624_v39  ;;  %v9142_v28 = vld [vmem:[%s15220_s7 + $0xc40] sm:$0xf] }
 0x249   :  { %vm2649_vm2 = vmpackc.low %vm12807_vm1, %vm12803_vm0  ;;  %v10083_v63 = vld [vmem:[%s15220_s7 + $0xc58] sm:$0xf0]  ;;  %v8164_v52 = vld [vmem:[%s15220_s7 + $0x4b4] sm:$0xf0]  ;;  %v8839_v42 = vor.u32 %v10003_v43, %v8836_v32  ;;  %v8783_v4 = vor.u32 %v9989_v58, %v8780_v59 }
 0x24a   :  { %v2645_v11 = vpack.c.bf16 %v2640_v47, %v2639_v44  ;;  %v9143_v18 = vor.u32 %v10083_v63, %v9142_v28  ;;  %v9891_v39 = vld [vmem:[%s15220_s7 + $0x65c] sm:$0xf]  ;;  %v9940_v13 = vld [vmem:[%s15220_s7 + $0x7e4] sm:$0xf]  ;;  %v8167_v8 = vor.u32 %v9835_v38, %v8164_v52  ;;  %v9933_v47 = vld [vmem:[%s15220_s7 + $0x7ac] sm:$0xf] }
 0x24b   :  { %5600 = vmatpush.bf16.msra.mxu0 %v8919_v62  ;;  %v8391_v44 = vor.u32 %v9891_v39, %v8388_v40  ;;  %v8587_v55 = vor.u32 %v9940_v13, %v8584_v45  ;;  %v9926_v63 = vld [vmem:[%s15220_s7 + $0x774] sm:$0xf]  ;;  %v9968_v38 = vld [vmem:[%s15220_s7 + $0x8c4] sm:$0xf]  ;;  %v9807_v40 = vld [vmem:[%s15220_s7 + $0x3bc] sm:$0xf] }
 0x24c   :  { %5626 = vmatpush.bf16.msra.mxu2 %v7579_v23  ;;  %5639 = vmatpush.bf16.msra.mxu3 %v7803_v6  ;;  %v2653_v21 = vsel %vm2649_vm2, %v2617_v33, %v2645_v11  ;;  %v8447_v23 = vor.u32 %v9905_v12, %v8444_v22  ;;  %v9947_v6 = vld [vmem:[%s15220_s7 + $0x81c] sm:$0xf]  ;;  %v8195_v33 = vor.u32 %v9842_v27, %v8192_v30  ;;  %v9828_v11 = vld [vmem:[%s15220_s7 + $0x464] sm:$0xf]  ;;  %v8724_v27 = vld [vmem:[%s15220_s7 + $0x914] sm:$0xf0] }
 0x24d   :  { %v3191_v0 = vunpack.c.l.b16 %v2653_v21  ;;  %v3192_v1 = vunpack.c.h.b16 %v2653_v21  ;;  %5613 = vmatpush.bf16.msra.mxu1 %v9143_v18  ;;  %v8615_v41 = vor.u32 %v9947_v6, %v8612_v24  ;;  %v8139_v60 = vor.u32 %v9828_v11, %v8136_v5  ;;  %v9919_v18 = vld [vmem:[%s15220_s7 + $0x73c] sm:$0xf]  ;;  %v9814_v6 = vld [vmem:[%s15220_s7 + $0x3f4] sm:$0xf]  ;;  %v8080_v24 = vld [vmem:[%s15220_s7 + $0x40c] sm:$0xf0] }
 0x24e   :  { %v8363_v21 = vor.u32 %v9884_v57, %v8360_v61  ;;  %v8083_v30 = vor.u32 %v9814_v6, %v8080_v24  ;;  %v8696_v13 = vld [vmem:[%s15220_s7 + $0x8dc] sm:$0xf0]  ;;  %v7778_v45 = vld [vmem:[%s15220_s7 + $0x190] sm:$0xf]  ;;  %v9856_v11 = vld [vmem:[%s15220_s7 + $0x544] sm:$0xf] }
 0x24f   :  { %v12863_v15 = vpack.c.b16 %v3191_v0, %v3191_v0  ;;  %v12865_v16 = vpack.c.b16 %v3192_v1, %v3192_v1  ;;  %5645 = vmatpush.bf16.msrb.mxu0 %v8223_v19  ;;  %v8528_v0 = vld [vmem:[%s15220_s7 + $0x78c] sm:$0xf0]  ;;  %v8559_v1 = vor.u32 %v9933_v47, %v8556_v48  ;;  %v8500_v19 = vld [vmem:[%s15220_s7 + $0x754] sm:$0xf0]  ;;  %v9797_v47 = vld [vmem:[%s15220_s7 + $0x368] sm:$0xf0] }
 0x250   :  { %v8531_v22 = vor.u32 %v9926_v63, %v8528_v0  ;;  %v8503_v52 = vor.u32 %v9919_v18, %v8500_v19  ;;  %v7750_v58 = vld [vmem:[%s15220_s7 + $0x158] sm:$0xf]  ;;  %v8248_v59 = vld [vmem:[%s15220_s7 + $0x55c] sm:$0xf0]  ;;  %v9720_v24 = vld [vmem:[%s15220_s7 + $0x100] sm:$0xf0] }
 0x251   :  { %5575 = vmatmul.bf16.vlgmr.msrb.gmra.mxu2 %v12863_v15  ;;  %5588 = vmatmul.bf16.vlgmr.msrb.gmra.mxu3 %v12865_v16  ;;  %v7974_v61 = vld [vmem:[%s15220_s7 + $0x318] sm:$0xf]  ;;  %v8251_v0 = vor.u32 %v9856_v11, %v8248_v59 }
 0x252   :  { %5671 = vmatpush.bf16.msrb.mxu2 %v8671_v10  ;;  %5684 = vmatpush.bf16.msrb.mxu3 %v8895_v46  ;;  %v12884_v49 = vpop.f32.mrf.mxu2  ;;  %v12886_v25 = vpop.f32.mrf.mxu3  ;;  %v8108_v10 = vld [vmem:[%s15220_s7 + $0x444] sm:$0xf0]  ;;  %v9877_v46 = vld [vmem:[%s15220_s7 + $0x5ec] sm:$0xf] }
 0x253   :  { %5658 = vmatpush.bf16.msrb.mxu1 %v8447_v23  ;;  %5646 = vmatpush.bf16.msrb.mxu0 %v8195_v33  ;;  %v8111_v12 = vor.u32 %v9821_v9, %v8108_v10  ;;  %v8335_v2 = vor.u32 %v9877_v46, %v8332_v17  ;;  %v8755_v23 = vor.u32 %v9982_v14, %v8752_v29  ;;  %v7722_v46 = vld [vmem:[%s15220_s7 + $0x120] sm:$0xf] }
 0x254   :  { %v7946_v17 = vld [vmem:[%s15220_s7 + $0x2e0] sm:$0xf] }
 0x256   :  { %5672 = vmatpush.bf16.msrb.mxu2 %v8643_v51  ;;  %5685 = vmatpush.bf16.msrb.mxu3 %v8867_v26  ;;  %v9870_v51 = vld [vmem:[%s15220_s7 + $0x5b4] sm:$0xf]  ;;  %v9975_v26 = vld [vmem:[%s15220_s7 + $0x8fc] sm:$0xf] }
 0x257   :  { %5659 = vmatpush.bf16.msrb.mxu1 %v8419_v3  ;;  %5647 = vmatpush.bf16.msrb.mxu0 %v8167_v8  ;;  %v8307_v43 = vor.u32 %v9870_v51, %v8304_v31  ;;  %v8472_v3 = vld [vmem:[%s15220_s7 + $0x71c] sm:$0xf0]  ;;  %v8727_v39 = vor.u32 %v9975_v26, %v8724_v27  ;;  %v9741_v8 = vld [vmem:[%s15220_s7 + $0x1a8] sm:$0xf0]  ;;  %v7918_v51 = vld [vmem:[%s15220_s7 + $0x2a8] sm:$0xf] }
 0x258   :  { %v7779_v5 = vor.u32 %v9741_v8, %v7778_v45  ;;  %v9776_v26 = vld [vmem:[%s15220_s7 + $0x2c0] sm:$0xf0] }
 0x259   :  { %v7919_v31 = vor.u32 %v9776_v26, %v7918_v51 }
 0x25a   :  { %5673 = vmatpush.bf16.msrb.mxu2 %v8615_v41  ;;  %5686 = vmatpush.bf16.msrb.mxu3 %v8839_v42  ;;  %v2522_v53 = vpop.f32.mrf.mxu2  ;;  %v2535_v54 = vpop.f32.mrf.mxu3  ;;  %v8052_v41 = vld [vmem:[%s15220_s7 + $0x3d4] sm:$0xf0]  ;;  %v9863_v42 = vld [vmem:[%s15220_s7 + $0x57c] sm:$0xf] }
 0x25b   :  { %5660 = vmatpush.bf16.msrb.mxu1 %v8391_v44  ;;  %5648 = vmatpush.bf16.msrb.mxu0 %v8139_v60  ;;  %v8055_v20 = vor.u32 %v9807_v40, %v8052_v41  ;;  %v8002_v44 = vld [vmem:[%s15220_s7 + $0x350] sm:$0xf]  ;;  %v8279_v48 = vor.u32 %v9863_v42, %v8276_v7  ;;  %v8475_v53 = vor.u32 %v9912_v34, %v8472_v3  ;;  %v9734_v60 = vld [vmem:[%s15220_s7 + $0x170] sm:$0xf0]  ;;  %v9713_v34 = vld [vmem:[%s15220_s7 + $0xc8] sm:$0xf0] }
 0x25c   :  { %v8699_v54 = vor.u32 %v9968_v38, %v8696_v13  ;;  %v8003_v57 = vor.u32 %v9797_v47, %v8002_v44  ;;  %v7751_v9 = vor.u32 %v9734_v60, %v7750_v58  ;;  %v7890_v3 = vld [vmem:[%s15220_s7 + $0x270] sm:$0xf]  ;;  %v9769_v38 = vld [vmem:[%s15220_s7 + $0x288] sm:$0xf0]  ;;  %v7638_v13 = vld [vmem:[%s15220_s7 + $0x78] sm:$0xf] }
 0x25d   :  { %v7891_v42 = vor.u32 %v9769_v38, %v7890_v3  ;;  %v9762_v7 = vld [vmem:[%s15220_s7 + $0x250] sm:$0xf0] }
 0x25e   :  { %5674 = vmatpush.bf16.msrb.mxu2 %v8587_v55  ;;  %5687 = vmatpush.bf16.msrb.mxu3 %v8811_v56  ;;  %v9800_v55 = vld [vmem:[%s15220_s7 + $0x384] sm:$0xf]  ;;  %v8024_v56 = vld [vmem:[%s15220_s7 + $0x39c] sm:$0xf0] }
 0x25f   :  { %v12954_v62 = vpop.f32.mrf.mxu0  ;;  %v12956_v28 = vpop.f32.mrf.mxu1  ;;  %5661 = vmatpush.bf16.msrb.mxu1 %v8363_v21  ;;  %5649 = vmatpush.bf16.msrb.mxu0 %v8111_v12  ;;  %v9790_v21 = vld [vmem:[%s15220_s7 + $0x330] sm:$0xf0]  ;;  %v8027_v63 = vor.u32 %v9800_v55, %v8024_v56  ;;  %v9727_v12 = vld [vmem:[%s15220_s7 + $0x138] sm:$0xf0]  ;;  %v7834_v56 = vld [vmem:[%s15220_s7 + $0x200] sm:$0xf] }
 0x260   :  { %v7975_v10 = vor.u32 %v9790_v21, %v7974_v61  ;;  %v7723_v19 = vor.u32 %v9727_v12, %v7722_v46  ;;  %v9699_v55 = vld [vmem:[%s15220_s7 + $0x58] sm:$0xf0]  ;;  %v9692_v21 = vld [vmem:[%s15220_s7 + $0x20] sm:$0xf0]  ;;  %v8674_v46 = vld [vmem:[%s15220_s7 + $0x890] sm:$0xf] }
 0x261   :  { %5627 = vmatmul.bf16.vlgmr.msra.gmra.mxu2 %v12486_v50  ;;  %5640 = vmatmul.bf16.vlgmr.msra.gmra.mxu3 %v12488_v37  ;;  %v10021_v12 = vld [vmem:[%s15220_s7 + $0xa68] sm:$0xf0] }
 0x262   :  { %5675 = vmatpush.bf16.msrb.mxu2 %v8559_v1  ;;  %5688 = vmatpush.bf16.msrb.mxu3 %v8783_v4  ;;  %v10151_v1 = vld [vmem:[%s15219_s6] sm:$0xff] }
 0x263   :  { %5662 = vmatpush.bf16.msrb.mxu1 %v8335_v2  ;;  %5650 = vmatpush.bf16.msrb.mxu0 %v8083_v30  ;;  %v895_v4 = vperm.slane %v10151_v1, 6  ;;  %v9783_v2 = vld [vmem:[%s15220_s7 + $0x2f8] sm:$0xf0]  ;;  %v896_v18 = vperm.slane %v10151_v1, 7  ;;  %v10052_v1 = vld [vmem:[%s15220_s7 + $0xb64] sm:$0xf] }
 0x265   :  { %v2521_v6 = vadd.f32 %v12884_v49, %v895_v4  ;;  %v7666_v49 = vld [vmem:[%s15220_s7 + $0xb0] sm:$0xf]  ;;  %v9032_v4 = vld [vmem:[%s15220_s7 + $0xb7c] sm:$0xf0] }
 0x266   :  { %5676 = vmatpush.bf16.msrb.mxu2 %v8531_v22  ;;  %5689 = vmatpush.bf16.msrb.mxu3 %v8755_v23  ;;  %v7947_v22 = vor.u32 %v9783_v2, %v7946_v17  ;;  %v7694_v23 = vld [vmem:[%s15220_s7 + $0xe8] sm:$0xf]  ;;  %v10073_v2 = vld [vmem:[%s15220_s7 + $0xc0c] sm:$0xf] }
 0x267   :  { %v2548_v32 = vpop.f32.mrf.mxu0  ;;  %v2561_v33 = vpop.f32.mrf.mxu1  ;;  %5663 = vmatpush.bf16.msrb.mxu1 %v8307_v43  ;;  %5651 = vmatpush.bf16.msrb.mxu0 %v8055_v20  ;;  %v7695_v30 = vor.u32 %v9720_v24, %v7694_v23  ;;  %v2534_v43 = vadd.f32 %v12886_v25, %v2521_v6  ;;  %v7667_v25 = vor.u32 %v9713_v34, %v7666_v49  ;;  %v9706_v20 = vld [vmem:[%s15220_s7 + $0x90] sm:$0xf0]  ;;  %v9340_v6 = vld [vmem:[%s15220_s7 + $0xde4] sm:$0xf0]  ;;  %v3167_v24 = vld [vmem:[%s15221_s8] sm:$0x7f] }
 0x268   :  { %v7639_v47 = vor.u32 %v9706_v20, %v7638_v13  ;;  %v3169_v38 = vperm.slane %v3167_v24, 0  ;;  %v8618_v20 = vld [vmem:[%s15220_s7 + $0x820] sm:$0xf]  ;;  %v9004_v24 = vld [vmem:[%s15220_s7 + $0xb44] sm:$0xf0] }
 0x26a   :  { %5677 = vmatpush.bf16.msrb.mxu2 %v8503_v52  ;;  %5690 = vmatpush.bf16.msrb.mxu3 %v8727_v39  ;;  %v2547_v52 = vadd.f32 %v12954_v62, %v2534_v43  ;;  %v7862_v62 = vld [vmem:[%s15220_s7 + $0x238] sm:$0xf]  ;;  %v9958_v43 = vld [vmem:[%s15220_s7 + $0x870] sm:$0xf0] }
 0x26b   :  { %5664 = vmatpush.bf16.msrb.mxu1 %v8279_v48  ;;  %5652 = vmatpush.bf16.msrb.mxu0 %v8027_v63  ;;  %v7863_v48 = vor.u32 %v9762_v7, %v7862_v62  ;;  %v7806_v63 = vld [vmem:[%s15220_s7 + $0x1c8] sm:$0xf]  ;;  %v9951_v62 = vld [vmem:[%s15220_s7 + $0x838] sm:$0xf0]  ;;  %v8842_v7 = vld [vmem:[%s15220_s7 + $0x9e0] sm:$0xf] }
 0x26c   :  { %v2560_v8 = vadd.f32 %v12956_v28, %v2547_v52  ;;  %v9755_v28 = vld [vmem:[%s15220_s7 + $0x218] sm:$0xf0]  ;;  %v10066_v52 = vld [vmem:[%s15220_s7 + $0xbd4] sm:$0xf] }
 0x26d   :  { %v7835_v61 = vor.u32 %v9755_v28, %v7834_v56  ;;  %v9060_v56 = vld [vmem:[%s15220_s7 + $0xbb4] sm:$0xf0]  ;;  %v10115_v28 = vld [vmem:[%s15220_s7 + $0xd5c] sm:$0xf] }
 0x26e   :  { %5678 = vmatpush.bf16.msrb.mxu2 %v8475_v53  ;;  %5691 = vmatpush.bf16.msrb.mxu3 %v8699_v54  ;;  %v7610_v53 = vld [vmem:[%s15220_s7 + $0x40] sm:$0xf] }
 0x26f   :  { %5665 = vmatpush.bf16.msrb.mxu1 %v8251_v0  ;;  %v7611_v60 = vor.u32 %v9699_v55, %v7610_v53  ;;  %v9748_v0 = vld [vmem:[%s15220_s7 + $0x1e0] sm:$0xf0] }
 0x270   :  { %v7807_v23 = vor.u32 %v9748_v0, %v7806_v63 }
 0x271   :  { %5679 = vmatmul.bf16.vlgmr.msrb.gmra.mxu2 %v12863_v15  ;;  %5692 = vmatmul.bf16.vlgmr.msrb.gmra.mxu3 %v12865_v16 }
 0x272   :  { %5723 = vmatpush.bf16.msra.mxu2 %v7779_v5  ;;  %5736 = vmatpush.bf16.msra.mxu3 %v8003_v57  ;;  %v2572_v14 = vpop.f32.mrf.mxu2  ;;  %v2585_v29 = vpop.f32.mrf.mxu3  ;;  %v7582_v57 = vld [vmem:[%s15220_s7 + $0x8] sm:$0xf] }
 0x273   :  { %v2573_v27 = vadd.f32 %v2572_v14, %v896_v18  ;;  %v9965_v14 = vld [vmem:[%s15220_s7 + $0x8a8] sm:$0xf0]  ;;  %v9116_v18 = vld [vmem:[%s15220_s7 + $0xc24] sm:$0xf0] }
 0x274   :  { %v8675_v26 = vor.u32 %v9965_v14, %v8674_v46  ;;  %v9119_v34 = vor.u32 %v10073_v2, %v9116_v18  ;;  %v9993_v2 = vld [vmem:[%s15220_s7 + $0x988] sm:$0xf0] }
 0x275   :  { %v2586_v39 = vadd.f32 %v2585_v29, %v2573_v27  ;;  %v8898_v29 = vld [vmem:[%s15220_s7 + $0xa50] sm:$0xf] }
 0x276   :  { %5724 = vmatpush.bf16.msra.mxu2 %v7751_v9  ;;  %5737 = vmatpush.bf16.msra.mxu3 %v7975_v10  ;;  %v8899_v27 = vor.u32 %v10021_v12, %v8898_v29  ;;  %v8562_v29 = vld [vmem:[%s15220_s7 + $0x7b0] sm:$0xf]  ;;  %v9937_v12 = vld [vmem:[%s15220_s7 + $0x7c8] sm:$0xf0] }
 0x27a   :  { %5725 = vmatpush.bf16.msra.mxu2 %v7723_v19  ;;  %5738 = vmatpush.bf16.msra.mxu3 %v7947_v22  ;;  %v2574_v32 = vpop.f32.mrf.mxu2  ;;  %v2587_v33 = vpop.f32.mrf.mxu3  ;;  %v10129_v19 = vld [vmem:[%s15220_s7 + $0xdcc] sm:$0xf]  ;;  %v7583_v22 = vor.u32 %v9692_v21, %v7582_v57  ;;  %v10000_v21 = vld [vmem:[%s15220_s7 + $0x9c0] sm:$0xf0] }
 0x27b   :  { %v8870_v32 = vld [vmem:[%s15220_s7 + $0xa18] sm:$0xf]  ;;  %v10014_v33 = vld [vmem:[%s15220_s7 + $0xa30] sm:$0xf0]  ;;  %v9343_v3 = vor.u32 %v10129_v19, %v9340_v6  ;;  %v10045_v6 = vld [vmem:[%s15220_s7 + $0xb2c] sm:$0xf] }
 0x27e   :  { %5726 = vmatpush.bf16.msra.mxu2 %v7695_v30  ;;  %5739 = vmatpush.bf16.msra.mxu3 %v7919_v31  ;;  %v8646_v30 = vld [vmem:[%s15220_s7 + $0x858] sm:$0xf] }
 0x27f   :  { %v2598_v40 = vpop.f32.mrf.mxu0  ;;  %v2611_v41 = vpop.f32.mrf.mxu1  ;;  %v8647_v13 = vor.u32 %v9958_v43, %v8646_v30 }
 0x280   :  { %v2599_v45 = vadd.f32 %v2598_v40, %v2586_v39 }
 0x282   :  { %v2612_v44 = vadd.f32 %v2611_v41, %v2599_v45  ;;  %5727 = vmatpush.bf16.msra.mxu2 %v7667_v25  ;;  %5740 = vmatpush.bf16.msra.mxu3 %v7891_v42  ;;  %v9088_v41 = vld [vmem:[%s15220_s7 + $0xbec] sm:$0xf0]  ;;  %v10122_v25 = vld [vmem:[%s15220_s7 + $0xd94] sm:$0xf]  ;;  %v8871_v45 = vor.u32 %v10014_v33, %v8870_v32  ;;  %v8758_v33 = vld [vmem:[%s15220_s7 + $0x938] sm:$0xf] }
 0x283   :  { %v9312_v42 = vld [vmem:[%s15220_s7 + $0xdac] sm:$0xf0]  ;;  %v9930_v32 = vld [vmem:[%s15220_s7 + $0x790] sm:$0xf0] }
 0x284   :  { %v2618_v54 = vpack.c.bf16 %v2612_v44, %v2560_v8  ;;  %v10007_v8 = vld [vmem:[%s15220_s7 + $0x9f8] sm:$0xf0]  ;;  %v9315_v53 = vor.u32 %v10122_v25, %v9312_v42  ;;  %v8976_v25 = vld [vmem:[%s15220_s7 + $0xb0c] sm:$0xf0]  ;;  %v10094_v42 = vld [vmem:[%s15220_s7 + $0xcb4] sm:$0xf] }
 0x285   :  { %v8843_v57 = vor.u32 %v10007_v8, %v8842_v7  ;;  %v8506_v7 = vld [vmem:[%s15220_s7 + $0x740] sm:$0xf]  ;;  %v9923_v8 = vld [vmem:[%s15220_s7 + $0x758] sm:$0xf0] }
 0x286   :  { %v2625_v11 = vunpack.c.l.bf16 %v2618_v54  ;;  %v2626_v5 = vunpack.c.h.bf16 %v2618_v54  ;;  %5728 = vmatpush.bf16.msra.mxu2 %v7639_v47  ;;  %5741 = vmatpush.bf16.msra.mxu3 %v7863_v48  ;;  %v9091_v48 = vor.u32 %v10066_v52, %v9088_v41  ;;  %v10038_v41 = vld [vmem:[%s15220_s7 + $0xaf4] sm:$0xf] }
 0x287   :  { %v2600_v58 = vpop.f32.mrf.mxu0  ;;  %v2613_v59 = vpop.f32.mrf.mxu1 }
 0x288   :  { %vm13149_vm3 = vcmp.gt.f32.partialorder %v2625_v11, 0.0  ;;  %vm13153_vm4 = vcmp.gt.f32.partialorder %v2626_v5, 0.0  ;;  %v2641_v9 = vmul.f32 0.20019531, %v2625_v11  ;;  %v2642_v10 = vmul.f32 0.20019531, %v2626_v5  ;;  %v9284_v11 = vld [vmem:[%s15220_s7 + $0xd74] sm:$0xf0] }
 0x289   :  { %vm2650_vm5 = vmpackc.low %vm13153_vm4, %vm13149_vm3  ;;  %v8619_v5 = vor.u32 %v9951_v62, %v8618_v20  ;;  %v8590_v58 = vld [vmem:[%s15220_s7 + $0x7e8] sm:$0xf]  ;;  %v9287_v0 = vor.u32 %v10115_v28, %v9284_v11  ;;  %v9172_v28 = vld [vmem:[%s15220_s7 + $0xc94] sm:$0xf0]  ;;  %v8507_v11 = vor.u32 %v9923_v8, %v8506_v7 }
 0x28a   :  { %v2646_v17 = vpack.c.bf16 %v2642_v10, %v2641_v9  ;;  %5729 = vmatpush.bf16.msra.mxu2 %v7611_v60  ;;  %5742 = vmatpush.bf16.msra.mxu3 %v7835_v61  ;;  %v9944_v60 = vld [vmem:[%s15220_s7 + $0x800] sm:$0xf0]  ;;  %v8814_v61 = vld [vmem:[%s15220_s7 + $0x9a8] sm:$0xf]  ;;  %v9256_v10 = vld [vmem:[%s15220_s7 + $0xd3c] sm:$0xf0] }
 0x28b   :  { %v10108_v9 = vld [vmem:[%s15220_s7 + $0xd24] sm:$0xf]  ;;  %v8591_v46 = vor.u32 %v9944_v60, %v8590_v58  ;;  %v8815_v14 = vor.u32 %v10000_v21, %v8814_v61  ;;  %v8920_v21 = vld [vmem:[%s15220_s7 + $0xa9c] sm:$0xf0] }
 0x28c   :  { %v2654_v51 = vsel %vm2650_vm5, %v2618_v54, %v2646_v17  ;;  %v10059_v54 = vld [vmem:[%s15220_s7 + $0xb9c] sm:$0xf]  ;;  %v8786_v17 = vld [vmem:[%s15220_s7 + $0x970] sm:$0xf]  ;;  %v9916_v58 = vld [vmem:[%s15220_s7 + $0x720] sm:$0xf0] }
 0x28d   :  { %v3193_v31 = vunpack.c.l.b16 %v2654_v51  ;;  %v3194_v49 = vunpack.c.h.b16 %v2654_v51  ;;  %v9063_v63 = vor.u32 %v10059_v54, %v9060_v56  ;;  %v10101_v51 = vld [vmem:[%s15220_s7 + $0xcec] sm:$0xf]  ;;  %v8787_v30 = vor.u32 %v9993_v2, %v8786_v17  ;;  %v10031_v54 = vld [vmem:[%s15220_s7 + $0xabc] sm:$0xf]  ;;  %v10024_v61 = vld [vmem:[%s15220_s7 + $0xa84] sm:$0xf] }
 0x28e   :  { %5730 = vmatpush.bf16.msra.mxu2 %v7583_v22  ;;  %5743 = vmatpush.bf16.msra.mxu3 %v7807_v23  ;;  %v9035_v22 = vor.u32 %v10052_v1, %v9032_v4  ;;  %v9259_v23 = vor.u32 %v10108_v9, %v9256_v10  ;;  %v10087_v56 = vld [vmem:[%s15220_s7 + $0xc7c] sm:$0xf]  ;;  %v9738_v1 = vld [vmem:[%s15220_s7 + $0x194] sm:$0xf]  ;;  %v7780_v10 = vld [vmem:[%s15220_s7 + $0x1ac] sm:$0xf0] }
 0x28f   :  { %v13203_v39 = vpack.c.b16 %v3193_v31, %v3193_v31  ;;  %v13205_v40 = vpack.c.b16 %v3194_v49, %v3194_v49  ;;  %v8534_v31 = vld [vmem:[%s15220_s7 + $0x778] sm:$0xf]  ;;  %v9175_v9 = vor.u32 %v10087_v56, %v9172_v28  ;;  %v8226_v17 = vld [vmem:[%s15220_s7 + $0x510] sm:$0xf]  ;;  %v9780_v7 = vld [vmem:[%s15220_s7 + $0x2e4] sm:$0xf] }
 0x290   :  { %v8535_v20 = vor.u32 %v9930_v32, %v8534_v31  ;;  %v9787_v32 = vld [vmem:[%s15220_s7 + $0x31c] sm:$0xf]  ;;  %v7948_v8 = vld [vmem:[%s15220_s7 + $0x2fc] sm:$0xf0]  ;;  %v9717_v56 = vld [vmem:[%s15220_s7 + $0xec] sm:$0xf] }
 0x291   :  { %5601 = vmatmul.bf16.vlgmr.msra.gmra.mxu0 %v13203_v39  ;;  %5614 = vmatmul.bf16.vlgmr.msra.gmra.mxu1 %v13205_v40 }
 0x292   :  { %5775 = vmatpush.bf16.msrb.mxu2 %v8675_v26  ;;  %5788 = vmatpush.bf16.msrb.mxu3 %v8899_v27  ;;  %v5524_v44 = vpop.f32.mrf.mxu2  ;;  %v5537_v47 = vpop.f32.mrf.mxu3  ;;  %v9228_v26 = vld [vmem:[%s15220_s7 + $0xd04] sm:$0xf0]  ;;  %v8563_v27 = vor.u32 %v9937_v12, %v8562_v29  ;;  %v10080_v29 = vld [vmem:[%s15220_s7 + $0xc44] sm:$0xf]  ;;  %v9144_v12 = vld [vmem:[%s15220_s7 + $0xc5c] sm:$0xf0] }
 0x293   :  { %5697 = vmatpush.bf16.msra.mxu0 %v9119_v34  ;;  %5710 = vmatpush.bf16.msra.mxu1 %v9343_v3  ;;  %v5525_v55 = vadd.f32 %v5524_v44, %v3169_v38  ;;  %v9986_v34 = vld [vmem:[%s15220_s7 + $0x950] sm:$0xf0]  ;;  %v9007_v38 = vor.u32 %v10045_v6, %v9004_v24  ;;  %v9231_v52 = vor.u32 %v10101_v51, %v9228_v26  ;;  %v8730_v44 = vld [vmem:[%s15220_s7 + $0x900] sm:$0xf] }
 0x294   :  { %5731 = vmatmul.bf16.vlgmr.msra.gmra.mxu2 %v12486_v50  ;;  %5744 = vmatmul.bf16.vlgmr.msra.gmra.mxu3 %v12488_v37  ;;  %v8759_v62 = vor.u32 %v9986_v34, %v8758_v33  ;;  %v7783_v6 = vor.u32 %v9738_v1, %v7780_v10  ;;  %v8923_v51 = vor.u32 %v10024_v61, %v8920_v21  ;;  %v7976_v33 = vld [vmem:[%s15220_s7 + $0x334] sm:$0xf0]  ;;  %v9846_v34 = vld [vmem:[%s15220_s7 + $0x4f0] sm:$0xf0]  ;;  %v9888_v61 = vld [vmem:[%s15220_s7 + $0x640] sm:$0xf0] }
 0x295   :  { %v5538_v59 = vadd.f32 %v5537_v47, %v5525_v55  ;;  %v9979_v47 = vld [vmem:[%s15220_s7 + $0x918] sm:$0xf0]  ;;  %v8948_v55 = vld [vmem:[%s15220_s7 + $0xad4] sm:$0xf0]  ;;  %v9147_v26 = vor.u32 %v10080_v29, %v9144_v12  ;;  %v9710_v1 = vld [vmem:[%s15220_s7 + $0xb4] sm:$0xf] }
 0x296   :  { %5776 = vmatpush.bf16.msrb.mxu2 %v8647_v13  ;;  %5789 = vmatpush.bf16.msrb.mxu3 %v8871_v45  ;;  %v9200_v13 = vld [vmem:[%s15220_s7 + $0xccc] sm:$0xf0]  ;;  %v8951_v4 = vor.u32 %v10031_v54, %v8948_v55  ;;  %v7951_v54 = vor.u32 %v9780_v7, %v7948_v8  ;;  %v8142_v55 = vld [vmem:[%s15220_s7 + $0x468] sm:$0xf]  ;;  %v9825_v29 = vld [vmem:[%s15220_s7 + $0x448] sm:$0xf0] }
 0x297   :  { %5698 = vmatpush.bf16.msra.mxu0 %v9091_v48  ;;  %5711 = vmatpush.bf16.msra.mxu1 %v9315_v53  ;;  %v8979_v48 = vor.u32 %v10038_v41, %v8976_v25  ;;  %v9203_v53 = vor.u32 %v10094_v42, %v9200_v13  ;;  %v7979_v41 = vor.u32 %v9787_v32, %v7976_v33  ;;  %v8170_v25 = vld [vmem:[%s15220_s7 + $0x4a0] sm:$0xf]  ;;  %v9724_v42 = vld [vmem:[%s15220_s7 + $0x124] sm:$0xf]  ;;  %v7668_v10 = vld [vmem:[%s15220_s7 + $0xcc] sm:$0xf0] }
 0x298   :  { %v8338_v12 = vld [vmem:[%s15220_s7 + $0x5f0] sm:$0xf]  ;;  %v8058_v32 = vld [vmem:[%s15220_s7 + $0x3c0] sm:$0xf]  ;;  %v9696_v33 = vld [vmem:[%s15220_s7 + $0x44] sm:$0xf] }
 0x299   :  { %v8030_v7 = vld [vmem:[%s15220_s7 + $0x388] sm:$0xf]  ;;  %v9804_v8 = vld [vmem:[%s15220_s7 + $0x3a0] sm:$0xf0] }
 0x29a   :  { %5777 = vmatpush.bf16.msrb.mxu2 %v8619_v5  ;;  %5790 = vmatpush.bf16.msrb.mxu3 %v8843_v57  ;;  %v5526_v18 = vpop.f32.mrf.mxu2  ;;  %v5539_v19 = vpop.f32.mrf.mxu3  ;;  %v8731_v5 = vor.u32 %v9979_v47, %v8730_v44  ;;  %v8478_v57 = vld [vmem:[%s15220_s7 + $0x708] sm:$0xf]  ;;  %v9839_v44 = vld [vmem:[%s15220_s7 + $0x4b8] sm:$0xf0]  ;;  %v8394_v47 = vld [vmem:[%s15220_s7 + $0x660] sm:$0xf] }
 0x29b   :  { %5699 = vmatpush.bf16.msra.mxu0 %v9063_v63  ;;  %5712 = vmatpush.bf16.msra.mxu1 %v9287_v0  ;;  %v8702_v63 = vld [vmem:[%s15220_s7 + $0x8c8] sm:$0xf]  ;;  %v9972_v0 = vld [vmem:[%s15220_s7 + $0x8e0] sm:$0xf0]  ;;  %v8479_v2 = vor.u32 %v9916_v58, %v8478_v57  ;;  %v9853_v19 = vld [vmem:[%s15220_s7 + $0x528] sm:$0xf0]  ;;  %v8171_v28 = vor.u32 %v9839_v44, %v8170_v25 }
 0x29c   :  { %v8703_v18 = vor.u32 %v9972_v0, %v8702_v63  ;;  %v8227_v31 = vor.u32 %v9853_v19, %v8226_v17  ;;  %v9773_v57 = vld [vmem:[%s15220_s7 + $0x2ac] sm:$0xf]  ;;  %v7920_v58 = vld [vmem:[%s15220_s7 + $0x2c4] sm:$0xf0]  ;;  %v8114_v0 = vld [vmem:[%s15220_s7 + $0x430] sm:$0xf] }
 0x29d   :  { %v7923_v63 = vor.u32 %v9773_v57, %v7920_v58  ;;  %v9881_v17 = vld [vmem:[%s15220_s7 + $0x608] sm:$0xf0]  ;;  %v8086_v19 = vld [vmem:[%s15220_s7 + $0x3f8] sm:$0xf]  ;;  %v9811_v25 = vld [vmem:[%s15220_s7 + $0x3d8] sm:$0xf0] }
 0x29e   :  { %5778 = vmatpush.bf16.msrb.mxu2 %v8591_v46  ;;  %5791 = vmatpush.bf16.msrb.mxu3 %v8815_v14  ;;  %v5550_v49 = vpop.f32.mrf.mxu0  ;;  %v5563_v43 = vpop.f32.mrf.mxu1  ;;  %v9794_v46 = vld [vmem:[%s15220_s7 + $0x354] sm:$0xf]  ;;  %v8004_v14 = vld [vmem:[%s15220_s7 + $0x36c] sm:$0xf0]  ;;  %v8254_v44 = vld [vmem:[%s15220_s7 + $0x548] sm:$0xf] }
 0x29f   :  { %v5551_v3 = vadd.f32 %v5550_v49, %v5538_v59  ;;  %5700 = vmatpush.bf16.msra.mxu0 %v9035_v22  ;;  %5713 = vmatpush.bf16.msra.mxu1 %v9259_v23  ;;  %v8450_v22 = vld [vmem:[%s15220_s7 + $0x6d0] sm:$0xf]  ;;  %v9909_v23 = vld [vmem:[%s15220_s7 + $0x6e8] sm:$0xf0]  ;;  %v8007_v24 = vor.u32 %v9794_v46, %v8004_v14  ;;  %v9766_v46 = vld [vmem:[%s15220_s7 + $0x274] sm:$0xf] }
 0x2a0   :  { %v8451_v49 = vor.u32 %v9909_v23, %v8450_v22  ;;  %v7892_v14 = vld [vmem:[%s15220_s7 + $0x28c] sm:$0xf0]  ;;  %v9703_v22 = vld [vmem:[%s15220_s7 + $0x7c] sm:$0xf]  ;;  %v8115_v23 = vor.u32 %v9825_v29, %v8114_v0  ;;  %v10133_v58 = vld [vmem:[%s15220_s7 + $0xde8] sm:$0xf0] }
 0x2a1   :  { %v13316_v45 = vadd.f32 %v5563_v43, %v5551_v3  ;;  %5653 = vmatmul.bf16.vlgmr.msrb.gmra.mxu0 %v12592_v35  ;;  %5666 = vmatmul.bf16.vlgmr.msrb.gmra.mxu1 %v12594_v36  ;;  %v7752_v43 = vld [vmem:[%s15220_s7 + $0x174] sm:$0xf0]  ;;  %v9346_v57 = vld [vmem:[%s15220_s7 + $0xdd0] sm:$0xf] }
 0x2a2   :  { %5779 = vmatpush.bf16.msrb.mxu2 %v8563_v27  ;;  %5792 = vmatpush.bf16.msrb.mxu3 %v8787_v30  ;;  %v8198_v27 = vld [vmem:[%s15220_s7 + $0x4d8] sm:$0xf]  ;;  %v9731_v30 = vld [vmem:[%s15220_s7 + $0x15c] sm:$0xf]  ;;  %v8900_v0 = vld [vmem:[%s15220_s7 + $0xa6c] sm:$0xf0] }
 0x2a3   :  { %5701 = vmatpush.bf16.msra.mxu0 %v9007_v38  ;;  %5714 = vmatpush.bf16.msra.mxu1 %v9231_v52  ;;  %v8422_v3 = vld [vmem:[%s15220_s7 + $0x698] sm:$0xf]  ;;  %v9902_v38 = vld [vmem:[%s15220_s7 + $0x6b0] sm:$0xf0]  ;;  %v7755_v52 = vor.u32 %v9731_v30, %v7752_v43  ;;  %v8199_v13 = vor.u32 %v9846_v34, %v8198_v27 }
 0x2a4   :  { %v9818_v27 = vld [vmem:[%s15220_s7 + $0x410] sm:$0xf0]  ;;  %v8310_v30 = vld [vmem:[%s15220_s7 + $0x5b8] sm:$0xf] }
 0x2a5   :  { %v8087_v34 = vor.u32 %v9818_v27, %v8086_v19  ;;  %v8648_v19 = vld [vmem:[%s15220_s7 + $0x874] sm:$0xf0] }
 0x2a6   :  { %5780 = vmatpush.bf16.msrb.mxu2 %v8535_v20  ;;  %5793 = vmatpush.bf16.msrb.mxu3 %v8759_v62  ;;  %v5552_v59 = vpop.f32.mrf.mxu0  ;;  %v5565_v60 = vpop.f32.mrf.mxu1  ;;  %v8423_v20 = vor.u32 %v9902_v38, %v8422_v3  ;;  %v7724_v62 = vld [vmem:[%s15220_s7 + $0x13c] sm:$0xf0] }
 0x2a7   :  { %5702 = vmatpush.bf16.msra.mxu0 %v8979_v48  ;;  %5715 = vmatpush.bf16.msra.mxu1 %v9203_v53  ;;  %v9895_v48 = vld [vmem:[%s15220_s7 + $0x678] sm:$0xf0]  ;;  %v7727_v53 = vor.u32 %v9724_v42, %v7724_v62  ;;  %v9832_v59 = vld [vmem:[%s15220_s7 + $0x480] sm:$0xf0]  ;;  %v8366_v60 = vld [vmem:[%s15220_s7 + $0x628] sm:$0xf] }
 0x2a8   :  { %v7612_v38 = vld [vmem:[%s15220_s7 + $0x5c] sm:$0xf0] }
 0x2a9   :  { %v8282_v42 = vld [vmem:[%s15220_s7 + $0x580] sm:$0xf] }
 0x2aa   :  { %5781 = vmatpush.bf16.msrb.mxu2 %v8507_v11  ;;  %5794 = vmatpush.bf16.msrb.mxu3 %v8731_v5  ;;  %v8395_v11 = vor.u32 %v9895_v48, %v8394_v47  ;;  %v7696_v5 = vld [vmem:[%s15220_s7 + $0x104] sm:$0xf0]  ;;  %v9689_v47 = vld [vmem:[%s15220_s7 + $0xc] sm:$0xf]  ;;  %v8059_v48 = vor.u32 %v9811_v25, %v8058_v32  ;;  %v8620_v32 = vld [vmem:[%s15220_s7 + $0x83c] sm:$0xf0] }
 0x2ab   :  { %5703 = vmatpush.bf16.msra.mxu0 %v8951_v4  ;;  %5716 = vmatpush.bf16.msra.mxu1 %v9175_v9  ;;  %v7699_v21 = vor.u32 %v9717_v56, %v7696_v5  ;;  %v8143_v4 = vor.u32 %v9832_v59, %v8142_v55  ;;  %v8367_v9 = vor.u32 %v9888_v61, %v8366_v60  ;;  %v9745_v55 = vld [vmem:[%s15220_s7 + $0x1cc] sm:$0xf]  ;;  %v7808_v56 = vld [vmem:[%s15220_s7 + $0x1e4] sm:$0xf0]  ;;  %v9962_v59 = vld [vmem:[%s15220_s7 + $0x894] sm:$0xf] }
 0x2ac   :  { %v10077_v5 = vld [vmem:[%s15220_s7 + $0xc28] sm:$0xf0]  ;;  %v7811_v61 = vor.u32 %v9745_v55, %v7808_v56 }
 0x2ae   :  { %5782 = vmatpush.bf16.msrb.mxu2 %v8479_v2  ;;  %5795 = vmatpush.bf16.msrb.mxu3 %v8703_v18  ;;  %v7671_v2 = vor.u32 %v9710_v1, %v7668_v10  ;;  %v7895_v18 = vor.u32 %v9766_v46, %v7892_v14  ;;  %v8031_v1 = vor.u32 %v9804_v8, %v8030_v7  ;;  %v9094_v46 = vld [vmem:[%s15220_s7 + $0xbd8] sm:$0xf]  ;;  %v10070_v14 = vld [vmem:[%s15220_s7 + $0xbf0] sm:$0xf0]  ;;  %v8592_v7 = vld [vmem:[%s15220_s7 + $0x804] sm:$0xf0] }
 0x2af   :  { %5704 = vmatpush.bf16.msra.mxu0 %v8923_v51  ;;  %5717 = vmatpush.bf16.msra.mxu1 %v9147_v26  ;;  %v9759_v51 = vld [vmem:[%s15220_s7 + $0x23c] sm:$0xf]  ;;  %v7864_v26 = vld [vmem:[%s15220_s7 + $0x254] sm:$0xf0]  ;;  %v9347_v10 = vor.u32 %v10133_v58, %v9346_v57  ;;  %v9997_v8 = vld [vmem:[%s15220_s7 + $0x9ac] sm:$0xf] }
 0x2b0   :  { %v7867_v43 = vor.u32 %v9759_v51, %v7864_v26  ;;  %v9066_v51 = vld [vmem:[%s15220_s7 + $0xba0] sm:$0xf]  ;;  %v10063_v26 = vld [vmem:[%s15220_s7 + $0xbb8] sm:$0xf0]  ;;  %v8564_v57 = vld [vmem:[%s15220_s7 + $0x7cc] sm:$0xf0] }
 0x2b1   :  { %5783 = vmatmul.bf16.vlgmr.msrb.gmra.mxu2 %v12863_v15  ;;  %5796 = vmatmul.bf16.vlgmr.msrb.gmra.mxu3 %v12865_v16  ;;  %v9990_v58 = vld [vmem:[%s15220_s7 + $0x974] sm:$0xf] }
 0x2b2   :  { %5827 = vmatpush.bf16.msra.mxu2 %v7783_v6  ;;  %5840 = vmatpush.bf16.msra.mxu3 %v8007_v24  ;;  %v8339_v6 = vor.u32 %v9881_v17, %v8338_v12  ;;  %v7640_v24 = vld [vmem:[%s15220_s7 + $0x94] sm:$0xf0] }
 0x2b3   :  { %5749 = vmatpush.bf16.msrb.mxu0 %v8227_v31  ;;  %5762 = vmatpush.bf16.msrb.mxu1 %v8451_v49  ;;  %v9874_v31 = vld [vmem:[%s15220_s7 + $0x5d0] sm:$0xf0]  ;;  %v7643_v49 = vor.u32 %v9703_v22, %v7640_v24  ;;  %v9318_v17 = vld [vmem:[%s15220_s7 + $0xd98] sm:$0xf]  ;;  %v10011_v22 = vld [vmem:[%s15220_s7 + $0xa1c] sm:$0xf] }
 0x2b4   :  { %5705 = vmatmul.bf16.vlgmr.msra.gmra.mxu0 %v13203_v39  ;;  %5718 = vmatmul.bf16.vlgmr.msra.gmra.mxu1 %v13205_v40  ;;  %v8311_v3 = vor.u32 %v9874_v31, %v8310_v30  ;;  %v9290_v31 = vld [vmem:[%s15220_s7 + $0xd60] sm:$0xf] }
 0x2b6   :  { %5828 = vmatpush.bf16.msra.mxu2 %v7755_v52  ;;  %5841 = vmatpush.bf16.msra.mxu3 %v7979_v41  ;;  %v9752_v52 = vld [vmem:[%s15220_s7 + $0x204] sm:$0xf]  ;;  %v7836_v41 = vld [vmem:[%s15220_s7 + $0x21c] sm:$0xf0] }
 0x2b7   :  { %5750 = vmatpush.bf16.msrb.mxu0 %v8199_v13  ;;  %5763 = vmatpush.bf16.msrb.mxu1 %v8423_v20  ;;  %v9867_v13 = vld [vmem:[%s15220_s7 + $0x598] sm:$0xf0]  ;;  %v7615_v20 = vor.u32 %v9696_v33, %v7612_v38  ;;  %v7839_v62 = vor.u32 %v9752_v52, %v7836_v41  ;;  %v10004_v33 = vld [vmem:[%s15220_s7 + $0x9e4] sm:$0xf]  ;;  %v9038_v52 = vld [vmem:[%s15220_s7 + $0xb68] sm:$0xf] }
 0x2b8   :  { %v10056_v41 = vld [vmem:[%s15220_s7 + $0xb80] sm:$0xf0] }
 0x2ba   :  { %5829 = vmatpush.bf16.msra.mxu2 %v7727_v53  ;;  %5842 = vmatpush.bf16.msra.mxu3 %v7951_v54  ;;  %v8283_v53 = vor.u32 %v9867_v13, %v8282_v42  ;;  %v7584_v54 = vld [vmem:[%s15220_s7 + $0x24] sm:$0xf0] }
 0x2bb   :  { %5751 = vmatpush.bf16.msrb.mxu0 %v8171_v28  ;;  %5764 = vmatpush.bf16.msrb.mxu1 %v8395_v11  ;;  %v9860_v28 = vld [vmem:[%s15220_s7 + $0x560] sm:$0xf0]  ;;  %v9122_v11 = vld [vmem:[%s15220_s7 + $0xc10] sm:$0xf]  ;;  %v7587_v60 = vor.u32 %v9689_v47, %v7584_v54  ;;  %v9262_v13 = vld [vmem:[%s15220_s7 + $0xd28] sm:$0xf]  ;;  %v9039_v47 = vor.u32 %v10056_v41, %v9038_v52 }
 0x2bc   :  { %v10049_v54 = vld [vmem:[%s15220_s7 + $0xb48] sm:$0xf0]  ;;  %v10084_v52 = vld [vmem:[%s15220_s7 + $0xc60] sm:$0xf0] }
 0x2be   :  { %5830 = vmatpush.bf16.msra.mxu2 %v7699_v21  ;;  %5843 = vmatpush.bf16.msra.mxu3 %v7923_v63  ;;  %v8676_v21 = vld [vmem:[%s15220_s7 + $0x8ac] sm:$0xf0]  ;;  %v10018_v63 = vld [vmem:[%s15220_s7 + $0xa54] sm:$0xf] }
 0x2bf   :  { %5752 = vmatpush.bf16.msrb.mxu0 %v8143_v4  ;;  %5765 = vmatpush.bf16.msrb.mxu1 %v8367_v9  ;;  %v8255_v4 = vor.u32 %v9860_v28, %v8254_v44  ;;  %v9123_v9 = vor.u32 %v10077_v5, %v9122_v11  ;;  %v8679_v29 = vor.u32 %v9962_v59, %v8676_v21  ;;  %v8816_v44 = vld [vmem:[%s15220_s7 + $0x9c4] sm:$0xf0]  ;;  %v9234_v28 = vld [vmem:[%s15220_s7 + $0xcf0] sm:$0xf]  ;;  %v10105_v11 = vld [vmem:[%s15220_s7 + $0xd08] sm:$0xf0] }
 0x2c0   :  { %v8903_v12 = vor.u32 %v10018_v63, %v8900_v0  ;;  %v8819_v56 = vor.u32 %v9997_v8, %v8816_v44  ;;  %v9934_v5 = vld [vmem:[%s15220_s7 + $0x7b4] sm:$0xf]  ;;  %v8788_v59 = vld [vmem:[%s15220_s7 + $0x98c] sm:$0xf0]  ;;  %v9235_v63 = vor.u32 %v10105_v11, %v9234_v28  ;;  %v8982_v0 = vld [vmem:[%s15220_s7 + $0xaf8] sm:$0xf] }
 0x2c1   :  { %v8228_v8 = vld [vmem:[%s15220_s7 + $0x52c] sm:$0xf0]  ;;  %v9906_v44 = vld [vmem:[%s15220_s7 + $0x6d4] sm:$0xf] }
 0x2c2   :  { %5831 = vmatpush.bf16.msra.mxu2 %v7671_v2  ;;  %5844 = vmatpush.bf16.msra.mxu3 %v7895_v18  ;;  %v10126_v2 = vld [vmem:[%s15220_s7 + $0xdb0] sm:$0xf0]  ;;  %v9955_v18 = vld [vmem:[%s15220_s7 + $0x85c] sm:$0xf] }
 0x2c3   :  { %5753 = vmatpush.bf16.msrb.mxu0 %v8115_v23  ;;  %5766 = vmatpush.bf16.msrb.mxu1 %v8339_v6  ;;  %v8872_v23 = vld [vmem:[%s15220_s7 + $0xa34] sm:$0xf0]  ;;  %v9095_v6 = vor.u32 %v10070_v14, %v9094_v46  ;;  %v9319_v24 = vor.u32 %v10126_v2, %v9318_v17  ;;  %v8651_v27 = vor.u32 %v9955_v18, %v8648_v19  ;;  %v10098_v46 = vld [vmem:[%s15220_s7 + $0xcd0] sm:$0xf0]  ;;  %v9927_v14 = vld [vmem:[%s15220_s7 + $0x77c] sm:$0xf] }
 0x2c4   :  { %v8875_v30 = vor.u32 %v10011_v22, %v8872_v23  ;;  %v8760_v17 = vld [vmem:[%s15220_s7 + $0x954] sm:$0xf0]  ;;  %v8954_v19 = vld [vmem:[%s15220_s7 + $0xac0] sm:$0xf]  ;;  %v10035_v22 = vld [vmem:[%s15220_s7 + $0xad8] sm:$0xf0] }
 0x2c5   :  { %v9798_v28 = vld [vmem:[%s15220_s7 + $0x370] sm:$0xf0] }
 0x2c6   :  { %5832 = vmatpush.bf16.msra.mxu2 %v7643_v49  ;;  %5845 = vmatpush.bf16.msra.mxu3 %v7867_v43  ;;  %v10119_v49 = vld [vmem:[%s15220_s7 + $0xd78] sm:$0xf0]  ;;  %v9948_v43 = vld [vmem:[%s15220_s7 + $0x824] sm:$0xf] }
 0x2c7   :  { %5754 = vmatpush.bf16.msrb.mxu0 %v8087_v34  ;;  %5767 = vmatpush.bf16.msrb.mxu1 %v8311_v3  ;;  %v8844_v34 = vld [vmem:[%s15220_s7 + $0x9fc] sm:$0xf0]  ;;  %v9067_v3 = vor.u32 %v10063_v26, %v9066_v51  ;;  %v9291_v38 = vor.u32 %v10119_v49, %v9290_v31  ;;  %v8623_v25 = vor.u32 %v9948_v43, %v8620_v32  ;;  %v10091_v51 = vld [vmem:[%s15220_s7 + $0xc98] sm:$0xf0]  ;;  %v9920_v26 = vld [vmem:[%s15220_s7 + $0x744] sm:$0xf] }
 0x2c8   :  { %v8847_v42 = vor.u32 %v10004_v33, %v8844_v34  ;;  %v8732_v31 = vld [vmem:[%s15220_s7 + $0x91c] sm:$0xf0]  ;;  %v8926_v49 = vld [vmem:[%s15220_s7 + $0xa88] sm:$0xf]  ;;  %v8955_v33 = vor.u32 %v10035_v22, %v8954_v19 }
 0x2c9   :  { %v8172_v19 = vld [vmem:[%s15220_s7 + $0x4bc] sm:$0xf0] }
 0x2ca   :  { %5833 = vmatpush.bf16.msra.mxu2 %v7615_v20  ;;  %5846 = vmatpush.bf16.msra.mxu3 %v7839_v62  ;;  %v10112_v20 = vld [vmem:[%s15220_s7 + $0xd40] sm:$0xf0]  ;;  %v9941_v62 = vld [vmem:[%s15220_s7 + $0x7ec] sm:$0xf] }
 0x2cb   :  { %5755 = vmatpush.bf16.msrb.mxu0 %v8059_v48  ;;  %5768 = vmatpush.bf16.msrb.mxu1 %v8283_v53  ;;  %v9263_v48 = vor.u32 %v10112_v20, %v9262_v13  ;;  %v9010_v53 = vld [vmem:[%s15220_s7 + $0xb30] sm:$0xf]  ;;  %v8595_v55 = vor.u32 %v9941_v62, %v8592_v7  ;;  %v8480_v13 = vld [vmem:[%s15220_s7 + $0x724] sm:$0xf0]  ;;  %v9969_v20 = vld [vmem:[%s15220_s7 + $0x8cc] sm:$0xf] }
 0x2cc   :  { %v9011_v21 = vor.u32 %v10049_v54, %v9010_v53  ;;  %v8704_v62 = vld [vmem:[%s15220_s7 + $0x8e4] sm:$0xf0]  ;;  %v9850_v7 = vld [vmem:[%s15220_s7 + $0x514] sm:$0xf] }
 0x2ce   :  { %5834 = vmatpush.bf16.msra.mxu2 %v7587_v60  ;;  %5847 = vmatpush.bf16.msra.mxu3 %v7811_v61 }
 0x2cf   :  { %5756 = vmatpush.bf16.msrb.mxu0 %v8031_v1  ;;  %5769 = vmatpush.bf16.msrb.mxu1 %v8255_v4  ;;  %v10042_v1 = vld [vmem:[%s15220_s7 + $0xb10] sm:$0xf0]  ;;  %v8567_v4 = vor.u32 %v9934_v5, %v8564_v57  ;;  %v8707_v5 = vor.u32 %v9969_v20, %v8704_v62  ;;  %v8231_v57 = vor.u32 %v9850_v7, %v8228_v8  ;;  %v9777_v20 = vld [vmem:[%s15220_s7 + $0x2c8] sm:$0xf0] }
 0x2d0   :  { %v8983_v2 = vor.u32 %v10042_v1, %v8982_v0  ;;  %v9899_v1 = vld [vmem:[%s15220_s7 + $0x69c] sm:$0xf]  ;;  %v9822_v8 = vld [vmem:[%s15220_s7 + $0x434] sm:$0xf] }
 0x2d1   :  { %5835 = vmatmul.bf16.vlgmr.msra.gmra.mxu2 %v12486_v50  ;;  %5848 = vmatmul.bf16.vlgmr.msra.gmra.mxu3 %v12488_v37 }
 0x2d2   :  { %5879 = vmatpush.bf16.msrb.mxu2 %v8679_v29  ;;  %5892 = vmatpush.bf16.msrb.mxu3 %v8903_v12  ;;  %v8536_v29 = vld [vmem:[%s15220_s7 + $0x794] sm:$0xf0]  ;;  %v9983_v12 = vld [vmem:[%s15220_s7 + $0x93c] sm:$0xf] }
 0x2d3   :  { %5801 = vmatpush.bf16.msra.mxu0 %v9123_v9  ;;  %5814 = vmatpush.bf16.msra.mxu1 %v9347_v10  ;;  %v8791_v9 = vor.u32 %v9990_v58, %v8788_v59  ;;  %v9206_v10 = vld [vmem:[%s15220_s7 + $0xcb8] sm:$0xf]  ;;  %v8539_v23 = vor.u32 %v9927_v14, %v8536_v29  ;;  %v9843_v59 = vld [vmem:[%s15220_s7 + $0x4dc] sm:$0xf]  ;;  %v7982_v29 = vld [vmem:[%s15220_s7 + $0x320] sm:$0xf] }
 0x2d4   :  { %5757 = vmatmul.bf16.vlgmr.msrb.gmra.mxu0 %v12592_v35  ;;  %5770 = vmatmul.bf16.vlgmr.msrb.gmra.mxu1 %v12594_v36  ;;  %v13688_v60 = vpop.f32.mrf.mxu2  ;;  %v13690_v61 = vpop.f32.mrf.mxu3  ;;  %v9207_v18 = vor.u32 %v10098_v46, %v9206_v10  ;;  %v9735_v14 = vld [vmem:[%s15220_s7 + $0x178] sm:$0xf0] }
 0x2d6   :  { %5880 = vmatpush.bf16.msrb.mxu2 %v8651_v27  ;;  %5893 = vmatpush.bf16.msrb.mxu3 %v8875_v30  ;;  %v8508_v27 = vld [vmem:[%s15220_s7 + $0x75c] sm:$0xf0]  ;;  %v9976_v30 = vld [vmem:[%s15220_s7 + $0x904] sm:$0xf] }
 0x2d7   :  { %5802 = vmatpush.bf16.msra.mxu0 %v9095_v6  ;;  %5815 = vmatpush.bf16.msra.mxu1 %v9319_v24  ;;  %v8763_v6 = vor.u32 %v9983_v12, %v8760_v17  ;;  %v9178_v24 = vld [vmem:[%s15220_s7 + $0xc80] sm:$0xf]  ;;  %v8511_v41 = vor.u32 %v9920_v26, %v8508_v27  ;;  %v9791_v12 = vld [vmem:[%s15220_s7 + $0x338] sm:$0xf0]  ;;  %v9728_v26 = vld [vmem:[%s15220_s7 + $0x140] sm:$0xf0] }
 0x2d8   :  { %v9179_v34 = vor.u32 %v10091_v51, %v9178_v24  ;;  %v8396_v24 = vld [vmem:[%s15220_s7 + $0x67c] sm:$0xf0]  ;;  %v7730_v51 = vld [vmem:[%s15220_s7 + $0x128] sm:$0xf] }
 0x2d9   :  { %v7954_v27 = vld [vmem:[%s15220_s7 + $0x2e8] sm:$0xf] }
 0x2da   :  { %5881 = vmatpush.bf16.msrb.mxu2 %v8623_v25  ;;  %5894 = vmatpush.bf16.msrb.mxu3 %v8847_v42  ;;  %v8735_v25 = vor.u32 %v9976_v30, %v8732_v31  ;;  %v9913_v42 = vld [vmem:[%s15220_s7 + $0x70c] sm:$0xf]  ;;  %v9784_v30 = vld [vmem:[%s15220_s7 + $0x300] sm:$0xf0] }
 0x2db   :  { %5803 = vmatpush.bf16.msra.mxu0 %v9067_v3  ;;  %5816 = vmatpush.bf16.msra.mxu1 %v9291_v38  ;;  %v10028_v3 = vld [vmem:[%s15220_s7 + $0xaa0] sm:$0xf0]  ;;  %v9150_v38 = vld [vmem:[%s15220_s7 + $0xc48] sm:$0xf]  ;;  %v8483_v11 = vor.u32 %v9913_v42, %v8480_v13  ;;  %v9721_v42 = vld [vmem:[%s15220_s7 + $0x108] sm:$0xf0] }
 0x2dc   :  { %v5578_v43 = vpop.f32.mrf.mxu2  ;;  %v5591_v32 = vpop.f32.mrf.mxu3  ;;  %v8927_v53 = vor.u32 %v10028_v3, %v8926_v49  ;;  %v9151_v54 = vor.u32 %v10084_v52, %v9150_v38  ;;  %v9885_v3 = vld [vmem:[%s15220_s7 + $0x62c] sm:$0xf]  ;;  %v8368_v38 = vld [vmem:[%s15220_s7 + $0x644] sm:$0xf0]  ;;  %v7702_v52 = vld [vmem:[%s15220_s7 + $0xf0] sm:$0xf] }
 0x2dd   :  { %v9829_v43 = vld [vmem:[%s15220_s7 + $0x46c] sm:$0xf]  ;;  %v8144_v32 = vld [vmem:[%s15220_s7 + $0x484] sm:$0xf0]  ;;  %v7926_v13 = vld [vmem:[%s15220_s7 + $0x2b0] sm:$0xf]  ;;  %v8371_v7 = vor.u32 %v9885_v3, %v8368_v38 }
 0x2de   :  { %5882 = vmatpush.bf16.msrb.mxu2 %v8595_v55  ;;  %5895 = vmatpush.bf16.msrb.mxu3 %v8819_v56  ;;  %v9742_v55 = vld [vmem:[%s15220_s7 + $0x1b0] sm:$0xf0]  ;;  %v8010_v56 = vld [vmem:[%s15220_s7 + $0x358] sm:$0xf]  ;;  %v8147_v62 = vor.u32 %v9829_v43, %v8144_v32  ;;  %v8256_v3 = vld [vmem:[%s15220_s7 + $0x564] sm:$0xf0] }
 0x2df   :  { %5804 = vmatpush.bf16.msra.mxu0 %v9039_v47  ;;  %5817 = vmatpush.bf16.msra.mxu1 %v9263_v48  ;;  %v8452_v47 = vld [vmem:[%s15220_s7 + $0x6ec] sm:$0xf0]  ;;  %v7786_v48 = vld [vmem:[%s15220_s7 + $0x198] sm:$0xf]  ;;  %v8011_v0 = vor.u32 %v9798_v28, %v8010_v56  ;;  %v9714_v56 = vld [vmem:[%s15220_s7 + $0xd0] sm:$0xf0] }
 0x2e0   :  { %v8455_v58 = vor.u32 %v9906_v44, %v8452_v47  ;;  %v8116_v44 = vld [vmem:[%s15220_s7 + $0x44c] sm:$0xf0]  ;;  %v7703_v47 = vor.u32 %v9721_v42, %v7702_v52  ;;  %v7898_v28 = vld [vmem:[%s15220_s7 + $0x278] sm:$0xf] }
 0x2e1   :  { %v7814_v42 = vld [vmem:[%s15220_s7 + $0x1d0] sm:$0xf] }
 0x2e2   :  { %5883 = vmatpush.bf16.msrb.mxu2 %v8567_v4  ;;  %5896 = vmatpush.bf16.msrb.mxu3 %v8791_v9  ;;  %v8424_v4 = vld [vmem:[%s15220_s7 + $0x6b4] sm:$0xf0]  ;;  %v7758_v9 = vld [vmem:[%s15220_s7 + $0x160] sm:$0xf] }
 0x2e3   :  { %5805 = vmatpush.bf16.msra.mxu0 %v9011_v21  ;;  %5818 = vmatpush.bf16.msra.mxu1 %v9235_v63  ;;  %v8200_v21 = vld [vmem:[%s15220_s7 + $0x4f4] sm:$0xf0]  ;;  %v7787_v63 = vor.u32 %v9742_v55, %v7786_v48  ;;  %v7759_v22 = vor.u32 %v9735_v14, %v7758_v9  ;;  %v7927_v48 = vor.u32 %v9777_v20, %v7926_v13 }
 0x2e4   :  { %v13803_v10 = vpop.f32.mrf.mxu2  ;;  %v13805_v46 = vpop.f32.mrf.mxu3  ;;  %v8203_v17 = vor.u32 %v9843_v59, %v8200_v21  ;;  %v7674_v55 = vld [vmem:[%s15220_s7 + $0xb8] sm:$0xf] }
 0x2e5   :  { %v8088_v59 = vld [vmem:[%s15220_s7 + $0x414] sm:$0xf0]  ;;  %v7675_v21 = vor.u32 %v9714_v56, %v7674_v55  ;;  %v9966_v55 = vld [vmem:[%s15220_s7 + $0x8b0] sm:$0xf0] }
 0x2e6   :  { %5884 = vmatpush.bf16.msrb.mxu2 %v8539_v23  ;;  %5897 = vmatpush.bf16.msrb.mxu3 %v8763_v6  ;;  %v7983_v23 = vor.u32 %v9791_v12, %v7982_v29  ;;  %v9892_v6 = vld [vmem:[%s15220_s7 + $0x664] sm:$0xf]  ;;  %v9707_v29 = vld [vmem:[%s15220_s7 + $0x98] sm:$0xf0]  ;;  %v7870_v12 = vld [vmem:[%s15220_s7 + $0x240] sm:$0xf] }
 0x2e7   :  { %5806 = vmatpush.bf16.msra.mxu0 %v8983_v2  ;;  %5819 = vmatpush.bf16.msra.mxu1 %v9207_v18  ;;  %v8427_v2 = vor.u32 %v9899_v1, %v8424_v4  ;;  %v9836_v18 = vld [vmem:[%s15220_s7 + $0x4a4] sm:$0xf]  ;;  %v8399_v49 = vor.u32 %v9892_v6, %v8396_v24  ;;  %v8312_v1 = vld [vmem:[%s15220_s7 + $0x5d4] sm:$0xf0]  ;;  %v7646_v4 = vld [vmem:[%s15220_s7 + $0x80] sm:$0xf] }
 0x2e8   :  { %v8175_v31 = vor.u32 %v9836_v18, %v8172_v19  ;;  %v9808_v19 = vld [vmem:[%s15220_s7 + $0x3c4] sm:$0xf]  ;;  %v8906_v56 = vld [vmem:[%s15220_s7 + $0xa58] sm:$0xf] }
 0x2e9   :  { %v9864_v24 = vld [vmem:[%s15220_s7 + $0x584] sm:$0xf] }
 0x2ea   :  { %5885 = vmatpush.bf16.msrb.mxu2 %v8511_v41  ;;  %5898 = vmatpush.bf16.msrb.mxu3 %v8735_v25 }
 0x2eb   :  { %5807 = vmatpush.bf16.msra.mxu0 %v8955_v33  ;;  %5820 = vmatpush.bf16.msra.mxu1 %v9179_v34  ;;  %v7731_v33 = vor.u32 %v9728_v26, %v7730_v51  ;;  %v7955_v34 = vor.u32 %v9784_v30, %v7954_v27  ;;  %v8284_v51 = vld [vmem:[%s15220_s7 + $0x59c] sm:$0xf0]  ;;  %v7618_v26 = vld [vmem:[%s15220_s7 + $0x48] sm:$0xf]  ;;  %v9700_v27 = vld [vmem:[%s15220_s7 + $0x60] sm:$0xf0] }
 0x2ec   :  { %v5630_v41 = vpop.f32.mrf.mxu2  ;;  %v5643_v25 = vpop.f32.mrf.mxu3  ;;  %v7842_v30 = vld [vmem:[%s15220_s7 + $0x208] sm:$0xf]  ;;  %v8287_v32 = vor.u32 %v9864_v24, %v8284_v51  ;;  %v7619_v38 = vor.u32 %v9700_v27, %v7618_v26  ;;  %v10116_v26 = vld [vmem:[%s15220_s7 + $0xd64] sm:$0xf]  ;;  %v9292_v27 = vld [vmem:[%s15220_s7 + $0xd7c] sm:$0xf0] }
 0x2ed   :  { %v7590_v41 = vld [vmem:[%s15220_s7 + $0x10] sm:$0xf]  ;;  %v9693_v25 = vld [vmem:[%s15220_s7 + $0x28] sm:$0xf0] }
 0x2ee   :  { %5886 = vmatpush.bf16.msrb.mxu2 %v8483_v11  ;;  %5899 = vmatpush.bf16.msrb.mxu3 %v8707_v5  ;;  %v9770_v11 = vld [vmem:[%s15220_s7 + $0x290] sm:$0xf0]  ;;  %v8119_v5 = vor.u32 %v9822_v8, %v8116_v44  ;;  %v9124_v8 = vld [vmem:[%s15220_s7 + $0xc2c] sm:$0xf0] }
 0x2ef   :  { %5808 = vmatpush.bf16.msra.mxu0 %v8927_v53  ;;  %5821 = vmatpush.bf16.msra.mxu1 %v9151_v54  ;;  %v9878_v53 = vld [vmem:[%s15220_s7 + $0x5f4] sm:$0xf]  ;;  %v8340_v54 = vld [vmem:[%s15220_s7 + $0x60c] sm:$0xf0] }
 0x2f0   :  { %v10130_v44 = vld [vmem:[%s15220_s7 + $0xdd4] sm:$0xf] }
 0x2f1   :  { %5887 = vmatmul.bf16.vlgmr.msrb.gmra.mxu2 %v12863_v15  ;;  %5900 = vmatmul.bf16.vlgmr.msrb.gmra.mxu3 %v12865_v16 }
 0x2f2   :  { %5931 = vmatpush.bf16.msra.mxu2 %v7787_v63  ;;  %5944 = vmatpush.bf16.msra.mxu3 %v8011_v0  ;;  %v7899_v63 = vor.u32 %v9770_v11, %v7898_v28  ;;  %v9871_v0 = vld [vmem:[%s15220_s7 + $0x5bc] sm:$0xf]  ;;  %v10022_v28 = vld [vmem:[%s15220_s7 + $0xa70] sm:$0xf0]  ;;  %v7591_v11 = vor.u32 %v9693_v25, %v7590_v41  ;;  %v9264_v41 = vld [vmem:[%s15220_s7 + $0xd44] sm:$0xf0] }
 0x2f3   :  { %5853 = vmatpush.bf16.msrb.mxu0 %v8231_v57  ;;  %5866 = vmatpush.bf16.msrb.mxu1 %v8455_v58  ;;  %v8343_v57 = vor.u32 %v9878_v53, %v8340_v54  ;;  %v9815_v58 = vld [vmem:[%s15220_s7 + $0x3fc] sm:$0xf]  ;;  %v8315_v18 = vor.u32 %v9871_v0, %v8312_v1  ;;  %v8907_v0 = vor.u32 %v10022_v28, %v8906_v56  ;;  %v8598_v25 = vld [vmem:[%s15220_s7 + $0x7f0] sm:$0xf]  ;;  %v10102_v56 = vld [vmem:[%s15220_s7 + $0xcf4] sm:$0xf] }
 0x2f4   :  { %5809 = vmatmul.bf16.vlgmr.msra.gmra.mxu0 %v13203_v39  ;;  %5822 = vmatmul.bf16.vlgmr.msra.gmra.mxu1 %v13205_v40  ;;  %v13907_v9 = vpop.f32.mrf.mxu2  ;;  %v13909_v14 = vpop.f32.mrf.mxu3  ;;  %v10123_v1 = vld [vmem:[%s15220_s7 + $0xd9c] sm:$0xf]  ;;  %v9236_v28 = vld [vmem:[%s15220_s7 + $0xd0c] sm:$0xf0] }
 0x2f6   :  { %5932 = vmatpush.bf16.msra.mxu2 %v7759_v22  ;;  %5945 = vmatpush.bf16.msra.mxu3 %v7983_v23  ;;  %v8060_v22 = vld [vmem:[%s15220_s7 + $0x3dc] sm:$0xf0]  ;;  %v7647_v23 = vor.u32 %v9707_v29, %v7646_v4  ;;  %v9320_v4 = vld [vmem:[%s15220_s7 + $0xdb4] sm:$0xf0] }
 0x2f7   :  { %5854 = vmatpush.bf16.msrb.mxu0 %v8203_v17  ;;  %5867 = vmatpush.bf16.msrb.mxu1 %v8427_v2  ;;  %v9763_v17 = vld [vmem:[%s15220_s7 + $0x258] sm:$0xf0]  ;;  %v8091_v2 = vor.u32 %v9815_v58, %v8088_v59  ;;  %v8063_v43 = vor.u32 %v9808_v19, %v8060_v22  ;;  %v8654_v29 = vld [vmem:[%s15220_s7 + $0x860] sm:$0xf]  ;;  %v9323_v19 = vor.u32 %v10123_v1, %v9320_v4  ;;  %v10060_v22 = vld [vmem:[%s15220_s7 + $0xba4] sm:$0xf] }
 0x2f8   :  { %v7871_v6 = vor.u32 %v9763_v17, %v7870_v12  ;;  %v10067_v59 = vld [vmem:[%s15220_s7 + $0xbdc] sm:$0xf]  ;;  %v8878_v17 = vld [vmem:[%s15220_s7 + $0xa20] sm:$0xf]  ;;  %v8984_v4 = vld [vmem:[%s15220_s7 + $0xb14] sm:$0xf0] }
 0x2f9   :  { %v9959_v12 = vld [vmem:[%s15220_s7 + $0x878] sm:$0xf0] }
 0x2fa   :  { %5933 = vmatpush.bf16.msra.mxu2 %v7731_v33  ;;  %5946 = vmatpush.bf16.msra.mxu3 %v7955_v34  ;;  %v8032_v33 = vld [vmem:[%s15220_s7 + $0x3a4] sm:$0xf0]  ;;  %v9857_v34 = vld [vmem:[%s15220_s7 + $0x54c] sm:$0xf]  ;;  %v8655_v24 = vor.u32 %v9959_v12, %v8654_v29  ;;  %v10039_v1 = vld [vmem:[%s15220_s7 + $0xafc] sm:$0xf] }
 0x2fb   :  { %5855 = vmatpush.bf16.msrb.mxu0 %v8175_v31  ;;  %5868 = vmatpush.bf16.msrb.mxu1 %v8399_v49  ;;  %v9756_v31 = vld [vmem:[%s15220_s7 + $0x220] sm:$0xf0]  ;;  %v9801_v49 = vld [vmem:[%s15220_s7 + $0x38c] sm:$0xf]  ;;  %v8259_v54 = vor.u32 %v9857_v34, %v8256_v3 }
 0x2fc   :  { %v7843_v52 = vor.u32 %v9756_v31, %v7842_v30  ;;  %v5682_v13 = vpop.f32.mrf.mxu2  ;;  %v5695_v20 = vpop.f32.mrf.mxu3  ;;  %v8035_v53 = vor.u32 %v9801_v49, %v8032_v33  ;;  %v8626_v30 = vld [vmem:[%s15220_s7 + $0x828] sm:$0xf]  ;;  %v10008_v31 = vld [vmem:[%s15220_s7 + $0xa00] sm:$0xf0] }
 0x2fd   :  { %v9040_v33 = vld [vmem:[%s15220_s7 + $0xb84] sm:$0xf0]  ;;  %v8822_v20 = vld [vmem:[%s15220_s7 + $0x9b0] sm:$0xf] }
 0x2fe   :  { %5934 = vmatpush.bf16.msra.mxu2 %v7703_v47  ;;  %5947 = vmatpush.bf16.msra.mxu3 %v7927_v48  ;;  %v9348_v47 = vld [vmem:[%s15220_s7 + $0xdec] sm:$0xf0]  ;;  %v8682_v48 = vld [vmem:[%s15220_s7 + $0x898] sm:$0xf] }
 0x2ff   :  { %5856 = vmatpush.bf16.msrb.mxu0 %v8147_v62  ;;  %5869 = vmatpush.bf16.msrb.mxu1 %v8371_v7  ;;  %v9749_v62 = vld [vmem:[%s15220_s7 + $0x1e8] sm:$0xf0]  ;;  %v10074_v7 = vld [vmem:[%s15220_s7 + $0xc14] sm:$0xf]  ;;  %v9351_v58 = vor.u32 %v10130_v44, %v9348_v47 }
 0x300   :  { %v10046_v47 = vld [vmem:[%s15220_s7 + $0xb34] sm:$0xf] }
 0x302   :  { %5935 = vmatpush.bf16.msra.mxu2 %v7675_v21  ;;  %5948 = vmatpush.bf16.msra.mxu3 %v7899_v63  ;;  %v9096_v21 = vld [vmem:[%s15220_s7 + $0xbf4] sm:$0xf0]  ;;  %v8683_v63 = vor.u32 %v9966_v55, %v8682_v48  ;;  %v9012_v48 = vld [vmem:[%s15220_s7 + $0xb4c] sm:$0xf0] }
 0x303   :  { %5857 = vmatpush.bf16.msrb.mxu0 %v8119_v5  ;;  %5870 = vmatpush.bf16.msrb.mxu1 %v8343_v57  ;;  %v7815_v5 = vor.u32 %v9749_v62, %v7814_v42  ;;  %v9127_v57 = vor.u32 %v10074_v7, %v9124_v8  ;;  %v10001_v62 = vld [vmem:[%s15220_s7 + $0x9c8] sm:$0xf0] }
 0x304   :  { %v8823_v55 = vor.u32 %v10001_v62, %v8822_v20 }
 0x306   :  { %5936 = vmatpush.bf16.msra.mxu2 %v7647_v23  ;;  %5949 = vmatpush.bf16.msra.mxu3 %v7871_v6  ;;  %v9068_v23 = vld [vmem:[%s15220_s7 + $0xbbc] sm:$0xf0]  ;;  %v5577_v6 = vadd.f32 %v13688_v60, %v13316_v45  ;;  %v9952_v45 = vld [vmem:[%s15220_s7 + $0x840] sm:$0xf0]  ;;  %v8850_v60 = vld [vmem:[%s15220_s7 + $0x9e8] sm:$0xf] }
 0x307   :  { %5858 = vmatpush.bf16.msrb.mxu0 %v8091_v2  ;;  %5871 = vmatpush.bf16.msrb.mxu1 %v8315_v18  ;;  %v10015_v2 = vld [vmem:[%s15220_s7 + $0xa38] sm:$0xf0]  ;;  %v9099_v18 = vor.u32 %v10067_v59, %v9096_v21  ;;  %v9071_v49 = vor.u32 %v10060_v22, %v9068_v23  ;;  %v8627_v3 = vor.u32 %v9952_v45, %v8626_v30 }
 0x308   :  { %v8879_v51 = vor.u32 %v10015_v2, %v8878_v17  ;;  %v5590_v34 = vadd.f32 %v13690_v61, %v5577_v6  ;;  %v9945_v61 = vld [vmem:[%s15220_s7 + $0x808] sm:$0xf0]  ;;  %v9015_v59 = vor.u32 %v10046_v47, %v9012_v48  ;;  %v9239_v21 = vor.u32 %v10102_v56, %v9236_v28  ;;  %v10095_v17 = vld [vmem:[%s15220_s7 + $0xcbc] sm:$0xf]  ;;  %v9208_v2 = vld [vmem:[%s15220_s7 + $0xcd4] sm:$0xf0] }
 0x309   :  { %v9931_v23 = vld [vmem:[%s15220_s7 + $0x798] sm:$0xf0]  ;;  %v8766_v6 = vld [vmem:[%s15220_s7 + $0x940] sm:$0xf]  ;;  %v8987_v45 = vor.u32 %v10039_v1, %v8984_v4  ;;  %v8486_v48 = vld [vmem:[%s15220_s7 + $0x710] sm:$0xf] }
 0x30a   :  { %5937 = vmatpush.bf16.msra.mxu2 %v7619_v38  ;;  %5950 = vmatpush.bf16.msra.mxu3 %v7843_v52  ;;  %v8851_v38 = vor.u32 %v10008_v31, %v8850_v60  ;;  %v10109_v52 = vld [vmem:[%s15220_s7 + $0xd2c] sm:$0xf]  ;;  %v9211_v60 = vor.u32 %v10095_v17, %v9208_v2  ;;  %v10032_v31 = vld [vmem:[%s15220_s7 + $0xac4] sm:$0xf]  ;;  %v9739_v1 = vld [vmem:[%s15220_s7 + $0x19c] sm:$0xf] }
 0x30b   :  { %5859 = vmatpush.bf16.msrb.mxu0 %v8063_v43  ;;  %5872 = vmatpush.bf16.msrb.mxu1 %v8287_v32  ;;  %v9295_v43 = vor.u32 %v10116_v26, %v9292_v27  ;;  %v10053_v32 = vld [vmem:[%s15220_s7 + $0xb6c] sm:$0xf]  ;;  %v9267_v44 = vor.u32 %v10109_v52, %v9264_v41  ;;  %v9924_v52 = vld [vmem:[%s15220_s7 + $0x760] sm:$0xf0]  ;;  %v8012_v17 = vld [vmem:[%s15220_s7 + $0x374] sm:$0xf0] }
 0x30c   :  { %v9043_v8 = vor.u32 %v10053_v32, %v9040_v33  ;;  %v9973_v28 = vld [vmem:[%s15220_s7 + $0x8e8] sm:$0xf0] }
 0x30e   :  { %5938 = vmatpush.bf16.msra.mxu2 %v7591_v11  ;;  %5951 = vmatpush.bf16.msra.mxu3 %v7815_v5  ;;  %v5602_v42 = vpop.f32.mrf.mxu0  ;;  %v5615_v13 = vpop.f32.mrf.mxu1  ;;  %v8570_v11 = vld [vmem:[%s15220_s7 + $0x7b8] sm:$0xf]  ;;  %v9938_v5 = vld [vmem:[%s15220_s7 + $0x7d0] sm:$0xf0] }
 0x30f   :  { %5860 = vmatpush.bf16.msrb.mxu0 %v8035_v53  ;;  %5873 = vmatpush.bf16.msrb.mxu1 %v8259_v54  ;;  %v5603_v7 = vadd.f32 %v5602_v42, %v5590_v34  ;;  %v8599_v54 = vor.u32 %v9945_v61, %v8598_v25  ;;  %v8571_v29 = vor.u32 %v9938_v5, %v8570_v11  ;;  %v8738_v25 = vld [vmem:[%s15220_s7 + $0x908] sm:$0xf]  ;;  %v9980_v42 = vld [vmem:[%s15220_s7 + $0x920] sm:$0xf0]  ;;  %v10025_v61 = vld [vmem:[%s15220_s7 + $0xa8c] sm:$0xf] }
 0x310   :  { %v8739_v47 = vor.u32 %v9980_v42, %v8738_v25  ;;  %v8234_v11 = vld [vmem:[%s15220_s7 + $0x518] sm:$0xf]  ;;  %v9854_v5 = vld [vmem:[%s15220_s7 + $0x530] sm:$0xf0] }
 0x311   :  { %5939 = vmatmul.bf16.vlgmr.msra.gmra.mxu2 %v12486_v50  ;;  %5952 = vmatmul.bf16.vlgmr.msra.gmra.mxu3 %v12488_v37  ;;  %v5616_v53 = vadd.f32 %v5615_v13, %v5603_v7  ;;  %v8928_v7 = vld [vmem:[%s15220_s7 + $0xaa4] sm:$0xf0] }
 0x312   :  { %5983 = vmatpush.bf16.msrb.mxu2 %v8683_v63  ;;  %5996 = vmatpush.bf16.msrb.mxu3 %v8907_v0  ;;  %v14098_v63 = vld [vmem:[%s15221_s8] sm:$0x7f]  ;;  %v8931_v4 = vor.u32 %v10025_v61, %v8928_v7  ;;  %v9781_v7 = vld [vmem:[%s15220_s7 + $0x2ec] sm:$0xf] }
 0x313   :  { %5905 = vmatpush.bf16.msra.mxu0 %v9127_v57  ;;  %5918 = vmatpush.bf16.msra.mxu1 %v9351_v58  ;;  %v8794_v57 = vld [vmem:[%s15220_s7 + $0x978] sm:$0xf]  ;;  %v9994_v58 = vld [vmem:[%s15220_s7 + $0x990] sm:$0xf0]  ;;  %10137 = vtanh.f32 %v5616_v53  ;;  %v3171_v0 = vperm.slane %v14098_v63, 2 }
 0x314   :  { %5861 = vmatmul.bf16.vlgmr.msrb.gmra.mxu0 %v12592_v35  ;;  %5874 = vmatmul.bf16.vlgmr.msrb.gmra.mxu1 %v12594_v36  ;;  %v8795_v12 = vor.u32 %v9994_v58, %v8794_v57  ;;  %v9917_v53 = vld [vmem:[%s15220_s7 + $0x728] sm:$0xf0]  ;;  %v9896_v61 = vld [vmem:[%s15220_s7 + $0x680] sm:$0xf0] }
 0x316   :  { %5984 = vmatpush.bf16.msrb.mxu2 %v8655_v24  ;;  %5997 = vmatpush.bf16.msrb.mxu3 %v8879_v51  ;;  %v5617_v22 = vpop.f32.mrf.mxu1  ;;  %v9987_v24 = vld [vmem:[%s15220_s7 + $0x958] sm:$0xf0]  ;;  %v3170_v51 = vperm.slane %v14098_v63, 1 }
 0x317   :  { %5906 = vmatpush.bf16.msra.mxu0 %v9099_v18  ;;  %5919 = vmatpush.bf16.msra.mxu1 %v9323_v19  ;;  %v8542_v18 = vld [vmem:[%s15220_s7 + $0x780] sm:$0xf]  ;;  %v5604_v19 = vpop.f32.mrf.mxu0  ;;  %v5732_v26 = vpop.f32.mrf.mxu2  ;;  %v8767_v34 = vor.u32 %v9987_v24, %v8766_v6  ;;  %v8235_v22 = vor.u32 %v9854_v5, %v8234_v11  ;;  %v9847_v24 = vld [vmem:[%s15220_s7 + $0x4f8] sm:$0xf0]  ;;  %v7704_v11 = vld [vmem:[%s15220_s7 + $0x10c] sm:$0xf0] }
 0x318   :  { %v5745_v27 = vpop.f32.mrf.mxu3  ;;  %v5733_v30 = vadd.f32 %v5732_v26, %v3171_v0  ;;  %v8543_v33 = vor.u32 %v9931_v23, %v8542_v18  ;;  %v5629_v13 = vadd.f32 %v13803_v10, %v3170_v51  ;;  %v9152_v10 = vld [vmem:[%s15220_s7 + $0xc64] sm:$0xf0]  ;;  %v9910_v0 = vld [vmem:[%s15220_s7 + $0x6f0] sm:$0xf0]  ;;  %v8487_v18 = vor.u32 %v9917_v53, %v8486_v48  ;;  %v8206_v6 = vld [vmem:[%s15220_s7 + $0x4e0] sm:$0xf] }
 0x319   :  { %v10138_v32 = vpop.eup %10137  ;;  %v8150_v48 = vld [vmem:[%s15220_s7 + $0x470] sm:$0xf]  ;;  %v9833_v53 = vld [vmem:[%s15220_s7 + $0x488] sm:$0xf0]  ;;  %v9774_v5 = vld [vmem:[%s15220_s7 + $0x2b4] sm:$0xf] }
 0x31a   :  { %5985 = vmatpush.bf16.msrb.mxu2 %v8627_v3  ;;  %5998 = vmatpush.bf16.msrb.mxu3 %v8851_v38  ;;  %v9180_v3 = vld [vmem:[%s15220_s7 + $0xc9c] sm:$0xf0]  ;;  %v8514_v38 = vld [vmem:[%s15220_s7 + $0x748] sm:$0xf]  ;;  %6250 = vst [vmem:[#allocation2] sm:$0xff] %v10138_v32  ;;  %v14144_v41 = vadd.f32 %v5745_v27, %v5733_v30  ;;  %v5642_v57 = vadd.f32 %v13805_v46, %v5629_v13 }
 0x31b   :  { %5907 = vmatpush.bf16.msra.mxu0 %v9071_v49  ;;  %5920 = vmatpush.bf16.msra.mxu1 %v9295_v43  ;;  %v8956_v49 = vld [vmem:[%s15220_s7 + $0xadc] sm:$0xf0]  ;;  %v10088_v43 = vld [vmem:[%s15220_s7 + $0xc84] sm:$0xf]  ;;  %v7788_v46 = vld [vmem:[%s15220_s7 + $0x1b4] sm:$0xf0] }
 0x31c   :  { %v8959_v20 = vor.u32 %v10032_v31, %v8956_v49  ;;  %v9183_v62 = vor.u32 %v10088_v43, %v9180_v3  ;;  %v7791_v51 = vor.u32 %v9739_v1, %v7788_v46  ;;  %v8430_v27 = vld [vmem:[%s15220_s7 + $0x6a0] sm:$0xf]  ;;  %v9903_v30 = vld [vmem:[%s15220_s7 + $0x6b8] sm:$0xf0]  ;;  %v9788_v31 = vld [vmem:[%s15220_s7 + $0x324] sm:$0xf] }
 0x31d   :  { %v7984_v49 = vld [vmem:[%s15220_s7 + $0x33c] sm:$0xf0]  ;;  %v8431_v3 = vor.u32 %v9903_v30, %v8430_v27  ;;  %v8402_v13 = vld [vmem:[%s15220_s7 + $0x668] sm:$0xf]  ;;  %v9819_v27 = vld [vmem:[%s15220_s7 + $0x418] sm:$0xf0] }
 0x31e   :  { %5986 = vmatpush.bf16.msrb.mxu2 %v8599_v54  ;;  %5999 = vmatpush.bf16.msrb.mxu3 %v8823_v55  ;;  %v8710_v54 = vld [vmem:[%s15220_s7 + $0x8d0] sm:$0xf]  ;;  %v5667_v56 = vpop.f32.mrf.mxu1  ;;  %v7987_v42 = vor.u32 %v9788_v31, %v7984_v49  ;;  %v8318_v49 = vld [vmem:[%s15220_s7 + $0x5c0] sm:$0xf] }
 0x31f   :  { %5908 = vmatpush.bf16.msra.mxu0 %v9043_v8  ;;  %5921 = vmatpush.bf16.msra.mxu1 %v9267_v44  ;;  %v10081_v8 = vld [vmem:[%s15220_s7 + $0xc4c] sm:$0xf]  ;;  %v8515_v44 = vor.u32 %v9924_v52, %v8514_v38  ;;  %v5654_v55 = vpop.f32.mrf.mxu0  ;;  %v5734_v58 = vpop.f32.mrf.mxu2  ;;  %v8711_v19 = vor.u32 %v9973_v28, %v8710_v54  ;;  %v8178_v38 = vld [vmem:[%s15220_s7 + $0x4a8] sm:$0xf]  ;;  %v9840_v52 = vld [vmem:[%s15220_s7 + $0x4c0] sm:$0xf0] }
 0x320   :  { %v5655_v2 = vadd.f32 %v5654_v55, %v5642_v57  ;;  %v8374_v55 = vld [vmem:[%s15220_s7 + $0x630] sm:$0xf]  ;;  %v9718_v28 = vld [vmem:[%s15220_s7 + $0xf4] sm:$0xf] }
 0x321   :  { %v7928_v57 = vld [vmem:[%s15220_s7 + $0x2cc] sm:$0xf0] }
 0x322   :  { %5987 = vmatpush.bf16.msrb.mxu2 %v8571_v29  ;;  %6000 = vmatpush.bf16.msrb.mxu3 %v8795_v12  ;;  %v9155_v29 = vor.u32 %v10081_v8, %v9152_v10  ;;  %v9795_v12 = vld [vmem:[%s15220_s7 + $0x35c] sm:$0xf]  ;;  %v5668_v43 = vadd.f32 %v5667_v56, %v5655_v2  ;;  %v7956_v8 = vld [vmem:[%s15220_s7 + $0x304] sm:$0xf0]  ;;  %v9889_v56 = vld [vmem:[%s15220_s7 + $0x648] sm:$0xf0] }
 0x323   :  { %5909 = vmatpush.bf16.msra.mxu0 %v9015_v59  ;;  %5922 = vmatpush.bf16.msra.mxu1 %v9239_v21  ;;  %v5747_v59 = vpop.f32.mrf.mxu3  ;;  %v8458_v21 = vld [vmem:[%s15220_s7 + $0x6d8] sm:$0xf]  ;;  %v8015_v26 = vor.u32 %v9795_v12, %v8012_v17  ;;  %v8375_v1 = vor.u32 %v9889_v56, %v8374_v55  ;;  %v7707_v12 = vor.u32 %v9718_v28, %v7704_v11  ;;  %v9882_v2 = vld [vmem:[%s15220_s7 + $0x610] sm:$0xf0]  ;;  %v8262_v28 = vld [vmem:[%s15220_s7 + $0x550] sm:$0xf] }
 0x324   :  { %v8459_v23 = vor.u32 %v9910_v0, %v8458_v21  ;;  %v5681_v10 = vadd.f32 %v13907_v9, %v5668_v43  ;;  %v7959_v9 = vor.u32 %v9781_v7, %v7956_v8  ;;  %v8151_v0 = vor.u32 %v9833_v53, %v8150_v48  ;;  %v9875_v43 = vld [vmem:[%s15220_s7 + $0x5d8] sm:$0xf0]  ;;  %v8290_v7 = vld [vmem:[%s15220_s7 + $0x588] sm:$0xf]  ;;  %v9868_v8 = vld [vmem:[%s15220_s7 + $0x5a0] sm:$0xf0] }
 0x325   :  { %v7931_v17 = vor.u32 %v9774_v5, %v7928_v57  ;;  %v7844_v48 = vld [vmem:[%s15220_s7 + $0x224] sm:$0xf0]  ;;  %v8291_v56 = vor.u32 %v9868_v8, %v8290_v7  ;;  %v9861_v11 = vld [vmem:[%s15220_s7 + $0x568] sm:$0xf0]  ;;  %v10120_v7 = vld [vmem:[%s15220_s7 + $0xd80] sm:$0xf0] }
 0x326   :  { %5988 = vmatpush.bf16.msrb.mxu2 %v8543_v33  ;;  %6001 = vmatpush.bf16.msrb.mxu3 %v8767_v34  ;;  %v5669_v33 = vpop.f32.mrf.mxu1  ;;  %v8207_v34 = vor.u32 %v9847_v24, %v8206_v6  ;;  %v5694_v58 = vadd.f32 %v13909_v14, %v5681_v10  ;;  %v8346_v14 = vld [vmem:[%s15220_s7 + $0x5f8] sm:$0xf]  ;;  %v9697_v10 = vld [vmem:[%s15220_s7 + $0x4c] sm:$0xf] }
 0x327   :  { %5910 = vmatpush.bf16.msra.mxu0 %v8987_v45  ;;  %5923 = vmatpush.bf16.msra.mxu1 %v9211_v60  ;;  %v9732_v45 = vld [vmem:[%s15220_s7 + $0x164] sm:$0xf]  ;;  %v7760_v60 = vld [vmem:[%s15220_s7 + $0x17c] sm:$0xf0]  ;;  %v5656_v32 = vpop.f32.mrf.mxu0  ;;  %v9949_v8 = vld [vmem:[%s15220_s7 + $0x82c] sm:$0xf] }
 0x328   :  { %v7763_v25 = vor.u32 %v9732_v45, %v7760_v60  ;;  %v9704_v32 = vld [vmem:[%s15220_s7 + $0x84] sm:$0xf]  ;;  %v7648_v33 = vld [vmem:[%s15220_s7 + $0x9c] sm:$0xf0] }
 0x32a   :  { %5989 = vmatpush.bf16.msrb.mxu2 %v8515_v44  ;;  %6002 = vmatpush.bf16.msrb.mxu3 %v8739_v47  ;;  %v8179_v44 = vor.u32 %v9840_v52, %v8178_v38  ;;  %v8403_v47 = vor.u32 %v9896_v61, %v8402_v13  ;;  %v8066_v13 = vld [vmem:[%s15220_s7 + $0x3c8] sm:$0xf]  ;;  %v9812_v61 = vld [vmem:[%s15220_s7 + $0x3e0] sm:$0xf0] }
 0x32b   :  { %5911 = vmatpush.bf16.msra.mxu0 %v8959_v20  ;;  %5924 = vmatpush.bf16.msra.mxu1 %v9183_v62  ;;  %v9725_v20 = vld [vmem:[%s15220_s7 + $0x12c] sm:$0xf]  ;;  %v7732_v62 = vld [vmem:[%s15220_s7 + $0x144] sm:$0xf0]  ;;  %v8067_v55 = vor.u32 %v9812_v61, %v8066_v13  ;;  %v10064_v13 = vld [vmem:[%s15220_s7 + $0xbc0] sm:$0xf0] }
 0x32c   :  { %v7735_v54 = vor.u32 %v9725_v20, %v7732_v62  ;;  %v7651_v20 = vor.u32 %v9704_v32, %v7648_v33  ;;  %v10127_v32 = vld [vmem:[%s15220_s7 + $0xdb8] sm:$0xf0]  ;;  %v9956_v33 = vld [vmem:[%s15220_s7 + $0x864] sm:$0xf] }
 0x32e   :  { %5990 = vmatpush.bf16.msrb.mxu2 %v8487_v18  ;;  %6003 = vmatpush.bf16.msrb.mxu3 %v8711_v19  ;;  %v9711_v18 = vld [vmem:[%s15220_s7 + $0xbc] sm:$0xf]  ;;  %v7676_v19 = vld [vmem:[%s15220_s7 + $0xd4] sm:$0xf0] }
 0x32f   :  { %5912 = vmatpush.bf16.msra.mxu0 %v8931_v4  ;;  %5925 = vmatpush.bf16.msra.mxu1 %v9155_v29  ;;  %v8122_v4 = vld [vmem:[%s15220_s7 + $0x438] sm:$0xf]  ;;  %v9826_v29 = vld [vmem:[%s15220_s7 + $0x450] sm:$0xf0]  ;;  %v7679_v30 = vor.u32 %v9711_v18, %v7676_v19  ;;  %v8263_v18 = vor.u32 %v9861_v11, %v8262_v28  ;;  %v9270_v28 = vld [vmem:[%s15220_s7 + $0xd30] sm:$0xf] }
 0x330   :  { %v8123_v24 = vor.u32 %v9826_v29, %v8122_v4  ;;  %v7816_v4 = vld [vmem:[%s15220_s7 + $0x1ec] sm:$0xf0]  ;;  %v9130_v29 = vld [vmem:[%s15220_s7 + $0xc18] sm:$0xf]  ;;  %v10113_v11 = vld [vmem:[%s15220_s7 + $0xd48] sm:$0xf0] }
 0x331   :  { %5991 = vmatmul.bf16.vlgmr.msrb.gmra.mxu2 %v12863_v15  ;;  %6004 = vmatmul.bf16.vlgmr.msrb.gmra.mxu3 %v12865_v16  ;;  %v5706_v59 = vpop.f32.mrf.mxu0  ;;  %v5719_v21 = vpop.f32.mrf.mxu1  ;;  %v8684_v19 = vld [vmem:[%s15220_s7 + $0x8b4] sm:$0xf0] }
 0x332   :  { %6035 = vmatpush.bf16.msra.mxu2 %v7791_v51  ;;  %6048 = vmatpush.bf16.msra.mxu3 %v8015_v26  ;;  %v5707_v46 = vadd.f32 %v5706_v59, %v5694_v58  ;;  %v8347_v51 = vor.u32 %v9882_v2, %v8346_v14  ;;  %v8094_v26 = vld [vmem:[%s15220_s7 + $0x400] sm:$0xf]  ;;  %v9963_v14 = vld [vmem:[%s15220_s7 + $0x89c] sm:$0xf] }
 0x333   :  { %5957 = vmatpush.bf16.msrb.mxu0 %v8235_v22  ;;  %5970 = vmatpush.bf16.msrb.mxu1 %v8459_v23  ;;  %v9767_v22 = vld [vmem:[%s15220_s7 + $0x27c] sm:$0xf]  ;;  %v7900_v23 = vld [vmem:[%s15220_s7 + $0x294] sm:$0xf0] }
 0x334   :  { %5913 = vmatmul.bf16.vlgmr.msra.gmra.mxu0 %v13203_v39  ;;  %5926 = vmatmul.bf16.vlgmr.msra.gmra.mxu1 %v13205_v40  ;;  %v5720_v6 = vadd.f32 %v5719_v21, %v5707_v46  ;;  %v7903_v45 = vor.u32 %v9767_v22, %v7900_v23  ;;  %v14310_v60 = vpop.f32.mrf.mxu2  ;;  %v14312_v31 = vpop.f32.mrf.mxu3  ;;  %v9690_v21 = vld [vmem:[%s15220_s7 + $0x14] sm:$0xf]  ;;  %v10019_v22 = vld [vmem:[%s15220_s7 + $0xa5c] sm:$0xf]  ;;  %v8908_v23 = vld [vmem:[%s15220_s7 + $0xa74] sm:$0xf0] }
 0x335   :  { %v10078_v46 = vld [vmem:[%s15220_s7 + $0xc30] sm:$0xf0] }
 0x336   :  { %6036 = vmatpush.bf16.msra.mxu2 %v7763_v25  ;;  %6049 = vmatpush.bf16.msra.mxu3 %v7987_v42  ;;  %10139 = vtanh.f32 %v5720_v6  ;;  %v8095_v25 = vor.u32 %v9819_v27, %v8094_v26  ;;  %v8319_v42 = vor.u32 %v9875_v43, %v8318_v49  ;;  %v9102_v27 = vld [vmem:[%s15220_s7 + $0xbe0] sm:$0xf]  ;;  %v8911_v49 = vor.u32 %v10019_v22, %v8908_v23  ;;  %v9991_v22 = vld [vmem:[%s15220_s7 + $0x97c] sm:$0xf]  ;;  %v8796_v23 = vld [vmem:[%s15220_s7 + $0x994] sm:$0xf0] }
 0x337   :  { %5958 = vmatpush.bf16.msrb.mxu0 %v8207_v34  ;;  %5971 = vmatpush.bf16.msrb.mxu1 %v8431_v3  ;;  %v9760_v34 = vld [vmem:[%s15220_s7 + $0x244] sm:$0xf]  ;;  %v7872_v3 = vld [vmem:[%s15220_s7 + $0x25c] sm:$0xf0] }
 0x338   :  { %v7875_v62 = vor.u32 %v9760_v34, %v7872_v3  ;;  %v9326_v43 = vld [vmem:[%s15220_s7 + $0xda0] sm:$0xf]  ;;  %v10012_v3 = vld [vmem:[%s15220_s7 + $0xa24] sm:$0xf] }
 0x339   :  { %v5708_v38 = vpop.f32.mrf.mxu0  ;;  %v5721_v52 = vpop.f32.mrf.mxu1  ;;  %v8656_v34 = vld [vmem:[%s15220_s7 + $0x87c] sm:$0xf0] }
 0x33a   :  { %6037 = vmatpush.bf16.msra.mxu2 %v7735_v54  ;;  %6050 = vmatpush.bf16.msra.mxu3 %v7959_v9  ;;  %v8038_v54 = vld [vmem:[%s15220_s7 + $0x390] sm:$0xf]  ;;  %v9805_v9 = vld [vmem:[%s15220_s7 + $0x3a8] sm:$0xf0]  ;;  %v8880_v38 = vld [vmem:[%s15220_s7 + $0xa3c] sm:$0xf0]  ;;  %v8659_v61 = vor.u32 %v9956_v33, %v8656_v34 }
 0x33b   :  { %5959 = vmatpush.bf16.msrb.mxu0 %v8179_v44  ;;  %5972 = vmatpush.bf16.msrb.mxu1 %v8403_v47  ;;  %v7620_v44 = vld [vmem:[%s15220_s7 + $0x64] sm:$0xf0]  ;;  %v9753_v47 = vld [vmem:[%s15220_s7 + $0x20c] sm:$0xf]  ;;  %v8039_v2 = vor.u32 %v9805_v9, %v8038_v54  ;;  %v9046_v54 = vld [vmem:[%s15220_s7 + $0xb70] sm:$0xf] }
 0x33c   :  { %v10140_v53 = vpop.eup %10139  ;;  %v7623_v5 = vor.u32 %v9697_v10, %v7620_v44  ;;  %v7847_v57 = vor.u32 %v9753_v47, %v7844_v48  ;;  %v5786_v58 = vpop.f32.mrf.mxu2  ;;  %v8628_v10 = vld [vmem:[%s15220_s7 + $0x844] sm:$0xf0]  ;;  %v10005_v44 = vld [vmem:[%s15220_s7 + $0x9ec] sm:$0xf]  ;;  %v8544_v34 = vld [vmem:[%s15220_s7 + $0x79c] sm:$0xf0] }
 0x33d   :  { %6251 = vst [vmem:[#allocation2 + $0x8] sm:$0xff] %v10140_v53  ;;  %v5799_v59 = vpop.f32.mrf.mxu3  ;;  %v8852_v47 = vld [vmem:[%s15220_s7 + $0xa04] sm:$0xf0]  ;;  %v10057_v9 = vld [vmem:[%s15220_s7 + $0xb88] sm:$0xf0] }
 0x33e   :  { %6038 = vmatpush.bf16.msra.mxu2 %v7707_v12  ;;  %6051 = vmatpush.bf16.msra.mxu3 %v7931_v17  ;;  %v9354_v12 = vld [vmem:[%s15220_s7 + $0xdd8] sm:$0xf]  ;;  %v10134_v17 = vld [vmem:[%s15220_s7 + $0xdf0] sm:$0xf0]  ;;  %v8824_v59 = vld [vmem:[%s15220_s7 + $0x9cc] sm:$0xf0] }
 0x33f   :  { %5960 = vmatpush.bf16.msrb.mxu0 %v8151_v0  ;;  %5973 = vmatpush.bf16.msrb.mxu1 %v8375_v1  ;;  %v7592_v0 = vld [vmem:[%s15220_s7 + $0x2c] sm:$0xf0]  ;;  %v9746_v1 = vld [vmem:[%s15220_s7 + $0x1d4] sm:$0xf]  ;;  %v9355_v26 = vor.u32 %v10134_v17, %v9354_v12 }
 0x340   :  { %v7595_v6 = vor.u32 %v9690_v21, %v7592_v0  ;;  %v9998_v58 = vld [vmem:[%s15220_s7 + $0x9b4] sm:$0xf] }
 0x341   :  { %v8827_v17 = vor.u32 %v9998_v58, %v8824_v59 }
 0x342   :  { %6039 = vmatpush.bf16.msra.mxu2 %v7679_v30  ;;  %6052 = vmatpush.bf16.msra.mxu3 %v7903_v45  ;;  %v10071_v30 = vld [vmem:[%s15220_s7 + $0xbf8] sm:$0xf0]  ;;  %v8687_v45 = vor.u32 %v9963_v14, %v8684_v19  ;;  %v9242_v14 = vld [vmem:[%s15220_s7 + $0xcf8] sm:$0xf] }
 0x343   :  { %5961 = vmatpush.bf16.msrb.mxu0 %v8123_v24  ;;  %5974 = vmatpush.bf16.msrb.mxu1 %v8347_v51  ;;  %v7819_v24 = vor.u32 %v9746_v1, %v7816_v4  ;;  %v9131_v51 = vor.u32 %v10078_v46, %v9130_v29  ;;  %v9103_v52 = vor.u32 %v10071_v30, %v9102_v27  ;;  %v9018_v29 = vld [vmem:[%s15220_s7 + $0xb38] sm:$0xf]  ;;  %v10050_v46 = vld [vmem:[%s15220_s7 + $0xb50] sm:$0xf0]  ;;  %v10043_v27 = vld [vmem:[%s15220_s7 + $0xb18] sm:$0xf0] }
 0x344   :  { %v9047_v1 = vor.u32 %v10057_v9, %v9046_v54  ;;  %v9271_v4 = vor.u32 %v10113_v11, %v9270_v28  ;;  %v8572_v19 = vld [vmem:[%s15220_s7 + $0x7d4] sm:$0xf0]  ;;  %v9977_v54 = vld [vmem:[%s15220_s7 + $0x90c] sm:$0xf]  ;;  %v8740_v9 = vld [vmem:[%s15220_s7 + $0x924] sm:$0xf0] }
 0x345   :  { %v10029_v11 = vld [vmem:[%s15220_s7 + $0xaa8] sm:$0xf0]  ;;  %v8743_v59 = vor.u32 %v9977_v54, %v8740_v9  ;;  %v7962_v54 = vld [vmem:[%s15220_s7 + $0x2f0] sm:$0xf] }
 0x346   :  { %6040 = vmatpush.bf16.msra.mxu2 %v7651_v20  ;;  %6053 = vmatpush.bf16.msra.mxu3 %v7875_v62  ;;  %v8883_v20 = vor.u32 %v10012_v3, %v8880_v38  ;;  %v9298_v62 = vld [vmem:[%s15220_s7 + $0xd68] sm:$0xf]  ;;  %v9984_v3 = vld [vmem:[%s15220_s7 + $0x944] sm:$0xf]  ;;  %v8768_v38 = vld [vmem:[%s15220_s7 + $0x95c] sm:$0xf0] }
 0x347   :  { %5962 = vmatpush.bf16.msrb.mxu0 %v8095_v25  ;;  %5975 = vmatpush.bf16.msrb.mxu1 %v8319_v42  ;;  %v9327_v25 = vor.u32 %v10127_v32, %v9326_v43  ;;  %v9074_v42 = vld [vmem:[%s15220_s7 + $0xba8] sm:$0xf]  ;;  %v9299_v53 = vor.u32 %v10120_v7, %v9298_v62  ;;  %v9928_v43 = vld [vmem:[%s15220_s7 + $0x784] sm:$0xf]  ;;  %v9785_v9 = vld [vmem:[%s15220_s7 + $0x308] sm:$0xf0] }
 0x348   :  { %v9075_v48 = vor.u32 %v10064_v13, %v9074_v42  ;;  %v10036_v62 = vld [vmem:[%s15220_s7 + $0xae0] sm:$0xf0] }
 0x34a   :  { %6041 = vmatpush.bf16.msra.mxu2 %v7623_v5  ;;  %6054 = vmatpush.bf16.msra.mxu3 %v7847_v57  ;;  %v9942_v5 = vld [vmem:[%s15220_s7 + $0x7f4] sm:$0xf]  ;;  %v8600_v57 = vld [vmem:[%s15220_s7 + $0x80c] sm:$0xf0] }
 0x34b   :  { %5963 = vmatpush.bf16.msrb.mxu0 %v8067_v55  ;;  %5976 = vmatpush.bf16.msrb.mxu1 %v8291_v56  ;;  %v8631_v55 = vor.u32 %v9949_v8, %v8628_v10  ;;  %v8855_v56 = vor.u32 %v10005_v44, %v8852_v47  ;;  %v8603_v12 = vor.u32 %v9942_v5, %v8600_v57  ;;  %v9186_v44 = vld [vmem:[%s15220_s7 + $0xc88] sm:$0xf]  ;;  %v10092_v47 = vld [vmem:[%s15220_s7 + $0xca0] sm:$0xf0]  ;;  %v9158_v5 = vld [vmem:[%s15220_s7 + $0xc50] sm:$0xf] }
 0x34c   :  { %v8547_v8 = vor.u32 %v9928_v43, %v8544_v34  ;;  %v8771_v10 = vor.u32 %v9984_v3, %v8768_v38  ;;  %v9187_v28 = vor.u32 %v10092_v47, %v9186_v44  ;;  %v10085_v57 = vld [vmem:[%s15220_s7 + $0xc68] sm:$0xf0]  ;;  %v8432_v34 = vld [vmem:[%s15220_s7 + $0x6bc] sm:$0xf0]  ;;  %v7766_v3 = vld [vmem:[%s15220_s7 + $0x168] sm:$0xf] }
 0x34d   :  { %v8404_v44 = vld [vmem:[%s15220_s7 + $0x684] sm:$0xf0]  ;;  %v7738_v47 = vld [vmem:[%s15220_s7 + $0x130] sm:$0xf] }
 0x34e   :  { %6042 = vmatpush.bf16.msra.mxu2 %v7595_v6  ;;  %6055 = vmatpush.bf16.msra.mxu3 %v7819_v24  ;;  %v3172_v6 = vperm.slane %v14098_v63, 3  ;;  %v9019_v24 = vor.u32 %v10050_v46, %v9018_v29  ;;  %v9214_v63 = vld [vmem:[%s15220_s7 + $0xcc0] sm:$0xf]  ;;  %v9970_v29 = vld [vmem:[%s15220_s7 + $0x8d4] sm:$0xf] }
 0x34f   :  { %5964 = vmatpush.bf16.msrb.mxu0 %v8039_v2  ;;  %5977 = vmatpush.bf16.msrb.mxu1 %v8263_v18  ;;  %v10106_v2 = vld [vmem:[%s15220_s7 + $0xd10] sm:$0xf0]  ;;  %v9935_v18 = vld [vmem:[%s15220_s7 + $0x7bc] sm:$0xf] }
 0x350   :  { %v8575_v30 = vor.u32 %v9935_v18, %v8572_v19  ;;  %v9907_v18 = vld [vmem:[%s15220_s7 + $0x6dc] sm:$0xf]  ;;  %v8460_v19 = vld [vmem:[%s15220_s7 + $0x6f4] sm:$0xf0] }
 0x351   :  { %6043 = vmatmul.bf16.vlgmr.msra.gmra.mxu2 %v12486_v50  ;;  %6056 = vmatmul.bf16.vlgmr.msra.gmra.mxu3 %v12488_v37  ;;  %v14480_v21 = vpop.f32.mrf.mxu0  ;;  %v14482_v0 = vpop.f32.mrf.mxu1 }
 0x352   :  { %6087 = vmatpush.bf16.msrb.mxu2 %v8687_v45  ;;  %6100 = vmatpush.bf16.msrb.mxu3 %v8911_v49  ;;  %v8799_v45 = vor.u32 %v9991_v22, %v8796_v23  ;;  %v10099_v49 = vld [vmem:[%s15220_s7 + $0xcd8] sm:$0xf0]  ;;  %v7794_v22 = vld [vmem:[%s15220_s7 + $0x1a0] sm:$0xf]  ;;  %v5759_v23 = vadd.f32 %v14480_v21, %v14144_v41 }
 0x353   :  { %6009 = vmatpush.bf16.msra.mxu0 %v9131_v51  ;;  %6022 = vmatpush.bf16.msra.mxu1 %v9355_v26  ;;  %v9243_v51 = vor.u32 %v10106_v2, %v9242_v14  ;;  %v8990_v26 = vld [vmem:[%s15220_s7 + $0xb00] sm:$0xf]  ;;  %v9851_v14 = vld [vmem:[%s15220_s7 + $0x51c] sm:$0xf]  ;;  %v8236_v2 = vld [vmem:[%s15220_s7 + $0x534] sm:$0xf0] }
 0x354   :  { %5965 = vmatmul.bf16.vlgmr.msrb.gmra.mxu0 %v12592_v35  ;;  %5978 = vmatmul.bf16.vlgmr.msrb.gmra.mxu1 %v12594_v36  ;;  %v5836_v32 = vpop.f32.mrf.mxu2  ;;  %v5849_v33 = vpop.f32.mrf.mxu3  ;;  %v8991_v13 = vor.u32 %v10043_v27, %v8990_v26  ;;  %v8018_v26 = vld [vmem:[%s15220_s7 + $0x360] sm:$0xf]  ;;  %v9799_v27 = vld [vmem:[%s15220_s7 + $0x378] sm:$0xf0]  ;;  %v8239_v21 = vor.u32 %v9851_v14, %v8236_v2  ;;  %v5772_v38 = vadd.f32 %v14482_v0, %v5759_v23 }
 0x356   :  { %6088 = vmatpush.bf16.msrb.mxu2 %v8659_v61  ;;  %6101 = vmatpush.bf16.msrb.mxu3 %v8883_v20  ;;  %v9215_v61 = vor.u32 %v10099_v49, %v9214_v63  ;;  %v8962_v20 = vld [vmem:[%s15220_s7 + $0xac8] sm:$0xf]  ;;  %v9844_v63 = vld [vmem:[%s15220_s7 + $0x4e4] sm:$0xf]  ;;  %v8208_v49 = vld [vmem:[%s15220_s7 + $0x4fc] sm:$0xf0] }
 0x357   :  { %6010 = vmatpush.bf16.msra.mxu0 %v9103_v52  ;;  %6023 = vmatpush.bf16.msra.mxu1 %v9327_v25  ;;  %v5837_v52 = vadd.f32 %v5836_v32, %v3172_v6  ;;  %v8019_v32 = vor.u32 %v9799_v27, %v8018_v26  ;;  %v9715_v27 = vld [vmem:[%s15220_s7 + $0xd8] sm:$0xf0] }
 0x359   :  { %v5760_v25 = vpop.f32.mrf.mxu0  ;;  %v5773_v42 = vpop.f32.mrf.mxu1  ;;  %v14539_v7 = vadd.f32 %v5849_v33, %v5837_v52  ;;  %v9900_v33 = vld [vmem:[%s15220_s7 + $0x6a4] sm:$0xf] }
 0x35a   :  { %6089 = vmatpush.bf16.msrb.mxu2 %v8631_v55  ;;  %6102 = vmatpush.bf16.msrb.mxu3 %v8855_v56  ;;  %v8934_v55 = vld [vmem:[%s15220_s7 + $0xa90] sm:$0xf]  ;;  %v8963_v56 = vor.u32 %v10036_v62, %v8962_v20  ;;  %v9736_v52 = vld [vmem:[%s15220_s7 + $0x180] sm:$0xf0]  ;;  %v7990_v25 = vld [vmem:[%s15220_s7 + $0x328] sm:$0xf]  ;;  %v8435_v0 = vor.u32 %v9900_v33, %v8432_v34 }
 0x35b   :  { %6011 = vmatpush.bf16.msra.mxu0 %v9075_v48  ;;  %6024 = vmatpush.bf16.msra.mxu1 %v9299_v53  ;;  %v9921_v48 = vld [vmem:[%s15220_s7 + $0x74c] sm:$0xf]  ;;  %v8516_v53 = vld [vmem:[%s15220_s7 + $0x764] sm:$0xf0]  ;;  %v8935_v6 = vor.u32 %v10029_v11, %v8934_v55  ;;  %v9792_v42 = vld [vmem:[%s15220_s7 + $0x340] sm:$0xf0]  ;;  %v7767_v62 = vor.u32 %v9736_v52, %v7766_v3 }
 0x35c   :  { %v8519_v58 = vor.u32 %v9921_v48, %v8516_v53  ;;  %v5838_v46 = vpop.f32.mrf.mxu2  ;;  %v8180_v20 = vld [vmem:[%s15220_s7 + $0x4c4] sm:$0xf0]  ;;  %v5785_v48 = vadd.f32 %v14310_v60, %v5772_v38  ;;  %v9729_v53 = vld [vmem:[%s15220_s7 + $0x148] sm:$0xf0]  ;;  %v9872_v33 = vld [vmem:[%s15220_s7 + $0x5c4] sm:$0xf] }
 0x35d   :  { %v7739_v11 = vor.u32 %v9729_v53, %v7738_v47  ;;  %v9778_v46 = vld [vmem:[%s15220_s7 + $0x2d0] sm:$0xf0]  ;;  %v8320_v34 = vld [vmem:[%s15220_s7 + $0x5dc] sm:$0xf0]  ;;  %v7654_v3 = vld [vmem:[%s15220_s7 + $0x88] sm:$0xf] }
 0x35e   :  { %6090 = vmatpush.bf16.msrb.mxu2 %v8603_v12  ;;  %6103 = vmatpush.bf16.msrb.mxu3 %v8827_v17  ;;  %v5851_v12 = vpop.f32.mrf.mxu3  ;;  %v8712_v17 = vld [vmem:[%s15220_s7 + $0x8ec] sm:$0xf0]  ;;  %v8292_v53 = vld [vmem:[%s15220_s7 + $0x5a4] sm:$0xf0] }
 0x35f   :  { %6012 = vmatpush.bf16.msra.mxu0 %v9047_v1  ;;  %6025 = vmatpush.bf16.msra.mxu1 %v9271_v4  ;;  %v9914_v1 = vld [vmem:[%s15220_s7 + $0x714] sm:$0xf]  ;;  %v8488_v4 = vld [vmem:[%s15220_s7 + $0x72c] sm:$0xf0]  ;;  %v8715_v41 = vor.u32 %v9970_v29, %v8712_v17  ;;  %v7934_v29 = vld [vmem:[%s15220_s7 + $0x2b8] sm:$0xf] }
 0x360   :  { %v7935_v23 = vor.u32 %v9778_v46, %v7934_v29  ;;  %v7598_v29 = vld [vmem:[%s15220_s7 + $0x18] sm:$0xf]  ;;  %v9694_v46 = vld [vmem:[%s15220_s7 + $0x30] sm:$0xf0] }
 0x362   :  { %6091 = vmatpush.bf16.msrb.mxu2 %v8575_v30  ;;  %6104 = vmatpush.bf16.msrb.mxu3 %v8799_v45  ;;  %v8491_v30 = vor.u32 %v9914_v1, %v8488_v4  ;;  %v8463_v45 = vor.u32 %v9907_v18, %v8460_v19  ;;  %v5798_v1 = vadd.f32 %v14312_v31, %v5785_v48  ;;  %v9722_v4 = vld [vmem:[%s15220_s7 + $0x110] sm:$0xf0]  ;;  %v9823_v31 = vld [vmem:[%s15220_s7 + $0x43c] sm:$0xf]  ;;  %v8124_v19 = vld [vmem:[%s15220_s7 + $0x454] sm:$0xf0] }
 0x363   :  { %6013 = vmatpush.bf16.msra.mxu0 %v9019_v24  ;;  %6026 = vmatpush.bf16.msra.mxu1 %v9243_v51  ;;  %v9159_v24 = vor.u32 %v10085_v57, %v9158_v5  ;;  %v9743_v51 = vld [vmem:[%s15220_s7 + $0x1b8] sm:$0xf0]  ;;  %v7963_v5 = vor.u32 %v9785_v9, %v7962_v54  ;;  %v9886_v57 = vld [vmem:[%s15220_s7 + $0x634] sm:$0xf]  ;;  %v9865_v48 = vld [vmem:[%s15220_s7 + $0x58c] sm:$0xf] }
 0x364   :  { %v7795_v43 = vor.u32 %v9743_v51, %v7794_v22  ;;  %v7682_v51 = vld [vmem:[%s15220_s7 + $0xc0] sm:$0xf]  ;;  %v7626_v54 = vld [vmem:[%s15220_s7 + $0x50] sm:$0xf] }
 0x366   :  { %6092 = vmatpush.bf16.msrb.mxu2 %v8547_v8  ;;  %6105 = vmatpush.bf16.msrb.mxu3 %v8771_v10  ;;  %v7991_v8 = vor.u32 %v9792_v42, %v7990_v25  ;;  %v9893_v10 = vld [vmem:[%s15220_s7 + $0x66c] sm:$0xf]  ;;  %v9708_v25 = vld [vmem:[%s15220_s7 + $0xa0] sm:$0xf0]  ;;  %v7878_v42 = vld [vmem:[%s15220_s7 + $0x248] sm:$0xf] }
 0x367   :  { %6014 = vmatpush.bf16.msra.mxu0 %v8991_v13  ;;  %6027 = vmatpush.bf16.msra.mxu1 %v9215_v61  ;;  %v8211_v13 = vor.u32 %v9844_v63, %v8208_v49  ;;  %v9837_v61 = vld [vmem:[%s15220_s7 + $0x4ac] sm:$0xf]  ;;  %v8407_v55 = vor.u32 %v9893_v10, %v8404_v44  ;;  %v9816_v63 = vld [vmem:[%s15220_s7 + $0x404] sm:$0xf]  ;;  %v8096_v49 = vld [vmem:[%s15220_s7 + $0x41c] sm:$0xf0]  ;;  %v7655_v44 = vor.u32 %v9708_v25, %v7654_v3 }
 0x368   :  { %v8183_v60 = vor.u32 %v9837_v61, %v8180_v20  ;;  %v8099_v20 = vor.u32 %v9816_v63, %v8096_v49  ;;  %v8068_v10 = vld [vmem:[%s15220_s7 + $0x3e4] sm:$0xf0]  ;;  %v10068_v63 = vld [vmem:[%s15220_s7 + $0xbe4] sm:$0xf]  ;;  %v9104_v49 = vld [vmem:[%s15220_s7 + $0xbfc] sm:$0xf0] }
 0x369   :  { %v8662_v3 = vld [vmem:[%s15220_s7 + $0x868] sm:$0xf]  ;;  %v9960_v25 = vld [vmem:[%s15220_s7 + $0x880] sm:$0xf0] }
 0x36a   :  { %6093 = vmatpush.bf16.msrb.mxu2 %v8519_v58  ;;  %6106 = vmatpush.bf16.msrb.mxu3 %v8743_v59  ;;  %v8376_v58 = vld [vmem:[%s15220_s7 + $0x64c] sm:$0xf0]  ;;  %v7710_v59 = vld [vmem:[%s15220_s7 + $0xf8] sm:$0xf] }
 0x36b   :  { %6015 = vmatpush.bf16.msra.mxu0 %v8963_v56  ;;  %6028 = vmatpush.bf16.msra.mxu1 %v9187_v28  ;;  %v9830_v56 = vld [vmem:[%s15220_s7 + $0x474] sm:$0xf]  ;;  %v8152_v28 = vld [vmem:[%s15220_s7 + $0x48c] sm:$0xf0]  ;;  %v8379_v18 = vor.u32 %v9886_v57, %v8376_v58  ;;  %v7711_v22 = vor.u32 %v9722_v4, %v7710_v59 }
 0x36c   :  { %v8155_v2 = vor.u32 %v9830_v56, %v8152_v28  ;;  %v9757_v56 = vld [vmem:[%s15220_s7 + $0x228] sm:$0xf0]  ;;  %v9802_v28 = vld [vmem:[%s15220_s7 + $0x394] sm:$0xf]  ;;  %v8040_v57 = vld [vmem:[%s15220_s7 + $0x3ac] sm:$0xf0] }
 0x36d   :  { %v9858_v58 = vld [vmem:[%s15220_s7 + $0x554] sm:$0xf]  ;;  %v8264_v59 = vld [vmem:[%s15220_s7 + $0x56c] sm:$0xf0] }
 0x36e   :  { %6094 = vmatpush.bf16.msrb.mxu2 %v8491_v30  ;;  %6107 = vmatpush.bf16.msrb.mxu3 %v8715_v41  ;;  %v7906_v30 = vld [vmem:[%s15220_s7 + $0x280] sm:$0xf]  ;;  %v9771_v41 = vld [vmem:[%s15220_s7 + $0x298] sm:$0xf0] }
 0x36f   :  { %6016 = vmatpush.bf16.msra.mxu0 %v8935_v6  ;;  %6029 = vmatpush.bf16.msra.mxu1 %v9159_v24  ;;  %v9879_v6 = vld [vmem:[%s15220_s7 + $0x5fc] sm:$0xf]  ;;  %v8348_v24 = vld [vmem:[%s15220_s7 + $0x614] sm:$0xf0] }
 0x371   :  { %6095 = vmatmul.bf16.vlgmr.msrb.gmra.mxu2 %v12863_v15  ;;  %6108 = vmatmul.bf16.vlgmr.msrb.gmra.mxu3 %v12865_v16  ;;  %v5810_v12 = vpop.f32.mrf.mxu0  ;;  %v5823_v17 = vpop.f32.mrf.mxu1 }
 0x372   :  { %6139 = vmatpush.bf16.msra.mxu2 %v7795_v43  ;;  %6152 = vmatpush.bf16.msra.mxu3 %v8019_v32  ;;  %v5811_v14 = vadd.f32 %v5810_v12, %v5798_v1  ;;  %v7683_v43 = vor.u32 %v9715_v27, %v7682_v51  ;;  %v7907_v32 = vor.u32 %v9771_v41, %v7906_v30  ;;  %v7822_v12 = vld [vmem:[%s15220_s7 + $0x1d8] sm:$0xf]  ;;  %v9967_v51 = vld [vmem:[%s15220_s7 + $0x8b8] sm:$0xf0] }
 0x373   :  { %6061 = vmatpush.bf16.msrb.mxu0 %v8239_v21  ;;  %6074 = vmatpush.bf16.msrb.mxu1 %v8463_v45  ;;  %v8127_v21 = vor.u32 %v9823_v31, %v8124_v19  ;;  %v8351_v45 = vor.u32 %v9879_v6, %v8348_v24  ;;  %v9132_v31 = vld [vmem:[%s15220_s7 + $0xc34] sm:$0xf0]  ;;  %v10131_v19 = vld [vmem:[%s15220_s7 + $0xddc] sm:$0xf]  ;;  %v8043_v6 = vor.u32 %v9802_v28, %v8040_v57  ;;  %v9048_v28 = vld [vmem:[%s15220_s7 + $0xb8c] sm:$0xf0] }
 0x374   :  { %6017 = vmatmul.bf16.vlgmr.msra.gmra.mxu0 %v13203_v39  ;;  %6030 = vmatmul.bf16.vlgmr.msra.gmra.mxu1 %v13205_v40  ;;  %v5824_v26 = vadd.f32 %v5823_v17, %v5811_v14  ;;  %v14727_v38 = vpop.f32.mrf.mxu2  ;;  %v14729_v52 = vpop.f32.mrf.mxu3  ;;  %v8267_v24 = vor.u32 %v9858_v58, %v8264_v59  ;;  %v10023_v27 = vld [vmem:[%s15220_s7 + $0xa78] sm:$0xf0]  ;;  %v7599_v30 = vor.u32 %v9694_v46, %v7598_v29  ;;  %v8606_v57 = vld [vmem:[%s15220_s7 + $0x7f8] sm:$0xf]  ;;  %v9946_v58 = vld [vmem:[%s15220_s7 + $0x810] sm:$0xf0] }
 0x375   :  { %v8830_v59 = vld [vmem:[%s15220_s7 + $0x9b8] sm:$0xf] }
 0x376   :  { %6140 = vmatpush.bf16.msra.mxu2 %v7767_v62  ;;  %6153 = vmatpush.bf16.msra.mxu3 %v7991_v8  ;;  %10141 = vtanh.f32 %v5824_v26  ;;  %v8323_v62 = vor.u32 %v9872_v33, %v8320_v34  ;;  %v9809_v8 = vld [vmem:[%s15220_s7 + $0x3cc] sm:$0xf]  ;;  %v8914_v26 = vld [vmem:[%s15220_s7 + $0xa60] sm:$0xf]  ;;  %v10124_v33 = vld [vmem:[%s15220_s7 + $0xda4] sm:$0xf] }
 0x377   :  { %6062 = vmatpush.bf16.msrb.mxu0 %v8211_v13  ;;  %6075 = vmatpush.bf16.msrb.mxu1 %v8435_v0  ;;  %v9764_v13 = vld [vmem:[%s15220_s7 + $0x260] sm:$0xf0]  ;;  %v9328_v34 = vld [vmem:[%s15220_s7 + $0xdbc] sm:$0xf0] }
 0x378   :  { %v7879_v47 = vor.u32 %v9764_v13, %v7878_v42  ;;  %v8886_v42 = vld [vmem:[%s15220_s7 + $0xa28] sm:$0xf]  ;;  %v10016_v13 = vld [vmem:[%s15220_s7 + $0xa40] sm:$0xf0] }
 0x379   :  { %v5812_v0 = vpop.f32.mrf.mxu0  ;;  %v5825_v61 = vpop.f32.mrf.mxu1 }
 0x37a   :  { %6141 = vmatpush.bf16.msra.mxu2 %v7739_v11  ;;  %6154 = vmatpush.bf16.msra.mxu3 %v7963_v5  ;;  %v8071_v11 = vor.u32 %v9809_v8, %v8068_v10  ;;  %v8295_v5 = vor.u32 %v9865_v48, %v8292_v53  ;;  %v9107_v0 = vor.u32 %v10068_v63, %v9104_v49  ;;  %v8634_v48 = vld [vmem:[%s15220_s7 + $0x830] sm:$0xf]  ;;  %v9953_v53 = vld [vmem:[%s15220_s7 + $0x848] sm:$0xf0]  ;;  %v10096_v49 = vld [vmem:[%s15220_s7 + $0xcc4] sm:$0xf] }
 0x37b   :  { %6063 = vmatpush.bf16.msrb.mxu0 %v8183_v60  ;;  %6076 = vmatpush.bf16.msrb.mxu1 %v8407_v55  ;;  %v9701_v60 = vld [vmem:[%s15220_s7 + $0x68] sm:$0xf0]  ;;  %v7850_v55 = vld [vmem:[%s15220_s7 + $0x210] sm:$0xf]  ;;  %v9331_v61 = vor.u32 %v10124_v33, %v9328_v34  ;;  %v8663_v8 = vor.u32 %v9960_v25, %v8662_v3  ;;  %v8887_v10 = vor.u32 %v10016_v13, %v8886_v42  ;;  %v9932_v3 = vld [vmem:[%s15220_s7 + $0x7a0] sm:$0xf0] }
 0x37c   :  { %v10142_v9 = vpop.eup %10141  ;;  %v7627_v1 = vor.u32 %v9701_v60, %v7626_v54  ;;  %v7851_v4 = vor.u32 %v9757_v56, %v7850_v55  ;;  %v5890_v17 = vpop.f32.mrf.mxu2  ;;  %v8858_v54 = vld [vmem:[%s15220_s7 + $0x9f0] sm:$0xf]  ;;  %v10054_v56 = vld [vmem:[%s15220_s7 + $0xb74] sm:$0xf]  ;;  %v8774_v25 = vld [vmem:[%s15220_s7 + $0x948] sm:$0xf] }
 0x37d   :  { %6252 = vst [vmem:[#allocation2 + $0x10] sm:$0xff] %v10142_v9  ;;  %v5903_v14 = vpop.f32.mrf.mxu3  ;;  %v10009_v9 = vld [vmem:[%s15220_s7 + $0xa08] sm:$0xf0]  ;;  %v9051_v46 = vor.u32 %v10054_v56, %v9048_v28  ;;  %v10047_v17 = vld [vmem:[%s15220_s7 + $0xb3c] sm:$0xf] }
 0x37e   :  { %6142 = vmatpush.bf16.msra.mxu2 %v7711_v22  ;;  %6155 = vmatpush.bf16.msra.mxu3 %v7935_v23  ;;  %v9356_v22 = vld [vmem:[%s15220_s7 + $0xdf4] sm:$0xf0]  ;;  %v8690_v23 = vld [vmem:[%s15220_s7 + $0x8a0] sm:$0xf]  ;;  %v9988_v42 = vld [vmem:[%s15220_s7 + $0x960] sm:$0xf0] }
 0x37f   :  { %6064 = vmatpush.bf16.msrb.mxu0 %v8155_v2  ;;  %6077 = vmatpush.bf16.msrb.mxu1 %v8379_v18  ;;  %v9750_v2 = vld [vmem:[%s15220_s7 + $0x1f0] sm:$0xf0]  ;;  %v10075_v18 = vld [vmem:[%s15220_s7 + $0xc1c] sm:$0xf]  ;;  %v9020_v14 = vld [vmem:[%s15220_s7 + $0xb54] sm:$0xf0] }
 0x380   :  { %v7823_v41 = vor.u32 %v9750_v2, %v7822_v12  ;;  %v8607_v2 = vor.u32 %v9946_v58, %v8606_v57  ;;  %v9981_v56 = vld [vmem:[%s15220_s7 + $0x928] sm:$0xf0] }
 0x382   :  { %6143 = vmatpush.bf16.msra.mxu2 %v7683_v43  ;;  %6156 = vmatpush.bf16.msra.mxu3 %v7907_v32  ;;  %v8691_v43 = vor.u32 %v9967_v51, %v8690_v23  ;;  %v8915_v32 = vor.u32 %v10023_v27, %v8914_v26  ;;  %v9939_v23 = vld [vmem:[%s15220_s7 + $0x7d8] sm:$0xf0]  ;;  %v14919_v51 = vld [vmem:[%s15221_s8] sm:$0x7f]  ;;  %v9023_v27 = vor.u32 %v10047_v17, %v9020_v14  ;;  %v8718_v14 = vld [vmem:[%s15220_s7 + $0x8d8] sm:$0xf] }
 0x383   :  { %6065 = vmatpush.bf16.msrb.mxu0 %v8127_v21  ;;  %6078 = vmatpush.bf16.msrb.mxu1 %v8351_v45  ;;  %v9135_v21 = vor.u32 %v10075_v18, %v9132_v31  ;;  %v9359_v45 = vor.u32 %v10131_v19, %v9356_v22  ;;  %v10103_v31 = vld [vmem:[%s15220_s7 + $0xcfc] sm:$0xf]  ;;  %v9244_v19 = vld [vmem:[%s15220_s7 + $0xd14] sm:$0xf0]  ;;  %v8578_v22 = vld [vmem:[%s15220_s7 + $0x7c0] sm:$0xf] }
 0x384   :  { %v3173_v26 = vperm.slane %v14919_v51, 4 }
 0x386   :  { %6144 = vmatpush.bf16.msra.mxu2 %v7655_v44  ;;  %6157 = vmatpush.bf16.msra.mxu3 %v7879_v47  ;;  %v10117_v44 = vld [vmem:[%s15220_s7 + $0xd6c] sm:$0xf]  ;;  %v9300_v47 = vld [vmem:[%s15220_s7 + $0xd84] sm:$0xf0] }
 0x387   :  { %6066 = vmatpush.bf16.msrb.mxu0 %v8099_v20  ;;  %6079 = vmatpush.bf16.msrb.mxu1 %v8323_v62  ;;  %v10061_v20 = vld [vmem:[%s15220_s7 + $0xbac] sm:$0xf]  ;;  %v9076_v62 = vld [vmem:[%s15220_s7 + $0xbc4] sm:$0xf0]  ;;  %v9303_v55 = vor.u32 %v10117_v44, %v9300_v47 }
 0x388   :  { %v9079_v60 = vor.u32 %v10061_v20, %v9076_v62 }
 0x38a   :  { %6145 = vmatpush.bf16.msra.mxu2 %v7627_v1  ;;  %6158 = vmatpush.bf16.msra.mxu3 %v7851_v4  ;;  %v10002_v1 = vld [vmem:[%s15220_s7 + $0x9d0] sm:$0xf0] }
 0x38b   :  { %6067 = vmatpush.bf16.msrb.mxu0 %v8071_v11  ;;  %6080 = vmatpush.bf16.msrb.mxu1 %v8295_v5  ;;  %v8635_v11 = vor.u32 %v9953_v53, %v8634_v48  ;;  %v8859_v5 = vor.u32 %v10009_v9, %v8858_v54  ;;  %v8831_v18 = vor.u32 %v10002_v1, %v8830_v59  ;;  %v10089_v53 = vld [vmem:[%s15220_s7 + $0xc8c] sm:$0xf]  ;;  %v9188_v54 = vld [vmem:[%s15220_s7 + $0xca4] sm:$0xf0]  ;;  %v8522_v9 = vld [vmem:[%s15220_s7 + $0x750] sm:$0xf] }
 0x38c   :  { %v8775_v48 = vor.u32 %v9988_v42, %v8774_v25  ;;  %v9160_v59 = vld [vmem:[%s15220_s7 + $0xc6c] sm:$0xf0]  ;;  %v8494_v1 = vld [vmem:[%s15220_s7 + $0x718] sm:$0xf] }
 0x38e   :  { %6146 = vmatpush.bf16.msra.mxu2 %v7599_v30  ;;  %6159 = vmatpush.bf16.msra.mxu3 %v7823_v41  ;;  %v9247_v30 = vor.u32 %v10103_v31, %v9244_v19  ;;  %v10040_v41 = vld [vmem:[%s15220_s7 + $0xb04] sm:$0xf]  ;;  %v9855_v31 = vld [vmem:[%s15220_s7 + $0x538] sm:$0xf0]  ;;  %v8466_v19 = vld [vmem:[%s15220_s7 + $0x6e0] sm:$0xf] }
 0x38f   :  { %6068 = vmatpush.bf16.msrb.mxu0 %v8043_v6  ;;  %6081 = vmatpush.bf16.msrb.mxu1 %v8267_v24  ;;  %v8802_v6 = vld [vmem:[%s15220_s7 + $0x980] sm:$0xf]  ;;  %v9995_v24 = vld [vmem:[%s15220_s7 + $0x998] sm:$0xf0] }
 0x390   :  { %v8803_v63 = vor.u32 %v9995_v24, %v8802_v6 }
 0x391   :  { %6147 = vmatmul.bf16.vlgmr.msra.gmra.mxu2 %v12486_v50  ;;  %6160 = vmatmul.bf16.vlgmr.msra.gmra.mxu3 %v12488_v37  ;;  %v10110_v50 = vld [vmem:[%s15220_s7 + $0xd34] sm:$0xf]  ;;  %v9272_v37 = vld [vmem:[%s15220_s7 + $0xd4c] sm:$0xf0]  ;;  %v14888_v4 = vpop.f32.mrf.mxu0  ;;  %v14890_v29 = vpop.f32.mrf.mxu1 }
 0x392   :  { %6191 = vmatpush.bf16.msrb.mxu2 %v8691_v43  ;;  %6204 = vmatpush.bf16.msrb.mxu3 %v8915_v32  ;;  %v9275_v12 = vor.u32 %v10110_v50, %v9272_v37  ;;  %v9216_v43 = vld [vmem:[%s15220_s7 + $0xcdc] sm:$0xf0]  ;;  %v8550_v32 = vld [vmem:[%s15220_s7 + $0x788] sm:$0xf]  ;;  %v8936_v50 = vld [vmem:[%s15220_s7 + $0xaac] sm:$0xf0] }
 0x393   :  { %6113 = vmatpush.bf16.msra.mxu0 %v9135_v21  ;;  %6126 = vmatpush.bf16.msra.mxu1 %v9359_v45  ;;  %v8992_v21 = vld [vmem:[%s15220_s7 + $0xb1c] sm:$0xf0]  ;;  %v8579_v45 = vor.u32 %v9939_v23, %v8578_v22  ;;  %v9219_v62 = vor.u32 %v10096_v49, %v9216_v43  ;;  %v8551_v47 = vor.u32 %v9932_v3, %v8550_v32  ;;  %v10082_v37 = vld [vmem:[%s15220_s7 + $0xc54] sm:$0xf]  ;;  %v9911_v22 = vld [vmem:[%s15220_s7 + $0x6f8] sm:$0xf0] }
 0x394   :  { %6069 = vmatmul.bf16.vlgmr.msrb.gmra.mxu0 %v12592_v35  ;;  %6082 = vmatmul.bf16.vlgmr.msrb.gmra.mxu1 %v12594_v36  ;;  %v5940_v33 = vpop.f32.mrf.mxu2  ;;  %v5953_v34 = vpop.f32.mrf.mxu3  ;;  %v8995_v20 = vor.u32 %v10040_v41, %v8992_v21  ;;  %v5863_v23 = vadd.f32 %v14888_v4, %v14539_v7  ;;  %v9163_v24 = vor.u32 %v10082_v37, %v9160_v59  ;;  %v8214_v21 = vld [vmem:[%s15220_s7 + $0x4e8] sm:$0xf]  ;;  %v9904_v4 = vld [vmem:[%s15220_s7 + $0x6c0] sm:$0xf0]  ;;  %v8186_v32 = vld [vmem:[%s15220_s7 + $0x4b0] sm:$0xf] }
 0x395   :  { %v5941_v13 = vadd.f32 %v5940_v33, %v3173_v26  ;;  %v8467_v41 = vor.u32 %v9911_v22, %v8466_v19  ;;  %v8438_v7 = vld [vmem:[%s15220_s7 + $0x6a8] sm:$0xf]  ;;  %v8410_v33 = vld [vmem:[%s15220_s7 + $0x670] sm:$0xf]  ;;  %v9806_v19 = vld [vmem:[%s15220_s7 + $0x3b0] sm:$0xf0] }
 0x396   :  { %6192 = vmatpush.bf16.msrb.mxu2 %v8663_v8  ;;  %6205 = vmatpush.bf16.msrb.mxu3 %v8887_v10  ;;  %v10033_v8 = vld [vmem:[%s15220_s7 + $0xacc] sm:$0xf]  ;;  %v8964_v10 = vld [vmem:[%s15220_s7 + $0xae4] sm:$0xf0]  ;;  %v8439_v43 = vor.u32 %v9904_v4, %v8438_v7  ;;  %v8270_v22 = vld [vmem:[%s15220_s7 + $0x558] sm:$0xf] }
 0x397   :  { %6114 = vmatpush.bf16.msra.mxu0 %v9107_v0  ;;  %6127 = vmatpush.bf16.msra.mxu1 %v9331_v61  ;;  %v14952_v44 = vadd.f32 %v5953_v34, %v5941_v13  ;;  %v8967_v28 = vor.u32 %v10033_v8, %v8964_v10  ;;  %v9897_v34 = vld [vmem:[%s15220_s7 + $0x688] sm:$0xf0]  ;;  %v8158_v13 = vld [vmem:[%s15220_s7 + $0x478] sm:$0xf] }
 0x398   :  { %v8411_v42 = vor.u32 %v9897_v34, %v8410_v33  ;;  %v9082_v34 = vld [vmem:[%s15220_s7 + $0xbb0] sm:$0xf] }
 0x399   :  { %v5864_v0 = vpop.f32.mrf.mxu0  ;;  %v5877_v61 = vpop.f32.mrf.mxu1 }
 0x39a   :  { %6193 = vmatpush.bf16.msrb.mxu2 %v8635_v11  ;;  %6206 = vmatpush.bf16.msrb.mxu3 %v8859_v5  ;;  %v9191_v11 = vor.u32 %v10089_v53, %v9188_v54  ;;  %v10026_v5 = vld [vmem:[%s15220_s7 + $0xa94] sm:$0xf]  ;;  %v8354_v53 = vld [vmem:[%s15220_s7 + $0x600] sm:$0xf] }
 0x39b   :  { %6115 = vmatpush.bf16.msra.mxu0 %v9079_v60  ;;  %6128 = vmatpush.bf16.msra.mxu1 %v9303_v55  ;;  %v9925_v60 = vld [vmem:[%s15220_s7 + $0x768] sm:$0xf0]  ;;  %v8746_v55 = vld [vmem:[%s15220_s7 + $0x910] sm:$0xf]  ;;  %v8939_v6 = vor.u32 %v10026_v5, %v8936_v50  ;;  %v9834_v0 = vld [vmem:[%s15220_s7 + $0x490] sm:$0xf0] }
 0x39c   :  { %v8523_v57 = vor.u32 %v9925_v60, %v8522_v9  ;;  %v8747_v58 = vor.u32 %v9981_v56, %v8746_v55  ;;  %v5955_v17 = vpop.f32.mrf.mxu3  ;;  %v8159_v8 = vor.u32 %v9834_v0, %v8158_v13  ;;  %v8102_v55 = vld [vmem:[%s15220_s7 + $0x408] sm:$0xf]  ;;  %v9820_v56 = vld [vmem:[%s15220_s7 + $0x420] sm:$0xf0] }
 0x39d   :  { %v9869_v17 = vld [vmem:[%s15220_s7 + $0x5a8] sm:$0xf0] }
 0x39e   :  { %6194 = vmatpush.bf16.msrb.mxu2 %v8607_v2  ;;  %6207 = vmatpush.bf16.msrb.mxu3 %v8831_v18  ;;  %v9974_v2 = vld [vmem:[%s15220_s7 + $0x8f0] sm:$0xf0]  ;;  %v8242_v18 = vld [vmem:[%s15220_s7 + $0x520] sm:$0xf] }
 0x39f   :  { %6116 = vmatpush.bf16.msra.mxu0 %v9051_v46  ;;  %6129 = vmatpush.bf16.msra.mxu1 %v9275_v12  ;;  %v9918_v46 = vld [vmem:[%s15220_s7 + $0x730] sm:$0xf0]  ;;  %v5942_v12 = vpop.f32.mrf.mxu2 }
 0x3a0   :  { %v8495_v26 = vor.u32 %v9918_v46, %v8494_v1  ;;  %v8074_v1 = vld [vmem:[%s15220_s7 + $0x3d0] sm:$0xf]  ;;  %v9813_v46 = vld [vmem:[%s15220_s7 + $0x3e8] sm:$0xf0] }
 0x3a1   :  { %v8298_v12 = vld [vmem:[%s15220_s7 + $0x590] sm:$0xf] }
 0x3a2   :  { %6195 = vmatpush.bf16.msrb.mxu2 %v8579_v45  ;;  %6208 = vmatpush.bf16.msrb.mxu3 %v8803_v63  ;;  %v9848_v45 = vld [vmem:[%s15220_s7 + $0x500] sm:$0xf0]  ;;  %v5876_v63 = vadd.f32 %v14890_v29, %v5863_v23  ;;  %v9841_v29 = vld [vmem:[%s15220_s7 + $0x4c8] sm:$0xf0]  ;;  %v9862_v23 = vld [vmem:[%s15220_s7 + $0x570] sm:$0xf0] }
 0x3a3   :  { %6117 = vmatpush.bf16.msra.mxu0 %v9023_v27  ;;  %6130 = vmatpush.bf16.msra.mxu1 %v9247_v30  ;;  %v8719_v27 = vor.u32 %v9974_v2, %v8718_v14  ;;  %v8243_v30 = vor.u32 %v9855_v31, %v8242_v18  ;;  %v8215_v49 = vor.u32 %v9848_v45, %v8214_v21  ;;  %v8046_v31 = vld [vmem:[%s15220_s7 + $0x398] sm:$0xf] }
 0x3a4   :  { %v5889_v3 = vadd.f32 %v14727_v38, %v5876_v63  ;;  %v8187_v25 = vor.u32 %v9841_v29, %v8186_v32  ;;  %v8382_v38 = vld [vmem:[%s15220_s7 + $0x638] sm:$0xf]  ;;  %v8075_v2 = vor.u32 %v9813_v46, %v8074_v1  ;;  %v8299_v18 = vor.u32 %v9869_v17, %v8298_v12  ;;  %v9110_v63 = vld [vmem:[%s15220_s7 + $0xbe8] sm:$0xf]  ;;  %v10128_v32 = vld [vmem:[%s15220_s7 + $0xdc0] sm:$0xf0] }
 0x3a5   :  { %v8047_v21 = vor.u32 %v9806_v19, %v8046_v31  ;;  %v8271_v45 = vor.u32 %v9862_v23, %v8270_v22  ;;  %v8970_v46 = vld [vmem:[%s15220_s7 + $0xad0] sm:$0xf]  ;;  %v10037_v12 = vld [vmem:[%s15220_s7 + $0xae8] sm:$0xf0]  ;;  %v8942_v19 = vld [vmem:[%s15220_s7 + $0xa98] sm:$0xf] }
 0x3a6   :  { %6196 = vmatpush.bf16.msrb.mxu2 %v8551_v47  ;;  %6209 = vmatpush.bf16.msrb.mxu3 %v8775_v48  ;;  %v8130_v47 = vld [vmem:[%s15220_s7 + $0x440] sm:$0xf]  ;;  %v9827_v48 = vld [vmem:[%s15220_s7 + $0x458] sm:$0xf0]  ;;  %v9194_v17 = vld [vmem:[%s15220_s7 + $0xc90] sm:$0xf] }
 0x3a7   :  { %6118 = vmatpush.bf16.msra.mxu0 %v8995_v20  ;;  %6131 = vmatpush.bf16.msra.mxu1 %v9219_v62  ;;  %v8131_v9 = vor.u32 %v9827_v48, %v8130_v47  ;;  %v9250_v47 = vld [vmem:[%s15220_s7 + $0xd00] sm:$0xf]  ;;  %v10107_v48 = vld [vmem:[%s15220_s7 + $0xd18] sm:$0xf0]  ;;  %v10030_v22 = vld [vmem:[%s15220_s7 + $0xab0] sm:$0xf0] }
 0x3a8   :  { %v9166_v23 = vld [vmem:[%s15220_s7 + $0xc58] sm:$0xf] }
 0x3aa   :  { %6197 = vmatpush.bf16.msrb.mxu2 %v8523_v57  ;;  %6210 = vmatpush.bf16.msrb.mxu3 %v8747_v58  ;;  %v8103_v58 = vor.u32 %v9820_v56, %v8102_v55  ;;  %v9222_v55 = vld [vmem:[%s15220_s7 + $0xcc8] sm:$0xf]  ;;  %v10100_v56 = vld [vmem:[%s15220_s7 + $0xce0] sm:$0xf0] }
 0x3ab   :  { %6119 = vmatpush.bf16.msra.mxu0 %v8967_v28  ;;  %6132 = vmatpush.bf16.msra.mxu1 %v9191_v11  ;;  %v8326_v28 = vld [vmem:[%s15220_s7 + $0x5c8] sm:$0xf]  ;;  %v9876_v11 = vld [vmem:[%s15220_s7 + $0x5e0] sm:$0xf0]  ;;  %v9223_v1 = vor.u32 %v10100_v56, %v9222_v55 }
 0x3ac   :  { %v8327_v59 = vor.u32 %v9876_v11, %v8326_v28 }
 0x3ae   :  { %6198 = vmatpush.bf16.msrb.mxu2 %v8495_v26  ;;  %6211 = vmatpush.bf16.msrb.mxu3 %v8719_v27  ;;  %v10079_v27 = vld [vmem:[%s15220_s7 + $0xc38] sm:$0xf0] }
 0x3af   :  { %6120 = vmatpush.bf16.msra.mxu0 %v8939_v6  ;;  %6133 = vmatpush.bf16.msra.mxu1 %v9163_v24  ;;  %v9138_v6 = vld [vmem:[%s15220_s7 + $0xc20] sm:$0xf] }
 0x3b0   :  { %v9139_v7 = vor.u32 %v10079_v27, %v9138_v6  ;;  %v10086_v6 = vld [vmem:[%s15220_s7 + $0xc70] sm:$0xf0]  ;;  %v8943_v27 = vor.u32 %v10030_v22, %v8942_v19 }
 0x3b1   :  { %6199 = vmatmul.bf16.vlgmr.msrb.gmra.mxu2 %v12863_v15  ;;  %6212 = vmatmul.bf16.vlgmr.msrb.gmra.mxu3 %v12865_v16  ;;  %v9890_v15 = vld [vmem:[%s15220_s7 + $0x650] sm:$0xf0]  ;;  %v5902_v16 = vadd.f32 %v14729_v52, %v5889_v3  ;;  %v5914_v61 = vpop.f32.mrf.mxu0  ;;  %v5927_v20 = vpop.f32.mrf.mxu1  ;;  %v9883_v52 = vld [vmem:[%s15220_s7 + $0x618] sm:$0xf0]  ;;  %v10065_v3 = vld [vmem:[%s15220_s7 + $0xbc8] sm:$0xf0] }
 0x3b2   :  { %6121 = vmatmul.bf16.vlgmr.msra.gmra.mxu0 %v13203_v39  ;;  %6134 = vmatmul.bf16.vlgmr.msra.gmra.mxu1 %v13205_v40  ;;  %v8383_v10 = vor.u32 %v9890_v15, %v8382_v38  ;;  %v8355_v60 = vor.u32 %v9883_v52, %v8354_v53  ;;  %v9083_v13 = vor.u32 %v10065_v3, %v9082_v34  ;;  %v9054_v38 = vld [vmem:[%s15220_s7 + $0xb78] sm:$0xf]  ;;  %v10058_v15 = vld [vmem:[%s15220_s7 + $0xb90] sm:$0xf0] }
 0x3b3   :  { %6165 = vmatpush.bf16.msrb.mxu0 %v8243_v30  ;;  %6178 = vmatpush.bf16.msrb.mxu1 %v8467_v41  ;;  %v5915_v62 = vadd.f32 %v5914_v61, %v5902_v16  ;;  %v9362_v30 = vld [vmem:[%s15220_s7 + $0xde0] sm:$0xf]  ;;  %v10135_v41 = vld [vmem:[%s15220_s7 + $0xdf8] sm:$0xf0]  ;;  %v9278_v16 = vld [vmem:[%s15220_s7 + $0xd38] sm:$0xf]  ;;  %v9251_v52 = vor.u32 %v10107_v48, %v9250_v47 }
 0x3b4   :  { %v15077_v5 = vpop.f32.mrf.mxu2  ;;  %v15079_v50 = vpop.f32.mrf.mxu3  ;;  %v9363_v4 = vor.u32 %v10135_v41, %v9362_v30  ;;  %v9167_v30 = vor.u32 %v10086_v6, %v9166_v23 }
 0x3b5   :  { %v5928_v54 = vadd.f32 %v5927_v20, %v5915_v62  ;;  %v9055_v20 = vor.u32 %v10058_v15, %v9054_v38 }
 0x3b7   :  { %6166 = vmatpush.bf16.msrb.mxu0 %v8215_v49  ;;  %6179 = vmatpush.bf16.msrb.mxu1 %v8439_v43  ;;  %10143 = vtanh.f32 %v5928_v54  ;;  %v10072_v49 = vld [vmem:[%s15220_s7 + $0xc00] sm:$0xf0]  ;;  %v9334_v43 = vld [vmem:[%s15220_s7 + $0xda8] sm:$0xf]  ;;  %v3174_v54 = vperm.slane %v14919_v51, 5 }
 0x3b8   :  { %v9111_v29 = vor.u32 %v10072_v49, %v9110_v63  ;;  %v9335_v33 = vor.u32 %v10128_v32, %v9334_v43 }
 0x3b9   :  { %v5916_v37 = vpop.f32.mrf.mxu0  ;;  %v5929_v57 = vpop.f32.mrf.mxu1 }
 0x3bb   :  { %6167 = vmatpush.bf16.msrb.mxu0 %v8187_v25  ;;  %6180 = vmatpush.bf16.msrb.mxu1 %v8411_v42  ;;  %v9306_v25 = vld [vmem:[%s15220_s7 + $0xd70] sm:$0xf]  ;;  %v10121_v42 = vld [vmem:[%s15220_s7 + $0xd88] sm:$0xf0] }
 0x3bc   :  { %v5994_v24 = vpop.f32.mrf.mxu2  ;;  %v6007_v26 = vpop.f32.mrf.mxu3  ;;  %v9307_v0 = vor.u32 %v10121_v42, %v9306_v25 }
 0x3bd   :  { %v10144_v14 = vpop.eup %10143 }
 0x3be   :  { %6253 = vst [vmem:[#allocation2 + $0x18] sm:$0xff] %v10144_v14  ;;  %v10093_v14 = vld [vmem:[%s15220_s7 + $0xca8] sm:$0xf0] }
 0x3bf   :  { %6168 = vmatpush.bf16.msrb.mxu0 %v8159_v8  ;;  %6181 = vmatpush.bf16.msrb.mxu1 %v8383_v10  ;;  %v9026_v8 = vld [vmem:[%s15220_s7 + $0xb40] sm:$0xf]  ;;  %v10051_v10 = vld [vmem:[%s15220_s7 + $0xb58] sm:$0xf0]  ;;  %v9195_v31 = vor.u32 %v10093_v14, %v9194_v17 }
 0x3c0   :  { %v9027_v53 = vor.u32 %v10051_v10, %v9026_v8 }
 0x3c3   :  { %6169 = vmatpush.bf16.msrb.mxu0 %v8131_v9  ;;  %6182 = vmatpush.bf16.msrb.mxu1 %v8355_v60  ;;  %v8998_v9 = vld [vmem:[%s15220_s7 + $0xb08] sm:$0xf]  ;;  %v10044_v60 = vld [vmem:[%s15220_s7 + $0xb20] sm:$0xf0] }
 0x3c7   :  { %6170 = vmatpush.bf16.msrb.mxu0 %v8103_v58  ;;  %6183 = vmatpush.bf16.msrb.mxu1 %v8327_v59  ;;  %v8999_v59 = vor.u32 %v10044_v60, %v8998_v9 }
 0x3cb   :  { %6171 = vmatpush.bf16.msrb.mxu0 %v8075_v2  ;;  %6184 = vmatpush.bf16.msrb.mxu1 %v8299_v18  ;;  %v8971_v18 = vor.u32 %v10037_v12, %v8970_v46 }
 0x3cf   :  { %6172 = vmatpush.bf16.msrb.mxu0 %v8047_v21  ;;  %6185 = vmatpush.bf16.msrb.mxu1 %v8271_v45 }
 0x3d1   :  { %v5979_v61 = vpop.f32.mrf.mxu1 }
 0x3d2   :  { %6173 = vmatmul.bf16.vlgmr.msrb.gmra.mxu0 %v12592_v35  ;;  %6186 = vmatmul.bf16.vlgmr.msrb.gmra.mxu1 %v12594_v36  ;;  %v10114_v35 = vld [vmem:[%s15220_s7 + $0xd50] sm:$0xf0]  ;;  %v5966_v36 = vpop.f32.mrf.mxu0  ;;  %s10180_s7 = smov [#allocation2]  }
 0x3d3   :  { %6217 = vmatpush.bf16.msra.mxu0 %v9139_v7  ;;  %6230 = vmatpush.bf16.msra.mxu1 %v9363_v4  ;;  %v9279_v62 = vor.u32 %v10114_v35, %v9278_v16  ;;  %v5967_v41 = vadd.f32 %v5966_v36, %v14952_v44  ;;  %s6263_s2 = sshll.u32 %s10180_s7, 4  ;;  %s6264_s2 = int_to_ptr.vmem [resolvable:$true] %s6263_s2 }
 0x3d4   :  { %v6044_v28 = vpop.f32.mrf.mxu2  ;;  %v6057_v11 = vpop.f32.mrf.mxu3 }
 0x3d5   :  { %v6045_v37 = vadd.f32 %v6044_v28, %v3174_v54  ;;  %v5980_v21 = vadd.f32 %v5979_v61, %v5967_v41 }
 0x3d7   :  { %6218 = vmatpush.bf16.msra.mxu0 %v9111_v29  ;;  %6231 = vmatpush.bf16.msra.mxu1 %v9335_v33  ;;  %v6058_v2 = vadd.f32 %v6057_v11, %v6045_v37  ;;  %v5993_v45 = vadd.f32 %v15077_v5, %v5980_v21 }
 0x3d9   :  { %v5981_v58 = vpop.f32.mrf.mxu1  ;;  %v6006_v7 = vadd.f32 %v15079_v50, %v5993_v45 }
 0x3da   :  { %v5968_v57 = vpop.f32.mrf.mxu0 }
 0x3db   :  { %6219 = vmatpush.bf16.msra.mxu0 %v9083_v13  ;;  %6232 = vmatpush.bf16.msra.mxu1 %v9307_v0 }
 0x3dc   :  { %v6046_v24 = vpop.f32.mrf.mxu2  ;;  %v6059_v26 = vpop.f32.mrf.mxu3 }
 0x3df   :  { %6220 = vmatpush.bf16.msra.mxu0 %v9055_v20  ;;  %6233 = vmatpush.bf16.msra.mxu1 %v9279_v62 }
 0x3e3   :  { %6221 = vmatpush.bf16.msra.mxu0 %v9027_v53  ;;  %6234 = vmatpush.bf16.msra.mxu1 %v9251_v52 }
 0x3e7   :  { %6222 = vmatpush.bf16.msra.mxu0 %v8999_v59  ;;  %6235 = vmatpush.bf16.msra.mxu1 %v9223_v1 }
 0x3eb   :  { %6223 = vmatpush.bf16.msra.mxu0 %v8971_v18  ;;  %6236 = vmatpush.bf16.msra.mxu1 %v9195_v31 }
 0x3ef   :  { %6224 = vmatpush.bf16.msra.mxu0 %v8943_v27  ;;  %6237 = vmatpush.bf16.msra.mxu1 %v9167_v30 }
 0x3f1   :  { %v6018_v4 = vpop.f32.mrf.mxu0  ;;  %v6031_v63 = vpop.f32.mrf.mxu1 }
 0x3f2   :  { %6225 = vmatmul.bf16.vlgmr.msra.gmra.mxu0 %v13203_v39  ;;  %6238 = vmatmul.bf16.vlgmr.msra.gmra.mxu1 %v13205_v40  ;;  %v6019_v49 = vadd.f32 %v6018_v4, %v6006_v7  ;;  %v3175_v40 = vperm.slane %v14919_v51, 6 }
 0x3f4   :  { %v6032_v43 = vadd.f32 %v6031_v63, %v6019_v49  ;;  %v6096_v32 = vpop.f32.mrf.mxu2  ;;  %v6109_v29 = vpop.f32.mrf.mxu3 }
 0x3f6   :  { %10145 = vtanh.f32 %v6032_v43 }
 0x3f9   :  { %v6020_v33 = vpop.f32.mrf.mxu0  ;;  %v6033_v44 = vpop.f32.mrf.mxu1 }
 0x3fc   :  { %v10146_v34 = vpop.eup %10145  ;;  %v6098_v3 = vpop.f32.mrf.mxu2 }
 0x3fd   :  { %6254 = vst [vmem:[#allocation2 + $0x20] sm:$0xff] %v10146_v34  ;;  %v6111_v25 = vpop.f32.mrf.mxu3 }
 0x411   :  { %v6070_v39 = vpop.f32.mrf.mxu0  ;;  %v6083_v42 = vpop.f32.mrf.mxu1 }
 0x412   :  { %v6071_v36 = vadd.f32 %v6070_v39, %v6058_v2 }
 0x414   :  { %v6148_v5 = vpop.f32.mrf.mxu2  ;;  %v6161_v13 = vpop.f32.mrf.mxu3  ;;  %v6084_v61 = vadd.f32 %v6083_v42, %v6071_v36 }
 0x415   :  { %v6149_v50 = vadd.f32 %v6148_v5, %v3175_v40 }
 0x416   :  { %v6097_v20 = vadd.f32 %v6096_v32, %v6084_v61 }
 0x417   :  { %v6162_v15 = vadd.f32 %v6161_v13, %v6149_v50 }
 0x418   :  { %v6110_v62 = vadd.f32 %v6109_v29, %v6097_v20 }
 0x419   :  { %v6072_v0 = vpop.f32.mrf.mxu0  ;;  %v6085_v38 = vpop.f32.mrf.mxu1 }
 0x41c   :  { %v6150_v16 = vpop.f32.mrf.mxu2  ;;  %v6163_v35 = vpop.f32.mrf.mxu3 }
 0x42f   :  { %v6122_v8 = vpop.f32.mrf.mxu0  ;;  %v6135_v10 = vpop.f32.mrf.mxu1 }
 0x430   :  { %v6123_v47 = vadd.f32 %v6122_v8, %v6110_v62 }
 0x432   :  { %v6136_v48 = vadd.f32 %v6135_v10, %v6123_v47 }
 0x434   :  { %10147 = vtanh.f32 %v6136_v48  ;;  %v6200_v53 = vpop.f32.mrf.mxu2  ;;  %v6213_v52 = vpop.f32.mrf.mxu3 }
 0x437   :  { %v6124_v51 = vpop.f32.mrf.mxu0  ;;  %v6137_v54 = vpop.f32.mrf.mxu1 }
 0x43a   :  { %v10148_v9 = vpop.eup %10147 }
 0x43b   :  { %6255 = vst [vmem:[#allocation2 + $0x28] sm:$0xff] %v10148_v9 }
 0x43c   :  { %v6202_v60 = vpop.f32.mrf.mxu2  ;;  %v6215_v55 = vpop.f32.mrf.mxu3 }
 0x44f   :  { %v6174_v56 = vpop.f32.mrf.mxu0  ;;  %v6187_v28 = vpop.f32.mrf.mxu1 }
 0x450   :  { %v6175_v57 = vadd.f32 %v6174_v56, %v6162_v15 }
 0x452   :  { %v6188_v58 = vadd.f32 %v6187_v28, %v6175_v57 }
 0x454   :  { %v6201_v59 = vadd.f32 %v6200_v53, %v6188_v58 }
 0x456   :  { %v6214_v1 = vadd.f32 %v6213_v52, %v6201_v59 }
 0x457   :  { %v6176_v11 = vpop.f32.mrf.mxu0  ;;  %v6189_v37 = vpop.f32.mrf.mxu1 }
 0x46f   :  { %v6226_v46 = vpop.f32.mrf.mxu0  ;;  %v6239_v12 = vpop.f32.mrf.mxu1 }
 0x470   :  { %v6227_v17 = vadd.f32 %v6226_v46, %v6214_v1 }
 0x472   :  { %v6240_v14 = vadd.f32 %v6239_v12, %v6227_v17 }
 0x474   :  { %10149 = vtanh.f32 %v6240_v14 }
 0x477   :  { %v6228_v2 = vpop.f32.mrf.mxu0  ;;  %v6241_v18 = vpop.f32.mrf.mxu1 }
 0x47a   :  { %v10150_v31 = vpop.eup %10149 }
 0x47b   :  { %6257 = vst.msk [vmem:[#allocation2 + $0x30] sm:$0xff] %vm6256_vm6, %v10150_v31 }
 0x47c   :  { %6268 = dma.vmem_to_hbm [thread:$0]  %s6264_s2, 896, %s6266_s4, [#allocation3]  }
 0x47d   :  { %10178 = dma.done.wait [#allocation3], 896  }
 0x47e   :  { %10179 = vsyncadd [#allocation3], 4294966400 }
 0x47f   :  { %6273 = vsyncpa [#allocation3], 1 }

</bundles_post_ra>
